<compile_context>
chip_gen: v7x
topology: tpu7x:2x2x1
jax: 0.10.0
libtpu: 0.0.40
codegen_flags: <defaults>
</compile_context>

<pallas_src>
import functools

import jax
import jax.numpy as jnp
from jax.experimental import pallas as pl
from jax.experimental.pallas import tpu as pltpu

EPS = 1e-5
LANE = 128


def _round_up(x, m):
    return (x + m - 1) // m * m


def _bottleneck_kernel(x_ref, w1_ref, g1_ref, b1_ref,
                       w2_ref, g2_ref, b2_ref,
                       w3_ref, g3_ref, b3_ref,
                       out_ref, col_ref):
    N, H, W, C = x_ref.shape           # C = padded inplanes (= 4*planes, padded)
    P = w1_ref.shape[1]                # padded planes
    NHW = N * H * W
    inv_n = jnp.float32(1.0 / NHW)

    def bn_scale_bias(h, g_ref, b_ref):
        # Single-pass batch stats (biased variance) folded into (scale, bias).
        m = jnp.sum(h, axis=0, keepdims=True) * inv_n
        ex2 = jnp.sum(h * h, axis=0, keepdims=True) * inv_n
        var = ex2 - m * m
        scale = g_ref[...] * jax.lax.rsqrt(var + EPS)
        bias = b_ref[...] - scale * m
        return scale, bias

    # ---- conv1: 1x1 convolution == channel matmul (bf16 MXU, f32 accumulate) ----
    x2 = x_ref[...].reshape(NHW, C)                                      # bf16
    h1 = jnp.dot(x2, w1_ref[...], preferred_element_type=jnp.float32)    # (NHW, P)
    s1, c1 = bn_scale_bias(h1, g1_ref, b1_ref)
    h1 = jnp.maximum(h1 * s1 + c1, 0.0).astype(jnp.bfloat16)             # BN1 + ReLU
    h1 = h1.reshape(N, H, W, P)

    # ---- conv2: 3x3, stride 1, pad 1 — im2col scatter + ONE big MXU matmul ----
    # Scatter the shifted activation directly into the im2col buffer; only the
    # thin out-of-image strips of each tap slab are zeroed (no full padded
    # buffer, no double store of the interior). Zero strips built once.
    zrow = jnp.zeros((N, 1, W, P), jnp.bfloat16)
    zcol = jnp.zeros((N, H, 1, P), jnp.bfloat16)
    for kh in range(3):
        dh = kh - 1
        hd0, hd1 = max(0, -dh), H - max(0, dh)        # destination rows
        hs0, hs1 = max(0, dh), H - max(0, -dh)        # source rows
        for kw in range(3):
            dw = kw - 1
            wd0, wd1 = max(0, -dw), W - max(0, dw)    # destination cols
            ws0, ws1 = max(0, dw), W - max(0, -dw)    # source cols
            lo = (kh * 3 + kw) * P                    # lane offset (multiple of 128)
            col_ref[:, hd0:hd1, wd0:wd1, lo:lo + P] = h1[:, hs0:hs1, ws0:ws1, :]
            if dh != 0:
                zr = 0 if dh < 0 else H - 1
                col_ref[:, zr:zr + 1, :, lo:lo + P] = zrow
            if dw != 0:
                zc = 0 if dw < 0 else W - 1
                col_ref[:, :, zc:zc + 1, lo:lo + P] = zcol

    h2 = jnp.dot(col_ref[...].reshape(NHW, 9 * P), w2_ref[...],
                 preferred_element_type=jnp.float32)                     # (NHW, P)
    s2, c2 = bn_scale_bias(h2, g2_ref, b2_ref)
    h2 = jnp.maximum(h2 * s2 + c2, 0.0).astype(jnp.bfloat16)             # BN2 + ReLU

    # ---- conv3: 1x1 to expansion*planes; BN3 + residual + final ReLU fused ----
    h3 = jnp.dot(h2, w3_ref[...], preferred_element_type=jnp.float32)    # (NHW, C)
    s3, c3 = bn_scale_bias(h3, g3_ref, b3_ref)
    identity = x_ref[...].reshape(NHW, C).astype(jnp.float32)            # re-read
    out = jnp.maximum(h3 * s3 + c3 + identity, 0.0)
    out_ref[...] = out.reshape(N, H, W, C).astype(out_ref.dtype)


def bottleneck_forward(x, params, bit=32, *, data_format="NHWC"):
    """Pallas forward of Bottleneck.forward(x, bit) on the FP (bit=32) path.

    x: (N, H, W, Cin) for data_format="NHWC" (preferred, no transposes), or
       (N, Cin, H, W) for data_format="NCHW" (PyTorch convention).
    Returns (out, bit); out has the same data_format, dtype bfloat16.
    """
    if data_format == "NCHW":
        x = jnp.transpose(x, (0, 2, 3, 1))
    elif data_format != "NHWC":
        raise ValueError(f"unknown data_format {data_format}")

    N, H, W, Cin = x.shape
    Cin_w, P = params["w1"].shape
    assert Cin_w == Cin
    assert params["w2"].shape[0] == 9
    assert params["w3"].shape[1] == Cin, "residual add requires inplanes == planes*expansion"

    # Pad channels to the lane width (exact: padded channels stay zero throughout).
    Pp = _round_up(P, LANE)
    Cp = _round_up(Cin, LANE)
    bf16, f32 = jnp.bfloat16, jnp.float32

    xp = jnp.pad(x.astype(bf16), ((0, 0), (0, 0), (0, 0), (0, Cp - Cin)))

    w1 = jnp.pad(params["w1"], ((0, Cp - Cin), (0, Pp - P))).astype(bf16)
    w2 = jnp.pad(params["w2"], ((0, 0), (0, Pp - P), (0, Pp - P)))
    w2 = w2.reshape(9 * Pp, Pp).astype(bf16)            # tap-major contraction layout
    w3 = jnp.pad(params["w3"], ((0, Pp - P), (0, Cp - Cin))).astype(bf16)

    pad_vec = lambda v, n: jnp.pad(v.astype(f32), ((0, 0), (0, n - v.shape[1])))
    g1, b1 = pad_vec(params["g1"], Pp), pad_vec(params["b1"], Pp)
    g2, b2 = pad_vec(params["g2"], Pp), pad_vec(params["b2"], Pp)
    g3, b3 = pad_vec(params["g3"], Cp), pad_vec(params["b3"], Cp)

    # Scoped-VMEM budget sized to the actual resident buffers (+ headroom).
    act = N * H * W
    est = 2 * (2 * act * Cp + act * 9 * Pp              # x, out, im2col (bf16)
               + Cp * Pp + 9 * Pp * Pp + Pp * Cp)       # weights (bf16)
    est += 4 * act * (2 * Pp + Cp)                      # f32 intermediates
    vmem_limit = int(min(max(2 * est, 16 << 20), 48 << 20))

    vmem = pl.BlockSpec(memory_space=pltpu.MemorySpace.VMEM)
    out = pl.pallas_call(
        _bottleneck_kernel,
        out_shape=jax.ShapeDtypeStruct((N, H, W, Cp), bf16),
        in_specs=[vmem] * 10,
        out_specs=vmem,
        scratch_shapes=[pltpu.VMEM((N, H, W, 9 * Pp), bf16)],
        compiler_params=pltpu.CompilerParams(vmem_limit_bytes=vmem_limit),
    )(xp, w1, g1, b1, w2, g2, b2, w3, g3, b3)

    out = out[..., :Cin]
    if data_format == "NCHW":
        out = jnp.transpose(out, (0, 3, 1, 2))
    return out, bit


def init_params(key, inplanes, planes):
    """Deterministic synthetic parameters matching the module's shapes.

    conv weights stored channels-last friendly:
      w1: (inplanes, planes)      <- torch (planes, inplanes, 1, 1)
      w2: (9, planes, planes)     <- torch (planes, planes, 3, 3), tap-major (kh*3+kw)
      w3: (planes, 4*planes)      <- torch (4*planes, planes, 1, 1)
    BN params at fresh-init defaults: gamma=1, beta=0.
    """
    k1, k2, k3 = jax.random.split(key, 3)
    w1 = jax.random.normal(k1, (inplanes, planes), jnp.float32) / (inplanes ** 0.5)
    w2 = jax.random.normal(k2, (9, planes, planes), jnp.float32) / ((9 * planes) ** 0.5)
    w3 = jax.random.normal(k3, (planes, planes * 4), jnp.float32) / (planes ** 0.5)
    ones = lambda c: jnp.ones((1, c), jnp.float32)
    zeros = lambda c: jnp.zeros((1, c), jnp.float32)
    return dict(w1=w1, g1=ones(planes), b1=zeros(planes),
                w2=w2, g2=ones(planes), b2=zeros(planes),
                w3=w3, g3=ones(planes * 4), b3=zeros(planes * 4))


def _reference(x_nhwc, params):
    """Pure-JAX reference (bf16-cast inputs, f32 intermediates, two-pass BN)."""
    f32 = jnp.float32
    cast = lambda a: a.astype(jnp.bfloat16).astype(f32)
    x = cast(x_nhwc)
    w1, w2, w3 = cast(params["w1"]), cast(params["w2"]), cast(params["w3"])

    def bn(h, g, b):
        m = jnp.mean(h, axis=(0, 1, 2), keepdims=True)
        v = jnp.mean((h - m) ** 2, axis=(0, 1, 2), keepdims=True)
        return (h - m) * (g.reshape(1, 1, 1, -1) * jax.lax.rsqrt(v + EPS)) \
            + b.reshape(1, 1, 1, -1)

    dot = functools.partial(jnp.einsum, precision=jax.lax.Precision.HIGHEST)
    h = dot("nhwc,cp->nhwp", x, w1)
    h = jax.nn.relu(bn(h, params["g1"], params["b1"]))
    N, H, W, _ = h.shape
    hp = jnp.pad(h, ((0, 0), (1, 1), (1, 1), (0, 0)))
    acc = jnp.zeros_like(h)
    for kh in range(3):
        for kw in range(3):
            acc = acc + dot("nhwc,cp->nhwp",
                            hp[:, kh:kh + H, kw:kw + W, :], w2[kh * 3 + kw])
    h = jax.nn.relu(bn(acc, params["g2"], params["b2"]))
    h = dot("nhwc,cp->nhwp", h, w3)
    h = bn(h, params["g3"], params["b3"])
    return jax.nn.relu(h + x)


if __name__ == "__main__":
    key = jax.random.PRNGKey(0)
    kx, kp = jax.random.split(key)

    planes = 32                 # 4*planes = 128 -> lane-dense residual channels
    inplanes = planes * 4       # expansion = 4; residual add needs inplanes == 4*planes
    N, H, W = 2, 16, 16

    # channels-last end-to-end (no NCHW<->NHWC transposes around the kernel)
    x = jax.random.normal(kx, (N, H, W, inplanes), jnp.float32)
    params = init_params(kp, inplanes, planes)

    out, bit = bottleneck_forward(x, params, bit=32, data_format="NHWC")
    out = jax.block_until_ready(out)

    assert out.shape == (N, H, W, inplanes)
    assert bit == 32
    assert bool(jnp.all(out >= 0.0))                 # final ReLU

    ref = _reference(x, params)
    err = float(jnp.max(jnp.abs(out.astype(jnp.float32) - ref)))
    tol = 0.03 * float(jnp.max(jnp.abs(ref))) + 0.03  # bf16 matmul/storage tolerance
    assert err < tol, f"max abs err {err} (tol {tol})"
    print("KERNEL_OK")
</pallas_src>

<mosaic_0001>
module attributes {stable_mosaic.version = 11 : i64} {
  func.func @_bottleneck_kernel(%arg0: memref<2x16x16x128xbf16, #tpu.memory_space<vmem>>, %arg1: memref<128x128xbf16, #tpu.memory_space<vmem>>, %arg2: memref<1x128xf32, #tpu.memory_space<vmem>>, %arg3: memref<1x128xf32, #tpu.memory_space<vmem>>, %arg4: memref<1152x128xbf16, #tpu.memory_space<vmem>>, %arg5: memref<1x128xf32, #tpu.memory_space<vmem>>, %arg6: memref<1x128xf32, #tpu.memory_space<vmem>>, %arg7: memref<128x128xbf16, #tpu.memory_space<vmem>>, %arg8: memref<1x128xf32, #tpu.memory_space<vmem>>, %arg9: memref<1x128xf32, #tpu.memory_space<vmem>>, %arg10: memref<2x16x16x128xbf16, #tpu.memory_space<vmem>>, %arg11: memref<2x16x16x1152xbf16, #tpu.memory_space<vmem>>) attributes {dimension_semantics = [], scalar_prefetch = 0 : i64, scratch_operands = 1 : i64, tpu.core_type = #tpu.core_type<tc>} {
    %c0 = arith.constant 0 : index
    %c0_0 = arith.constant 0 : index
    %c0_1 = arith.constant 0 : index
    %c0_2 = arith.constant 0 : index
    %0 = vector.load %arg0[%c0, %c0_0, %c0_1, %c0_2] : memref<2x16x16x128xbf16, #tpu.memory_space<vmem>>, vector<2x16x16x128xbf16>
    %1 = vector.shape_cast %0 : vector<2x16x16x128xbf16> to vector<512x128xbf16>
    %c0_3 = arith.constant 0 : index
    %c0_4 = arith.constant 0 : index
    %2 = vector.load %arg1[%c0_3, %c0_4] : memref<128x128xbf16, #tpu.memory_space<vmem>>, vector<128x128xbf16>
    %cst = arith.constant dense<0.000000e+00> : vector<512x128xf32>
    %3 = tpu.matmul %1, %2, %cst {dimension_numbers = #tpu.dot_dimension_numbers<[1], [0], [0], [1], [0, 0, 1, 1], [], []>} : vector<512x128xbf16>, vector<128x128xbf16>, vector<512x128xf32> -> vector<512x128xf32>
    %cst_5 = arith.constant dense<0.000000e+00> : vector<128xf32>
    %4 = vector.multi_reduction <add>, %3, %cst_5 [0] : vector<512x128xf32> to vector<128xf32>
    %5 = vector.shape_cast %4 : vector<128xf32> to vector<1x128xf32>
    %cst_6 = arith.constant 0.001953125 : f32
    %6 = vector.broadcast %cst_6 : f32 to vector<1x128xf32>
    %7 = arith.mulf %5, %6 : vector<1x128xf32>
    %8 = arith.mulf %3, %3 : vector<512x128xf32>
    %cst_7 = arith.constant dense<0.000000e+00> : vector<128xf32>
    %9 = vector.multi_reduction <add>, %8, %cst_7 [0] : vector<512x128xf32> to vector<128xf32>
    %10 = vector.shape_cast %9 : vector<128xf32> to vector<1x128xf32>
    %cst_8 = arith.constant 0.001953125 : f32
    %11 = vector.broadcast %cst_8 : f32 to vector<1x128xf32>
    %12 = arith.mulf %10, %11 : vector<1x128xf32>
    %13 = arith.mulf %7, %7 : vector<1x128xf32>
    %14 = arith.subf %12, %13 : vector<1x128xf32>
    %c0_9 = arith.constant 0 : index
    %c0_10 = arith.constant 0 : index
    %15 = vector.load %arg2[%c0_9, %c0_10] : memref<1x128xf32, #tpu.memory_space<vmem>>, vector<1x128xf32>
    %cst_11 = arith.constant 9.99999974E-6 : f32
    %16 = vector.broadcast %cst_11 : f32 to vector<1x128xf32>
    %17 = arith.addf %14, %16 : vector<1x128xf32>
    %18 = math.rsqrt %17 : vector<1x128xf32>
    %19 = arith.mulf %15, %18 : vector<1x128xf32>
    %c0_12 = arith.constant 0 : index
    %c0_13 = arith.constant 0 : index
    %20 = vector.load %arg3[%c0_12, %c0_13] : memref<1x128xf32, #tpu.memory_space<vmem>>, vector<1x128xf32>
    %21 = arith.mulf %19, %7 : vector<1x128xf32>
    %22 = arith.subf %20, %21 : vector<1x128xf32>
    %23 = vector.broadcast %19 : vector<1x128xf32> to vector<512x128xf32>
    %24 = arith.mulf %3, %23 : vector<512x128xf32>
    %25 = vector.broadcast %22 : vector<1x128xf32> to vector<512x128xf32>
    %26 = arith.addf %24, %25 : vector<512x128xf32>
    %cst_14 = arith.constant 0.000000e+00 : f32
    %27 = vector.broadcast %cst_14 : f32 to vector<512x128xf32>
    %28 = arith.maximumf %26, %27 : vector<512x128xf32>
    %29 = arith.truncf %28 : vector<512x128xf32> to vector<512x128xbf16>
    %30 = vector.shape_cast %29 : vector<512x128xbf16> to vector<2x16x16x128xbf16>
    %cst_15 = arith.constant 0.000000e+00 : bf16
    %31 = vector.broadcast %cst_15 : bf16 to vector<2x1x16x128xbf16>
    %cst_16 = arith.constant 0.000000e+00 : bf16
    %32 = vector.broadcast %cst_16 : bf16 to vector<2x16x1x128xbf16>
    %33 = vector.extract_strided_slice %30 {offsets = [0, 0, 0, 0], sizes = [2, 15, 15, 128], strides = [1, 1, 1, 1]} : vector<2x16x16x128xbf16> to vector<2x15x15x128xbf16>
    %c0_17 = arith.constant 0 : index
    %c1 = arith.constant 1 : index
    %c1_18 = arith.constant 1 : index
    %c0_19 = arith.constant 0 : index
    %34 = vector.load %arg11[%c0_17, %c1, %c1_18, %c0_19] : memref<2x16x16x1152xbf16, #tpu.memory_space<vmem>>, vector<2x15x15x128xbf16>
    tpu.vector_store %arg11[%c0_17, %c1, %c1_18, %c0_19], %33 {strides = array<i32>} : memref<2x16x16x1152xbf16, #tpu.memory_space<vmem>>, vector<2x15x15x128xbf16>,
    %c0_20 = arith.constant 0 : index
    %c0_21 = arith.constant 0 : index
    %c0_22 = arith.constant 0 : index
    %c0_23 = arith.constant 0 : index
    %35 = vector.load %arg11[%c0_20, %c0_21, %c0_22, %c0_23] : memref<2x16x16x1152xbf16, #tpu.memory_space<vmem>>, vector<2x1x16x128xbf16>
    tpu.vector_store %arg11[%c0_20, %c0_21, %c0_22, %c0_23], %31 {strides = array<i32>} : memref<2x16x16x1152xbf16, #tpu.memory_space<vmem>>, vector<2x1x16x128xbf16>,
    %c0_24 = arith.constant 0 : index
    %c0_25 = arith.constant 0 : index
    %c0_26 = arith.constant 0 : index
    %c0_27 = arith.constant 0 : index
    %36 = vector.load %arg11[%c0_24, %c0_25, %c0_26, %c0_27] : memref<2x16x16x1152xbf16, #tpu.memory_space<vmem>>, vector<2x16x1x128xbf16>
    tpu.vector_store %arg11[%c0_24, %c0_25, %c0_26, %c0_27], %32 {strides = array<i32>} : memref<2x16x16x1152xbf16, #tpu.memory_space<vmem>>, vector<2x16x1x128xbf16>,
    %37 = vector.extract_strided_slice %30 {offsets = [0, 0, 0, 0], sizes = [2, 15, 16, 128], strides = [1, 1, 1, 1]} : vector<2x16x16x128xbf16> to vector<2x15x16x128xbf16>
    %c0_28 = arith.constant 0 : index
    %c1_29 = arith.constant 1 : index
    %c0_30 = arith.constant 0 : index
    %c128 = arith.constant 128 : index
    %38 = vector.load %arg11[%c0_28, %c1_29, %c0_30, %c128] : memref<2x16x16x1152xbf16, #tpu.memory_space<vmem>>, vector<2x15x16x128xbf16>
    tpu.vector_store %arg11[%c0_28, %c1_29, %c0_30, %c128], %37 {strides = array<i32>} : memref<2x16x16x1152xbf16, #tpu.memory_space<vmem>>, vector<2x15x16x128xbf16>,
    %c0_31 = arith.constant 0 : index
    %c0_32 = arith.constant 0 : index
    %c0_33 = arith.constant 0 : index
    %c128_34 = arith.constant 128 : index
    %39 = vector.load %arg11[%c0_31, %c0_32, %c0_33, %c128_34] : memref<2x16x16x1152xbf16, #tpu.memory_space<vmem>>, vector<2x1x16x128xbf16>
    tpu.vector_store %arg11[%c0_31, %c0_32, %c0_33, %c128_34], %31 {strides = array<i32>} : memref<2x16x16x1152xbf16, #tpu.memory_space<vmem>>, vector<2x1x16x128xbf16>,
    %40 = vector.extract_strided_slice %30 {offsets = [0, 0, 1, 0], sizes = [2, 15, 15, 128], strides = [1, 1, 1, 1]} : vector<2x16x16x128xbf16> to vector<2x15x15x128xbf16>
    %c0_35 = arith.constant 0 : index
    %c1_36 = arith.constant 1 : index
    %c0_37 = arith.constant 0 : index
    %c256 = arith.constant 256 : index
    %41 = vector.load %arg11[%c0_35, %c1_36, %c0_37, %c256] : memref<2x16x16x1152xbf16, #tpu.memory_space<vmem>>, vector<2x15x15x128xbf16>
    tpu.vector_store %arg11[%c0_35, %c1_36, %c0_37, %c256], %40 {strides = array<i32>} : memref<2x16x16x1152xbf16, #tpu.memory_space<vmem>>, vector<2x15x15x128xbf16>,
    %c0_38 = arith.constant 0 : index
    %c0_39 = arith.constant 0 : index
    %c0_40 = arith.constant 0 : index
    %c256_41 = arith.constant 256 : index
    %42 = vector.load %arg11[%c0_38, %c0_39, %c0_40, %c256_41] : memref<2x16x16x1152xbf16, #tpu.memory_space<vmem>>, vector<2x1x16x128xbf16>
    tpu.vector_store %arg11[%c0_38, %c0_39, %c0_40, %c256_41], %31 {strides = array<i32>} : memref<2x16x16x1152xbf16, #tpu.memory_space<vmem>>, vector<2x1x16x128xbf16>,
    %c0_42 = arith.constant 0 : index
    %c0_43 = arith.constant 0 : index
    %c15 = arith.constant 15 : index
    %c256_44 = arith.constant 256 : index
    %43 = vector.load %arg11[%c0_42, %c0_43, %c15, %c256_44] : memref<2x16x16x1152xbf16, #tpu.memory_space<vmem>>, vector<2x16x1x128xbf16>
    tpu.vector_store %arg11[%c0_42, %c0_43, %c15, %c256_44], %32 {strides = array<i32>} : memref<2x16x16x1152xbf16, #tpu.memory_space<vmem>>, vector<2x16x1x128xbf16>,
    %44 = vector.extract_strided_slice %30 {offsets = [0, 0, 0, 0], sizes = [2, 16, 15, 128], strides = [1, 1, 1, 1]} : vector<2x16x16x128xbf16> to vector<2x16x15x128xbf16>
    %c0_45 = arith.constant 0 : index
    %c0_46 = arith.constant 0 : index
    %c1_47 = arith.constant 1 : index
    %c384 = arith.constant 384 : index
    %45 = vector.load %arg11[%c0_45, %c0_46, %c1_47, %c384] : memref<2x16x16x1152xbf16, #tpu.memory_space<vmem>>, vector<2x16x15x128xbf16>
    tpu.vector_store %arg11[%c0_45, %c0_46, %c1_47, %c384], %44 {strides = array<i32>} : memref<2x16x16x1152xbf16, #tpu.memory_space<vmem>>, vector<2x16x15x128xbf16>,
    %c0_48 = arith.constant 0 : index
    %c0_49 = arith.constant 0 : index
    %c0_50 = arith.constant 0 : index
    %c384_51 = arith.constant 384 : index
    %46 = vector.load %arg11[%c0_48, %c0_49, %c0_50, %c384_51] : memref<2x16x16x1152xbf16, #tpu.memory_space<vmem>>, vector<2x16x1x128xbf16>
    tpu.vector_store %arg11[%c0_48, %c0_49, %c0_50, %c384_51], %32 {strides = array<i32>} : memref<2x16x16x1152xbf16, #tpu.memory_space<vmem>>, vector<2x16x1x128xbf16>,
    %c0_52 = arith.constant 0 : index
    %c0_53 = arith.constant 0 : index
    %c0_54 = arith.constant 0 : index
    %c512 = arith.constant 512 : index
    %47 = vector.load %arg11[%c0_52, %c0_53, %c0_54, %c512] : memref<2x16x16x1152xbf16, #tpu.memory_space<vmem>>, vector<2x16x16x128xbf16>
    tpu.vector_store %arg11[%c0_52, %c0_53, %c0_54, %c512], %30 {strides = array<i32>} : memref<2x16x16x1152xbf16, #tpu.memory_space<vmem>>, vector<2x16x16x128xbf16>,
    %48 = vector.extract_strided_slice %30 {offsets = [0, 0, 1, 0], sizes = [2, 16, 15, 128], strides = [1, 1, 1, 1]} : vector<2x16x16x128xbf16> to vector<2x16x15x128xbf16>
    %c0_55 = arith.constant 0 : index
    %c0_56 = arith.constant 0 : index
    %c0_57 = arith.constant 0 : index
    %c640 = arith.constant 640 : index
    %49 = vector.load %arg11[%c0_55, %c0_56, %c0_57, %c640] : memref<2x16x16x1152xbf16, #tpu.memory_space<vmem>>, vector<2x16x15x128xbf16>
    tpu.vector_store %arg11[%c0_55, %c0_56, %c0_57, %c640], %48 {strides = array<i32>} : memref<2x16x16x1152xbf16, #tpu.memory_space<vmem>>, vector<2x16x15x128xbf16>,
    %c0_58 = arith.constant 0 : index
    %c0_59 = arith.constant 0 : index
    %c15_60 = arith.constant 15 : index
    %c640_61 = arith.constant 640 : index
    %50 = vector.load %arg11[%c0_58, %c0_59, %c15_60, %c640_61] : memref<2x16x16x1152xbf16, #tpu.memory_space<vmem>>, vector<2x16x1x128xbf16>
    tpu.vector_store %arg11[%c0_58, %c0_59, %c15_60, %c640_61], %32 {strides = array<i32>} : memref<2x16x16x1152xbf16, #tpu.memory_space<vmem>>, vector<2x16x1x128xbf16>,
    %51 = vector.extract_strided_slice %30 {offsets = [0, 1, 0, 0], sizes = [2, 15, 15, 128], strides = [1, 1, 1, 1]} : vector<2x16x16x128xbf16> to vector<2x15x15x128xbf16>
    %c0_62 = arith.constant 0 : index
    %c0_63 = arith.constant 0 : index
    %c1_64 = arith.constant 1 : index
    %c768 = arith.constant 768 : index
    %52 = vector.load %arg11[%c0_62, %c0_63, %c1_64, %c768] : memref<2x16x16x1152xbf16, #tpu.memory_space<vmem>>, vector<2x15x15x128xbf16>
    tpu.vector_store %arg11[%c0_62, %c0_63, %c1_64, %c768], %51 {strides = array<i32>} : memref<2x16x16x1152xbf16, #tpu.memory_space<vmem>>, vector<2x15x15x128xbf16>,
    %c0_65 = arith.constant 0 : index
    %c15_66 = arith.constant 15 : index
    %c0_67 = arith.constant 0 : index
    %c768_68 = arith.constant 768 : index
    %53 = vector.load %arg11[%c0_65, %c15_66, %c0_67, %c768_68] : memref<2x16x16x1152xbf16, #tpu.memory_space<vmem>>, vector<2x1x16x128xbf16>
    tpu.vector_store %arg11[%c0_65, %c15_66, %c0_67, %c768_68], %31 {strides = array<i32>} : memref<2x16x16x1152xbf16, #tpu.memory_space<vmem>>, vector<2x1x16x128xbf16>,
    %c0_69 = arith.constant 0 : index
    %c0_70 = arith.constant 0 : index
    %c0_71 = arith.constant 0 : index
    %c768_72 = arith.constant 768 : index
    %54 = vector.load %arg11[%c0_69, %c0_70, %c0_71, %c768_72] : memref<2x16x16x1152xbf16, #tpu.memory_space<vmem>>, vector<2x16x1x128xbf16>
    tpu.vector_store %arg11[%c0_69, %c0_70, %c0_71, %c768_72], %32 {strides = array<i32>} : memref<2x16x16x1152xbf16, #tpu.memory_space<vmem>>, vector<2x16x1x128xbf16>,
    %55 = vector.extract_strided_slice %30 {offsets = [0, 1, 0, 0], sizes = [2, 15, 16, 128], strides = [1, 1, 1, 1]} : vector<2x16x16x128xbf16> to vector<2x15x16x128xbf16>
    %c0_73 = arith.constant 0 : index
    %c0_74 = arith.constant 0 : index
    %c0_75 = arith.constant 0 : index
    %c896 = arith.constant 896 : index
    %56 = vector.load %arg11[%c0_73, %c0_74, %c0_75, %c896] : memref<2x16x16x1152xbf16, #tpu.memory_space<vmem>>, vector<2x15x16x128xbf16>
    tpu.vector_store %arg11[%c0_73, %c0_74, %c0_75, %c896], %55 {strides = array<i32>} : memref<2x16x16x1152xbf16, #tpu.memory_space<vmem>>, vector<2x15x16x128xbf16>,
    %c0_76 = arith.constant 0 : index
    %c15_77 = arith.constant 15 : index
    %c0_78 = arith.constant 0 : index
    %c896_79 = arith.constant 896 : index
    %57 = vector.load %arg11[%c0_76, %c15_77, %c0_78, %c896_79] : memref<2x16x16x1152xbf16, #tpu.memory_space<vmem>>, vector<2x1x16x128xbf16>
    tpu.vector_store %arg11[%c0_76, %c15_77, %c0_78, %c896_79], %31 {strides = array<i32>} : memref<2x16x16x1152xbf16, #tpu.memory_space<vmem>>, vector<2x1x16x128xbf16>,
    %58 = vector.extract_strided_slice %30 {offsets = [0, 1, 1, 0], sizes = [2, 15, 15, 128], strides = [1, 1, 1, 1]} : vector<2x16x16x128xbf16> to vector<2x15x15x128xbf16>
    %c0_80 = arith.constant 0 : index
    %c0_81 = arith.constant 0 : index
    %c0_82 = arith.constant 0 : index
    %c1024 = arith.constant 1024 : index
    %59 = vector.load %arg11[%c0_80, %c0_81, %c0_82, %c1024] : memref<2x16x16x1152xbf16, #tpu.memory_space<vmem>>, vector<2x15x15x128xbf16>
    tpu.vector_store %arg11[%c0_80, %c0_81, %c0_82, %c1024], %58 {strides = array<i32>} : memref<2x16x16x1152xbf16, #tpu.memory_space<vmem>>, vector<2x15x15x128xbf16>,
    %c0_83 = arith.constant 0 : index
    %c15_84 = arith.constant 15 : index
    %c0_85 = arith.constant 0 : index
    %c1024_86 = arith.constant 1024 : index
    %60 = vector.load %arg11[%c0_83, %c15_84, %c0_85, %c1024_86] : memref<2x16x16x1152xbf16, #tpu.memory_space<vmem>>, vector<2x1x16x128xbf16>
    tpu.vector_store %arg11[%c0_83, %c15_84, %c0_85, %c1024_86], %31 {strides = array<i32>} : memref<2x16x16x1152xbf16, #tpu.memory_space<vmem>>, vector<2x1x16x128xbf16>,
    %c0_87 = arith.constant 0 : index
    %c0_88 = arith.constant 0 : index
    %c15_89 = arith.constant 15 : index
    %c1024_90 = arith.constant 1024 : index
    %61 = vector.load %arg11[%c0_87, %c0_88, %c15_89, %c1024_90] : memref<2x16x16x1152xbf16, #tpu.memory_space<vmem>>, vector<2x16x1x128xbf16>
    tpu.vector_store %arg11[%c0_87, %c0_88, %c15_89, %c1024_90], %32 {strides = array<i32>} : memref<2x16x16x1152xbf16, #tpu.memory_space<vmem>>, vector<2x16x1x128xbf16>,
    %c0_91 = arith.constant 0 : index
    %c0_92 = arith.constant 0 : index
    %c0_93 = arith.constant 0 : index
    %c0_94 = arith.constant 0 : index
    %62 = vector.load %arg11[%c0_91, %c0_92, %c0_93, %c0_94] : memref<2x16x16x1152xbf16, #tpu.memory_space<vmem>>, vector<2x16x16x1152xbf16>
    %63 = vector.shape_cast %62 : vector<2x16x16x1152xbf16> to vector<512x1152xbf16>
    %c0_95 = arith.constant 0 : index
    %c0_96 = arith.constant 0 : index
    %64 = vector.load %arg4[%c0_95, %c0_96] : memref<1152x128xbf16, #tpu.memory_space<vmem>>, vector<1152x128xbf16>
    %cst_97 = arith.constant dense<0.000000e+00> : vector<512x128xf32>
    %65 = tpu.matmul %63, %64, %cst_97 {dimension_numbers = #tpu.dot_dimension_numbers<[1], [0], [0], [1], [0, 0, 1, 1], [], []>} : vector<512x1152xbf16>, vector<1152x128xbf16>, vector<512x128xf32> -> vector<512x128xf32>
    %cst_98 = arith.constant dense<0.000000e+00> : vector<128xf32>
    %66 = vector.multi_reduction <add>, %65, %cst_98 [0] : vector<512x128xf32> to vector<128xf32>
    %67 = vector.shape_cast %66 : vector<128xf32> to vector<1x128xf32>
    %cst_99 = arith.constant 0.001953125 : f32
    %68 = vector.broadcast %cst_99 : f32 to vector<1x128xf32>
    %69 = arith.mulf %67, %68 : vector<1x128xf32>
    %70 = arith.mulf %65, %65 : vector<512x128xf32>
    %cst_100 = arith.constant dense<0.000000e+00> : vector<128xf32>
    %71 = vector.multi_reduction <add>, %70, %cst_100 [0] : vector<512x128xf32> to vector<128xf32>
    %72 = vector.shape_cast %71 : vector<128xf32> to vector<1x128xf32>
    %cst_101 = arith.constant 0.001953125 : f32
    %73 = vector.broadcast %cst_101 : f32 to vector<1x128xf32>
    %74 = arith.mulf %72, %73 : vector<1x128xf32>
    %75 = arith.mulf %69, %69 : vector<1x128xf32>
    %76 = arith.subf %74, %75 : vector<1x128xf32>
    %c0_102 = arith.constant 0 : index
    %c0_103 = arith.constant 0 : index
    %77 = vector.load %arg5[%c0_102, %c0_103] : memref<1x128xf32, #tpu.memory_space<vmem>>, vector<1x128xf32>
    %cst_104 = arith.constant 9.99999974E-6 : f32
    %78 = vector.broadcast %cst_104 : f32 to vector<1x128xf32>
    %79 = arith.addf %76, %78 : vector<1x128xf32>
    %80 = math.rsqrt %79 : vector<1x128xf32>
    %81 = arith.mulf %77, %80 : vector<1x128xf32>
    %c0_105 = arith.constant 0 : index
    %c0_106 = arith.constant 0 : index
    %82 = vector.load %arg6[%c0_105, %c0_106] : memref<1x128xf32, #tpu.memory_space<vmem>>, vector<1x128xf32>
    %83 = arith.mulf %81, %69 : vector<1x128xf32>
    %84 = arith.subf %82, %83 : vector<1x128xf32>
    %85 = vector.broadcast %81 : vector<1x128xf32> to vector<512x128xf32>
    %86 = arith.mulf %65, %85 : vector<512x128xf32>
    %87 = vector.broadcast %84 : vector<1x128xf32> to vector<512x128xf32>
    %88 = arith.addf %86, %87 : vector<512x128xf32>
    %cst_107 = arith.constant 0.000000e+00 : f32
    %89 = vector.broadcast %cst_107 : f32 to vector<512x128xf32>
    %90 = arith.maximumf %88, %89 : vector<512x128xf32>
    %91 = arith.truncf %90 : vector<512x128xf32> to vector<512x128xbf16>
    %c0_108 = arith.constant 0 : index
    %c0_109 = arith.constant 0 : index
    %92 = vector.load %arg7[%c0_108, %c0_109] : memref<128x128xbf16, #tpu.memory_space<vmem>>, vector<128x128xbf16>
    %cst_110 = arith.constant dense<0.000000e+00> : vector<512x128xf32>
    %93 = tpu.matmul %91, %92, %cst_110 {dimension_numbers = #tpu.dot_dimension_numbers<[1], [0], [0], [1], [0, 0, 1, 1], [], []>} : vector<512x128xbf16>, vector<128x128xbf16>, vector<512x128xf32> -> vector<512x128xf32>
    %cst_111 = arith.constant dense<0.000000e+00> : vector<128xf32>
    %94 = vector.multi_reduction <add>, %93, %cst_111 [0] : vector<512x128xf32> to vector<128xf32>
    %95 = vector.shape_cast %94 : vector<128xf32> to vector<1x128xf32>
    %cst_112 = arith.constant 0.001953125 : f32
    %96 = vector.broadcast %cst_112 : f32 to vector<1x128xf32>
    %97 = arith.mulf %95, %96 : vector<1x128xf32>
    %98 = arith.mulf %93, %93 : vector<512x128xf32>
    %cst_113 = arith.constant dense<0.000000e+00> : vector<128xf32>
    %99 = vector.multi_reduction <add>, %98, %cst_113 [0] : vector<512x128xf32> to vector<128xf32>
    %100 = vector.shape_cast %99 : vector<128xf32> to vector<1x128xf32>
    %cst_114 = arith.constant 0.001953125 : f32
    %101 = vector.broadcast %cst_114 : f32 to vector<1x128xf32>
    %102 = arith.mulf %100, %101 : vector<1x128xf32>
    %103 = arith.mulf %97, %97 : vector<1x128xf32>
    %104 = arith.subf %102, %103 : vector<1x128xf32>
    %c0_115 = arith.constant 0 : index
    %c0_116 = arith.constant 0 : index
    %105 = vector.load %arg8[%c0_115, %c0_116] : memref<1x128xf32, #tpu.memory_space<vmem>>, vector<1x128xf32>
    %cst_117 = arith.constant 9.99999974E-6 : f32
    %106 = vector.broadcast %cst_117 : f32 to vector<1x128xf32>
    %107 = arith.addf %104, %106 : vector<1x128xf32>
    %108 = math.rsqrt %107 : vector<1x128xf32>
    %109 = arith.mulf %105, %108 : vector<1x128xf32>
    %c0_118 = arith.constant 0 : index
    %c0_119 = arith.constant 0 : index
    %110 = vector.load %arg9[%c0_118, %c0_119] : memref<1x128xf32, #tpu.memory_space<vmem>>, vector<1x128xf32>
    %111 = arith.mulf %109, %97 : vector<1x128xf32>
    %112 = arith.subf %110, %111 : vector<1x128xf32>
    %c0_120 = arith.constant 0 : index
    %c0_121 = arith.constant 0 : index
    %c0_122 = arith.constant 0 : index
    %c0_123 = arith.constant 0 : index
    %113 = vector.load %arg0[%c0_120, %c0_121, %c0_122, %c0_123] : memref<2x16x16x128xbf16, #tpu.memory_space<vmem>>, vector<2x16x16x128xbf16>
    %114 = vector.shape_cast %113 : vector<2x16x16x128xbf16> to vector<512x128xbf16>
    %115 = arith.extf %114 : vector<512x128xbf16> to vector<512x128xf32>
    %116 = vector.broadcast %109 : vector<1x128xf32> to vector<512x128xf32>
    %117 = arith.mulf %93, %116 : vector<512x128xf32>
    %118 = vector.broadcast %112 : vector<1x128xf32> to vector<512x128xf32>
    %119 = arith.addf %117, %118 : vector<512x128xf32>
    %120 = arith.addf %119, %115 : vector<512x128xf32>
    %cst_124 = arith.constant 0.000000e+00 : f32
    %121 = vector.broadcast %cst_124 : f32 to vector<512x128xf32>
    %122 = arith.maximumf %120, %121 : vector<512x128xf32>
    %123 = vector.shape_cast %122 : vector<512x128xf32> to vector<2x16x16x128xf32>
    %124 = arith.truncf %123 : vector<2x16x16x128xf32> to vector<2x16x16x128xbf16>
    %c0_125 = arith.constant 0 : index
    %c0_126 = arith.constant 0 : index
    %c0_127 = arith.constant 0 : index
    %c0_128 = arith.constant 0 : index
    %125 = vector.load %arg10[%c0_125, %c0_126, %c0_127, %c0_128] : memref<2x16x16x128xbf16, #tpu.memory_space<vmem>>, vector<2x16x16x128xbf16>
    tpu.vector_store %arg10[%c0_125, %c0_126, %c0_127, %c0_128], %124 {strides = array<i32>} : memref<2x16x16x128xbf16, #tpu.memory_space<vmem>>, vector<2x16x16x128xbf16>,
    return
  }
}

</mosaic_0001>

<bundles_post_ra>
// kernel: tpu_custom_call.1
= control target key start
LH: loop header
LB: loop body
LE: loop exit
PB: predicated region body
PF: predicated region fallthrough
CT: control target
= control target key end

     0   :  { %15 = vsyncpa [#allocation4], 0  ;;  %s13692_s0 = inlined_call_operand.hbm [shape: bf16[2,16,16,128], index: 0, kind: input, shape index: {}]   ;;  %s13693_s1 = inlined_call_operand.hbm [shape: bf16[128,128], index: 1, kind: input, shape index: {}]   ;;  %s13694_s2 = inlined_call_operand.vmem [shape: f32[1,128], index: 2, kind: input, shape index: {}]   ;;  %s13695_s3 = inlined_call_operand.vmem [shape: f32[1,128], index: 3, kind: input, shape index: {}]   ;;  %s13696_s4 = inlined_call_operand.hbm [shape: bf16[1152,128], index: 4, kind: input, shape index: {}]   ;;  %s13697_s5 = inlined_call_operand.vmem [shape: f32[1,128], index: 5, kind: input, shape index: {}]   ;;  %s13698_s6 = inlined_call_operand.vmem [shape: f32[1,128], index: 6, kind: input, shape index: {}]   ;;  %s13699_s7 = inlined_call_operand.hbm [shape: bf16[128,128], index: 7, kind: input, shape index: {}]   ;;  %s13700_s8 = inlined_call_operand.vmem [shape: f32[1,128], index: 8, kind: input, shape index: {}]   ;;  %s13701_s9 = inlined_call_operand.vmem [shape: f32[1,128], index: 9, kind: input, shape index: {}]   ;;  %s13702_s10 = inlined_call_operand.hbm [shape: bf16[2,16,16,128], index: 10, kind: output, shape index: {}]  }
   0x1   :  { %16 = vsyncpa [#allocation7], 0 }
   0x2   :  { %17 = vsyncpa [#allocation10], 0 }
   0x3   :  { %18 = vsyncpa [#allocation5], 0  ;;  %s8388_s13 = smov [#allocation6]   ;;  %s8389_s15 = smov [#allocation3]  }
   0x4   :  { %s36_s14 = sshll.u32 %s8388_s13, 4  ;;  %s24_s16 = sshll.u32 %s8389_s15, 4  ;;  %s37_s14 = int_to_ptr.vmem [resolvable:$true] %s36_s14  ;;  %s8451_s16 = int_to_ptr.vmem [resolvable:$true] %s24_s16 }
   0x5   :  { %s8270_s19 = scalar_lea.hbm %s13693_s1, 1024 }
   0x6   :  { %p8271_p0 = scmp.ne.s32.totalorder %s13693_s1, %s8270_s19  ;;  %p8274_p1 = scmp.lt.u32.totalorder %s8270_s19, %s13693_s1 }
   0x8   :  { %p8276_p2 = pnand %p8274_p1, %p8271_p0 }
   0xa   :  { %8279 = shalt.err (!%p8276_p2)
}
   0xb   :  { %s8280_s24 = scalar_lea.vmem %s37_s14, 1024  ;;  %p8285_p4 = scmp.lt.s32.totalorder %s37_s14, %s37_s14 }
   0xc   :  { %p8281_p3 = scmp.ne.s32.totalorder %s37_s14, %s8280_s24  ;;  %p8286_p5 = scmp.lt.s32.totalorder %s8280_s24, %s8280_s24 }
   0xe   :  { %p8287_p6 = por %p8286_p5, %p8285_p4 }
  0x10   :  { %p8288_p7 = pnand %p8287_p6, %p8281_p3 }
  0x12   :  { %8291 = shalt.err (!%p8288_p7)
}
  0x13   :  { %s8390_s25 = smov 64   ;;  %s8391_s26 = smov 4  }
  0x14   :  { %42 = dma.hbm_to_vmem [thread:$0]  %s13693_s1, 1024, %s37_s14, [#allocation7], %s8390_s25, %s8390_s25, %s8391_s26  }
  0x15   :  { %s8292_s11 = scalar_lea.hbm %s13692_s0, 4096 }
  0x16   :  { %p8293_p8 = scmp.ne.s32.totalorder %s13692_s0, %s8292_s11  ;;  %p8296_p9 = scmp.lt.u32.totalorder %s8292_s11, %s13692_s0 }
  0x18   :  { %p8298_p10 = pnand %p8296_p9, %p8293_p8 }
  0x1a   :  { %8301 = shalt.err (!%p8298_p10)
}
  0x1b   :  { %s8302_s18 = scalar_lea.vmem %s8451_s16, 4096  ;;  %p8307_p12 = scmp.lt.s32.totalorder %s8451_s16, %s8451_s16 }
  0x1c   :  { %p8303_p11 = scmp.ne.s32.totalorder %s8451_s16, %s8302_s18  ;;  %p8308_p13 = scmp.lt.s32.totalorder %s8302_s18, %s8302_s18 }
  0x1e   :  { %p8309_p0 = por %p8308_p13, %p8307_p12 }
  0x20   :  { %p8310_p1 = pnand %p8309_p0, %p8303_p11 }
  0x22   :  { %8313 = shalt.err (!%p8310_p1)
}
  0x23   :  { %30 = dma.hbm_to_vmem [thread:$0]  %s13692_s0, 4096, %s8451_s16, [#allocation4], %s8390_s25, %s8390_s25, %s8391_s26  }
  0x24   :  { %s8392_s19 = smov [#allocation8]   ;;  %s8393_s21 = smov [#allocation9]  }
  0x25   :  { %s52_s20 = sshll.u32 %s8392_s19, 4  ;;  %s68_s22 = sshll.u32 %s8393_s21, 4  ;;  %s53_s20 = int_to_ptr.vmem [resolvable:$true] %s52_s20  ;;  %s8488_s22 = int_to_ptr.vmem [resolvable:$true] %s68_s22 }
  0x26   :  { %s8314_s27 = scalar_lea.hbm %s13696_s4, 9216 }
  0x27   :  { %p8315_p2 = scmp.ne.s32.totalorder %s13696_s4, %s8314_s27  ;;  %p8318_p3 = scmp.lt.u32.totalorder %s8314_s27, %s13696_s4 }
  0x29   :  { %p8320_p4 = pnand %p8318_p3, %p8315_p2 }
  0x2b   :  { %8323 = shalt.err (!%p8320_p4)
}
  0x2c   :  { %s8324_s0 = scalar_lea.vmem %s53_s20, 9216  ;;  %p8329_p6 = scmp.lt.s32.totalorder %s53_s20, %s53_s20 }
  0x2d   :  { %p8325_p5 = scmp.ne.s32.totalorder %s53_s20, %s8324_s0  ;;  %p8330_p7 = scmp.lt.s32.totalorder %s8324_s0, %s8324_s0 }
  0x2f   :  { %p8331_p8 = por %p8330_p7, %p8329_p6 }
  0x31   :  { %p8332_p9 = pnand %p8331_p8, %p8325_p5 }
  0x33   :  { %8335 = shalt.err (!%p8332_p9)
}
  0x34   :  { %58 = dma.hbm_to_vmem [thread:$0]  %s13696_s4, 9216, %s53_s20, [#allocation7], %s8390_s25, %s8390_s25, %s8391_s26  }
  0x35   :  { %s8336_s17 = scalar_lea.hbm %s13699_s7, 1024 }
  0x36   :  { %p8337_p10 = scmp.ne.s32.totalorder %s13699_s7, %s8336_s17  ;;  %p8340_p11 = scmp.lt.u32.totalorder %s8336_s17, %s13699_s7 }
  0x38   :  { %p8342_p12 = pnand %p8340_p11, %p8337_p10 }
  0x3a   :  { %8345 = shalt.err (!%p8342_p12)
}
  0x3b   :  { %s8346_s21 = scalar_lea.vmem %s8488_s22, 1024  ;;  %p8351_p0 = scmp.lt.s32.totalorder %s8488_s22, %s8488_s22 }
  0x3c   :  { %p8347_p13 = scmp.ne.s32.totalorder %s8488_s22, %s8346_s21  ;;  %p8352_p1 = scmp.lt.s32.totalorder %s8346_s21, %s8346_s21 }
  0x3e   :  { %p8353_p2 = por %p8352_p1, %p8351_p0 }
  0x40   :  { %p8354_p3 = pnand %p8353_p2, %p8347_p13 }
  0x42   :  { %8357 = shalt.err (!%p8354_p3)
}
  0x43   :  { %74 = dma.hbm_to_vmem [thread:$0]  %s13699_s7, 1024, %s8488_s22, [#allocation10], %s8390_s25, %s8390_s25, %s8391_s26  }
  0x44   :  { %8380 = dma.done.wait [#allocation4], 4096  }
  0x45   :  { %8381 = vsyncadd [#allocation4], 4294963200 }
  0x46   :  { %8382 = dma.done.wait [#allocation7], 10240  }
  0x47   :  { %8383 = vsyncadd [#allocation7], 4294957056 }
  0x48   :  { %8384 = dma.done.wait [#allocation10], 1024  }
  0x49   :  { %8385 = vsyncadd [#allocation10], 4294966272  ;;  %v8124_v0 = vld [vmem:[#allocation6] sm:$0xff]   ;;  %v8125_v1 = vld [vmem:[#allocation6 + $0x8] sm:$0xff]   ;;  %v13703_v40 = vmov 0   ;;  %vm1391_vm0 = vcmask 1047552  }
  0x4a   :  { %7524 = vmatprep.subr.bf16.mxu0 %v8124_v0  ;;  %v8126_v2 = vld [vmem:[#allocation6 + $0x10] sm:$0xff]   ;;  %v8127_v3 = vld [vmem:[#allocation6 + $0x18] sm:$0xff]   ;;  %v8132_v4 = vld [vmem:[#allocation3] sm:$0xff]   ;;  %1484 = vst [vmem:[#allocation2] sm:$0xff] %v13703_v40  ;;  %7764 = vmatprep.subr.bf16.mxu1 %v13703_v40  ;;  %vm1392_vm1 = vsmask.f32 7938 }
  0x4b   :  { %7525 = vmatpush3.bf16.msra.mxu0 %v8124_v0  ;;  %7540 = vmatprep.mubr.bf16.mxu0 %v8132_v4  ;;  %v8128_v5 = vld [vmem:[#allocation6 + $0x20] sm:$0xff]   ;;  %v8129_v6 = vld [vmem:[#allocation6 + $0x28] sm:$0xff]   ;;  %v8130_v7 = vld [vmem:[#allocation6 + $0x30] sm:$0xff]   ;;  %1485 = vst [vmem:[#allocation2 + $0x480] sm:$0xff] %v13703_v40  ;;  %vm1707_vm2 = vsmask.f32 7424 }
  0x4c   :  { %7526 = vmatprep.subr.bf16.mxu0 %v8125_v1  ;;  %v8131_v8 = vld [vmem:[#allocation6 + $0x38] sm:$0xff]   ;;  %v8133_v9 = vld [vmem:[#allocation3 + $0x8] sm:$0xff]   ;;  %v8134_v10 = vld [vmem:[#allocation3 + $0x10] sm:$0xff]   ;;  %1615 = vst [vmem:[#allocation2 + $0x8] sm:$0xff] %v13703_v40  ;;  %vm1486_vm5 = vcmask 1040384   ;;  %vm1801_vm8 = vcmask 1047559  }
  0x4d   :  { %v8135_v11 = vld [vmem:[#allocation3 + $0x18] sm:$0xff]   ;;  %v8136_v12 = vld [vmem:[#allocation3 + $0x20] sm:$0xff]   ;;  %v8137_v13 = vld [vmem:[#allocation3 + $0x28] sm:$0xff]   ;;  %1799 = vst [vmem:[#allocation2 + $0x10] sm:$0xff] %v13703_v40  ;;  %vm1487_vm6 = vsmask.f32 256 }
  0x4e   :  { %v8138_v14 = vld [vmem:[#allocation3 + $0x30] sm:$0xff]   ;;  %v8139_v15 = vld [vmem:[#allocation3 + $0x38] sm:$0xff]   ;;  %v8140_v16 = vld [vmem:[#allocation3 + $0x40] sm:$0xff]   ;;  %1800 = vst [vmem:[#allocation2 + $0x490] sm:$0xff] %v13703_v40  ;;  %vm1802_vm9 = vsmask.f32 7966 }
  0x4f   :  { %7527 = vmatpush3.bf16.msra.mxu0 %v8125_v1  ;;  %v8141_v17 = vld [vmem:[#allocation3 + $0x48] sm:$0xff]   ;;  %v8142_v18 = vld [vmem:[#allocation3 + $0x50] sm:$0xff]   ;;  %v8143_v19 = vld [vmem:[#allocation3 + $0x58] sm:$0xff]   ;;  %2429 = vst [vmem:[#allocation2 + $0x468] sm:$0xff] %v13703_v40 }
  0x50   :  { %7528 = vmatprep.subr.bf16.mxu0 %v8126_v2  ;;  %v8144_v20 = vld [vmem:[#allocation3 + $0x60] sm:$0xff]   ;;  %v8145_v21 = vld [vmem:[#allocation3 + $0x68] sm:$0xff]   ;;  %v8146_v22 = vld [vmem:[#allocation3 + $0x70] sm:$0xff]   ;;  %2430 = vst [vmem:[#allocation2 + $0x8e8] sm:$0xff] %v13703_v40 }
  0x51   :  { %v8147_v23 = vld [vmem:[#allocation3 + $0x78] sm:$0xff]   ;;  %v8148_v24 = vld [vmem:[#allocation3 + $0x80] sm:$0xff]   ;;  %v8149_v25 = vld [vmem:[#allocation3 + $0x88] sm:$0xff]   ;;  %2649 = vst [vmem:[#allocation2 + $0x478] sm:$0xff] %v13703_v40 }
  0x52   :  { %v8150_v26 = vld [vmem:[#allocation3 + $0x90] sm:$0xff]   ;;  %v8151_v27 = vld [vmem:[#allocation3 + $0x98] sm:$0xff]   ;;  %v8152_v28 = vld [vmem:[#allocation3 + $0xa0] sm:$0xff]   ;;  %2650 = vst [vmem:[#allocation2 + $0x8f8] sm:$0xff] %v13703_v40 }
  0x53   :  { %7529 = vmatpush3.bf16.msra.mxu0 %v8126_v2  ;;  %v8153_v29 = vld [vmem:[#allocation3 + $0xa8] sm:$0xff]   ;;  %v8154_v30 = vld [vmem:[#allocation3 + $0xb0] sm:$0xff]   ;;  %v8155_v31 = vld [vmem:[#allocation3 + $0xb8] sm:$0xff]  }
  0x54   :  { %7530 = vmatprep.subr.bf16.mxu0 %v8127_v3  ;;  %v8156_v32 = vld [vmem:[#allocation3 + $0xc0] sm:$0xff]   ;;  %v8157_v33 = vld [vmem:[#allocation3 + $0xc8] sm:$0xff]   ;;  %v8158_v34 = vld [vmem:[#allocation3 + $0xd0] sm:$0xff]  }
  0x55   :  { %v8159_v35 = vld [vmem:[#allocation3 + $0xd8] sm:$0xff]   ;;  %v8160_v36 = vld [vmem:[#allocation3 + $0xe0] sm:$0xff]   ;;  %v8161_v37 = vld [vmem:[#allocation3 + $0xe8] sm:$0xff]  }
  0x56   :  { %v8162_v38 = vld [vmem:[#allocation3 + $0xf0] sm:$0xff]   ;;  %v8163_v39 = vld [vmem:[#allocation3 + $0xf8] sm:$0xff]   ;;  %v8164_v41 = vld [vmem:[#allocation8] sm:$0xff]  }
  0x57   :  { %7531 = vmatpush3.bf16.msra.mxu0 %v8127_v3  ;;  %vm9032_vm3 = vmand %vm1391_vm0, %vm1392_vm1 }
  0x58   :  { %7532 = vmatprep.subr.bf16.mxu0 %v8128_v5  ;;  %vm9055_vm4 = vmand %vm1391_vm0, %vm1707_vm2 }
  0x59   :  { %vm10932_vm7 = vmand %vm1486_vm5, %vm1487_vm6 }
  0x5a   :  { %vm10942_vm10 = vmand %vm1801_vm8, %vm1802_vm9 }
  0x5b   :  { %7533 = vmatpush3.bf16.msra.mxu0 %v8128_v5 }
  0x5c   :  { %7534 = vmatprep.subr.bf16.mxu0 %v8129_v6 }
  0x5f   :  { %7535 = vmatpush3.bf16.msra.mxu0 %v8129_v6 }
  0x60   :  { %7536 = vmatprep.subr.bf16.mxu0 %v8130_v7 }
  0x63   :  { %7537 = vmatpush3.bf16.msra.mxu0 %v8130_v7 }
  0x64   :  { %7538 = vmatprep.subr.bf16.mxu0 %v8131_v8 }
  0x67   :  { %7539 = vmatpush3.bf16.msra.mxu0 %v8131_v8 }
  0x68   :  { %3611 = vmatprep.subr.bf16.mxu0 %v13703_v40 }
  0x6a   :  { %7541 = vmatmul.mubr.bf16.vlgmr.msra.gmra.mrb[0].mxu0 %v8133_v9 }
  0x6b   :  { %7544 = vmatprep.mubr.bf16.mxu0 %v8134_v10  ;;  %3612 = vmatpush1.bf16.msra.mxu0 %v8164_v41 }
  0x6c   :  { %3613 = vmatprep.subr.bf16.mxu0 %v13703_v40 }
  0x72   :  { %7545 = vmatmul.mubr.bf16.gmra.mrb[4].mxu0 %v8135_v11 }
  0x73   :  { %7548 = vmatprep.mubr.bf16.mxu0 %v8136_v12 }
  0x7a   :  { %7549 = vmatmul.mubr.bf16.gmra.mrb[8].mxu0 %v8137_v13 }
  0x7b   :  { %7552 = vmatprep.mubr.bf16.mxu0 %v8138_v14 }
  0x82   :  { %7553 = vmatmul.mubr.bf16.gmra.mrb[12].mxu0 %v8139_v15 }
  0x83   :  { %7556 = vmatprep.mubr.bf16.mxu0 %v8140_v16 }
  0x8a   :  { %7557 = vmatmul.mubr.bf16.gmra.mrb[16].mxu0 %v8141_v17 }
  0x8b   :  { %7560 = vmatprep.mubr.bf16.mxu0 %v8142_v18 }
  0x92   :  { %7561 = vmatmul.mubr.bf16.gmra.mrb[20].mxu0 %v8143_v19 }
  0x93   :  { %7564 = vmatprep.mubr.bf16.mxu0 %v8144_v20 }
  0x9a   :  { %7565 = vmatmul.mubr.bf16.gmra.mrb[24].mxu0 %v8145_v21 }
  0x9b   :  { %7568 = vmatprep.mubr.bf16.mxu0 %v8146_v22 }
  0xa2   :  { %7569 = vmatmul.mubr.bf16.gmra.mrb[28].mxu0 %v8147_v23 }
  0xa3   :  { %7572 = vmatprep.mubr.bf16.mxu0 %v8148_v24 }
  0xaa   :  { %7573 = vmatmul.mubr.bf16.gmra.mrb[32].mxu0 %v8149_v25 }
  0xab   :  { %7576 = vmatprep.mubr.bf16.mxu0 %v8150_v26 }
  0xb2   :  { %7577 = vmatmul.mubr.bf16.gmra.mrb[36].mxu0 %v8151_v27 }
  0xb3   :  { %7580 = vmatprep.mubr.bf16.mxu0 %v8152_v28 }
  0xba   :  { %7581 = vmatmul.mubr.bf16.gmra.mrb[40].mxu0 %v8153_v29 }
  0xbb   :  { %7584 = vmatprep.mubr.bf16.mxu0 %v8154_v30 }
  0xc2   :  { %7585 = vmatmul.mubr.bf16.gmra.mrb[44].mxu0 %v8155_v31 }
  0xc3   :  { %7588 = vmatprep.mubr.bf16.mxu0 %v8156_v32 }
  0xca   :  { %7589 = vmatmul.mubr.bf16.gmra.mrb[48].mxu0 %v8157_v33 }
  0xcb   :  { %7592 = vmatprep.mubr.bf16.mxu0 %v8158_v34 }
  0xd2   :  { %7593 = vmatmul.mubr.bf16.gmra.mrb[52].mxu0 %v8159_v35 }
  0xd3   :  { %7596 = vmatprep.mubr.bf16.mxu0 %v8160_v36 }
  0xda   :  { %7597 = vmatmul.mubr.bf16.gmra.mrb[56].mxu0 %v8161_v37 }
  0xdb   :  { %7600 = vmatprep.mubr.bf16.mxu0 %v8162_v38 }
  0xe2   :  { %7601 = vmatmul.mubr.bf16.gmra.mrb[60].mxu0 %v8163_v39 }
  0xe3   :  { %3643 = vmatprep.mubr.bf16.mxu0 %v13703_v40 }
 0x13d   :  { %v8538_v42 = vpop.f32.mrb[0].mxu0 }
 0x13e   :  { %v8540_v43 = vpop.f32.mrb[1].mxu0  ;;  %v773_v49 = vmul.f32 %v8538_v42, %v8538_v42 }
 0x13f   :  { %v8542_v44 = vpop.f32.mrb[2].mxu0  ;;  %v771_v46 = vmul.f32 %v8540_v43, %v8540_v43 }
 0x140   :  { %v8544_v45 = vpop.f32.mrb[3].mxu0  ;;  %v774_v52 = vmul.f32 %v8542_v44, %v8542_v44 }
 0x141   :  { %v701_v47 = vadd.f32 %v8544_v45, %v8540_v43  ;;  %v772_v48 = vmul.f32 %v8544_v45, %v8544_v45 }
 0x143   :  { %v702_v50 = vadd.f32 %v8538_v42, %v701_v47  ;;  %v835_v51 = vadd.f32 %v772_v48, %v771_v46 }
 0x145   :  { %v836_v53 = vadd.f32 %v835_v51, %v773_v49  ;;  %v8557_v54 = vpop.f32.mrb[4].mxu0  ;;  %v703_v55 = vadd.f32 %v8542_v44, %v702_v50 }
 0x146   :  { %v8560_v56 = vpop.f32.mrb[5].mxu0  ;;  %v777_v1 = vmul.f32 %v8557_v54, %v8557_v54 }
 0x147   :  { %v704_v57 = vadd.f32 %v703_v55, %v8560_v56  ;;  %v775_v58 = vmul.f32 %v8560_v56, %v8560_v56  ;;  %v837_v59 = vadd.f32 %v836_v53, %v774_v52  ;;  %v8565_v60 = vpop.f32.mrb[6].mxu0 }
 0x148   :  { %v8567_v61 = vpop.f32.mrb[7].mxu0  ;;  %v778_v4 = vmul.f32 %v8565_v60, %v8565_v60 }
 0x149   :  { %v838_v62 = vadd.f32 %v837_v59, %v775_v58  ;;  %v705_v63 = vadd.f32 %v704_v57, %v8567_v61  ;;  %v776_v0 = vmul.f32 %v8567_v61, %v8567_v61 }
 0x14b   :  { %v706_v2 = vadd.f32 %v8557_v54, %v705_v63  ;;  %v839_v3 = vadd.f32 %v838_v62, %v776_v0 }
 0x14d   :  { %v840_v5 = vadd.f32 %v839_v3, %v777_v1  ;;  %v8577_v6 = vpop.f32.mrb[8].mxu0  ;;  %v707_v7 = vadd.f32 %v8565_v60, %v706_v2 }
 0x14e   :  { %v8580_v8 = vpop.f32.mrb[9].mxu0  ;;  %v781_v17 = vmul.f32 %v8577_v6, %v8577_v6 }
 0x14f   :  { %v708_v9 = vadd.f32 %v707_v7, %v8580_v8  ;;  %v779_v10 = vmul.f32 %v8580_v8, %v8580_v8  ;;  %v841_v11 = vadd.f32 %v840_v5, %v778_v4  ;;  %v8585_v12 = vpop.f32.mrb[10].mxu0 }
 0x150   :  { %v8587_v13 = vpop.f32.mrb[11].mxu0  ;;  %v782_v20 = vmul.f32 %v8585_v12, %v8585_v12 }
 0x151   :  { %v842_v14 = vadd.f32 %v841_v11, %v779_v10  ;;  %v709_v15 = vadd.f32 %v708_v9, %v8587_v13  ;;  %v780_v16 = vmul.f32 %v8587_v13, %v8587_v13 }
 0x153   :  { %v710_v18 = vadd.f32 %v8577_v6, %v709_v15  ;;  %v843_v19 = vadd.f32 %v842_v14, %v780_v16 }
 0x155   :  { %v844_v21 = vadd.f32 %v843_v19, %v781_v17  ;;  %v8597_v22 = vpop.f32.mrb[12].mxu0  ;;  %v711_v23 = vadd.f32 %v8585_v12, %v710_v18 }
 0x156   :  { %v8600_v24 = vpop.f32.mrb[13].mxu0  ;;  %v785_v33 = vmul.f32 %v8597_v22, %v8597_v22 }
 0x157   :  { %v712_v25 = vadd.f32 %v711_v23, %v8600_v24  ;;  %v783_v26 = vmul.f32 %v8600_v24, %v8600_v24  ;;  %v845_v27 = vadd.f32 %v844_v21, %v782_v20  ;;  %v8605_v28 = vpop.f32.mrb[14].mxu0 }
 0x158   :  { %v8607_v29 = vpop.f32.mrb[15].mxu0  ;;  %v786_v36 = vmul.f32 %v8605_v28, %v8605_v28 }
 0x159   :  { %v846_v30 = vadd.f32 %v845_v27, %v783_v26  ;;  %v713_v31 = vadd.f32 %v712_v25, %v8607_v29  ;;  %v784_v32 = vmul.f32 %v8607_v29, %v8607_v29 }
 0x15b   :  { %v714_v34 = vadd.f32 %v8597_v22, %v713_v31  ;;  %v847_v35 = vadd.f32 %v846_v30, %v784_v32 }
 0x15d   :  { %v848_v37 = vadd.f32 %v847_v35, %v785_v33  ;;  %v8617_v38 = vpop.f32.mrb[16].mxu0  ;;  %v715_v39 = vadd.f32 %v8605_v28, %v714_v34 }
 0x15e   :  { %v8620_v41 = vpop.f32.mrb[17].mxu0  ;;  %v789_v55 = vmul.f32 %v8617_v38, %v8617_v38 }
 0x15f   :  { %v716_v46 = vadd.f32 %v715_v39, %v8620_v41  ;;  %v787_v47 = vmul.f32 %v8620_v41, %v8620_v41  ;;  %v849_v48 = vadd.f32 %v848_v37, %v786_v36  ;;  %v8625_v49 = vpop.f32.mrb[18].mxu0 }
 0x160   :  { %v8627_v50 = vpop.f32.mrb[19].mxu0  ;;  %v790_v59 = vmul.f32 %v8625_v49, %v8625_v49 }
 0x161   :  { %v850_v51 = vadd.f32 %v849_v48, %v787_v47  ;;  %v717_v52 = vadd.f32 %v716_v46, %v8627_v50  ;;  %v788_v53 = vmul.f32 %v8627_v50, %v8627_v50 }
 0x163   :  { %v718_v57 = vadd.f32 %v8617_v38, %v717_v52  ;;  %v851_v58 = vadd.f32 %v850_v51, %v788_v53 }
 0x165   :  { %v852_v62 = vadd.f32 %v851_v58, %v789_v55  ;;  %v8637_v63 = vpop.f32.mrb[20].mxu0  ;;  %v719_v0 = vadd.f32 %v8625_v49, %v718_v57 }
 0x166   :  { %v8640_v1 = vpop.f32.mrb[21].mxu0  ;;  %v793_v14 = vmul.f32 %v8637_v63, %v8637_v63 }
 0x167   :  { %v720_v2 = vadd.f32 %v719_v0, %v8640_v1  ;;  %v791_v3 = vmul.f32 %v8640_v1, %v8640_v1  ;;  %v853_v4 = vadd.f32 %v852_v62, %v790_v59  ;;  %v8645_v5 = vpop.f32.mrb[22].mxu0 }
 0x168   :  { %v8647_v7 = vpop.f32.mrb[23].mxu0  ;;  %v794_v17 = vmul.f32 %v8645_v5, %v8645_v5 }
 0x169   :  { %v854_v9 = vadd.f32 %v853_v4, %v791_v3  ;;  %v721_v10 = vadd.f32 %v720_v2, %v8647_v7  ;;  %v792_v11 = vmul.f32 %v8647_v7, %v8647_v7 }
 0x16b   :  { %v722_v15 = vadd.f32 %v8637_v63, %v721_v10  ;;  %v855_v16 = vadd.f32 %v854_v9, %v792_v11 }
 0x16d   :  { %v856_v18 = vadd.f32 %v855_v16, %v793_v14  ;;  %v8657_v19 = vpop.f32.mrb[24].mxu0  ;;  %v723_v20 = vadd.f32 %v8645_v5, %v722_v15 }
 0x16e   :  { %v8660_v21 = vpop.f32.mrb[25].mxu0  ;;  %v797_v34 = vmul.f32 %v8657_v19, %v8657_v19 }
 0x16f   :  { %v724_v23 = vadd.f32 %v723_v20, %v8660_v21  ;;  %v795_v25 = vmul.f32 %v8660_v21, %v8660_v21  ;;  %v857_v26 = vadd.f32 %v856_v18, %v794_v17  ;;  %v8665_v27 = vpop.f32.mrb[26].mxu0 }
 0x170   :  { %v8667_v30 = vpop.f32.mrb[27].mxu0  ;;  %v798_v37 = vmul.f32 %v8665_v27, %v8665_v27 }
 0x171   :  { %v858_v31 = vadd.f32 %v857_v26, %v795_v25  ;;  %v725_v32 = vadd.f32 %v724_v23, %v8667_v30  ;;  %v796_v33 = vmul.f32 %v8667_v30, %v8667_v30 }
 0x173   :  { %v726_v35 = vadd.f32 %v8657_v19, %v725_v32  ;;  %v859_v36 = vadd.f32 %v858_v31, %v796_v33 }
 0x175   :  { %v860_v39 = vadd.f32 %v859_v36, %v797_v34  ;;  %v8677_v46 = vpop.f32.mrb[28].mxu0  ;;  %v727_v47 = vadd.f32 %v8665_v27, %v726_v35 }
 0x176   :  { %v8680_v48 = vpop.f32.mrb[29].mxu0  ;;  %v801_v0 = vmul.f32 %v8677_v46, %v8677_v46 }
 0x177   :  { %v728_v51 = vadd.f32 %v727_v47, %v8680_v48  ;;  %v799_v52 = vmul.f32 %v8680_v48, %v8680_v48  ;;  %v861_v53 = vadd.f32 %v860_v39, %v798_v37  ;;  %v8685_v55 = vpop.f32.mrb[30].mxu0 }
 0x178   :  { %v8687_v57 = vpop.f32.mrb[31].mxu0  ;;  %v802_v4 = vmul.f32 %v8685_v55, %v8685_v55 }
 0x179   :  { %v862_v58 = vadd.f32 %v861_v53, %v799_v52  ;;  %v729_v59 = vadd.f32 %v728_v51, %v8687_v57  ;;  %v800_v62 = vmul.f32 %v8687_v57, %v8687_v57 }
 0x17b   :  { %v730_v2 = vadd.f32 %v8677_v46, %v729_v59  ;;  %v863_v3 = vadd.f32 %v862_v58, %v800_v62 }
 0x17d   :  { %v864_v9 = vadd.f32 %v863_v3, %v801_v0  ;;  %v8697_v10 = vpop.f32.mrb[32].mxu0  ;;  %v731_v11 = vadd.f32 %v8685_v55, %v730_v2 }
 0x17e   :  { %v8700_v14 = vpop.f32.mrb[33].mxu0  ;;  %v805_v31 = vmul.f32 %v8697_v10, %v8697_v10 }
 0x17f   :  { %v732_v15 = vadd.f32 %v731_v11, %v8700_v14  ;;  %v803_v16 = vmul.f32 %v8700_v14, %v8700_v14  ;;  %v865_v17 = vadd.f32 %v864_v9, %v802_v4  ;;  %v8705_v18 = vpop.f32.mrb[34].mxu0 }
 0x180   :  { %v8707_v20 = vpop.f32.mrb[35].mxu0  ;;  %v806_v34 = vmul.f32 %v8705_v18, %v8705_v18 }
 0x181   :  { %v866_v23 = vadd.f32 %v865_v17, %v803_v16  ;;  %v733_v25 = vadd.f32 %v732_v15, %v8707_v20  ;;  %v804_v26 = vmul.f32 %v8707_v20, %v8707_v20 }
 0x183   :  { %v734_v32 = vadd.f32 %v8697_v10, %v733_v25  ;;  %v867_v33 = vadd.f32 %v866_v23, %v804_v26 }
 0x185   :  { %v868_v35 = vadd.f32 %v867_v33, %v805_v31  ;;  %v8717_v36 = vpop.f32.mrb[36].mxu0  ;;  %v735_v37 = vadd.f32 %v8705_v18, %v734_v32 }
 0x186   :  { %v8720_v39 = vpop.f32.mrb[37].mxu0  ;;  %v809_v2 = vmul.f32 %v8717_v36, %v8717_v36 }
 0x187   :  { %v736_v47 = vadd.f32 %v735_v37, %v8720_v39  ;;  %v807_v51 = vmul.f32 %v8720_v39, %v8720_v39  ;;  %v869_v52 = vadd.f32 %v868_v35, %v806_v34  ;;  %v8725_v53 = vpop.f32.mrb[38].mxu0 }
 0x188   :  { %v8727_v58 = vpop.f32.mrb[39].mxu0  ;;  %v810_v9 = vmul.f32 %v8725_v53, %v8725_v53 }
 0x189   :  { %v870_v59 = vadd.f32 %v869_v52, %v807_v51  ;;  %v737_v62 = vadd.f32 %v736_v47, %v8727_v58  ;;  %v808_v0 = vmul.f32 %v8727_v58, %v8727_v58 }
 0x18b   :  { %v738_v3 = vadd.f32 %v8717_v36, %v737_v62  ;;  %v871_v4 = vadd.f32 %v870_v59, %v808_v0 }
 0x18d   :  { %v872_v11 = vadd.f32 %v871_v4, %v809_v2  ;;  %v8737_v15 = vpop.f32.mrb[40].mxu0  ;;  %v739_v16 = vadd.f32 %v8725_v53, %v738_v3 }
 0x18e   :  { %14010 = vst [vmem:[#allocation16_spill] sm:$0xff] %v8737_v15  ;;  %v8740_v17 = vpop.f32.mrb[41].mxu0  ;;  %v813_v37 = vmul.f32 %v8737_v15, %v8737_v15 }
 0x18f   :  { %v740_v23 = vadd.f32 %v739_v16, %v8740_v17  ;;  %v811_v25 = vmul.f32 %v8740_v17, %v8740_v17  ;;  %v873_v26 = vadd.f32 %v872_v11, %v810_v9  ;;  %v8745_v31 = vpop.f32.mrb[42].mxu0 }
 0x190   :  { %14011 = vst [vmem:[#allocation17_spill] sm:$0xff] %v8745_v31  ;;  %v8747_v32 = vpop.f32.mrb[43].mxu0  ;;  %v814_v52 = vmul.f32 %v8745_v31, %v8745_v31 }
 0x191   :  { %v874_v33 = vadd.f32 %v873_v26, %v811_v25  ;;  %v741_v34 = vadd.f32 %v740_v23, %v8747_v32  ;;  %v812_v35 = vmul.f32 %v8747_v32, %v8747_v32 }
 0x193   :  { %v742_v47 = vadd.f32 %v8737_v15, %v741_v34  ;;  %v875_v51 = vadd.f32 %v874_v33, %v812_v35 }
 0x195   :  { %v876_v59 = vadd.f32 %v875_v51, %v813_v37  ;;  %v8757_v62 = vpop.f32.mrb[44].mxu0  ;;  %v743_v0 = vadd.f32 %v8745_v31, %v742_v47 }
 0x196   :  { %14012 = vst [vmem:[#allocation18_spill] sm:$0xff] %v8757_v62  ;;  %v8760_v2 = vpop.f32.mrb[45].mxu0  ;;  %v817_v33 = vmul.f32 %v8757_v62, %v8757_v62 }
 0x197   :  { %14013 = vst [vmem:[#allocation19_spill] sm:$0xff] %v8760_v2  ;;  %v744_v3 = vadd.f32 %v743_v0, %v8760_v2  ;;  %v815_v4 = vmul.f32 %v8760_v2, %v8760_v2  ;;  %v877_v9 = vadd.f32 %v876_v59, %v814_v52  ;;  %v8765_v11 = vpop.f32.mrb[46].mxu0 }
 0x198   :  { %14014 = vst [vmem:[#allocation20_spill] sm:$0xff] %v8765_v11  ;;  %v8767_v16 = vpop.f32.mrb[47].mxu0  ;;  %v818_v37 = vmul.f32 %v8765_v11, %v8765_v11 }
 0x199   :  { %14015 = vst [vmem:[#allocation21_spill] sm:$0xff] %v8767_v16  ;;  %v878_v23 = vadd.f32 %v877_v9, %v815_v4  ;;  %v745_v25 = vadd.f32 %v744_v3, %v8767_v16  ;;  %v816_v26 = vmul.f32 %v8767_v16, %v8767_v16 }
 0x19b   :  { %v746_v34 = vadd.f32 %v8757_v62, %v745_v25  ;;  %v879_v35 = vadd.f32 %v878_v23, %v816_v26  ;;  %v8166_v62 = vld [vmem:[#allocation8 + $0x10] sm:$0xff]  }
 0x19d   :  { %v880_v47 = vadd.f32 %v879_v35, %v817_v33  ;;  %v8777_v51 = vpop.f32.mrb[48].mxu0  ;;  %v747_v52 = vadd.f32 %v8765_v11, %v746_v34 }
 0x19e   :  { %14016 = vst [vmem:[#allocation22_spill] sm:$0xff] %v8777_v51  ;;  %v8780_v59 = vpop.f32.mrb[49].mxu0  ;;  %v821_v34 = vmul.f32 %v8777_v51, %v8777_v51 }
 0x19f   :  { %14017 = vst [vmem:[#allocation23_spill] sm:$0xff] %v8780_v59  ;;  %v748_v0 = vadd.f32 %v747_v52, %v8780_v59  ;;  %v819_v3 = vmul.f32 %v8780_v59, %v8780_v59  ;;  %v881_v4 = vadd.f32 %v880_v47, %v818_v37  ;;  %v8785_v9 = vpop.f32.mrb[50].mxu0 }
 0x1a0   :  { %14018 = vst [vmem:[#allocation24_spill] sm:$0xff] %v8785_v9  ;;  %v8787_v25 = vpop.f32.mrb[51].mxu0  ;;  %v822_v40 = vmul.f32 %v8785_v9, %v8785_v9 }
 0x1a1   :  { %14019 = vst [vmem:[#allocation25_spill] sm:$0xff] %v8787_v25  ;;  %v882_v23 = vadd.f32 %v881_v4, %v819_v3  ;;  %v749_v26 = vadd.f32 %v748_v0, %v8787_v25  ;;  %v820_v33 = vmul.f32 %v8787_v25, %v8787_v25 }
 0x1a3   :  { %v750_v35 = vadd.f32 %v8777_v51, %v749_v26  ;;  %v883_v52 = vadd.f32 %v882_v23, %v820_v33 }
 0x1a5   :  { %v884_v37 = vadd.f32 %v883_v52, %v821_v34  ;;  %v8797_v47 = vpop.f32.mrb[52].mxu0  ;;  %v751_v59 = vadd.f32 %v8785_v9, %v750_v35 }
 0x1a6   :  { %14020 = vst [vmem:[#allocation26_spill] sm:$0xff] %v8797_v47  ;;  %v8800_v3 = vpop.f32.mrb[53].mxu0  ;;  %v825_v35 = vmul.f32 %v8797_v47, %v8797_v47 }
 0x1a7   :  { %14021 = vst [vmem:[#allocation27_spill] sm:$0xff] %v8800_v3  ;;  %v752_v0 = vadd.f32 %v751_v59, %v8800_v3  ;;  %v823_v4 = vmul.f32 %v8800_v3, %v8800_v3  ;;  %v885_v25 = vadd.f32 %v884_v37, %v822_v40  ;;  %v8805_v11 = vpop.f32.mrb[54].mxu0 }
 0x1a8   :  { %14022 = vst [vmem:[#allocation28_spill] sm:$0xff] %v8805_v11  ;;  %v8807_v26 = vpop.f32.mrb[55].mxu0  ;;  %v826_v3 = vmul.f32 %v8805_v11, %v8805_v11 }
 0x1a9   :  { %14023 = vst [vmem:[#allocation29_spill] sm:$0xff] %v8807_v26  ;;  %v886_v23 = vadd.f32 %v885_v25, %v823_v4  ;;  %v753_v33 = vadd.f32 %v752_v0, %v8807_v26  ;;  %v824_v34 = vmul.f32 %v8807_v26, %v8807_v26 }
 0x1ab   :  { %v754_v52 = vadd.f32 %v8797_v47, %v753_v33  ;;  %v887_v59 = vadd.f32 %v886_v23, %v824_v34 }
 0x1ad   :  { %v888_v40 = vadd.f32 %v887_v59, %v825_v35  ;;  %v8817_v37 = vpop.f32.mrb[56].mxu0  ;;  %v755_v9 = vadd.f32 %v8805_v11, %v754_v52 }
 0x1ae   :  { %14024 = vst [vmem:[#allocation30_spill] sm:$0xff] %v8817_v37  ;;  %v8820_v25 = vpop.f32.mrb[57].mxu0  ;;  %v829_v52 = vmul.f32 %v8817_v37, %v8817_v37 }
 0x1af   :  { %14025 = vst [vmem:[#allocation31_spill] sm:$0xff] %v8820_v25  ;;  %v756_v0 = vadd.f32 %v755_v9, %v8820_v25  ;;  %v827_v4 = vmul.f32 %v8820_v25, %v8820_v25  ;;  %v889_v26 = vadd.f32 %v888_v40, %v826_v3  ;;  %v8825_v51 = vpop.f32.mrb[58].mxu0 }
 0x1b0   :  { %14026 = vst [vmem:[#allocation32_spill] sm:$0xff] %v8825_v51  ;;  %v8827_v33 = vpop.f32.mrb[59].mxu0  ;;  %v830_v25 = vmul.f32 %v8825_v51, %v8825_v51 }
 0x1b1   :  { %14027 = vst [vmem:[#allocation33_spill] sm:$0xff] %v8827_v33  ;;  %v890_v23 = vadd.f32 %v889_v26, %v827_v4  ;;  %v757_v34 = vadd.f32 %v756_v0, %v8827_v33  ;;  %v828_v35 = vmul.f32 %v8827_v33, %v8827_v33 }
 0x1b3   :  { %v758_v59 = vadd.f32 %v8817_v37, %v757_v34  ;;  %v891_v9 = vadd.f32 %v890_v23, %v828_v35 }
 0x1b5   :  { %v892_v3 = vadd.f32 %v891_v9, %v829_v52  ;;  %v8837_v40 = vpop.f32.mrb[60].mxu0  ;;  %v759_v11 = vadd.f32 %v8825_v51, %v758_v59  ;;  %v8165_v51 = vld [vmem:[#allocation8 + $0x8] sm:$0xff]  }
 0x1b6   :  { %14028 = vst [vmem:[#allocation34_spill] sm:$0xff] %v8837_v40  ;;  %v8840_v26 = vpop.f32.mrb[61].mxu0  ;;  %v833_v59 = vmul.f32 %v8837_v40, %v8837_v40  ;;  %3614 = vmatpush1.bf16.msra.mxu0 %v8165_v51  ;;  %v8168_v51 = vld [vmem:[#allocation8 + $0x20] sm:$0xff]  }
 0x1b7   :  { %v760_v0 = vadd.f32 %v759_v11, %v8840_v26  ;;  %v831_v4 = vmul.f32 %v8840_v26, %v8840_v26  ;;  %v893_v33 = vadd.f32 %v892_v3, %v830_v25  ;;  %v8845_v47 = vpop.f32.mrb[62].mxu0 }
 0x1b8   :  { %v8847_v34 = vpop.f32.mrb[63].mxu0  ;;  %v834_v25 = vmul.f32 %v8845_v47, %v8845_v47 }
 0x1b9   :  { %v894_v23 = vadd.f32 %v893_v33, %v831_v4  ;;  %v761_v35 = vadd.f32 %v760_v0, %v8847_v34  ;;  %v832_v52 = vmul.f32 %v8847_v34, %v8847_v34  ;;  %v14029_v0 = vmov 0  }
 0x1ba   :  { %3615 = vmatprep.subr.bf16.mxu0 %v14029_v0 }
 0x1bb   :  { %v762_v9 = vadd.f32 %v8837_v40, %v761_v35  ;;  %v895_v11 = vadd.f32 %v894_v23, %v832_v52  ;;  %3616 = vmatpush1.bf16.msra.mxu0 %v8166_v62  ;;  %v8167_v23 = vld [vmem:[#allocation8 + $0x18] sm:$0xff]   ;;  %v8170_v62 = vld [vmem:[#allocation8 + $0x28] sm:$0xff]  }
 0x1bc   :  { %3617 = vmatprep.subr.bf16.mxu0 %v14029_v0 }
 0x1bd   :  { %v763_v3 = vadd.f32 %v8845_v47, %v762_v9  ;;  %v896_v37 = vadd.f32 %v895_v11, %v833_v59  ;;  %v8169_v11 = vld [vmem:[#allocation8 + $0x80] sm:$0xff]  }
 0x1be   :  { %7780 = vmatpush1.bf16.msra.mxu1 %v8169_v11 }
 0x1bf   :  { %v764_v33 = vrot.slane %v763_v3, 4  ;;  %v897_v4 = vadd.f32 %v896_v37, %v834_v25  ;;  %3618 = vmatpush1.bf16.msra.mxu0 %v8167_v23  ;;  %7765 = vmatprep.subr.bf16.mxu1 %v14029_v0  ;;  %v915_v23 = vlaneseq }
 0x1c0   :  { %3619 = vmatprep.subr.bf16.mxu0 %v14029_v0 }
 0x1c1   :  { %v765_v16 = vadd.f32 %v764_v33, %v763_v3  ;;  %v898_v2 = vrot.slane %v897_v4, 4 }
 0x1c3   :  { %v766_v31 = vrot.slane %v765_v16, 2  ;;  %v899_v15 = vadd.f32 %v898_v2, %v897_v4  ;;  %3620 = vmatpush1.bf16.msra.mxu0 %v8168_v51  ;;  %v8173_v4 = vld [vmem:[#allocation8 + $0x90] sm:$0xff]   ;;  %v8176_v51 = vld [vmem:[#allocation8 + $0x40] sm:$0xff]  }
 0x1c4   :  { %3621 = vmatprep.subr.bf16.mxu0 %v14029_v0 }
 0x1c5   :  { %v767_v35 = vadd.f32 %v766_v31, %v765_v16  ;;  %v900_v52 = vrot.slane %v899_v15, 2  ;;  %v8171_v31 = vld [vmem:[#allocation8 + $0x88] sm:$0xff]   ;;  %v8172_v16 = vld [vmem:[#allocation8 + $0x30] sm:$0xff]  }
 0x1c6   :  { %7781 = vmatpush1.bf16.msra.mxu1 %v8171_v31  ;;  %v911_v31 = vld [vmem:[%s13695_s3] sm:$0x1] }
 0x1c7   :  { %v768_v40 = vrot.slane %v767_v35, 1  ;;  %v901_v9 = vadd.f32 %v900_v52, %v899_v15  ;;  %3622 = vmatpush1.bf16.msra.mxu0 %v8170_v62  ;;  %7766 = vmatprep.subr.bf16.mxu1 %v14029_v0  ;;  %v8175_v52 = vld [vmem:[#allocation8 + $0x98] sm:$0xff]  }
 0x1c8   :  { %3623 = vmatprep.subr.bf16.mxu0 %v14029_v0 }
 0x1c9   :  { %v769_v37 = vadd.f32 %v768_v40, %v767_v35  ;;  %v902_v59 = vrot.slane %v901_v9, 1  ;;  %v8174_v35 = vld [vmem:[#allocation8 + $0x38] sm:$0xff]  }
 0x1ca   :  { %7782 = vmatpush1.bf16.msra.mxu1 %v8173_v4 }
 0x1cb   :  { %v770_v25 = vmul.f32 0.001953125, %v769_v37  ;;  %v903_v3 = vadd.f32 %v902_v59, %v901_v9  ;;  %3624 = vmatpush1.bf16.msra.mxu0 %v8172_v16  ;;  %7767 = vmatprep.subr.bf16.mxu1 %v14029_v0  ;;  %v916_v9 = vshrl.u32 %v915_v23, 7  ;;  %v8177_v37 = vld [vmem:[#allocation8 + $0xa0] sm:$0xff]  }
 0x1cc   :  { %3625 = vmatprep.subr.bf16.mxu0 %v14029_v0  ;;  %v907_v59 = vld [vmem:[%s13694_s2] sm:$0x1] }
 0x1cd   :  { %v904_v2 = vmul.f32 0.001953125, %v903_v3  ;;  %v905_v33 = vmul.f32 %v770_v25, %v770_v25  ;;  %v8873_v11 = vsub.s32 0, %v916_v9  ;;  %v8178_v3 = vld [vmem:[#allocation8 + $0x48] sm:$0xff]  }
 0x1ce   :  { %7783 = vmatpush1.bf16.msra.mxu1 %v8175_v52 }
 0x1cf   :  { %v906_v15 = vsub.f32 %v904_v2, %v905_v33  ;;  %3626 = vmatpush1.bf16.msra.mxu0 %v8174_v35  ;;  %7768 = vmatprep.subr.bf16.mxu1 %v14029_v0  ;;  %14030 = vst [vmem:[#allocation35_spill] sm:$0xff] %v8873_v11  ;;  %v8179_v33 = vld [vmem:[#allocation8 + $0xa8] sm:$0xff]  }
 0x1d0   :  { %3627 = vmatprep.subr.bf16.mxu0 %v14029_v0 }
 0x1d1   :  { %v908_v40 = vadd.f32 1e-05, %v906_v15 }
 0x1d2   :  { %7784 = vmatpush1.bf16.msra.mxu1 %v8177_v37 }
 0x1d3   :  { %8244 = vrsqrt.f32 %v908_v40  ;;  %3628 = vmatpush1.bf16.msra.mxu0 %v8176_v51  ;;  %7769 = vmatprep.subr.bf16.mxu1 %v14029_v0  ;;  %v8180_v40 = vld [vmem:[#allocation8 + $0x50] sm:$0xff]  }
 0x1d4   :  { %3629 = vmatprep.subr.bf16.mxu0 %v14029_v0 }
 0x1d6   :  { %7785 = vmatpush1.bf16.msra.mxu1 %v8179_v33 }
 0x1d7   :  { %3630 = vmatpush1.bf16.msra.mxu0 %v8178_v3  ;;  %7770 = vmatprep.subr.bf16.mxu1 %v14029_v0 }
 0x1d8   :  { %3631 = vmatprep.subr.bf16.mxu0 %v14029_v0 }
 0x1db   :  { %3632 = vmatpush1.bf16.msra.mxu0 %v8180_v40 }
 0x1dc   :  { %3633 = vmatprep.subr.bf16.mxu0 %v14029_v0 }
 0x1dd   :  { %v8245_v62 = vpop.eup %8244 }
 0x1de   :  { %v910_v2 = vmul.f32 %v8245_v62, %v907_v59 }
 0x1e0   :  { %v912_v15 = vmul.f32 %v910_v2, %v770_v25  ;;  %v8881_v16 = vrot.slane %v910_v2, %v8873_v11  ;;  %v8181_v25 = vld [vmem:[#allocation8 + $0xb0] sm:$0xff]  }
 0x1e1   :  { %7786 = vmatpush1.bf16.msra.mxu1 %v8181_v25 }
 0x1e2   :  { %v913_v4 = vsub.f32 %v911_v31, %v912_v15  ;;  %v980_v23 = vmul.f32 %v8881_v16, %v8840_v26  ;;  %v981_v35 = vmul.f32 %v8881_v16, %v8847_v34  ;;  %v8890_v52 = vmul.f32 %v8881_v16, %v8540_v43  ;;  %7771 = vmatprep.subr.bf16.mxu1 %v14029_v0  ;;  %v8184_v31 = vld [vmem:[#allocation8 + $0x60] sm:$0xff]  }
 0x1e3   :  { %v8894_v9 = vmul.f32 %v8881_v16, %v8544_v45  ;;  %v8898_v51 = vmul.f32 %v8538_v42, %v8881_v16  ;;  %v8902_v26 = vmul.f32 %v8542_v44, %v8881_v16  ;;  %v8906_v34 = vmul.f32 %v8881_v16, %v8560_v56  ;;  %v8182_v56 = vld [vmem:[#allocation8 + $0x58] sm:$0xff]  }
 0x1e4   :  { %v8910_v43 = vrot.slane %v913_v4, %v8873_v11  ;;  %v8914_v45 = vmul.f32 %v8881_v16, %v8567_v61  ;;  %v8918_v42 = vmul.f32 %v8557_v54, %v8881_v16  ;;  %v8922_v44 = vmul.f32 %v8565_v60, %v8881_v16  ;;  %3634 = vmatpush1.bf16.msra.mxu0 %v8182_v56 }
 0x1e5   :  { %v8926_v37 = vmul.f32 %v8881_v16, %v8580_v8  ;;  %v8930_v59 = vmul.f32 %v8881_v16, %v8587_v13  ;;  %v8934_v61 = vmul.f32 %v8577_v6, %v8881_v16  ;;  %v8938_v54 = vmul.f32 %v8585_v12, %v8881_v16  ;;  %v8183_v6 = vld [vmem:[#allocation8 + $0xb8] sm:$0xff]   ;;  %3635 = vmatprep.subr.bf16.mxu0 %v14029_v0 }
 0x1e6   :  { %v1050_v60 = vadd.f32 %v8910_v43, %v980_v23  ;;  %v1051_v3 = vadd.f32 %v8910_v43, %v981_v35  ;;  %v8945_v8 = vmul.f32 %v8881_v16, %v8600_v24  ;;  %v8949_v13 = vmul.f32 %v8881_v16, %v8607_v29  ;;  %7787 = vmatpush1.bf16.msra.mxu1 %v8183_v6  ;;  %v1796_v6 = vld [vmem:[#allocation2 + $0x8c8] sm:$0xff] }
 0x1e7   :  { %v8953_v12 = vmul.f32 %v8597_v22, %v8881_v16  ;;  %v8957_v62 = vmul.f32 %v8605_v28, %v8881_v16  ;;  %v8961_v2 = vmul.f32 %v8881_v16, %v8620_v41  ;;  %v8965_v24 = vmul.f32 %v8881_v16, %v8627_v50  ;;  %7772 = vmatprep.subr.bf16.mxu1 %v14029_v0 }
 0x1e8   :  { %v1114_v29 = vmax.f32 %v1050_v60, 0.0  ;;  %v1115_v33 = vmax.f32 %v1051_v3, 0.0  ;;  %v8970_v22 = vmul.f32 %v8617_v38, %v8881_v16  ;;  %v8974_v28 = vmul.f32 %v8625_v49, %v8881_v16  ;;  %3636 = vmatpush1.bf16.msra.mxu0 %v8184_v31  ;;  %v1481_v60 = vld [vmem:[#allocation2 + $0x8b8] sm:$0xff] }
 0x1e9   :  { %v8978_v41 = vmul.f32 %v8881_v16, %v8640_v1  ;;  %v8982_v50 = vmul.f32 %v8881_v16, %v8647_v7  ;;  %v8986_v15 = vmul.f32 %v8637_v63, %v8881_v16  ;;  %v8990_v38 = vmul.f32 %v8645_v5, %v8881_v16  ;;  %v8185_v63 = vld [vmem:[#allocation8 + $0xc0] sm:$0xff]   ;;  %3637 = vmatprep.subr.bf16.mxu0 %v14029_v0 }
 0x1ea   :  { %v1148_v49 = vpack.c.bf16 %v1115_v33, %v1114_v29  ;;  %v8995_v40 = vmul.f32 %v8881_v16, %v8660_v21  ;;  %v8999_v1 = vmul.f32 %v8881_v16, %v8667_v30  ;;  %v9003_v7 = vmul.f32 %v8657_v19, %v8881_v16  ;;  %7788 = vmatpush1.bf16.msra.mxu1 %v8185_v63  ;;  %v2006_v29 = vld [vmem:[#allocation2 + $0x888] sm:$0xff]  ;;  %v2236_v33 = vld [vmem:[#allocation2 + $0x898] sm:$0xff] }
 0x1eb   :  { %v9007_v5 = vmul.f32 %v8665_v27, %v8881_v16  ;;  %v9011_v4 = vmul.f32 %v8881_v16, %v8680_v48  ;;  %v9015_v21 = vmul.f32 %v8881_v16, %v8687_v57  ;;  %v9019_v30 = vmul.f32 %v8677_v46, %v8881_v16  ;;  %v8186_v57 = vld [vmem:[#allocation8 + $0x68] sm:$0xff]   ;;  %7773 = vmatprep.subr.bf16.mxu1 %v14029_v0 }
 0x1ec   :  { %v1354_v19 = vshrl.u32 %v1148_v49, 16  ;;  %v1357_v23 = vshll.u32 %v1148_v49, 16  ;;  %1614 = vst [vmem:[#allocation2 + $0x8c0] sm:$0xff] %v1148_v49  ;;  %2138 = vst [vmem:[#allocation2 + $0x890] sm:$0xff] %v1148_v49  ;;  %v9024_v27 = vmul.f32 %v8685_v55, %v8881_v16  ;;  %v9028_v48 = vmul.f32 %v8881_v16, %v8700_v14  ;;  %3638 = vmatpush1.bf16.msra.mxu0 %v8186_v57 }
 0x1ed   :  { %2555 = vst [vmem:[#allocation2 + $0x860] sm:$0xff] %v1148_v49  ;;  %v14031_v46 = vmov 0  ;;  %v9038_v35 = vmul.f32 %v8881_v16, %v8707_v20  ;;  %v9042_v55 = vmul.f32 %v8697_v10, %v8881_v16  ;;  %v9046_v14 = vmul.f32 %v8705_v18, %v8881_v16  ;;  %3639 = vmatprep.subr.bf16.mxu0 %v14029_v0 }
 0x1ee   :  { %v14032_v46 = vsel %vm9032_vm3, 4294967295, %v14031_v46  ;;  %v9050_v25 = vmul.f32 %v8881_v16, %v8720_v39  ;;  %v14034_v56 = vmov 0  ;;  %v1356_v20 = vrot.slane %v1354_v19, 7  ;;  %v8187_v39 = vld [vmem:[#allocation8 + $0xc8] sm:$0xff]  }
 0x1ef   :  { %14033 = vst [vmem:[#allocation36_spill] sm:$0xff] %v14032_v46  ;;  %v14035_v56 = vsel %vm9055_vm4, 4294967295, %v14034_v56  ;;  %v1675_v10 = vrot.slane %v1357_v23, 1  ;;  %v9061_v3 = vmul.f32 %v8881_v16, %v8727_v58  ;;  %v9065_v18 = vmul.f32 %v8717_v36, %v8881_v16  ;;  %v14042_v36 = vld [vmem:[#allocation16_spill] sm:$0xff]  ;;  %7789 = vmatpush1.bf16.msra.mxu1 %v8187_v39 }
 0x1f0   :  { %14036 = vst [vmem:[#allocation37_spill] sm:$0xff] %v14035_v56  ;;  %v9069_v31 = vmul.f32 %v8725_v53, %v8881_v16  ;;  %v9073_v49 = vmul.f32 %v8881_v16, %v8740_v17  ;;  %v9077_v58 = vmul.f32 %v8881_v16, %v8747_v32  ;;  %v9081_v63 = vmul.f32 %v14042_v36, %v8881_v16  ;;  %v14044_v53 = vld [vmem:[#allocation17_spill] sm:$0xff]  ;;  %v14045_v17 = vld [vmem:[#allocation19_spill] sm:$0xff]  ;;  %v8188_v32 = vld [vmem:[#allocation8 + $0x70] sm:$0xff]  }
 0x1f1   :  { %14037 = vst [vmem:[#allocation38_spill] sm:$0xff] %v9061_v3  ;;  %14038 = vst [vmem:[#allocation39_spill] sm:$0xff] %v9065_v18  ;;  %v1359_v57 = vor.u32 %v1357_v23, %v1356_v20  ;;  %v1676_v11 = vor.u32 %v1675_v10, %v1354_v19  ;;  %v2422_v18 = vld [vmem:[#allocation2 + $0x858] sm:$0xff]  ;;  %v2643_v3 = vld [vmem:[#allocation2 + $0x868] sm:$0xff]  ;;  %7774 = vmatprep.subr.bf16.mxu1 %v14029_v0  ;;  %3640 = vmatpush1.bf16.msra.mxu0 %v8188_v32 }
 0x1f2   :  { %14039 = vst [vmem:[#allocation40_spill] sm:$0xff] %v9069_v31  ;;  %14040 = vst [vmem:[#allocation41_spill] sm:$0xff] %v9073_v49  ;;  %v9086_v31 = vmul.f32 %v14044_v53, %v8881_v16  ;;  %v9090_v49 = vmul.f32 %v8881_v16, %v14045_v17  ;;  %v14049_v19 = vld [vmem:[#allocation20_spill] sm:$0xff]  ;;  %v14051_v10 = vld [vmem:[#allocation23_spill] sm:$0xff]  ;;  %3641 = vmatprep.subr.bf16.mxu0 %v14029_v0  ;;  %v9181_v56 = vadd.f32 %v8910_v43, %v8894_v9 }
 0x1f3   :  { %14041 = vst [vmem:[#allocation42_spill] sm:$0xff] %v9077_v58  ;;  %14043 = vst [vmem:[#allocation16_spill] sm:$0xff] %v9081_v63  ;;  %v14046_v58 = vld [vmem:[#allocation21_spill] sm:$0xff]  ;;  %v14047_v63 = vld [vmem:[#allocation18_spill] sm:$0xff]  ;;  %v9102_v20 = vmul.f32 %v14049_v19, %v8881_v16  ;;  %v9106_v53 = vmul.f32 %v8881_v16, %v14051_v10  ;;  %v1482_v39 = vsel %vm9032_vm3, %v1359_v57, %v1481_v60 }
 0x1f4   :  { %v9094_v36 = vmul.f32 %v8881_v16, %v14046_v58  ;;  %v9098_v23 = vmul.f32 %v14047_v63, %v8881_v16  ;;  %v1797_v58 = vsel %vm9055_vm4, %v1676_v11, %v1796_v6  ;;  %v2007_v63 = vsel %vm9032_vm3, %v1359_v57, %v2006_v29  ;;  %v8189_v19 = vld [vmem:[#allocation8 + $0xd0] sm:$0xff]   ;;  %1483 = vst [vmem:[#allocation2 + $0x8b8] sm:$0xff] %v1482_v39  ;;  %v14055_v29 = vld [vmem:[#allocation24_spill] sm:$0xff]  ;;  %v8190_v39 = vld [vmem:[#allocation8 + $0x78] sm:$0xff]  }
 0x1f5   :  { %14050 = vst [vmem:[#allocation19_spill] sm:$0xff] %v9102_v20  ;;  %14052 = vst [vmem:[#allocation21_spill] sm:$0xff] %v9106_v53  ;;  %v2237_v17 = vsel %vm9055_vm4, %v1676_v11, %v2236_v33  ;;  %v2423_v10 = vsel %vm9032_vm3, %v1359_v57, %v2422_v18  ;;  %v2644_v53 = vsel %vm9055_vm4, %v1676_v11, %v2643_v3  ;;  %v14053_v20 = vld [vmem:[#allocation25_spill] sm:$0xff]  ;;  %v14054_v6 = vld [vmem:[#allocation22_spill] sm:$0xff]  ;;  %7790 = vmatpush1.bf16.msra.mxu1 %v8189_v19 }
 0x1f6   :  { %14048 = vst [vmem:[#allocation17_spill] sm:$0xff] %v9098_v23  ;;  %v9123_v60 = vmul.f32 %v8881_v16, %v14053_v20  ;;  %v9127_v23 = vmul.f32 %v14054_v6, %v8881_v16  ;;  %1798 = vst [vmem:[#allocation2 + $0x8c8] sm:$0xff] %v1797_v58  ;;  %v9132_v18 = vmul.f32 %v14055_v29, %v8881_v16  ;;  %v14056_v33 = vld [vmem:[#allocation27_spill] sm:$0xff]  ;;  %v14057_v3 = vld [vmem:[#allocation29_spill] sm:$0xff]  ;;  %7775 = vmatprep.subr.bf16.mxu1 %v14029_v0 }
 0x1f7   :  { %2008 = vst [vmem:[#allocation2 + $0x888] sm:$0xff] %v2007_v63  ;;  %2238 = vst [vmem:[#allocation2 + $0x898] sm:$0xff] %v2237_v17  ;;  %v9136_v11 = vmul.f32 %v8881_v16, %v14056_v33  ;;  %v9140_v57 = vmul.f32 %v8881_v16, %v14057_v3  ;;  %v14058_v32 = vld [vmem:[#allocation26_spill] sm:$0xff]  ;;  %v14059_v58 = vld [vmem:[#allocation28_spill] sm:$0xff]  ;;  %3642 = vmatpush1.bf16.msra.mxu0 %v8190_v39  ;;  %v9206_v9 = vadd.f32 %v8910_v43, %v8922_v44 }
 0x1f8   :  { %v9144_v20 = vmul.f32 %v14058_v32, %v8881_v16  ;;  %2424 = vst [vmem:[#allocation2 + $0x858] sm:$0xff] %v2423_v10  ;;  %2645 = vst [vmem:[#allocation2 + $0x868] sm:$0xff] %v2644_v53  ;;  %v9148_v63 = vmul.f32 %v14059_v58, %v8881_v16  ;;  %v14060_v17 = vld [vmem:[#allocation31_spill] sm:$0xff]  ;;  %v14061_v29 = vld [vmem:[#allocation33_spill] sm:$0xff]  ;;  %3900 = vmatprep.subr.bf16.mxu0 %v14029_v0  ;;  %v9231_v44 = vadd.f32 %v8910_v43, %v8949_v13 }
 0x1f9   :  { %v9152_v6 = vmul.f32 %v8881_v16, %v14060_v17  ;;  %v9156_v33 = vmul.f32 %v8881_v16, %v14061_v29  ;;  %v14062_v3 = vld [vmem:[#allocation30_spill] sm:$0xff]  ;;  %v14063_v53 = vld [vmem:[#allocation32_spill] sm:$0xff]  ;;  %v9173_v17 = vmul.f32 %v8845_v47, %v8881_v16  ;;  %v9177_v29 = vadd.f32 %v8910_v43, %v8890_v52 }
 0x1fa   :  { %v9160_v32 = vmul.f32 %v14062_v3, %v8881_v16  ;;  %v9165_v19 = vmul.f32 %v14063_v53, %v8881_v16  ;;  %v14064_v10 = vld [vmem:[#allocation34_spill] sm:$0xff]  ;;  %v8191_v3 = vld [vmem:[#allocation8 + $0xd8] sm:$0xff]   ;;  %v9185_v53 = vadd.f32 %v8910_v43, %v8898_v51  ;;  %v9193_v47 = vadd.f32 %v8910_v43, %v8906_v34  ;;  %v14072_v39 = vld [vmem:[#allocation40_spill] sm:$0xff] }
 0x1fb   :  { %v9169_v58 = vmul.f32 %v14064_v10, %v8881_v16  ;;  %v9189_v10 = vadd.f32 %v8910_v43, %v8902_v26  ;;  %v9198_v16 = vadd.f32 %v8910_v43, %v8914_v45  ;;  %v9202_v52 = vadd.f32 %v8910_v43, %v8918_v42  ;;  %7791 = vmatpush1.bf16.msra.mxu1 %v8191_v3  ;;  %v14073_v3 = vld [vmem:[#allocation41_spill] sm:$0xff]  ;;  %v14075_v46 = vld [vmem:[#allocation42_spill] sm:$0xff] }
 0x1fc   :  { %v9210_v51 = vadd.f32 %v8910_v43, %v8926_v37  ;;  %v9214_v26 = vadd.f32 %v8910_v43, %v8930_v59  ;;  %v9218_v34 = vadd.f32 %v8910_v43, %v8934_v61  ;;  %v9222_v45 = vadd.f32 %v8910_v43, %v8938_v54  ;;  %7776 = vmatprep.subr.bf16.mxu1 %v14029_v0 }
 0x1fd   :  { %v9226_v42 = vadd.f32 %v8910_v43, %v8945_v8  ;;  %v9235_v37 = vadd.f32 %v8910_v43, %v8953_v12  ;;  %v9239_v59 = vadd.f32 %v8910_v43, %v8957_v62  ;;  %v9243_v61 = vadd.f32 %v8910_v43, %v8961_v2 }
 0x1fe   :  { %v9247_v54 = vadd.f32 %v8910_v43, %v8965_v24  ;;  %v9251_v0 = vadd.f32 %v8910_v43, %v8970_v22  ;;  %v9255_v8 = vadd.f32 %v8910_v43, %v8974_v28  ;;  %v9259_v13 = vadd.f32 %v8910_v43, %v8978_v41 }
 0x1ff   :  { %v9263_v12 = vadd.f32 %v8910_v43, %v8982_v50  ;;  %v9267_v62 = vadd.f32 %v8910_v43, %v8986_v15  ;;  %v9271_v2 = vadd.f32 %v8910_v43, %v8990_v38  ;;  %v9275_v24 = vadd.f32 %v8910_v43, %v8995_v40 }
 0x200   :  { %v9279_v22 = vadd.f32 %v8910_v43, %v8999_v1  ;;  %v9283_v28 = vadd.f32 %v8910_v43, %v9003_v7  ;;  %v9287_v41 = vadd.f32 %v8910_v43, %v9007_v5  ;;  %v9291_v50 = vadd.f32 %v8910_v43, %v9011_v4 }
 0x201   :  { %v9295_v15 = vadd.f32 %v8910_v43, %v9015_v21  ;;  %v9299_v38 = vadd.f32 %v8910_v43, %v9019_v30  ;;  %v9303_v40 = vadd.f32 %v8910_v43, %v9024_v27  ;;  %v9307_v1 = vadd.f32 %v8910_v43, %v9028_v48  ;;  %v14070_v30 = vld [vmem:[#allocation38_spill] sm:$0xff]  ;;  %v14071_v48 = vld [vmem:[#allocation39_spill] sm:$0xff] }
 0x202   :  { %14065 = vst [vmem:[#allocation18_spill] sm:$0xff] %v9283_v28  ;;  %v9311_v7 = vadd.f32 %v8910_v43, %v9038_v35  ;;  %v9315_v5 = vadd.f32 %v8910_v43, %v9042_v55  ;;  %v9319_v4 = vadd.f32 %v8910_v43, %v9046_v14  ;;  %v9323_v21 = vadd.f32 %v8910_v43, %v9050_v25 }
 0x203   :  { %14066 = vst [vmem:[#allocation20_spill] sm:$0xff] %v9303_v40  ;;  %14067 = vst [vmem:[#allocation23_spill] sm:$0xff] %v9307_v1  ;;  %v9327_v27 = vadd.f32 %v8910_v43, %v14070_v30  ;;  %v9331_v35 = vadd.f32 %v8910_v43, %v14071_v48  ;;  %v9335_v55 = vadd.f32 %v8910_v43, %v14072_v39  ;;  %v14107_v40 = vmax.f32 %v9198_v16, 0.0 }
 0x204   :  { %14068 = vst [vmem:[#allocation25_spill] sm:$0xff] %v9311_v7  ;;  %14069 = vst [vmem:[#allocation22_spill] sm:$0xff] %v9323_v21  ;;  %v9339_v14 = vadd.f32 %v8910_v43, %v14073_v3  ;;  %v9343_v25 = vadd.f32 %v8910_v43, %v14075_v46  ;;  %v14077_v21 = vld [vmem:[#allocation16_spill] sm:$0xff]  ;;  %v9351_v48 = vadd.f32 %v8910_v43, %v9086_v31  ;;  %v14102_v7 = vmax.f32 %v9177_v29, 0.0 }
 0x205   :  { %v9347_v30 = vadd.f32 %v8910_v43, %v14077_v21  ;;  %v9355_v39 = vadd.f32 %v8910_v43, %v9090_v49  ;;  %v9359_v3 = vadd.f32 %v8910_v43, %v9094_v36  ;;  %v9375_v49 = vadd.f32 %v8910_v43, %v9123_v60 }
 0x206   :  { %14074 = vst [vmem:[#allocation24_spill] sm:$0xff] %v9339_v14  ;;  %14076 = vst [vmem:[#allocation27_spill] sm:$0xff] %v9343_v25  ;;  %v14079_v14 = vld [vmem:[#allocation17_spill] sm:$0xff]  ;;  %v14080_v25 = vld [vmem:[#allocation19_spill] sm:$0xff]  ;;  %v9379_v36 = vadd.f32 %v8910_v43, %v9127_v23  ;;  %v9395_v60 = vadd.f32 %v8910_v43, %v9144_v20  ;;  %v9399_v23 = vadd.f32 %v8910_v43, %v9148_v63  ;;  %v14109_v29 = vmax.f32 %v9206_v9, 0.0 }
 0x207   :  { %14078 = vst [vmem:[#allocation29_spill] sm:$0xff] %v9347_v30  ;;  %v9363_v46 = vadd.f32 %v8910_v43, %v14079_v14  ;;  %v9367_v21 = vadd.f32 %v8910_v43, %v14080_v25  ;;  %v14082_v30 = vld [vmem:[#allocation21_spill] sm:$0xff]  ;;  %14084 = vst [vmem:[#allocation31_spill] sm:$0xff] %v9375_v49  ;;  %v9383_v14 = vadd.f32 %v8910_v43, %v9132_v18  ;;  %v14114_v16 = vmax.f32 %v9226_v42, 0.0 }
 0x208   :  { %v9371_v31 = vadd.f32 %v8910_v43, %v14082_v30  ;;  %14085 = vst [vmem:[#allocation33_spill] sm:$0xff] %v9379_v36  ;;  %v9387_v25 = vadd.f32 %v8910_v43, %v9136_v11  ;;  %v9391_v30 = vadd.f32 %v8910_v43, %v9140_v57  ;;  %v9403_v18 = vadd.f32 %v8910_v43, %v9152_v6 }
 0x209   :  { %14081 = vst [vmem:[#allocation26_spill] sm:$0xff] %v9367_v21  ;;  %14086 = vst [vmem:[#allocation30_spill] sm:$0xff] %v9383_v14  ;;  %v8192_v14 = vld [vmem:[#allocation8 + $0xe0] sm:$0xff]   ;;  %v9407_v11 = vadd.f32 %v8910_v43, %v9156_v33  ;;  %v9411_v57 = vadd.f32 %v8910_v43, %v9160_v32  ;;  %v9415_v20 = vadd.f32 %v8910_v43, %v9165_v19  ;;  %v8193_v32 = vld [vmem:[#allocation8 + $0xe8] sm:$0xff]   ;;  %v1076_v19 = vmax.f32 %v9267_v62, 0.0 }
 0x20a   :  { %14083 = vst [vmem:[#allocation28_spill] sm:$0xff] %v9371_v31  ;;  %14087 = vst [vmem:[#allocation32_spill] sm:$0xff] %v9403_v18  ;;  %v9419_v63 = vadd.f32 %v8910_v43, %v9169_v58  ;;  %v9423_v6 = vadd.f32 %v8910_v43, %v9173_v17  ;;  %7792 = vmatpush1.bf16.msra.mxu1 %v8192_v14  ;;  %v1069_v58 = vmax.f32 %v9239_v59, 0.0  ;;  %v1070_v18 = vmax.f32 %v9243_v61, 0.0  ;;  %v8194_v33 = vld [vmem:[#allocation8 + $0xf0] sm:$0xff]  }
 0x20b   :  { %14088 = vst [vmem:[#allocation34_spill] sm:$0xff] %v9407_v11  ;;  %14089 = vst [vmem:[#allocation38_spill] sm:$0xff] %v9411_v57  ;;  %v1071_v43 = vmax.f32 %v9247_v54, 0.0  ;;  %v1073_v11 = vmax.f32 %v9255_v8, 0.0  ;;  %v1074_v14 = vmax.f32 %v9259_v13, 0.0  ;;  %v1075_v57 = vmax.f32 %v9263_v12, 0.0 }
 0x20c   :  { %14090 = vst [vmem:[#allocation39_spill] sm:$0xff] %v9415_v20  ;;  %14091 = vst [vmem:[#allocation40_spill] sm:$0xff] %v9419_v63  ;;  %v8250_v63 = vld [vmem:[#allocation2] sm:$0xff]  ;;  %v1077_v20 = vmax.f32 %v9271_v2, 0.0  ;;  %v1078_v59 = vmax.f32 %v9275_v24, 0.0  ;;  %v1079_v61 = vmax.f32 %v9279_v22, 0.0 }
 0x20d   :  { %7777 = vmatprep.subr.bf16.mxu1 %v8250_v63  ;;  %v8195_v22 = vld [vmem:[#allocation8 + $0xf8] sm:$0xff]   ;;  %v14092_v28 = vld [vmem:[#allocation22_spill] sm:$0xff]  ;;  %v14093_v12 = vld [vmem:[#allocation24_spill] sm:$0xff]  ;;  %v14105_v17 = vmax.f32 %v9189_v10, 0.0  ;;  %v14106_v13 = vmax.f32 %v9193_v47, 0.0  ;;  %v14108_v62 = vmax.f32 %v9202_v52, 0.0 }
 0x20e   :  { %7793 = vmatpush1.bf16.msra.mxu1 %v8193_v32  ;;  %v14095_v2 = vld [vmem:[#allocation29_spill] sm:$0xff]  ;;  %v14112_v10 = vmax.f32 %v9218_v34, 0.0  ;;  %v14113_v47 = vmax.f32 %v9222_v45, 0.0  ;;  %v14115_v52 = vmax.f32 %v9231_v44, 0.0  ;;  %v14116_v9 = vmax.f32 %v9235_v37, 0.0  ;;  %v14124_v37 = vld [vmem:[#allocation18_spill] sm:$0xff] }
 0x20f   :  { %7778 = vmatprep.subr.bf16.mxu1 %v8250_v63  ;;  %v9503_v8 = vpack.c.bf16 %v14107_v40, %v14106_v13  ;;  %v9509_v36 = vpack.c.bf16 %v14109_v29, %v14108_v62  ;;  %v9541_v45 = vpack.c.bf16 %v1075_v57, %v1074_v14  ;;  %v9543_v42 = vpack.c.bf16 %v1077_v20, %v1076_v19 }
 0x210   :  { %v14096_v1 = vld [vmem:[#allocation30_spill] sm:$0xff]  ;;  %v9527_v40 = vpack.c.bf16 %v14115_v52, %v14114_v16  ;;  %v9531_v13 = vpack.c.bf16 %v1069_v58, %v14116_v9  ;;  %v9545_v44 = vpack.c.bf16 %v1079_v61, %v1078_v59  ;;  %v14128_v57 = vmax.f32 %v9291_v50, 0.0  ;;  %v14135_v61 = vld [vmem:[#allocation23_spill] sm:$0xff] }
 0x211   :  { %v14097_v54 = vld [vmem:[#allocation32_spill] sm:$0xff]  ;;  %14121 = vst [vmem:[#allocation17_spill] sm:$0xff] %v9541_v45  ;;  %14122 = vst [vmem:[#allocation19_spill] sm:$0xff] %v9543_v42  ;;  %v14129_v20 = vmax.f32 %v9295_v15, 0.0  ;;  %v14131_v58 = vmax.f32 %v9299_v38, 0.0  ;;  %v14136_v62 = vmax.f32 %v14135_v61, 0.0 }
 0x212   :  { %7794 = vmatpush1.bf16.msra.mxu1 %v8194_v33  ;;  %v14098_v21 = vld [vmem:[#allocation34_spill] sm:$0xff]  ;;  %v14103_v33 = vmax.f32 %v9181_v56, 0.0  ;;  %v14110_v56 = vmax.f32 %v9210_v51, 0.0  ;;  %14117 = vst [vmem:[#allocation41_spill] sm:$0xff] %v9531_v13  ;;  %v9533_v51 = vpack.c.bf16 %v1071_v43, %v1070_v18  ;;  %14123 = vst [vmem:[#allocation21_spill] sm:$0xff] %v9545_v44  ;;  %v14126_v18 = vmax.f32 %v9287_v41, 0.0 }
 0x213   :  { %7779 = vmatprep.subr.bf16.mxu1 %v8250_v63  ;;  %v14099_v31 = vld [vmem:[#allocation38_spill] sm:$0xff]  ;;  %v14100_v49 = vld [vmem:[#allocation39_spill] sm:$0xff]  ;;  %1587 = vst [vmem:[#allocation2 + $0xe0] sm:$0xff] %v9503_v8  ;;  %1588 = vst [vmem:[#allocation2 + $0x128] sm:$0xff] %v9509_v36  ;;  %v9569_v19 = vpack.c.bf16 %v14129_v20, %v14128_v57  ;;  %v14140_v41 = vmax.f32 %v9315_v5, 0.0  ;;  %v14141_v50 = vmax.f32 %v9319_v4, 0.0 }
 0x214   :  { %v9491_v24 = vpack.c.bf16 %v14103_v33, %v14102_v7  ;;  %14118 = vst [vmem:[#allocation42_spill] sm:$0xff] %v9533_v51  ;;  %2110 = vst [vmem:[#allocation2 + $0xb0] sm:$0xff] %v9503_v8  ;;  %v14132_v43 = vld [vmem:[#allocation20_spill] sm:$0xff]  ;;  %v14137_v33 = vld [vmem:[#allocation25_spill] sm:$0xff]  ;;  %v14143_v38 = vmax.f32 %v14092_v28, 0.0  ;;  %v14149_v52 = vmax.f32 %v14093_v12, 0.0 }
 0x215   :  { %2111 = vst [vmem:[#allocation2 + $0xf8] sm:$0xff] %v9509_v36  ;;  %2528 = vst [vmem:[#allocation2 + $0x80] sm:$0xff] %v9503_v8  ;;  %v14133_v14 = vmax.f32 %v14132_v43, 0.0  ;;  %v9599_v15 = vpack.c.bf16 %v14141_v50, %v14140_v41  ;;  %v14150_v9 = vld [vmem:[#allocation27_spill] sm:$0xff]  ;;  %v14153_v28 = vmax.f32 %v14095_v2, 0.0  ;;  %v14154_v4 = vmax.f32 %v9351_v48, 0.0 }
 0x216   :  { %7795 = vmatpush1.bf16.msra.mxu1 %v8195_v22  ;;  %v14101_v22 = vld [vmem:[#allocation40_spill] sm:$0xff]  ;;  %1585 = vst [vmem:[#allocation2 + $0x50] sm:$0xff] %v9491_v24  ;;  %2108 = vst [vmem:[#allocation2 + $0x20] sm:$0xff] %v9491_v24  ;;  %v14151_v5 = vmax.f32 %v14150_v9, 0.0  ;;  %v14165_v43 = vld [vmem:[#allocation31_spill] sm:$0xff]  ;;  %v14172_v61 = vmax.f32 %v9387_v25, 0.0 }
 0x217   :  { %4189 = vmatprep.subr.bf16.mxu1 %v8250_v63  ;;  %v14104_v63 = vmax.f32 %v9185_v53, 0.0  ;;  %v14111_v53 = vmax.f32 %v9214_v26, 0.0  ;;  %v14119_v26 = vmax.f32 %v9251_v0, 0.0  ;;  %2529 = vst [vmem:[#allocation2 + $0xc8] sm:$0xff] %v9509_v36  ;;  %v14125_v0 = vmax.f32 %v14124_v37, 0.0  ;;  %14130 = vst [vmem:[#allocation24_spill] sm:$0xff] %v9569_v19 }
 0x218   :  { %v9575_v59 = vpack.c.bf16 %v14133_v14, %v14131_v58  ;;  %1591 = vst [vmem:[#allocation2 + $0x200] sm:$0xff] %v9527_v40  ;;  %1592 = vst [vmem:[#allocation2 + $0x248] sm:$0xff] %v9531_v13  ;;  %v14159_v37 = vmax.f32 %v9363_v46, 0.0  ;;  %v14163_v20 = vld [vmem:[#allocation28_spill] sm:$0xff]  ;;  %v14166_v2 = vmax.f32 %v14165_v43, 0.0  ;;  %v14168_v48 = vld [vmem:[#allocation33_spill] sm:$0xff] }
 0x219   :  { %v9497_v32 = vpack.c.bf16 %v14105_v17, %v14104_v63  ;;  %v9515_v7 = vpack.c.bf16 %v14111_v53, %v14110_v56  ;;  %v9521_v17 = vpack.c.bf16 %v14113_v47, %v14112_v10  ;;  %v9539_v34 = vpack.c.bf16 %v1073_v11, %v14119_v26  ;;  %1593 = vst [vmem:[#allocation2 + $0x290] sm:$0xff] %v9533_v51 }
 0x21a   :  { %v9563_v11 = vpack.c.bf16 %v14126_v18, %v14125_v0  ;;  %14134 = vst [vmem:[#allocation29_spill] sm:$0xff] %v9575_v59  ;;  %v14138_v63 = vmax.f32 %v14137_v33, 0.0  ;;  %2114 = vst [vmem:[#allocation2 + $0x1d0] sm:$0xff] %v9527_v40  ;;  %v14144_v56 = vmax.f32 %v9327_v27, 0.0  ;;  %v14146_v10 = vmax.f32 %v9331_v35, 0.0  ;;  %v14160_v0 = vld [vmem:[#allocation26_spill] sm:$0xff] }
 0x21b   :  { %14120 = vst [vmem:[#allocation16_spill] sm:$0xff] %v9539_v34  ;;  %1586 = vst [vmem:[#allocation2 + $0x98] sm:$0xff] %v9497_v32  ;;  %v14147_v47 = vmax.f32 %v9335_v55, 0.0  ;;  %v9617_v26 = vpack.c.bf16 %v14151_v5, %v14149_v52  ;;  %v9635_v27 = vpack.c.bf16 %v14154_v4, %v14153_v28  ;;  %v14156_v35 = vmax.f32 %v9355_v39, 0.0 }
 0x21c   :  { %1589 = vst [vmem:[#allocation2 + $0x170] sm:$0xff] %v9515_v7  ;;  %2109 = vst [vmem:[#allocation2 + $0x68] sm:$0xff] %v9497_v32  ;;  %v9581_v29 = vpack.c.bf16 %v14138_v63, %v14136_v62  ;;  %v9605_v53 = vpack.c.bf16 %v14144_v56, %v14143_v38  ;;  %v14157_v55 = vmax.f32 %v9359_v3, 0.0  ;;  %v14161_v18 = vmax.f32 %v14160_v0, 0.0 }
 0x21d   :  { %2112 = vst [vmem:[#allocation2 + $0x140] sm:$0xff] %v9515_v7  ;;  %2527 = vst [vmem:[#allocation2 + $0x38] sm:$0xff] %v9497_v32  ;;  %v9611_v16 = vpack.c.bf16 %v14147_v47, %v14146_v10  ;;  %v14164_v58 = vmax.f32 %v14163_v20, 0.0  ;;  %v14169_v39 = vmax.f32 %v14168_v48, 0.0  ;;  %v14170_v3 = vmax.f32 %v14096_v1, 0.0 }
 0x21e   :  { %2530 = vst [vmem:[#allocation2 + $0x110] sm:$0xff] %v9515_v7  ;;  %14127 = vst [vmem:[#allocation22_spill] sm:$0xff] %v9563_v11  ;;  %v9641_v12 = vpack.c.bf16 %v14157_v55, %v14156_v35  ;;  %v9647_v57 = vpack.c.bf16 %v14161_v18, %v14159_v37  ;;  %v14173_v62 = vmax.f32 %v9391_v30, 0.0  ;;  %v14174_v63 = vmax.f32 %v9395_v60, 0.0 }
 0x21f   :  { %14139 = vst [vmem:[#allocation30_spill] sm:$0xff] %v9581_v29  ;;  %1590 = vst [vmem:[#allocation2 + $0x1b8] sm:$0xff] %v9521_v17  ;;  %v9653_v14 = vpack.c.bf16 %v14166_v2, %v14164_v58  ;;  %v9669_v46 = vpack.c.bf16 %v14170_v3, %v14169_v39  ;;  %v14175_v41 = vmax.f32 %v9399_v23, 0.0  ;;  %v14177_v38 = vmax.f32 %v14097_v54, 0.0 }
 0x220   :  { %2113 = vst [vmem:[#allocation2 + $0x188] sm:$0xff] %v9521_v17  ;;  %2115 = vst [vmem:[#allocation2 + $0x218] sm:$0xff] %v9531_v13  ;;  %v9675_v33 = vpack.c.bf16 %v14173_v62, %v14172_v61  ;;  %v14178_v56 = vmax.f32 %v14098_v21, 0.0  ;;  %v14179_v1 = vmax.f32 %v14099_v31, 0.0  ;;  %v14180_v21 = vmax.f32 %v14100_v49, 0.0 }
 0x221   :  { %2116 = vst [vmem:[#allocation2 + $0x260] sm:$0xff] %v9533_v51  ;;  %2531 = vst [vmem:[#allocation2 + $0x158] sm:$0xff] %v9521_v17  ;;  %v9681_v50 = vpack.c.bf16 %v14175_v41, %v14174_v63  ;;  %v14181_v30 = vmax.f32 %v14101_v22, 0.0  ;;  %v14182_v60 = vmax.f32 %v9423_v6, 0.0  ;;  %v13768_v54 = vshrl.u32 %v9491_v24, 16 }
 0x222   :  { %2532 = vst [vmem:[#allocation2 + $0x1a0] sm:$0xff] %v9527_v40  ;;  %2533 = vst [vmem:[#allocation2 + $0x1e8] sm:$0xff] %v9531_v13  ;;  %v9687_v10 = vpack.c.bf16 %v14178_v56, %v14177_v38  ;;  %v9705_v25 = vpack.c.bf16 %v14180_v21, %v14179_v1  ;;  %v13783_v47 = vshll.u32 %v9491_v24, 16  ;;  %v13756_v31 = vshrl.u32 %v9497_v32, 16 }
 0x223   :  { %2534 = vst [vmem:[#allocation2 + $0x230] sm:$0xff] %v9533_v51  ;;  %14142 = vst [vmem:[#allocation32_spill] sm:$0xff] %v9599_v15  ;;  %v9711_v23 = vpack.c.bf16 %v14182_v60, %v14181_v30  ;;  %v13780_v49 = vshll.u32 %v9497_v32, 16  ;;  %v13755_v6 = vshrl.u32 %v9503_v8, 16  ;;  %v13777_v22 = vshll.u32 %v9503_v8, 16 }
 0x224   :  { %14145 = vst [vmem:[#allocation34_spill] sm:$0xff] %v9605_v53  ;;  %14148 = vst [vmem:[#allocation38_spill] sm:$0xff] %v9611_v16  ;;  %v1153_v52 = vrot.slane %v13768_v54, 7  ;;  %v13753_v9 = vshrl.u32 %v9509_v36, 16  ;;  %v13774_v5 = vshll.u32 %v9509_v36, 16  ;;  %v13752_v28 = vshrl.u32 %v9515_v7, 16 }
 0x225   :  { %14152 = vst [vmem:[#allocation39_spill] sm:$0xff] %v9617_v26  ;;  %1594 = vst [vmem:[#allocation2 + $0x2d8] sm:$0xff] %v9539_v34  ;;  %v1160_v4 = vrot.slane %v13756_v31, 7  ;;  %v1167_v35 = vrot.slane %v13755_v6, 7  ;;  %v13771_v55 = vshll.u32 %v9515_v7, 16  ;;  %v13750_v37 = vshrl.u32 %v9521_v17, 16 }
 0x226   :  { %1595 = vst [vmem:[#allocation2 + $0x320] sm:$0xff] %v9541_v45  ;;  %1596 = vst [vmem:[#allocation2 + $0x368] sm:$0xff] %v9543_v42  ;;  %v9761_v0 = vor.u32 %v13783_v47, %v1153_v52  ;;  %v1174_v18 = vrot.slane %v13753_v9, 7  ;;  %v1181_v20 = vrot.slane %v13752_v28, 7  ;;  %v13765_v58 = vshll.u32 %v9521_v17, 16 }
 0x227   :  { %1597 = vst [vmem:[#allocation2 + $0x3b0] sm:$0xff] %v9545_v44  ;;  %2117 = vst [vmem:[#allocation2 + $0x2a8] sm:$0xff] %v9539_v34  ;;  %v9770_v43 = vor.u32 %v13780_v49, %v1160_v4  ;;  %v9774_v2 = vor.u32 %v13777_v22, %v1167_v35  ;;  %v1188_v48 = vrot.slane %v13750_v37, 7  ;;  %v13749_v39 = vshrl.u32 %v9527_v40, 16 }
 0x228   :  { %2118 = vst [vmem:[#allocation2 + $0x2f0] sm:$0xff] %v9541_v45  ;;  %2119 = vst [vmem:[#allocation2 + $0x338] sm:$0xff] %v9543_v42  ;;  %v9781_v3 = vor.u32 %v13774_v5, %v1174_v18  ;;  %v9785_v61 = vor.u32 %v13771_v55, %v1181_v20  ;;  %v13762_v62 = vshll.u32 %v9527_v40, 16  ;;  %v13748_v63 = vshrl.u32 %v9531_v13, 16 }
 0x229   :  { %2120 = vst [vmem:[#allocation2 + $0x380] sm:$0xff] %v9545_v44  ;;  %2535 = vst [vmem:[#allocation2 + $0x278] sm:$0xff] %v9539_v34  ;;  %v9791_v41 = vor.u32 %v13765_v58, %v1188_v48  ;;  %v1195_v38 = vrot.slane %v13749_v39, 7  ;;  %v13759_v56 = vshll.u32 %v9531_v13, 16  ;;  %v13751_v1 = vshrl.u32 %v9533_v51, 16 }
 0x22a   :  { %2536 = vst [vmem:[#allocation2 + $0x2c0] sm:$0xff] %v9541_v45  ;;  %2537 = vst [vmem:[#allocation2 + $0x308] sm:$0xff] %v9543_v42  ;;  %v1202_v21 = vrot.slane %v13748_v63, 7  ;;  %v13758_v30 = vshll.u32 %v9533_v51, 16  ;;  %v13754_v60 = vshrl.u32 %v9539_v34, 16  ;;  %v13761_v52 = vshll.u32 %v9539_v34, 16 }
 0x22b   :  { %2538 = vst [vmem:[#allocation2 + $0x350] sm:$0xff] %v9545_v44  ;;  %14155 = vst [vmem:[#allocation40_spill] sm:$0xff] %v9635_v27  ;;  %v9804_v4 = vor.u32 %v13762_v62, %v1195_v38  ;;  %v1209_v35 = vrot.slane %v13751_v1, 7  ;;  %v13757_v18 = vshrl.u32 %v9541_v45, 16  ;;  %v13764_v20 = vshll.u32 %v9541_v45, 16 }
 0x22c   :  { %14158 = vst [vmem:[#allocation18_spill] sm:$0xff] %v9641_v12  ;;  %14162 = vst [vmem:[#allocation20_spill] sm:$0xff] %v9647_v57  ;;  %v9812_v48 = vor.u32 %v13759_v56, %v1202_v21  ;;  %v1216_v63 = vrot.slane %v13754_v60, 7  ;;  %v13760_v39 = vshrl.u32 %v9543_v42, 16  ;;  %v13767_v37 = vshll.u32 %v9543_v42, 16  ;;  %v1430_v42 = vld [vmem:[#allocation2 + $0x3a8] sm:$0xff] }
 0x22d   :  { %14167 = vst [vmem:[#allocation23_spill] sm:$0xff] %v9653_v14  ;;  %1598 = vst [vmem:[#allocation2 + $0x3f8] sm:$0xff] %v9563_v11  ;;  %v9820_v38 = vor.u32 %v13758_v30, %v1209_v35  ;;  %v1223_v1 = vrot.slane %v13757_v18, 7  ;;  %v13763_v28 = vshrl.u32 %v9545_v44, 16  ;;  %v13770_v9 = vshll.u32 %v9545_v44, 16 }
 0x22e   :  { %1599 = vst [vmem:[#allocation2 + $0x440] sm:$0xff] %v9569_v19  ;;  %1600 = vst [vmem:[#allocation2 + $0x4d0] sm:$0xff] %v9581_v29  ;;  %v9828_v21 = vor.u32 %v13761_v52, %v1216_v63  ;;  %v1230_v60 = vrot.slane %v13760_v39, 7  ;;  %v13766_v6 = vshrl.u32 %v9563_v11, 16  ;;  %v13773_v31 = vshll.u32 %v9563_v11, 16 }
 0x22f   :  { %2121 = vst [vmem:[#allocation2 + $0x3c8] sm:$0xff] %v9563_v11  ;;  %2122 = vst [vmem:[#allocation2 + $0x410] sm:$0xff] %v9569_v19  ;;  %v9836_v35 = vor.u32 %v13764_v20, %v1223_v1  ;;  %v1237_v18 = vrot.slane %v13763_v28, 7  ;;  %v13769_v30 = vshrl.u32 %v9569_v19, 16  ;;  %v13776_v56 = vshll.u32 %v9569_v19, 16 }
 0x230   :  { %2123 = vst [vmem:[#allocation2 + $0x458] sm:$0xff] %v9575_v59  ;;  %2124 = vst [vmem:[#allocation2 + $0x4a0] sm:$0xff] %v9581_v29  ;;  %v9844_v63 = vor.u32 %v13767_v37, %v1230_v60  ;;  %v1244_v39 = vrot.slane %v13766_v6, 7  ;;  %v13772_v52 = vshrl.u32 %v9581_v29, 16  ;;  %v13779_v62 = vshll.u32 %v9581_v29, 16 }
 0x231   :  { %2539 = vst [vmem:[#allocation2 + $0x398] sm:$0xff] %v9563_v11  ;;  %2540 = vst [vmem:[#allocation2 + $0x3e0] sm:$0xff] %v9569_v19  ;;  %v9852_v1 = vor.u32 %v13770_v9, %v1237_v18  ;;  %v1251_v28 = vrot.slane %v13769_v30, 7  ;;  %v13775_v20 = vshrl.u32 %v9599_v15, 16  ;;  %v13782_v58 = vshll.u32 %v9599_v15, 16  ;;  %v1427_v19 = vld [vmem:[#allocation2 + $0x360] sm:$0xff] }
 0x232   :  { %2541 = vst [vmem:[#allocation2 + $0x428] sm:$0xff] %v9575_v59  ;;  %14171 = vst [vmem:[#allocation25_spill] sm:$0xff] %v9669_v46  ;;  %v9860_v60 = vor.u32 %v13773_v31, %v1244_v39  ;;  %v1258_v6 = vrot.slane %v13772_v52, 7  ;;  %v13778_v37 = vshrl.u32 %v9605_v53, 16  ;;  %v13785_v54 = vshll.u32 %v9605_v53, 16 }
 0x233   :  { %14176 = vst [vmem:[#allocation27_spill] sm:$0xff] %v9681_v50  ;;  %1601 = vst [vmem:[#allocation2 + $0x518] sm:$0xff] %v9599_v15  ;;  %v9868_v18 = vor.u32 %v13776_v56, %v1251_v28  ;;  %v1265_v30 = vrot.slane %v13775_v20, 7  ;;  %v13781_v9 = vshrl.u32 %v9611_v16, 16  ;;  %v13787_v55 = vshll.u32 %v9611_v16, 16 }
 0x234   :  { %1602 = vst [vmem:[#allocation2 + $0x560] sm:$0xff] %v9605_v53  ;;  %1603 = vst [vmem:[#allocation2 + $0x5a8] sm:$0xff] %v9611_v16  ;;  %v9876_v39 = vor.u32 %v13779_v62, %v1258_v6  ;;  %v1272_v52 = vrot.slane %v13778_v37, 7  ;;  %v13784_v31 = vshrl.u32 %v9617_v26, 16  ;;  %v13788_v5 = vshll.u32 %v9617_v26, 16 }
 0x235   :  { %1604 = vst [vmem:[#allocation2 + $0x5f0] sm:$0xff] %v9617_v26  ;;  %2125 = vst [vmem:[#allocation2 + $0x4e8] sm:$0xff] %v9599_v15  ;;  %v9884_v28 = vor.u32 %v13782_v58, %v1265_v30  ;;  %v1279_v20 = vrot.slane %v13781_v9, 7  ;;  %v13786_v56 = vshrl.u32 %v9635_v27, 16  ;;  %v13794_v22 = vshll.u32 %v9635_v27, 16 }
 0x236   :  { %2126 = vst [vmem:[#allocation2 + $0x530] sm:$0xff] %v9605_v53  ;;  %2127 = vst [vmem:[#allocation2 + $0x578] sm:$0xff] %v9611_v16  ;;  %v9892_v6 = vor.u32 %v13785_v54, %v1272_v52  ;;  %v1286_v37 = vrot.slane %v13784_v31, 7  ;;  %v13791_v62 = vshrl.u32 %v9641_v12, 16  ;;  %v13797_v58 = vshrl.u32 %v9647_v57, 16 }
 0x237   :  { %2128 = vst [vmem:[#allocation2 + $0x5c0] sm:$0xff] %v9617_v26  ;;  %2542 = vst [vmem:[#allocation2 + $0x4b8] sm:$0xff] %v9599_v15  ;;  %v9900_v30 = vor.u32 %v13787_v55, %v1279_v20  ;;  %v1293_v9 = vrot.slane %v13786_v56, 7  ;;  %v13804_v54 = vshrl.u32 %v9653_v14, 16  ;;  %v14207_v55 = vshll.u32 %v9647_v57, 16 }
 0x238   :  { %2543 = vst [vmem:[#allocation2 + $0x500] sm:$0xff] %v9605_v53  ;;  %2544 = vst [vmem:[#allocation2 + $0x548] sm:$0xff] %v9611_v16  ;;  %v9908_v52 = vor.u32 %v13788_v5, %v1286_v37  ;;  %v1300_v31 = vrot.slane %v13791_v62, 7  ;;  %v1307_v56 = vrot.slane %v13797_v58, 7  ;;  %v1397_v37 = vld [vmem:[#allocation2 + $0x90] sm:$0xff]  ;;  %v1394_v5 = vld [vmem:[#allocation2 + $0x48] sm:$0xff] }
 0x239   :  { %2545 = vst [vmem:[#allocation2 + $0x590] sm:$0xff] %v9617_v26  ;;  %14183 = vst [vmem:[#allocation26_spill] sm:$0xff] %v9711_v23  ;;  %v9916_v20 = vor.u32 %v13794_v22, %v1293_v9  ;;  %v1314_v49 = vrot.slane %v13804_v54, 7  ;;  %v1403_v22 = vld [vmem:[#allocation2 + $0x120] sm:$0xff]  ;;  %v1409_v58 = vld [vmem:[#allocation2 + $0x1b0] sm:$0xff]  ;;  %v14209_v47 = vshrl.u32 %v9669_v46, 16 }
 0x23a   :  { %1605 = vst [vmem:[#allocation2 + $0x638] sm:$0xff] %v9635_v27  ;;  %1606 = vst [vmem:[#allocation2 + $0x680] sm:$0xff] %v9641_v12  ;;  %v9932_v26 = vor.u32 %v14207_v55, %v1307_v56  ;;  %v1415_v54 = vld [vmem:[#allocation2 + $0x240] sm:$0xff]  ;;  %v1412_v53 = vld [vmem:[#allocation2 + $0x1f8] sm:$0xff]  ;;  %v14210_v59 = vshll.u32 %v9653_v14, 16  ;;  %v14212_v15 = vshrl.u32 %v9675_v33, 16 }
 0x23b   :  { %1607 = vst [vmem:[#allocation2 + $0x6c8] sm:$0xff] %v9647_v57  ;;  %1608 = vst [vmem:[#allocation2 + $0x710] sm:$0xff] %v9653_v14  ;;  %v1321_v16 = vrot.slane %v14209_v47, 7  ;;  %v1418_v47 = vld [vmem:[#allocation2 + $0x288] sm:$0xff]  ;;  %v14215_v11 = vshrl.u32 %v9681_v50, 16  ;;  %v14216_v55 = vshll.u32 %v9675_v33, 16 }
 0x23c   :  { %2129 = vst [vmem:[#allocation2 + $0x608] sm:$0xff] %v9635_v27  ;;  %2130 = vst [vmem:[#allocation2 + $0x650] sm:$0xff] %v9641_v12  ;;  %v9940_v9 = vor.u32 %v14210_v59, %v1314_v49  ;;  %v1328_v29 = vrot.slane %v14212_v15, 7  ;;  %v1433_v15 = vld [vmem:[#allocation2 + $0x3f0] sm:$0xff]  ;;  %v14218_v45 = vshrl.u32 %v9687_v10, 16  ;;  %v1436_v59 = vld [vmem:[#allocation2 + $0x438] sm:$0xff] }
 0x23d   :  { %2131 = vst [vmem:[#allocation2 + $0x698] sm:$0xff] %v9647_v57  ;;  %2132 = vst [vmem:[#allocation2 + $0x6e0] sm:$0xff] %v9653_v14  ;;  %v1335_v44 = vrot.slane %v14215_v11, 7  ;;  %v1398_v11 = vsel %vm9032_vm3, %v9770_v43, %v1397_v37  ;;  %v1442_v49 = vld [vmem:[#allocation2 + $0x510] sm:$0xff]  ;;  %v14220_v51 = vshll.u32 %v9681_v50, 16  ;;  %v1448_v37 = vld [vmem:[#allocation2 + $0x5a0] sm:$0xff] }
 0x23e   :  { %2546 = vst [vmem:[#allocation2 + $0x5d8] sm:$0xff] %v9635_v27  ;;  %2547 = vst [vmem:[#allocation2 + $0x620] sm:$0xff] %v9641_v12  ;;  %v1400_v27 = vld [vmem:[#allocation2 + $0xd8] sm:$0xff]  ;;  %v9956_v56 = vor.u32 %v14216_v55, %v1328_v29  ;;  %v1342_v34 = vrot.slane %v14218_v45, 7  ;;  %v14222_v29 = vshrl.u32 %v9705_v25, 16 }
 0x23f   :  { %2548 = vst [vmem:[#allocation2 + $0x668] sm:$0xff] %v9647_v57  ;;  %2549 = vst [vmem:[#allocation2 + $0x6b0] sm:$0xff] %v9653_v14  ;;  %v1421_v57 = vld [vmem:[#allocation2 + $0x2d0] sm:$0xff]  ;;  %v1424_v14 = vld [vmem:[#allocation2 + $0x318] sm:$0xff]  ;;  %v9968_v13 = vor.u32 %v14220_v51, %v1335_v44  ;;  %v1401_v45 = vsel %vm9032_vm3, %v9774_v2, %v1400_v27  ;;  %v1410_v27 = vsel %vm9032_vm3, %v9791_v41, %v1409_v58 }
 0x240   :  { %1609 = vst [vmem:[#allocation2 + $0x758] sm:$0xff] %v9669_v46  ;;  %1610 = vst [vmem:[#allocation2 + $0x7a0] sm:$0xff] %v9675_v33  ;;  %v1349_v55 = vrot.slane %v14222_v29, 7  ;;  %v1457_v29 = vld [vmem:[#allocation2 + $0x678] sm:$0xff]  ;;  %v1419_v58 = vsel %vm9032_vm3, %v9820_v38, %v1418_v47  ;;  %v1431_v47 = vsel %vm9032_vm3, %v9852_v1, %v1430_v42  ;;  %v1443_v42 = vsel %vm9032_vm3, %v9884_v28, %v1442_v49 }
 0x241   :  { %1611 = vst [vmem:[#allocation2 + $0x7e8] sm:$0xff] %v9681_v50  ;;  %1612 = vst [vmem:[#allocation2 + $0x830] sm:$0xff] %v9687_v10 }
 0x242   :  { %2133 = vst [vmem:[#allocation2 + $0x728] sm:$0xff] %v9669_v46  ;;  %2134 = vst [vmem:[#allocation2 + $0x770] sm:$0xff] %v9675_v33 }
 0x243   :  { %2135 = vst [vmem:[#allocation2 + $0x7b8] sm:$0xff] %v9681_v50  ;;  %2136 = vst [vmem:[#allocation2 + $0x800] sm:$0xff] %v9687_v10 }
 0x244   :  { %2550 = vst [vmem:[#allocation2 + $0x6f8] sm:$0xff] %v9669_v46  ;;  %2551 = vst [vmem:[#allocation2 + $0x740] sm:$0xff] %v9675_v33 }
 0x245   :  { %2552 = vst [vmem:[#allocation2 + $0x788] sm:$0xff] %v9681_v50  ;;  %2553 = vst [vmem:[#allocation2 + $0x7d0] sm:$0xff] %v9687_v10  ;;  %v14223_v50 = vshll.u32 %v9687_v10, 16 }
 0x246   :  { %1613 = vst [vmem:[#allocation2 + $0x878] sm:$0xff] %v9705_v25  ;;  %2137 = vst [vmem:[#allocation2 + $0x848] sm:$0xff] %v9705_v25 }
 0x247   :  { %2139 = vst [vmem:[#allocation2 + $0x8d8] sm:$0xff] %v9711_v23  ;;  %2554 = vst [vmem:[#allocation2 + $0x818] sm:$0xff] %v9705_v25  ;;  %v9980_v51 = vor.u32 %v14223_v50, %v1342_v34  ;;  %v14225_v34 = vshll.u32 %v9705_v25, 16 }
 0x248   :  { %2556 = vst [vmem:[#allocation2 + $0x8a8] sm:$0xff] %v9711_v23  ;;  %14184 = vst [vmem:[#allocation28_spill] sm:$0xff] %v9761_v0  ;;  %v14205_v23 = vshll.u32 %v9641_v12, 16  ;;  %v1406_v12 = vld [vmem:[#allocation2 + $0x168] sm:$0xff] }
 0x249   :  { %14185 = vst [vmem:[#allocation31_spill] sm:$0xff] %v9770_v43  ;;  %14186 = vst [vmem:[#allocation33_spill] sm:$0xff] %v9774_v2  ;;  %v1445_v43 = vld [vmem:[#allocation2 + $0x558] sm:$0xff]  ;;  %v1407_v44 = vsel %vm9032_vm3, %v9785_v61, %v1406_v12  ;;  %v9993_v50 = vor.u32 %v14225_v34, %v1349_v55  ;;  %v1416_v12 = vsel %vm9032_vm3, %v9812_v48, %v1415_v54 }
 0x24a   :  { %14187 = vst [vmem:[#allocation43_spill] sm:$0xff] %v9781_v3  ;;  %14188 = vst [vmem:[#allocation44_spill] sm:$0xff] %v9785_v61  ;;  %v9924_v62 = vor.u32 %v14205_v23, %v1300_v31  ;;  %v14213_v23 = vshll.u32 %v9669_v46, 16  ;;  %v1439_v46 = vld [vmem:[#allocation2 + $0x4c8] sm:$0xff]  ;;  %v1425_v55 = vsel %vm9032_vm3, %v9836_v35, %v1424_v14  ;;  %v1428_v54 = vsel %vm9032_vm3, %v9844_v63, %v1427_v19 }
 0x24b   :  { %14189 = vst [vmem:[#allocation45_spill] sm:$0xff] %v9791_v41  ;;  %14190 = vst [vmem:[#allocation46_spill] sm:$0xff] %v9804_v4  ;;  %v1437_v14 = vsel %vm9032_vm3, %v9868_v18, %v1436_v59  ;;  %v1440_v19 = vsel %vm9032_vm3, %v9876_v39, %v1439_v46  ;;  %v1449_v59 = vsel %vm9032_vm3, %v9900_v30, %v1448_v37 }
 0x24c   :  { %14191 = vst [vmem:[#allocation47_spill] sm:$0xff] %v9812_v48  ;;  %14192 = vst [vmem:[#allocation48_spill] sm:$0xff] %v9820_v38  ;;  %v9948_v31 = vor.u32 %v14213_v23, %v1321_v16  ;;  %v1395_v23 = vsel %vm9032_vm3, %v9761_v0, %v1394_v5  ;;  %v1404_v5 = vsel %vm9032_vm3, %v9781_v3, %v1403_v22  ;;  %v1454_v0 = vld [vmem:[#allocation2 + $0x630] sm:$0xff]  ;;  %v14308_v48 = vshrl.u32 %v9675_v33, 16  ;;  %v2613_v16 = vld [vmem:[#allocation2 + $0x598] sm:$0xff] }
 0x24d   :  { %14193 = vst [vmem:[#allocation49_spill] sm:$0xff] %v9828_v21  ;;  %14194 = vst [vmem:[#allocation50_spill] sm:$0xff] %v9836_v35  ;;  %v1413_v22 = vsel %vm9032_vm3, %v9804_v4, %v1412_v53  ;;  %v1422_v53 = vsel %vm9032_vm3, %v9828_v21, %v1421_v57  ;;  %v1469_v4 = vld [vmem:[#allocation2 + $0x798] sm:$0xff]  ;;  %v1434_v57 = vsel %vm9032_vm3, %v9860_v60, %v1433_v15  ;;  %v1763_v38 = vld [vmem:[#allocation2 + $0x5b0] sm:$0xff] }
 0x24e   :  { %14195 = vst [vmem:[#allocation51_spill] sm:$0xff] %v9844_v63  ;;  %14196 = vst [vmem:[#allocation52_spill] sm:$0xff] %v9852_v1  ;;  %v1446_v15 = vsel %vm9032_vm3, %v9892_v6, %v1445_v43  ;;  %v1455_v49 = vsel %vm9032_vm3, %v9916_v20, %v1454_v0  ;;  %v1458_v43 = vsel %vm9032_vm3, %v9924_v62, %v1457_v29  ;;  %v14302_v1 = vld [vmem:[#allocation27_spill] sm:$0xff] }
 0x24f   :  { %14197 = vst [vmem:[#allocation53_spill] sm:$0xff] %v9860_v60  ;;  %14198 = vst [vmem:[#allocation54_spill] sm:$0xff] %v9868_v18  ;;  %v1470_v0 = vsel %vm9032_vm3, %v9956_v56, %v1469_v4  ;;  %v14228_v4 = vshll.u32 %v9497_v32, 16  ;;  %v1733_v18 = vld [vmem:[#allocation2 + $0x298] sm:$0xff] }
 0x250   :  { %14199 = vst [vmem:[#allocation55_spill] sm:$0xff] %v9876_v39  ;;  %14200 = vst [vmem:[#allocation56_spill] sm:$0xff] %v9884_v28  ;;  %v1727_v28 = vld [vmem:[#allocation2 + $0x208] sm:$0xff]  ;;  %v1736_v39 = vld [vmem:[#allocation2 + $0x2e0] sm:$0xff] }
 0x251   :  { %14201 = vst [vmem:[#allocation57_spill] sm:$0xff] %v9892_v6  ;;  %14202 = vst [vmem:[#allocation58_spill] sm:$0xff] %v9900_v30  ;;  %v1754_v21 = vld [vmem:[#allocation2 + $0x4d8] sm:$0xff] }
 0x252   :  { %14203 = vst [vmem:[#allocation59_spill] sm:$0xff] %v9908_v52  ;;  %14204 = vst [vmem:[#allocation60_spill] sm:$0xff] %v9916_v20  ;;  %v1724_v20 = vld [vmem:[#allocation2 + $0x1c0] sm:$0xff] }
 0x253   :  { %14206 = vst [vmem:[#allocation61_spill] sm:$0xff] %v9924_v62  ;;  %14208 = vst [vmem:[#allocation62_spill] sm:$0xff] %v9932_v26  ;;  %v1718_v62 = vld [vmem:[#allocation2 + $0x130] sm:$0xff] }
 0x254   :  { %14211 = vst [vmem:[#allocation63_spill] sm:$0xff] %v9940_v9  ;;  %14214 = vst [vmem:[#allocation64_spill] sm:$0xff] %v9948_v31 }
 0x255   :  { %14217 = vst [vmem:[#allocation65_spill] sm:$0xff] %v9956_v56  ;;  %14221 = vst [vmem:[#allocation36_spill] sm:$0xff] %v9968_v13  ;;  %v14288_v56 = vld [vmem:[#allocation20_spill] sm:$0xff] }
 0x256   :  { %1396 = vst [vmem:[#allocation2 + $0x48] sm:$0xff] %v1395_v23  ;;  %1399 = vst [vmem:[#allocation2 + $0x90] sm:$0xff] %v1398_v11  ;;  %v1451_v23 = vld [vmem:[#allocation2 + $0x5e8] sm:$0xff]  ;;  %v1460_v11 = vld [vmem:[#allocation2 + $0x6c0] sm:$0xff] }
 0x257   :  { %14224 = vst [vmem:[#allocation66_spill] sm:$0xff] %v9980_v51  ;;  %1402 = vst [vmem:[#allocation2 + $0xd8] sm:$0xff] %v1401_v45  ;;  %v1466_v45 = vld [vmem:[#allocation2 + $0x750] sm:$0xff]  ;;  %v1452_v46 = vsel %vm9032_vm3, %v9908_v52, %v1451_v23  ;;  %v1461_v34 = vsel %vm9032_vm3, %v9932_v26, %v1460_v11  ;;  %v1721_v52 = vld [vmem:[#allocation2 + $0x178] sm:$0xff] }
 0x258   :  { %1405 = vst [vmem:[#allocation2 + $0x120] sm:$0xff] %v1404_v5  ;;  %14226 = vst [vmem:[#allocation67_spill] sm:$0xff] %v9993_v50  ;;  %v1463_v5 = vld [vmem:[#allocation2 + $0x708] sm:$0xff]  ;;  %v1467_v23 = vsel %vm9032_vm3, %v9948_v31, %v1466_v45  ;;  %v1619_v45 = vrot.slane %v14228_v4, 1 }
 0x259   :  { %1408 = vst [vmem:[#allocation2 + $0x168] sm:$0xff] %v1407_v44  ;;  %1411 = vst [vmem:[#allocation2 + $0x1b0] sm:$0xff] %v1410_v27  ;;  %v1472_v44 = vld [vmem:[#allocation2 + $0x7e0] sm:$0xff]  ;;  %v1478_v27 = vld [vmem:[#allocation2 + $0x870] sm:$0xff]  ;;  %v1464_v37 = vsel %vm9032_vm3, %v9940_v9, %v1463_v5  ;;  %v14229_v5 = vshll.u32 %v9503_v8, 16 }
 0x25a   :  { %1414 = vst [vmem:[#allocation2 + $0x1f8] sm:$0xff] %v1413_v22  ;;  %1417 = vst [vmem:[#allocation2 + $0x240] sm:$0xff] %v1416_v12  ;;  %v1475_v22 = vld [vmem:[#allocation2 + $0x828] sm:$0xff]  ;;  %v1473_v11 = vsel %vm9032_vm3, %v9968_v13, %v1472_v44  ;;  %v1479_v12 = vsel %vm9032_vm3, %v9993_v50, %v1478_v27  ;;  %v14232_v27 = vshrl.u32 %v9491_v24, 16  ;;  %v14283_v50 = vld [vmem:[#allocation40_spill] sm:$0xff] }
 0x25b   :  { %1420 = vst [vmem:[#allocation2 + $0x288] sm:$0xff] %v1419_v58  ;;  %1423 = vst [vmem:[#allocation2 + $0x2d0] sm:$0xff] %v1422_v53  ;;  %v1476_v29 = vsel %vm9032_vm3, %v9980_v51, %v1475_v22  ;;  %v14227_v58 = vshll.u32 %v9491_v24, 16  ;;  %v14242_v24 = vshrl.u32 %v9509_v36, 16  ;;  %v1709_v51 = vld [vmem:[#allocation2 + $0x58] sm:$0xff] }
 0x25c   :  { %1426 = vst [vmem:[#allocation2 + $0x318] sm:$0xff] %v1425_v55  ;;  %1429 = vst [vmem:[#allocation2 + $0x360] sm:$0xff] %v1428_v54  ;;  %v1621_v55 = vrot.slane %v14229_v5, 1  ;;  %v14230_v54 = vshll.u32 %v9509_v36, 16  ;;  %v14290_v9 = vld [vmem:[#allocation23_spill] sm:$0xff] }
 0x25d   :  { %1432 = vst [vmem:[#allocation2 + $0x3a8] sm:$0xff] %v1431_v47  ;;  %1435 = vst [vmem:[#allocation2 + $0x3f0] sm:$0xff] %v1434_v57  ;;  %v1617_v53 = vrot.slane %v14227_v58, 1  ;;  %v14231_v57 = vshll.u32 %v9515_v7, 16 }
 0x25e   :  { %1441 = vst [vmem:[#allocation2 + $0x4c8] sm:$0xff] %v1440_v19  ;;  %1438 = vst [vmem:[#allocation2 + $0x438] sm:$0xff] %v1437_v14  ;;  %v1623_v47 = vrot.slane %v14230_v54, 1  ;;  %v14234_v14 = vshll.u32 %v9521_v17, 16 }
 0x25f   :  { %1444 = vst [vmem:[#allocation2 + $0x510] sm:$0xff] %v1443_v42  ;;  %1447 = vst [vmem:[#allocation2 + $0x558] sm:$0xff] %v1446_v15  ;;  %v1625_v44 = vrot.slane %v14231_v57, 1  ;;  %v10073_v22 = vor.u32 %v1617_v53, %v14232_v27  ;;  %v14235_v42 = vshll.u32 %v9527_v40, 16 }
 0x260   :  { %1450 = vst [vmem:[#allocation2 + $0x5a0] sm:$0xff] %v1449_v59  ;;  %1453 = vst [vmem:[#allocation2 + $0x5e8] sm:$0xff] %v1452_v46  ;;  %v1627_v19 = vrot.slane %v14234_v14, 1  ;;  %v14236_v59 = vld [vmem:[#allocation41_spill] sm:$0xff] }
 0x261   :  { %1456 = vst [vmem:[#allocation2 + $0x630] sm:$0xff] %v1455_v49  ;;  %1459 = vst [vmem:[#allocation2 + $0x678] sm:$0xff] %v1458_v43  ;;  %v1629_v15 = vrot.slane %v14235_v42, 1  ;;  %v14237_v46 = vshll.u32 %v14236_v59, 16  ;;  %v14238_v43 = vshrl.u32 %v9497_v32, 16  ;;  %v14245_v32 = vshrl.u32 %v9527_v40, 16 }
 0x262   :  { %1462 = vst [vmem:[#allocation2 + $0x6c0] sm:$0xff] %v1461_v34  ;;  %1465 = vst [vmem:[#allocation2 + $0x708] sm:$0xff] %v1464_v37  ;;  %v14240_v37 = vshrl.u32 %v9503_v8, 16  ;;  %v14246_v8 = vshrl.u32 %v14236_v59, 16 }
 0x263   :  { %1468 = vst [vmem:[#allocation2 + $0x750] sm:$0xff] %v1467_v23  ;;  %1471 = vst [vmem:[#allocation2 + $0x798] sm:$0xff] %v1470_v0  ;;  %v1631_v49 = vrot.slane %v14237_v46, 1  ;;  %v10083_v34 = vor.u32 %v1619_v45, %v14238_v43  ;;  %v10091_v0 = vor.u32 %v1623_v47, %v14242_v24  ;;  %v10103_v53 = vor.u32 %v1629_v15, %v14245_v32  ;;  %v14247_v45 = vld [vmem:[#allocation42_spill] sm:$0xff]  ;;  %v14251_v47 = vld [vmem:[#allocation17_spill] sm:$0xff] }
 0x264   :  { %1474 = vst [vmem:[#allocation2 + $0x7e0] sm:$0xff] %v1473_v11  ;;  %1477 = vst [vmem:[#allocation2 + $0x828] sm:$0xff] %v1476_v29  ;;  %v10087_v23 = vor.u32 %v1621_v55, %v14240_v37  ;;  %v14243_v11 = vshrl.u32 %v9515_v7, 16  ;;  %v14248_v36 = vshll.u32 %v14247_v45, 16  ;;  %v14249_v55 = vld [vmem:[#allocation16_spill] sm:$0xff]  ;;  %v14252_v57 = vshll.u32 %v14251_v47, 16 }
 0x265   :  { %1480 = vst [vmem:[#allocation2 + $0x870] sm:$0xff] %v1479_v12  ;;  %14233 = vst [vmem:[#allocation68_spill] sm:$0xff] %v10073_v22  ;;  %v14244_v12 = vshrl.u32 %v9521_v17, 16  ;;  %v10107_v4 = vor.u32 %v1631_v49, %v14246_v8  ;;  %v14250_v54 = vshll.u32 %v14249_v55, 16  ;;  %v14253_v17 = vld [vmem:[#allocation19_spill] sm:$0xff]  ;;  %v14257_v15 = vshrl.u32 %v14247_v45, 16 }
 0x266   :  { %14239 = vst [vmem:[#allocation41_spill] sm:$0xff] %v10083_v34  ;;  %14241 = vst [vmem:[#allocation69_spill] sm:$0xff] %v10087_v23  ;;  %v10095_v29 = vor.u32 %v1625_v44, %v14243_v11  ;;  %v1633_v5 = vrot.slane %v14248_v36, 1  ;;  %v1637_v44 = vrot.slane %v14252_v57, 1  ;;  %v14254_v27 = vshll.u32 %v14253_v17, 16  ;;  %v14258_v46 = vld [vmem:[#allocation22_spill] sm:$0xff] }
 0x267   :  { %v10099_v58 = vor.u32 %v1627_v19, %v14244_v12  ;;  %v1635_v7 = vrot.slane %v14250_v54, 1  ;;  %v14255_v19 = vld [vmem:[#allocation21_spill] sm:$0xff]  ;;  %v14259_v49 = vshll.u32 %v14258_v46, 16  ;;  %v14260_v37 = vld [vmem:[#allocation24_spill] sm:$0xff]  ;;  %v14262_v12 = vld [vmem:[#allocation30_spill] sm:$0xff]  ;;  %v14264_v36 = vshrl.u32 %v14249_v55, 16 }
 0x268   :  { %v1639_v14 = vrot.slane %v14254_v27, 1  ;;  %v14256_v40 = vshll.u32 %v14255_v19, 16  ;;  %v10121_v59 = vor.u32 %v1633_v5, %v14257_v15  ;;  %v14261_v24 = vshll.u32 %v14260_v37, 16 }
 0x269   :  { %v1643_v43 = vrot.slane %v14259_v49, 1  ;;  %v14263_v32 = vshll.u32 %v14262_v12, 16  ;;  %v10131_v54 = vor.u32 %v1635_v7, %v14264_v36  ;;  %v14266_v57 = vshrl.u32 %v14251_v47, 16  ;;  %v14277_v36 = vld [vmem:[#allocation34_spill] sm:$0xff] }
 0x26a   :  { %v1641_v42 = vrot.slane %v14256_v40, 1  ;;  %v1645_v11 = vrot.slane %v14261_v24, 1  ;;  %v14268_v45 = vshrl.u32 %v14253_v17, 16  ;;  %v14270_v40 = vshrl.u32 %v14255_v19, 16 }
 0x26b   :  { %v1647_v8 = vrot.slane %v14263_v32, 1  ;;  %14265 = vst [vmem:[#allocation42_spill] sm:$0xff] %v10131_v54  ;;  %v10135_v27 = vor.u32 %v1637_v44, %v14266_v57  ;;  %v14272_v49 = vshrl.u32 %v14258_v46, 16  ;;  %v14273_v55 = vshrl.u32 %v14260_v37, 16  ;;  %v14275_v32 = vld [vmem:[#allocation32_spill] sm:$0xff]  ;;  %v14281_v46 = vld [vmem:[#allocation39_spill] sm:$0xff] }
 0x26c   :  { %v10139_v5 = vor.u32 %v1639_v14, %v14268_v45  ;;  %v10143_v15 = vor.u32 %v1641_v42, %v14270_v40  ;;  %v14274_v47 = vshrl.u32 %v14262_v12, 16  ;;  %v14276_v17 = vshll.u32 %v14275_v32, 16  ;;  %v14279_v42 = vld [vmem:[#allocation38_spill] sm:$0xff] }
 0x26d   :  { %14267 = vst [vmem:[#allocation16_spill] sm:$0xff] %v10135_v27  ;;  %v10147_v24 = vor.u32 %v1643_v43, %v14272_v49  ;;  %v10151_v7 = vor.u32 %v1645_v11, %v14273_v55  ;;  %v14278_v57 = vshll.u32 %v14277_v36, 16  ;;  %v14280_v45 = vshll.u32 %v14279_v42, 16  ;;  %v1712_v55 = vld [vmem:[#allocation2 + $0xa0] sm:$0xff] }
 0x26e   :  { %14269 = vst [vmem:[#allocation17_spill] sm:$0xff] %v10139_v5  ;;  %14271 = vst [vmem:[#allocation19_spill] sm:$0xff] %v10143_v15  ;;  %v10155_v44 = vor.u32 %v1647_v8, %v14274_v47  ;;  %v1649_v14 = vrot.slane %v14276_v17, 1  ;;  %v14282_v43 = vshll.u32 %v14281_v46, 16  ;;  %v14284_v37 = vshll.u32 %v14283_v50, 16  ;;  %v14286_v47 = vld [vmem:[#allocation18_spill] sm:$0xff] }
 0x26f   :  { %v1651_v19 = vrot.slane %v14278_v57, 1  ;;  %v1653_v40 = vrot.slane %v14280_v45, 1  ;;  %v14285_v12 = vshrl.u32 %v14275_v32, 16  ;;  %v14287_v17 = vshll.u32 %v14286_v47, 16 }
 0x270   :  { %v1655_v49 = vrot.slane %v14282_v43, 1  ;;  %v1657_v11 = vrot.slane %v14284_v37, 1  ;;  %v14289_v57 = vshll.u32 %v14288_v56, 16  ;;  %v14291_v45 = vshll.u32 %v14290_v9, 16  ;;  %v1715_v43 = vld [vmem:[#allocation2 + $0xe8] sm:$0xff] }
 0x271   :  { %v10169_v8 = vor.u32 %v1649_v14, %v14285_v12  ;;  %v1659_v13 = vrot.slane %v14287_v17, 1  ;;  %v14292_v37 = vshrl.u32 %v14277_v36, 16  ;;  %v14293_v32 = vshrl.u32 %v14279_v42, 16 }
 0x272   :  { %v1661_v31 = vrot.slane %v14289_v57, 1  ;;  %v1663_v26 = vrot.slane %v14291_v45, 1  ;;  %v14294_v12 = vshrl.u32 %v14281_v46, 16  ;;  %v14295_v57 = vshrl.u32 %v14283_v50, 16  ;;  %v1730_v45 = vld [vmem:[#allocation2 + $0x250] sm:$0xff] }
 0x273   :  { %v10179_v30 = vor.u32 %v1651_v19, %v14292_v37  ;;  %v10183_v14 = vor.u32 %v1653_v40, %v14293_v32  ;;  %v14296_v36 = vshrl.u32 %v14286_v47, 16  ;;  %v14297_v42 = vshrl.u32 %v14288_v56, 16  ;;  %v14299_v37 = vld [vmem:[#allocation25_spill] sm:$0xff]  ;;  %v1742_v32 = vld [vmem:[#allocation2 + $0x370] sm:$0xff] }
 0x274   :  { %v10187_v17 = vor.u32 %v1655_v49, %v14294_v12  ;;  %v10191_v6 = vor.u32 %v1657_v11, %v14295_v57  ;;  %v14298_v46 = vshrl.u32 %v14290_v9, 16  ;;  %v14300_v50 = vshll.u32 %v14299_v37, 16  ;;  %v1739_v12 = vld [vmem:[#allocation2 + $0x328] sm:$0xff]  ;;  %v1748_v9 = vld [vmem:[#allocation2 + $0x400] sm:$0xff] }
 0x275   :  { %v10195_v19 = vor.u32 %v1659_v13, %v14296_v36  ;;  %v10199_v40 = vor.u32 %v1661_v31, %v14297_v42  ;;  %v14301_v57 = vshll.u32 %v9675_v33, 16  ;;  %v14303_v47 = vshll.u32 %v14302_v1, 16  ;;  %v1766_v33 = vld [vmem:[#allocation2 + $0x5f8] sm:$0xff] }
 0x276   :  { %v10203_v49 = vor.u32 %v1663_v26, %v14298_v46  ;;  %v1665_v11 = vrot.slane %v14300_v50, 1  ;;  %v14304_v36 = vshll.u32 %v9687_v10, 16  ;;  %v14305_v31 = vshll.u32 %v9705_v25, 16  ;;  %v1745_v26 = vld [vmem:[#allocation2 + $0x3b8] sm:$0xff]  ;;  %v1751_v46 = vld [vmem:[#allocation2 + $0x448] sm:$0xff] }
 0x277   :  { %v1667_v60 = vrot.slane %v14301_v57, 1  ;;  %v1669_v13 = vrot.slane %v14303_v47, 1  ;;  %v14306_v63 = vshrl.u32 %v14299_v37, 16  ;;  %v1710_v57 = vsel %vm9055_vm4, %v10073_v22, %v1709_v51 }
 0x278   :  { %v1671_v56 = vrot.slane %v14304_v36, 1  ;;  %v1673_v42 = vrot.slane %v14305_v31, 1  ;;  %v1713_v47 = vsel %vm9055_vm4, %v10083_v34, %v1712_v55  ;;  %v1716_v36 = vsel %vm9055_vm4, %v10087_v23, %v1715_v43  ;;  %v1757_v31 = vld [vmem:[#allocation2 + $0x520] sm:$0xff]  ;;  %1711 = vst [vmem:[#allocation2 + $0x58] sm:$0xff] %v1710_v57  ;;  %v1760_v43 = vld [vmem:[#allocation2 + $0x568] sm:$0xff]  ;;  %v10272_v57 = vld [vmem:[#allocation2 + $0x18] sm:$0xff] }
 0x279   :  { %v10217_v50 = vor.u32 %v1665_v11, %v14306_v63  ;;  %v10230_v37 = vor.u32 %v1667_v60, %v14308_v48  ;;  %v14309_v63 = vshrl.u32 %v14302_v1, 16  ;;  %v14310_v51 = vshrl.u32 %v9687_v10, 16  ;;  %1714 = vst [vmem:[#allocation2 + $0xa0] sm:$0xff] %v1713_v47  ;;  %1717 = vst [vmem:[#allocation2 + $0xe8] sm:$0xff] %v1716_v36  ;;  %v1769_v23 = vld [vmem:[#allocation2 + $0x640] sm:$0xff]  ;;  %v1775_v60 = vld [vmem:[#allocation2 + $0x6d0] sm:$0xff] }
 0x27a   :  { %v14311_v55 = vshrl.u32 %v9705_v25, 16  ;;  %v1719_v48 = vsel %vm9055_vm4, %v10091_v0, %v1718_v62  ;;  %v1722_v10 = vsel %vm9055_vm4, %v10095_v29, %v1721_v52  ;;  %v1725_v25 = vsel %vm9055_vm4, %v10099_v58, %v1724_v20  ;;  %v1787_v47 = vld [vmem:[#allocation2 + $0x7f0] sm:$0xff]  ;;  %v1784_v36 = vld [vmem:[#allocation2 + $0x7a8] sm:$0xff] }
 0x27b   :  { %v10234_v11 = vor.u32 %v1669_v13, %v14309_v63  ;;  %v10238_v22 = vor.u32 %v1671_v56, %v14310_v51  ;;  %v1728_v1 = vsel %vm9055_vm4, %v10103_v53, %v1727_v28  ;;  %v1772_v13 = vld [vmem:[#allocation2 + $0x688] sm:$0xff]  ;;  %v10256_v56 = vld [vmem:[#allocation2 + $0x760] sm:$0xff]  ;;  %v1731_v62 = vsel %vm9055_vm4, %v10107_v4, %v1730_v45  ;;  %1720 = vst [vmem:[#allocation2 + $0x130] sm:$0xff] %v1719_v48  ;;  %v1778_v45 = vld [vmem:[#allocation2 + $0x718] sm:$0xff] }
 0x27c   :  { %v10242_v34 = vor.u32 %v1673_v42, %v14311_v55  ;;  %v1734_v52 = vsel %vm9055_vm4, %v10121_v59, %v1733_v18  ;;  %v1737_v20 = vsel %vm9055_vm4, %v10131_v54, %v1736_v39  ;;  %v1740_v28 = vsel %vm9055_vm4, %v10135_v27, %v1739_v12  ;;  %1723 = vst [vmem:[#allocation2 + $0x178] sm:$0xff] %v1722_v10  ;;  %v10270_v42 = vld [vmem:[#allocation2 + $0x60] sm:$0xff]  ;;  %v10286_v51 = vld [vmem:[#allocation2 + $0xf0] sm:$0xff]  ;;  %v1922_v10 = vld [vmem:[#allocation2 + $0xa8] sm:$0xff] }
 0x27d   :  { %1726 = vst [vmem:[#allocation2 + $0x1c0] sm:$0xff] %v1725_v25  ;;  %1729 = vst [vmem:[#allocation2 + $0x208] sm:$0xff] %v1728_v1  ;;  %v1743_v18 = vsel %vm9055_vm4, %v10139_v5, %v1742_v32  ;;  %v1746_v39 = vsel %vm9055_vm4, %v10143_v15, %v1745_v26  ;;  %v1749_v12 = vsel %vm9055_vm4, %v10147_v24, %v1748_v9  ;;  %v1793_v55 = vld [vmem:[#allocation2 + $0x880] sm:$0xff]  ;;  %v1790_v32 = vld [vmem:[#allocation2 + $0x838] sm:$0xff] }
 0x27e   :  { %14312 = vst [vmem:[#allocation21_spill] sm:$0xff] %v10242_v34  ;;  %v1752_v63 = vsel %vm9055_vm4, %v10151_v7, %v1751_v46  ;;  %1732 = vst [vmem:[#allocation2 + $0x250] sm:$0xff] %v1731_v62  ;;  %v1755_v26 = vsel %vm9055_vm4, %v10155_v44, %v1754_v21  ;;  %v1758_v9 = vsel %vm9055_vm4, %v10169_v8, %v1757_v31  ;;  %v10300_v25 = vld [vmem:[#allocation2 + $0x180] sm:$0xff]  ;;  %v1928_v21 = vld [vmem:[#allocation2 + $0x138] sm:$0xff] }
 0x27f   :  { %1735 = vst [vmem:[#allocation2 + $0x298] sm:$0xff] %v1734_v52  ;;  %1738 = vst [vmem:[#allocation2 + $0x2e0] sm:$0xff] %v1737_v20  ;;  %v1761_v46 = vsel %vm9055_vm4, %v10179_v30, %v1760_v43  ;;  %v1764_v48 = vsel %vm9055_vm4, %v10183_v14, %v1763_v38  ;;  %v1767_v31 = vsel %vm9055_vm4, %v10187_v17, %v1766_v33  ;;  %v1937_v62 = vld [vmem:[#allocation2 + $0x210] sm:$0xff]  ;;  %v1934_v52 = vld [vmem:[#allocation2 + $0x1c8] sm:$0xff] }
 0x280   :  { %1741 = vst [vmem:[#allocation2 + $0x328] sm:$0xff] %v1740_v28  ;;  %1744 = vst [vmem:[#allocation2 + $0x370] sm:$0xff] %v1743_v18  ;;  %v1770_v43 = vsel %vm9055_vm4, %v10191_v6, %v1769_v23  ;;  %v1773_v38 = vsel %vm9055_vm4, %v10195_v19, %v1772_v13  ;;  %v1776_v1 = vsel %vm9055_vm4, %v10199_v40, %v1775_v60  ;;  %v10314_v20 = vld [vmem:[#allocation2 + $0x2a0] sm:$0xff]  ;;  %v1940_v28 = vld [vmem:[#allocation2 + $0x258] sm:$0xff] }
 0x281   :  { %1747 = vst [vmem:[#allocation2 + $0x3b8] sm:$0xff] %v1746_v39  ;;  %1750 = vst [vmem:[#allocation2 + $0x400] sm:$0xff] %v1749_v12  ;;  %v1779_v33 = vsel %vm9055_vm4, %v10203_v49, %v1778_v45  ;;  %v1782_v23 = vsel %vm9055_vm4, %v10217_v50, %v10256_v56  ;;  %v1785_v60 = vsel %vm9055_vm4, %v10230_v37, %v1784_v36  ;;  %v10329_v18 = vld [vmem:[#allocation2 + $0x330] sm:$0xff]  ;;  %v1946_v45 = vld [vmem:[#allocation2 + $0x2e8] sm:$0xff] }
 0x282   :  { %1753 = vst [vmem:[#allocation2 + $0x448] sm:$0xff] %v1752_v63  ;;  %1756 = vst [vmem:[#allocation2 + $0x4d8] sm:$0xff] %v1755_v26  ;;  %v1788_v13 = vsel %vm9055_vm4, %v10234_v11, %v1787_v47  ;;  %v1791_v56 = vsel %vm9055_vm4, %v10238_v22, %v1790_v32  ;;  %v1794_v36 = vsel %vm9055_vm4, %v10242_v34, %v1793_v55  ;;  %v14313_v39 = vld [vmem:[#allocation29_spill] sm:$0xff]  ;;  %v1955_v63 = vld [vmem:[#allocation2 + $0x3c0] sm:$0xff] }
 0x283   :  { %1759 = vst [vmem:[#allocation2 + $0x520] sm:$0xff] %v1758_v9  ;;  %1762 = vst [vmem:[#allocation2 + $0x568] sm:$0xff] %v1761_v46  ;;  %v13888_v12 = vshrl.u32 %v14313_v39, 16  ;;  %v1952_v26 = vld [vmem:[#allocation2 + $0x378] sm:$0xff]  ;;  %v10339_v9 = vld [vmem:[#allocation2 + $0x450] sm:$0xff] }
 0x284   :  { %1765 = vst [vmem:[#allocation2 + $0x5b0] sm:$0xff] %v1764_v48  ;;  %1768 = vst [vmem:[#allocation2 + $0x5f8] sm:$0xff] %v1767_v31  ;;  %v14314_v46 = vld [vmem:[#allocation26_spill] sm:$0xff]  ;;  %v14315_v31 = vld [vmem:[#allocation28_spill] sm:$0xff] }
 0x285   :  { %1771 = vst [vmem:[#allocation2 + $0x640] sm:$0xff] %v1770_v43  ;;  %1774 = vst [vmem:[#allocation2 + $0x688] sm:$0xff] %v1773_v38  ;;  %v13889_v48 = vshrl.u32 %v14314_v46, 16  ;;  %v1917_v55 = vsel %vm9032_vm3, %v14315_v31, %v10272_v57  ;;  %v14316_v43 = vld [vmem:[#allocation31_spill] sm:$0xff]  ;;  %v1926_v57 = vsel %vm9032_vm3, %v9781_v3, %v10286_v51  ;;  %v10369_v31 = vld [vmem:[#allocation2 + $0x600] sm:$0xff] }
 0x286   :  { %1777 = vst [vmem:[#allocation2 + $0x6d0] sm:$0xff] %v1776_v1  ;;  %1780 = vst [vmem:[#allocation2 + $0x718] sm:$0xff] %v1779_v33  ;;  %v1920_v38 = vsel %vm9032_vm3, %v14316_v43, %v10270_v42  ;;  %v10351_v1 = vld [vmem:[#allocation2 + $0x408] sm:$0xff]  ;;  %v1967_v33 = vld [vmem:[#allocation2 + $0x4e0] sm:$0xff]  ;;  %v1929_v42 = vsel %vm9032_vm3, %v9785_v61, %v1928_v21  ;;  %v14319_v61 = vshll.u32 %v14313_v39, 16 }
 0x287   :  { %1783 = vst [vmem:[#allocation2 + $0x760] sm:$0xff] %v1782_v23  ;;  %1786 = vst [vmem:[#allocation2 + $0x7a8] sm:$0xff] %v1785_v60  ;;  %v1964_v23 = vld [vmem:[#allocation2 + $0x498] sm:$0xff]  ;;  %v1903_v60 = vrot.slane %v13888_v12, 7  ;;  %v14317_v51 = vld [vmem:[#allocation46_spill] sm:$0xff] }
 0x288   :  { %1789 = vst [vmem:[#allocation2 + $0x7f0] sm:$0xff] %v1788_v13  ;;  %1792 = vst [vmem:[#allocation2 + $0x838] sm:$0xff] %v1791_v56  ;;  %v1923_v13 = vsel %vm9032_vm3, %v9774_v2, %v1922_v10  ;;  %v10365_v56 = vld [vmem:[#allocation2 + $0x570] sm:$0xff]  ;;  %v1932_v10 = vsel %vm9032_vm3, %v9791_v41, %v10300_v25  ;;  %v1935_v12 = vsel %vm9032_vm3, %v14317_v51, %v1934_v52  ;;  %v14318_v21 = vld [vmem:[#allocation47_spill] sm:$0xff] }
 0x289   :  { %1795 = vst [vmem:[#allocation2 + $0x880] sm:$0xff] %v1794_v36  ;;  %1918 = vst [vmem:[#allocation2 + $0x18] sm:$0xff] %v1917_v55  ;;  %v10367_v36 = vld [vmem:[#allocation2 + $0x528] sm:$0xff]  ;;  %v1910_v55 = vrot.slane %v13889_v48, 7  ;;  %v1976_v32 = vld [vmem:[#allocation2 + $0x5b8] sm:$0xff]  ;;  %v10389_v3 = vor.u32 %v14319_v61, %v1903_v60 }
 0x28a   :  { %1921 = vst [vmem:[#allocation2 + $0x60] sm:$0xff] %v1920_v38  ;;  %v1938_v38 = vsel %vm9032_vm3, %v14318_v21, %v1937_v62  ;;  %1924 = vst [vmem:[#allocation2 + $0xa8] sm:$0xff] %v1923_v13  ;;  %v10383_v47 = vld [vmem:[#allocation2 + $0x690] sm:$0xff]  ;;  %v10385_v48 = vld [vmem:[#allocation2 + $0x648] sm:$0xff] }
 0x28b   :  { %1927 = vst [vmem:[#allocation2 + $0xf0] sm:$0xff] %v1926_v57  ;;  %1930 = vst [vmem:[#allocation2 + $0x138] sm:$0xff] %v1929_v42  ;;  %v14321_v25 = vld [vmem:[#allocation48_spill] sm:$0xff]  ;;  %v14322_v51 = vld [vmem:[#allocation49_spill] sm:$0xff] }
 0x28c   :  { %14320 = vst [vmem:[#allocation22_spill] sm:$0xff] %v10389_v3  ;;  %v1941_v52 = vsel %vm9032_vm3, %v14321_v25, %v1940_v28  ;;  %v1944_v62 = vsel %vm9032_vm3, %v14322_v51, %v10314_v20  ;;  %v14323_v13 = vld [vmem:[#allocation50_spill] sm:$0xff]  ;;  %1933 = vst [vmem:[#allocation2 + $0x180] sm:$0xff] %v1932_v10  ;;  %v10401_v42 = vld [vmem:[#allocation2 + $0x28] sm:$0xff]  ;;  %v14324_v28 = vshll.u32 %v14314_v46, 16 }
 0x28d   :  { %v1947_v57 = vsel %vm9032_vm3, %v14323_v13, %v1946_v45  ;;  %1936 = vst [vmem:[#allocation2 + $0x1c8] sm:$0xff] %v1935_v12  ;;  %1939 = vst [vmem:[#allocation2 + $0x210] sm:$0xff] %v1938_v38  ;;  %v1991_v61 = vld [vmem:[#allocation2 + $0x720] sm:$0xff]  ;;  %v1988_v60 = vld [vmem:[#allocation2 + $0x6d8] sm:$0xff] }
 0x28e   :  { %v10403_v21 = vld [vmem:[#allocation2 + $0x7b0] sm:$0xff]  ;;  %v10407_v25 = vor.u32 %v14324_v28, %v1910_v55  ;;  %v14325_v41 = vld [vmem:[#allocation51_spill] sm:$0xff]  ;;  %v14326_v51 = vld [vmem:[#allocation52_spill] sm:$0xff]  ;;  %1942 = vst [vmem:[#allocation2 + $0x258] sm:$0xff] %v1941_v52 }
 0x28f   :  { %v1950_v20 = vsel %vm9032_vm3, %v14325_v41, %v10329_v18  ;;  %v1953_v45 = vsel %vm9032_vm3, %v14326_v51, %v1952_v26  ;;  %v14327_v12 = vld [vmem:[#allocation53_spill] sm:$0xff]  ;;  %1945 = vst [vmem:[#allocation2 + $0x2a0] sm:$0xff] %v1944_v62  ;;  %1948 = vst [vmem:[#allocation2 + $0x2e8] sm:$0xff] %v1947_v57  ;;  %v10419_v38 = vld [vmem:[#allocation2 + $0x70] sm:$0xff] }
 0x290   :  { %v1956_v10 = vsel %vm9032_vm3, %v14327_v12, %v1955_v63  ;;  %v10421_v55 = vld [vmem:[#allocation2 + $0x100] sm:$0xff]  ;;  %v10423_v28 = vld [vmem:[#allocation2 + $0xb8] sm:$0xff]  ;;  %v1994_v13 = vld [vmem:[#allocation2 + $0x768] sm:$0xff]  ;;  %v1962_v63 = vsel %vm9032_vm3, %v10389_v3, %v10339_v9  ;;  %1951 = vst [vmem:[#allocation2 + $0x330] sm:$0xff] %v1950_v20 }
 0x291   :  { %v2003_v2 = vld [vmem:[#allocation2 + $0x840] sm:$0xff]  ;;  %v2000_v18 = vld [vmem:[#allocation2 + $0x7f8] sm:$0xff]  ;;  %v14328_v41 = vld [vmem:[#allocation54_spill] sm:$0xff]  ;;  %1954 = vst [vmem:[#allocation2 + $0x378] sm:$0xff] %v1953_v45 }
 0x292   :  { %v1959_v26 = vsel %vm9032_vm3, %v14328_v41, %v10351_v1  ;;  %v14329_v52 = vld [vmem:[#allocation55_spill] sm:$0xff]  ;;  %v14330_v57 = vld [vmem:[#allocation56_spill] sm:$0xff]  ;;  %1957 = vst [vmem:[#allocation2 + $0x3c0] sm:$0xff] %v1956_v10  ;;  %v10439_v51 = vld [vmem:[#allocation2 + $0x190] sm:$0xff] }
 0x293   :  { %v1965_v62 = vsel %vm9032_vm3, %v14329_v52, %v1964_v23  ;;  %v1968_v12 = vsel %vm9032_vm3, %v14330_v57, %v1967_v33  ;;  %v10441_v43 = vld [vmem:[#allocation2 + $0x148] sm:$0xff]  ;;  %v2009_v1 = vld [vmem:[#allocation2 + $0x8d0] sm:$0xff]  ;;  %1963 = vst [vmem:[#allocation2 + $0x450] sm:$0xff] %v1962_v63  ;;  %v14333_v20 = vld [vmem:[#allocation59_spill] sm:$0xff] }
 0x294   :  { %1966 = vst [vmem:[#allocation2 + $0x498] sm:$0xff] %v1965_v62  ;;  %v14331_v9 = vld [vmem:[#allocation57_spill] sm:$0xff]  ;;  %v14332_v23 = vld [vmem:[#allocation58_spill] sm:$0xff]  ;;  %v1977_v45 = vsel %vm9032_vm3, %v14333_v20, %v1976_v32  ;;  %v14334_v10 = vld [vmem:[#allocation60_spill] sm:$0xff] }
 0x295   :  { %v1971_v3 = vsel %vm9032_vm3, %v14331_v9, %v10367_v36  ;;  %v1974_v33 = vsel %vm9032_vm3, %v14332_v23, %v10365_v56  ;;  %v1980_v63 = vsel %vm9032_vm3, %v14334_v10, %v10369_v31  ;;  %1960 = vst [vmem:[#allocation2 + $0x408] sm:$0xff] %v1959_v26  ;;  %1969 = vst [vmem:[#allocation2 + $0x4e0] sm:$0xff] %v1968_v12  ;;  %v10458_v52 = vld [vmem:[#allocation2 + $0x220] sm:$0xff]  ;;  %v2164_v62 = vld [vmem:[#allocation2 + $0x1d8] sm:$0xff] }
 0x296   :  { %v10460_v36 = vld [vmem:[#allocation2 + $0x2b0] sm:$0xff]  ;;  %v10462_v9 = vld [vmem:[#allocation2 + $0x268] sm:$0xff]  ;;  %v14337_v31 = vld [vmem:[#allocation63_spill] sm:$0xff]  ;;  %1972 = vst [vmem:[#allocation2 + $0x528] sm:$0xff] %v1971_v3 }
 0x297   :  { %v14335_v56 = vld [vmem:[#allocation61_spill] sm:$0xff]  ;;  %v14336_v32 = vld [vmem:[#allocation62_spill] sm:$0xff]  ;;  %v1989_v12 = vsel %vm9032_vm3, %v14337_v31, %v1988_v60  ;;  %v14338_v26 = vld [vmem:[#allocation64_spill] sm:$0xff]  ;;  %1975 = vst [vmem:[#allocation2 + $0x570] sm:$0xff] %v1974_v33 }
 0x298   :  { %v1983_v23 = vsel %vm9032_vm3, %v14335_v56, %v10385_v48  ;;  %v1986_v20 = vsel %vm9032_vm3, %v14336_v32, %v10383_v47  ;;  %v1992_v10 = vsel %vm9032_vm3, %v14338_v26, %v1991_v61  ;;  %1978 = vst [vmem:[#allocation2 + $0x5b8] sm:$0xff] %v1977_v45  ;;  %1981 = vst [vmem:[#allocation2 + $0x600] sm:$0xff] %v1980_v63  ;;  %v10478_v57 = vld [vmem:[#allocation2 + $0x340] sm:$0xff]  ;;  %v10480_v48 = vld [vmem:[#allocation2 + $0x2f8] sm:$0xff] }
 0x299   :  { %v10482_v56 = vld [vmem:[#allocation2 + $0x3d0] sm:$0xff]  ;;  %v14339_v41 = vld [vmem:[#allocation65_spill] sm:$0xff]  ;;  %v14340_v60 = vld [vmem:[#allocation36_spill] sm:$0xff]  ;;  %1984 = vst [vmem:[#allocation2 + $0x648] sm:$0xff] %v1983_v23 }
 0x29a   :  { %v1995_v47 = vsel %vm9032_vm3, %v14339_v41, %v1994_v13  ;;  %v1998_v31 = vsel %vm9032_vm3, %v14340_v60, %v10403_v21  ;;  %v14341_v61 = vld [vmem:[#allocation66_spill] sm:$0xff]  ;;  %v14342_v33 = vld [vmem:[#allocation67_spill] sm:$0xff]  ;;  %1987 = vst [vmem:[#allocation2 + $0x690] sm:$0xff] %v1986_v20  ;;  %1990 = vst [vmem:[#allocation2 + $0x6d8] sm:$0xff] %v1989_v12  ;;  %v2010_v21 = vsel %vm9032_vm3, %v10407_v25, %v2009_v1  ;;  %v14344_v60 = vshll.u32 %v14314_v46, 16 }
 0x29b   :  { %v2001_v3 = vsel %vm9032_vm3, %v14341_v61, %v2000_v18  ;;  %v2004_v45 = vsel %vm9032_vm3, %v14342_v33, %v2003_v2  ;;  %1993 = vst [vmem:[#allocation2 + $0x720] sm:$0xff] %v1992_v10  ;;  %v10497_v63 = vld [vmem:[#allocation2 + $0x388] sm:$0xff]  ;;  %v10499_v13 = vld [vmem:[#allocation2 + $0x460] sm:$0xff]  ;;  %v10501_v41 = vld [vmem:[#allocation2 + $0x418] sm:$0xff]  ;;  %v14343_v18 = vshll.u32 %v14313_v39, 16 }
 0x29c   :  { %v2142_v2 = vrot.slane %v14344_v60, 1  ;;  %v14345_v23 = vld [vmem:[#allocation68_spill] sm:$0xff]  ;;  %1996 = vst [vmem:[#allocation2 + $0x768] sm:$0xff] %v1995_v47  ;;  %1999 = vst [vmem:[#allocation2 + $0x7b0] sm:$0xff] %v1998_v31  ;;  %v10514_v10 = vld [vmem:[#allocation2 + $0x4f0] sm:$0xff]  ;;  %v2156_v31 = vsel %vm9055_vm4, %v10091_v0, %v10421_v55  ;;  %v2159_v47 = vsel %vm9055_vm4, %v10095_v29, %v10441_v43  ;;  %v2162_v55 = vsel %vm9055_vm4, %v10099_v58, %v10439_v51 }
 0x29d   :  { %v2140_v61 = vrot.slane %v14343_v18, 1  ;;  %v2147_v20 = vsel %vm9055_vm4, %v14345_v23, %v10401_v42  ;;  %2002 = vst [vmem:[#allocation2 + $0x7f8] sm:$0xff] %v2001_v3  ;;  %2005 = vst [vmem:[#allocation2 + $0x840] sm:$0xff] %v2004_v45  ;;  %v2194_v12 = vld [vmem:[#allocation2 + $0x4a8] sm:$0xff]  ;;  %v10516_v33 = vld [vmem:[#allocation2 + $0x580] sm:$0xff]  ;;  %v2165_v43 = vsel %vm9055_vm4, %v10103_v53, %v2164_v62  ;;  %v2171_v51 = vsel %vm9055_vm4, %v10121_v59, %v10462_v9 }
 0x29e   :  { %2011 = vst [vmem:[#allocation2 + $0x8d0] sm:$0xff] %v2010_v21  ;;  %2148 = vst [vmem:[#allocation2 + $0x28] sm:$0xff] %v2147_v20  ;;  %v14346_v1 = vld [vmem:[#allocation41_spill] sm:$0xff]  ;;  %v2200_v3 = vld [vmem:[#allocation2 + $0x538] sm:$0xff]  ;;  %v2174_v62 = vsel %vm9055_vm4, %v10131_v54, %v10460_v36  ;;  %v2180_v36 = vsel %vm9055_vm4, %v10139_v5, %v10478_v57 }
 0x29f   :  { %v2150_v60 = vsel %vm9055_vm4, %v14346_v1, %v10419_v38  ;;  %v14347_v18 = vld [vmem:[#allocation69_spill] sm:$0xff]  ;;  %v10534_v45 = vld [vmem:[#allocation2 + $0x610] sm:$0xff]  ;;  %v14348_v38 = vshrl.u32 %v14313_v39, 16  ;;  %2157 = vst [vmem:[#allocation2 + $0x100] sm:$0xff] %v2156_v31  ;;  %2160 = vst [vmem:[#allocation2 + $0x148] sm:$0xff] %v2159_v47 }
 0x2a0   :  { %v2153_v42 = vsel %vm9055_vm4, %v14347_v18, %v10423_v28  ;;  %v10536_v21 = vld [vmem:[#allocation2 + $0x5c8] sm:$0xff]  ;;  %v14349_v28 = vshrl.u32 %v14314_v46, 16  ;;  %2151 = vst [vmem:[#allocation2 + $0x70] sm:$0xff] %v2150_v60  ;;  %v10553_v39 = vld [vmem:[#allocation2 + $0x6a0] sm:$0xff]  ;;  %v2168_v46 = vsel %vm9055_vm4, %v10107_v4, %v10458_v52  ;;  %2163 = vst [vmem:[#allocation2 + $0x190] sm:$0xff] %v2162_v55  ;;  %v2186_v55 = vsel %vm9055_vm4, %v10147_v24, %v10482_v56 }
 0x2a1   :  { %v10540_v23 = vor.u32 %v2140_v61, %v14348_v38  ;;  %2154 = vst [vmem:[#allocation2 + $0xb8] sm:$0xff] %v2153_v42  ;;  %v2212_v61 = vld [vmem:[#allocation2 + $0x658] sm:$0xff]  ;;  %v10555_v38 = vld [vmem:[#allocation2 + $0x730] sm:$0xff]  ;;  %2166 = vst [vmem:[#allocation2 + $0x1d8] sm:$0xff] %v2165_v43  ;;  %v2189_v43 = vsel %vm9055_vm4, %v10151_v7, %v10501_v41  ;;  %v2195_v41 = vsel %vm9055_vm4, %v10155_v44, %v2194_v12 }
 0x2a2   :  { %v10544_v20 = vor.u32 %v2142_v2, %v14349_v28  ;;  %v2177_v2 = vsel %vm9055_vm4, %v10135_v27, %v10480_v48  ;;  %v10573_v60 = vld [vmem:[#allocation2 + $0x30] sm:$0xff]  ;;  %v10575_v52 = vld [vmem:[#allocation2 + $0xc0] sm:$0xff]  ;;  %v10577_v42 = vld [vmem:[#allocation2 + $0x78] sm:$0xff]  ;;  %v2183_v48 = vsel %vm9055_vm4, %v10143_v15, %v10497_v63  ;;  %2169 = vst [vmem:[#allocation2 + $0x220] sm:$0xff] %v2168_v46  ;;  %v2198_v46 = vsel %vm9055_vm4, %v10169_v8, %v10514_v10 }
 0x2a3   :  { %v10579_v31 = vld [vmem:[#allocation2 + $0x108] sm:$0xff]  ;;  %v10581_v47 = vld [vmem:[#allocation2 + $0x7c0] sm:$0xff]  ;;  %v2224_v28 = vld [vmem:[#allocation2 + $0x778] sm:$0xff]  ;;  %2172 = vst [vmem:[#allocation2 + $0x268] sm:$0xff] %v2171_v51  ;;  %v2192_v56 = vsel %vm9055_vm4, %v10540_v23, %v10499_v13  ;;  %v2201_v51 = vsel %vm9055_vm4, %v10179_v30, %v2200_v3  ;;  %v2204_v44 = vsel %vm9055_vm4, %v10183_v14, %v10516_v33  ;;  %v2207_v10 = vsel %vm9055_vm4, %v10187_v17, %v10536_v21 }
 0x2a4   :  { %14350 = vst [vmem:[#allocation24_spill] sm:$0xff] %v10544_v20  ;;  %v2218_v9 = vld [vmem:[#allocation2 + $0x6e8] sm:$0xff]  ;;  %2175 = vst [vmem:[#allocation2 + $0x2b0] sm:$0xff] %v2174_v62  ;;  %v10599_v57 = vld [vmem:[#allocation2 + $0x150] sm:$0xff]  ;;  %v2210_v12 = vsel %vm9055_vm4, %v10191_v6, %v10534_v45  ;;  %v2213_v3 = vsel %vm9055_vm4, %v10195_v19, %v2212_v61  ;;  %v2216_v21 = vsel %vm9055_vm4, %v10199_v40, %v10553_v39 }
 0x2a5   :  { %2178 = vst [vmem:[#allocation2 + $0x2f8] sm:$0xff] %v2177_v2  ;;  %v10601_v5 = vld [vmem:[#allocation2 + $0x1e0] sm:$0xff]  ;;  %v10603_v27 = vld [vmem:[#allocation2 + $0x198] sm:$0xff]  ;;  %v2233_v63 = vld [vmem:[#allocation2 + $0x850] sm:$0xff]  ;;  %v2219_v45 = vsel %vm9055_vm4, %v10203_v49, %v2218_v9  ;;  %v2222_v61 = vsel %vm9055_vm4, %v10217_v50, %v10555_v38  ;;  %v2228_v9 = vsel %vm9055_vm4, %v10234_v11, %v10581_v47 }
 0x2a6   :  { %v2230_v15 = vld [vmem:[#allocation2 + $0x808] sm:$0xff]  ;;  %v2239_v54 = vld [vmem:[#allocation2 + $0x8e0] sm:$0xff]  ;;  %2181 = vst [vmem:[#allocation2 + $0x340] sm:$0xff] %v2180_v36  ;;  %2184 = vst [vmem:[#allocation2 + $0x388] sm:$0xff] %v2183_v48 }
 0x2a7   :  { %2187 = vst [vmem:[#allocation2 + $0x3d0] sm:$0xff] %v2186_v55  ;;  %2190 = vst [vmem:[#allocation2 + $0x418] sm:$0xff] %v2189_v43  ;;  %v10619_v62 = vld [vmem:[#allocation2 + $0x270] sm:$0xff]  ;;  %v10621_v13 = vld [vmem:[#allocation2 + $0x228] sm:$0xff]  ;;  %v2225_v55 = vsel %vm9055_vm4, %v10230_v37, %v2224_v28  ;;  %v2231_v38 = vsel %vm9055_vm4, %v10238_v22, %v2230_v15  ;;  %v2234_v28 = vsel %vm9055_vm4, %v10242_v34, %v2233_v63 }
 0x2a8   :  { %v10623_v2 = vld [vmem:[#allocation2 + $0x300] sm:$0xff]  ;;  %2193 = vst [vmem:[#allocation2 + $0x460] sm:$0xff] %v2192_v56  ;;  %2196 = vst [vmem:[#allocation2 + $0x4a8] sm:$0xff] %v2195_v41  ;;  %v10640_v36 = vld [vmem:[#allocation2 + $0x2b8] sm:$0xff]  ;;  %v2240_v41 = vsel %vm9055_vm4, %v10544_v20, %v2239_v54 }
 0x2a9   :  { %2199 = vst [vmem:[#allocation2 + $0x4f0] sm:$0xff] %v2198_v46  ;;  %2202 = vst [vmem:[#allocation2 + $0x538] sm:$0xff] %v2201_v51  ;;  %v10642_v48 = vld [vmem:[#allocation2 + $0x390] sm:$0xff]  ;;  %v10644_v33 = vld [vmem:[#allocation2 + $0x348] sm:$0xff] }
 0x2aa   :  { %2205 = vst [vmem:[#allocation2 + $0x580] sm:$0xff] %v2204_v44  ;;  %2208 = vst [vmem:[#allocation2 + $0x5c8] sm:$0xff] %v2207_v10  ;;  %v10660_v43 = vld [vmem:[#allocation2 + $0x420] sm:$0xff]  ;;  %v10662_v39 = vld [vmem:[#allocation2 + $0x3d8] sm:$0xff] }
 0x2ab   :  { %2211 = vst [vmem:[#allocation2 + $0x610] sm:$0xff] %v2210_v12  ;;  %2214 = vst [vmem:[#allocation2 + $0x658] sm:$0xff] %v2213_v3  ;;  %v10664_v56 = vld [vmem:[#allocation2 + $0x4b0] sm:$0xff]  ;;  %v10679_v46 = vld [vmem:[#allocation2 + $0x540] sm:$0xff] }
 0x2ac   :  { %2217 = vst [vmem:[#allocation2 + $0x6a0] sm:$0xff] %v2216_v21  ;;  %2220 = vst [vmem:[#allocation2 + $0x6e8] sm:$0xff] %v2219_v45  ;;  %v10681_v51 = vld [vmem:[#allocation2 + $0x4f8] sm:$0xff]  ;;  %v10683_v47 = vld [vmem:[#allocation2 + $0x5d0] sm:$0xff] }
 0x2ad   :  { %2223 = vst [vmem:[#allocation2 + $0x730] sm:$0xff] %v2222_v61  ;;  %2226 = vst [vmem:[#allocation2 + $0x778] sm:$0xff] %v2225_v55  ;;  %v14351_v15 = vld [vmem:[#allocation31_spill] sm:$0xff]  ;;  %v14352_v44 = vld [vmem:[#allocation33_spill] sm:$0xff] }
 0x2ae   :  { %2241 = vst [vmem:[#allocation2 + $0x8e0] sm:$0xff] %v2240_v41  ;;  %v2339_v63 = vsel %vm9032_vm3, %v14351_v15, %v10573_v60  ;;  %v2342_v54 = vsel %vm9032_vm3, %v14352_v44, %v10577_v42  ;;  %v14353_v10 = vld [vmem:[#allocation43_spill] sm:$0xff]  ;;  %v14354_v3 = vld [vmem:[#allocation44_spill] sm:$0xff]  ;;  %2229 = vst [vmem:[#allocation2 + $0x7c0] sm:$0xff] %v2228_v9 }
 0x2af   :  { %v2345_v12 = vsel %vm9032_vm3, %v14353_v10, %v10575_v52  ;;  %v2348_v21 = vsel %vm9032_vm3, %v14354_v3, %v10579_v31  ;;  %2232 = vst [vmem:[#allocation2 + $0x808] sm:$0xff] %v2231_v38  ;;  %2235 = vst [vmem:[#allocation2 + $0x850] sm:$0xff] %v2234_v28  ;;  %v2392_v45 = vld [vmem:[#allocation2 + $0x588] sm:$0xff]  ;;  %v10701_v60 = vld [vmem:[#allocation2 + $0x660] sm:$0xff] }
 0x2b0   :  { %v10703_v61 = vld [vmem:[#allocation2 + $0x618] sm:$0xff]  ;;  %2340 = vst [vmem:[#allocation2 + $0x30] sm:$0xff] %v2339_v63  ;;  %v14355_v42 = vld [vmem:[#allocation45_spill] sm:$0xff]  ;;  %v14356_v52 = vld [vmem:[#allocation46_spill] sm:$0xff] }
 0x2b1   :  { %v2351_v55 = vsel %vm9032_vm3, %v14355_v42, %v10599_v57  ;;  %v2354_v41 = vsel %vm9032_vm3, %v14356_v52, %v10603_v27  ;;  %v14357_v31 = vld [vmem:[#allocation47_spill] sm:$0xff]  ;;  %v14358_v38 = vld [vmem:[#allocation48_spill] sm:$0xff]  ;;  %2343 = vst [vmem:[#allocation2 + $0x78] sm:$0xff] %v2342_v54  ;;  %2346 = vst [vmem:[#allocation2 + $0xc0] sm:$0xff] %v2345_v12 }
 0x2b2   :  { %v2357_v9 = vsel %vm9032_vm3, %v14357_v31, %v10601_v5  ;;  %v2360_v28 = vsel %vm9032_vm3, %v14358_v38, %v10621_v13  ;;  %2349 = vst [vmem:[#allocation2 + $0x108] sm:$0xff] %v2348_v21  ;;  %v10721_v15 = vld [vmem:[#allocation2 + $0x40] sm:$0xff]  ;;  %v10723_v57 = vld [vmem:[#allocation2 + $0xd0] sm:$0xff]  ;;  %v10725_v63 = vld [vmem:[#allocation2 + $0x88] sm:$0xff] }
 0x2b3   :  { %v2407_v27 = vld [vmem:[#allocation2 + $0x6f0] sm:$0xff]  ;;  %v2404_v44 = vld [vmem:[#allocation2 + $0x6a8] sm:$0xff]  ;;  %v10727_v10 = vld [vmem:[#allocation2 + $0x780] sm:$0xff]  ;;  %2352 = vst [vmem:[#allocation2 + $0x150] sm:$0xff] %v2351_v55 }
 0x2b4   :  { %v14359_v5 = vld [vmem:[#allocation49_spill] sm:$0xff]  ;;  %v14360_v13 = vld [vmem:[#allocation50_spill] sm:$0xff]  ;;  %v14361_v12 = vld [vmem:[#allocation51_spill] sm:$0xff]  ;;  %2355 = vst [vmem:[#allocation2 + $0x198] sm:$0xff] %v2354_v41 }
 0x2b5   :  { %v2363_v3 = vsel %vm9032_vm3, %v14359_v5, %v10619_v62  ;;  %v2366_v54 = vsel %vm9032_vm3, %v14360_v13, %v10640_v36  ;;  %v2369_v21 = vsel %vm9032_vm3, %v14361_v12, %v10623_v2  ;;  %v14362_v42 = vld [vmem:[#allocation52_spill] sm:$0xff]  ;;  %2358 = vst [vmem:[#allocation2 + $0x1e0] sm:$0xff] %v2357_v9  ;;  %2361 = vst [vmem:[#allocation2 + $0x228] sm:$0xff] %v2360_v28  ;;  %v10747_v31 = vld [vmem:[#allocation2 + $0x118] sm:$0xff] }
 0x2b6   :  { %v2372_v52 = vsel %vm9032_vm3, %v14362_v42, %v10644_v33  ;;  %v10745_v62 = vld [vmem:[#allocation2 + $0x160] sm:$0xff]  ;;  %v10749_v38 = vld [vmem:[#allocation2 + $0x1f0] sm:$0xff]  ;;  %v10751_v36 = vld [vmem:[#allocation2 + $0x1a8] sm:$0xff]  ;;  %2364 = vst [vmem:[#allocation2 + $0x270] sm:$0xff] %v2363_v3 }
 0x2b7   :  { %v2410_v5 = vld [vmem:[#allocation2 + $0x738] sm:$0xff]  ;;  %v2419_v13 = vld [vmem:[#allocation2 + $0x810] sm:$0xff]  ;;  %v2416_v2 = vld [vmem:[#allocation2 + $0x7c8] sm:$0xff]  ;;  %2367 = vst [vmem:[#allocation2 + $0x2b8] sm:$0xff] %v2366_v54 }
 0x2b8   :  { %v14363_v12 = vld [vmem:[#allocation53_spill] sm:$0xff]  ;;  %v14364_v55 = vld [vmem:[#allocation54_spill] sm:$0xff]  ;;  %v14366_v42 = vld [vmem:[#allocation56_spill] sm:$0xff]  ;;  %2370 = vst [vmem:[#allocation2 + $0x300] sm:$0xff] %v2369_v21 }
 0x2b9   :  { %v2375_v33 = vsel %vm9032_vm3, %v14363_v12, %v10642_v48  ;;  %v2378_v41 = vsel %vm9032_vm3, %v14364_v55, %v10662_v39  ;;  %v14365_v9 = vld [vmem:[#allocation22_spill] sm:$0xff]  ;;  %v2384_v20 = vsel %vm9032_vm3, %v14366_v42, %v10664_v56  ;;  %2373 = vst [vmem:[#allocation2 + $0x348] sm:$0xff] %v2372_v52  ;;  %v10769_v48 = vld [vmem:[#allocation2 + $0x280] sm:$0xff]  ;;  %v10771_v12 = vld [vmem:[#allocation2 + $0x238] sm:$0xff] }
 0x2ba   :  { %v2381_v28 = vsel %vm9032_vm3, %v14365_v9, %v10660_v43  ;;  %v10773_v34 = vld [vmem:[#allocation2 + $0x310] sm:$0xff]  ;;  %v2425_v39 = vld [vmem:[#allocation2 + $0x8a0] sm:$0xff]  ;;  %v14367_v55 = vld [vmem:[#allocation57_spill] sm:$0xff]  ;;  %2376 = vst [vmem:[#allocation2 + $0x390] sm:$0xff] %v2375_v33  ;;  %v2408_v33 = vsel %vm9032_vm3, %v14338_v26, %v2407_v27 }
 0x2bb   :  { %2382 = vst [vmem:[#allocation2 + $0x420] sm:$0xff] %v2381_v28  ;;  %v2387_v43 = vsel %vm9032_vm3, %v14367_v55, %v10681_v51  ;;  %v14368_v9 = vld [vmem:[#allocation58_spill] sm:$0xff]  ;;  %v14369_v3 = vld [vmem:[#allocation59_spill] sm:$0xff]  ;;  %v14370_v21 = vld [vmem:[#allocation60_spill] sm:$0xff] }
 0x2bc   :  { %v2390_v56 = vsel %vm9032_vm3, %v14368_v9, %v10679_v46  ;;  %v2393_v54 = vsel %vm9032_vm3, %v14369_v3, %v2392_v45  ;;  %v2396_v52 = vsel %vm9032_vm3, %v14370_v21, %v10683_v47  ;;  %2379 = vst [vmem:[#allocation2 + $0x3d8] sm:$0xff] %v2378_v41  ;;  %2385 = vst [vmem:[#allocation2 + $0x4b0] sm:$0xff] %v2384_v20  ;;  %v10790_v28 = vld [vmem:[#allocation2 + $0x2c8] sm:$0xff]  ;;  %v10792_v51 = vld [vmem:[#allocation2 + $0x3a0] sm:$0xff] }
 0x2bd   :  { %v10794_v42 = vld [vmem:[#allocation2 + $0x358] sm:$0xff]  ;;  %v14371_v46 = vld [vmem:[#allocation61_spill] sm:$0xff]  ;;  %v2402_v45 = vsel %vm9032_vm3, %v14336_v32, %v10701_v60  ;;  %2388 = vst [vmem:[#allocation2 + $0x4f8] sm:$0xff] %v2387_v43  ;;  %2391 = vst [vmem:[#allocation2 + $0x540] sm:$0xff] %v2390_v56 }
 0x2be   :  { %v2399_v55 = vsel %vm9032_vm3, %v14371_v46, %v10703_v61  ;;  %v14372_v47 = vld [vmem:[#allocation63_spill] sm:$0xff]  ;;  %2394 = vst [vmem:[#allocation2 + $0x588] sm:$0xff] %v2393_v54  ;;  %2397 = vst [vmem:[#allocation2 + $0x5d0] sm:$0xff] %v2396_v52  ;;  %v2601_v41 = vld [vmem:[#allocation2 + $0x430] sm:$0xff]  ;;  %v2566_v52 = vsel %vm9055_vm4, %v10091_v0, %v10723_v57  ;;  %v2575_v0 = vsel %vm9055_vm4, %v10103_v53, %v10751_v36 }
 0x2bf   :  { %v2405_v20 = vsel %vm9032_vm3, %v14372_v47, %v2404_v44  ;;  %v2598_v9 = vld [vmem:[#allocation2 + $0x3e8] sm:$0xff]  ;;  %v10810_v61 = vld [vmem:[#allocation2 + $0x4c0] sm:$0xff]  ;;  %v14375_v21 = vld [vmem:[#allocation66_spill] sm:$0xff]  ;;  %2400 = vst [vmem:[#allocation2 + $0x618] sm:$0xff] %v2399_v55 }
 0x2c0   :  { %v14373_v3 = vld [vmem:[#allocation65_spill] sm:$0xff]  ;;  %v14374_v60 = vld [vmem:[#allocation36_spill] sm:$0xff]  ;;  %v2417_v26 = vsel %vm9032_vm3, %v14375_v21, %v2416_v2  ;;  %v14376_v27 = vld [vmem:[#allocation67_spill] sm:$0xff]  ;;  %2403 = vst [vmem:[#allocation2 + $0x660] sm:$0xff] %v2402_v45  ;;  %v2560_v2 = vsel %vm9055_vm4, %v14346_v1, %v10721_v15  ;;  %v2569_v1 = vsel %vm9055_vm4, %v10095_v29, %v10747_v31  ;;  %v2578_v15 = vsel %vm9055_vm4, %v10107_v4, %v10749_v38 }
 0x2c1   :  { %v2411_v32 = vsel %vm9032_vm3, %v14373_v3, %v2410_v5  ;;  %v2414_v44 = vsel %vm9032_vm3, %v14374_v60, %v10727_v10  ;;  %v2420_v43 = vsel %vm9032_vm3, %v14376_v27, %v2419_v13  ;;  %2406 = vst [vmem:[#allocation2 + $0x6a8] sm:$0xff] %v2405_v20  ;;  %2409 = vst [vmem:[#allocation2 + $0x6f0] sm:$0xff] %v2408_v33  ;;  %v2610_v56 = vld [vmem:[#allocation2 + $0x550] sm:$0xff]  ;;  %v2607_v54 = vld [vmem:[#allocation2 + $0x508] sm:$0xff] }
 0x2c2   :  { %v10825_v5 = vld [vmem:[#allocation2 + $0x5e0] sm:$0xff]  ;;  %v2426_v10 = vsel %vm9032_vm3, %v10407_v25, %v2425_v39  ;;  %v2563_v13 = vsel %vm9055_vm4, %v14347_v18, %v10725_v63  ;;  %2412 = vst [vmem:[#allocation2 + $0x738] sm:$0xff] %v2411_v32  ;;  %2415 = vst [vmem:[#allocation2 + $0x780] sm:$0xff] %v2414_v44  ;;  %v2622_v25 = vld [vmem:[#allocation2 + $0x670] sm:$0xff]  ;;  %v2572_v18 = vsel %vm9055_vm4, %v10099_v58, %v10745_v62 }
 0x2c3   :  { %2418 = vst [vmem:[#allocation2 + $0x7c8] sm:$0xff] %v2417_v26  ;;  %2421 = vst [vmem:[#allocation2 + $0x810] sm:$0xff] %v2420_v43  ;;  %v2619_v39 = vld [vmem:[#allocation2 + $0x628] sm:$0xff]  ;;  %v2628_v57 = vld [vmem:[#allocation2 + $0x700] sm:$0xff]  ;;  %v2581_v58 = vsel %vm9055_vm4, %v10121_v59, %v10771_v12  ;;  %v2602_v45 = vsel %vm9055_vm4, %v10540_v23, %v2601_v41  ;;  %v2614_v23 = vsel %vm9055_vm4, %v10187_v17, %v2613_v16 }
 0x2c4   :  { %2427 = vst [vmem:[#allocation2 + $0x8a0] sm:$0xff] %v2426_v10  ;;  %2564 = vst [vmem:[#allocation2 + $0x88] sm:$0xff] %v2563_v13  ;;  %v2625_v63 = vld [vmem:[#allocation2 + $0x6b8] sm:$0xff]  ;;  %v2634_v29 = vld [vmem:[#allocation2 + $0x790] sm:$0xff] }
 0x2c5   :  { %2561 = vst [vmem:[#allocation2 + $0x40] sm:$0xff] %v2560_v2  ;;  %2567 = vst [vmem:[#allocation2 + $0xd0] sm:$0xff] %v2566_v52  ;;  %v14377_v62 = vld [vmem:[#allocation42_spill] sm:$0xff]  ;;  %v14378_v31 = vld [vmem:[#allocation16_spill] sm:$0xff]  ;;  %v2626_v17 = vsel %vm9055_vm4, %v10203_v49, %v2625_v63  ;;  %v2635_v49 = vsel %vm9055_vm4, %v10234_v11, %v2634_v29 }
 0x2c6   :  { %v2584_v53 = vsel %vm9055_vm4, %v14377_v62, %v10769_v48  ;;  %v2587_v4 = vsel %vm9055_vm4, %v14378_v31, %v10790_v28  ;;  %v14379_v38 = vld [vmem:[#allocation17_spill] sm:$0xff]  ;;  %2570 = vst [vmem:[#allocation2 + $0x118] sm:$0xff] %v2569_v1  ;;  %2573 = vst [vmem:[#allocation2 + $0x160] sm:$0xff] %v2572_v18  ;;  %v2640_v12 = vld [vmem:[#allocation2 + $0x820] sm:$0xff]  ;;  %v2596_v28 = vsel %vm9055_vm4, %v10147_v24, %v10792_v51 }
 0x2c7   :  { %v2590_v36 = vsel %vm9055_vm4, %v14379_v38, %v10773_v34  ;;  %2576 = vst [vmem:[#allocation2 + $0x1a8] sm:$0xff] %v2575_v0  ;;  %2579 = vst [vmem:[#allocation2 + $0x1f0] sm:$0xff] %v2578_v15  ;;  %v2631_v59 = vld [vmem:[#allocation2 + $0x748] sm:$0xff]  ;;  %v2637_v46 = vld [vmem:[#allocation2 + $0x7d8] sm:$0xff]  ;;  %v2599_v34 = vsel %vm9055_vm4, %v10151_v7, %v2598_v9  ;;  %v2608_v24 = vsel %vm9055_vm4, %v10179_v30, %v2607_v54 }
 0x2c8   :  { %v14380_v55 = vld [vmem:[#allocation19_spill] sm:$0xff]  ;;  %2582 = vst [vmem:[#allocation2 + $0x238] sm:$0xff] %v2581_v58  ;;  %2585 = vst [vmem:[#allocation2 + $0x280] sm:$0xff] %v2584_v53  ;;  %v2646_v47 = vld [vmem:[#allocation2 + $0x8b0] sm:$0xff]  ;;  %v2611_v7 = vsel %vm9055_vm4, %v10183_v14, %v2610_v56  ;;  %v2620_v30 = vsel %vm9055_vm4, %v10195_v19, %v2619_v39  ;;  %v2623_v14 = vsel %vm9055_vm4, %v10199_v40, %v2622_v25 }
 0x2c9   :  { %v2593_v48 = vsel %vm9055_vm4, %v14380_v55, %v10794_v42  ;;  %2588 = vst [vmem:[#allocation2 + $0x2c8] sm:$0xff] %v2587_v4  ;;  %2591 = vst [vmem:[#allocation2 + $0x310] sm:$0xff] %v2590_v36  ;;  %v2605_v42 = vsel %vm9055_vm4, %v10169_v8, %v10810_v61  ;;  %v1489_v51 = vld [vmem:[#allocation2] sm:$0x1]  ;;  %v1492_v20 = vld [vmem:[#allocation2 + $0x48] sm:$0x1]  ;;  %v2617_v8 = vsel %vm9055_vm4, %v10191_v6, %v10825_v5 }
 0x2ca   :  { %2603 = vst [vmem:[#allocation2 + $0x430] sm:$0xff] %v2602_v45  ;;  %2594 = vst [vmem:[#allocation2 + $0x358] sm:$0xff] %v2593_v48  ;;  %v2042_v33 = vld [vmem:[#allocation2 + $0x2e8] sm:$0x1]  ;;  %v1834_v41 = vld [vmem:[#allocation2 + $0x2e0] sm:$0x80]  ;;  %v2629_v19 = vsel %vm9055_vm4, %v10217_v50, %v2628_v57  ;;  %v2632_v40 = vsel %vm9055_vm4, %v10230_v37, %v2631_v59  ;;  %v2638_v61 = vsel %vm9055_vm4, %v10238_v22, %v2637_v46 }
 0x2cb   :  { %2597 = vst [vmem:[#allocation2 + $0x3a0] sm:$0xff] %v2596_v28  ;;  %2600 = vst [vmem:[#allocation2 + $0x3e8] sm:$0xff] %v2599_v34  ;;  %v1495_v9 = vld [vmem:[#allocation2 + $0x90] sm:$0x1]  ;;  %v1837_v6 = vld [vmem:[#allocation2 + $0x328] sm:$0x80] }
 0x2cc   :  { %2606 = vst [vmem:[#allocation2 + $0x4c0] sm:$0xff] %v2605_v42  ;;  %2609 = vst [vmem:[#allocation2 + $0x508] sm:$0xff] %v2608_v24  ;;  %v2045_v3 = vld [vmem:[#allocation2 + $0x330] sm:$0x1]  ;;  %v2048_v32 = vld [vmem:[#allocation2 + $0x378] sm:$0x1] }
 0x2cd   :  { %2612 = vst [vmem:[#allocation2 + $0x550] sm:$0xff] %v2611_v7  ;;  %2615 = vst [vmem:[#allocation2 + $0x598] sm:$0xff] %v2614_v23  ;;  %v1498_v60 = vld [vmem:[#allocation2 + $0xd8] sm:$0x1]  ;;  %v1840_v50 = vld [vmem:[#allocation2 + $0x370] sm:$0x80] }
 0x2ce   :  { %2618 = vst [vmem:[#allocation2 + $0x5e0] sm:$0xff] %v2617_v8  ;;  %2621 = vst [vmem:[#allocation2 + $0x628] sm:$0xff] %v2620_v30  ;;  %v2051_v44 = vld [vmem:[#allocation2 + $0x3c0] sm:$0x1]  ;;  %v14381_v26 = vld [vmem:[#allocation21_spill] sm:$0xff]  ;;  %v1490_v52 = vsel %vm10932_vm7, 0, %v1489_v51 }
 0x2cf   :  { %2624 = vst [vmem:[#allocation2 + $0x670] sm:$0xff] %v2623_v14  ;;  %2627 = vst [vmem:[#allocation2 + $0x6b8] sm:$0xff] %v2626_v17  ;;  %v1501_v21 = vld [vmem:[#allocation2 + $0x120] sm:$0x1]  ;;  %v2641_v37 = vsel %vm9055_vm4, %v14381_v26, %v2640_v12  ;;  %v1843_v22 = vld [vmem:[#allocation2 + $0x3b8] sm:$0x80] }
 0x2d0   :  { %v14382_v27 = vld [vmem:[#allocation24_spill] sm:$0xff]  ;;  %2630 = vst [vmem:[#allocation2 + $0x700] sm:$0xff] %v2629_v19  ;;  %2633 = vst [vmem:[#allocation2 + $0x748] sm:$0xff] %v2632_v40  ;;  %v2054_v43 = vld [vmem:[#allocation2 + $0x408] sm:$0x1]  ;;  %v1493_v16 = vsel %vm10932_vm7, 0, %v1492_v20 }
 0x2d1   :  { %v2647_v11 = vsel %vm9055_vm4, %v14382_v27, %v2646_v47  ;;  %2636 = vst [vmem:[#allocation2 + $0x790] sm:$0xff] %v2635_v49  ;;  %2639 = vst [vmem:[#allocation2 + $0x7d8] sm:$0xff] %v2638_v61  ;;  %v1504_v56 = vld [vmem:[#allocation2 + $0x168] sm:$0x1]  ;;  %v1846_v54 = vld [vmem:[#allocation2 + $0x400] sm:$0x80] }
 0x2d2   :  { %2648 = vst [vmem:[#allocation2 + $0x8b0] sm:$0xff] %v2647_v11  ;;  %2642 = vst [vmem:[#allocation2 + $0x820] sm:$0xff] %v2641_v37  ;;  %v2057_v35 = vld [vmem:[#allocation2 + $0x450] sm:$0x1]  ;;  %v1849_v2 = vld [vmem:[#allocation2 + $0x448] sm:$0x80] }
 0x2d3   :  { %v1507_v10 = vld [vmem:[#allocation2 + $0x1b0] sm:$0x1]  ;;  %v2060_v13 = vld [vmem:[#allocation2 + $0x498] sm:$0x1]  ;;  %v2043_v25 = vsel %vm10932_vm7, 0, %v2042_v33  ;;  %v2046_v1 = vsel %vm10932_vm7, 0, %v2045_v3 }
 0x2d4   :  { %v10948_v18 = vld [vmem:[#allocation2 + $0x1f8] sm:$0x1]  ;;  %v10950_v0 = vld [vmem:[#allocation2 + $0x490] sm:$0x80]  ;;  %v10952_v15 = vld [vmem:[#allocation2 + $0x4e0] sm:$0x1] }
 0x2d5   :  { %v10954_v57 = vld [vmem:[#allocation2 + $0x240] sm:$0x1]  ;;  %1491 = vst [vmem:[#allocation2] sm:$0x1] %v1490_v52  ;;  %1494 = vst [vmem:[#allocation2 + $0x48] sm:$0x1] %v1493_v16 }
 0x2d6   :  { %2044 = vst [vmem:[#allocation2 + $0x2e8] sm:$0x1] %v2043_v25  ;;  %v1835_v63 = vsel %vm10942_vm10, 0, %v1834_v41  ;;  %2047 = vst [vmem:[#allocation2 + $0x330] sm:$0x1] %v2046_v1  ;;  %v1496_v29 = vsel %vm10932_vm7, 0, %v1495_v9 }
 0x2d7   :  { %v1838_v58 = vsel %vm10942_vm10, 0, %v1837_v6  ;;  %v2049_v62 = vsel %vm10932_vm7, 0, %v2048_v32  ;;  %v1855_v53 = vld [vmem:[#allocation2 + $0x4d8] sm:$0x80]  ;;  %v2066_v31 = vld [vmem:[#allocation2 + $0x528] sm:$0x1] }
 0x2d8   :  { %v1516_v4 = vld [vmem:[#allocation2 + $0x288] sm:$0x1]  ;;  %v1858_v38 = vld [vmem:[#allocation2 + $0x520] sm:$0x80]  ;;  %1836 = vst [vmem:[#allocation2 + $0x2e0] sm:$0x80] %v1835_v63 }
 0x2d9   :  { %1497 = vst [vmem:[#allocation2 + $0x90] sm:$0x1] %v1496_v29  ;;  %1839 = vst [vmem:[#allocation2 + $0x328] sm:$0x80] %v1838_v58  ;;  %v1499_v36 = vsel %vm10932_vm7, 0, %v1498_v60  ;;  %v1841_v59 = vsel %vm10942_vm10, 0, %v1840_v50 }
 0x2da   :  { %2050 = vst [vmem:[#allocation2 + $0x378] sm:$0x1] %v2049_v62  ;;  %v2052_v12 = vsel %vm10932_vm7, 0, %v2051_v44  ;;  %v1502_v46 = vsel %vm10932_vm7, 0, %v1501_v21  ;;  %v10972_v55 = vld [vmem:[#allocation2 + $0x570] sm:$0x1] }
 0x2db   :  { %v10974_v48 = vld [vmem:[#allocation2 + $0x2d0] sm:$0x1]  ;;  %v10976_v28 = vld [vmem:[#allocation2 + $0x568] sm:$0x80]  ;;  %v10978_v34 = vld [vmem:[#allocation2 + $0x5b8] sm:$0x1] }
 0x2dc   :  { %1500 = vst [vmem:[#allocation2 + $0xd8] sm:$0x1] %v1499_v36  ;;  %1842 = vst [vmem:[#allocation2 + $0x370] sm:$0x80] %v1841_v59  ;;  %v1844_v45 = vsel %vm10942_vm10, 0, %v1843_v22  ;;  %v2055_v47 = vsel %vm10932_vm7, 0, %v2054_v43 }
 0x2dd   :  { %2053 = vst [vmem:[#allocation2 + $0x3c0] sm:$0x1] %v2052_v12  ;;  %1503 = vst [vmem:[#allocation2 + $0x120] sm:$0x1] %v1502_v46  ;;  %v1505_v42 = vsel %vm10932_vm7, 0, %v1504_v56  ;;  %v1847_v24 = vsel %vm10942_vm10, 0, %v1846_v54 }
 0x2de   :  { %v10988_v7 = vld [vmem:[#allocation2 + $0x318] sm:$0x1]  ;;  %v10990_v23 = vld [vmem:[#allocation2 + $0x5b0] sm:$0x80]  ;;  %v10992_v51 = vld [vmem:[#allocation2 + $0x600] sm:$0x1] }
 0x2df   :  { %1845 = vst [vmem:[#allocation2 + $0x3b8] sm:$0x80] %v1844_v45  ;;  %2056 = vst [vmem:[#allocation2 + $0x408] sm:$0x1] %v2055_v47  ;;  %v2058_v20 = vsel %vm10932_vm7, 0, %v2057_v35  ;;  %v1508_v8 = vsel %vm10932_vm7, 0, %v1507_v10 }
 0x2e0   :  { %1506 = vst [vmem:[#allocation2 + $0x168] sm:$0x1] %v1505_v42  ;;  %1848 = vst [vmem:[#allocation2 + $0x400] sm:$0x80] %v1847_v24  ;;  %v1850_v30 = vsel %vm10942_vm10, 0, %v1849_v2  ;;  %v2061_v14 = vsel %vm10932_vm7, 0, %v2060_v13 }
 0x2e1   :  { %v11002_v17 = vld [vmem:[#allocation2 + $0x360] sm:$0x1]  ;;  %v11004_v33 = vld [vmem:[#allocation2 + $0x5f8] sm:$0x80]  ;;  %v11006_v41 = vld [vmem:[#allocation2 + $0x648] sm:$0x1] }
 0x2e2   :  { %v2757_v9 = vld [vmem:[#allocation2 + $0x50] sm:$0xff]  ;;  %v11008_v6 = vld [vmem:[#allocation8 + $0x100] sm:$0xff]   ;;  %2059 = vst [vmem:[#allocation2 + $0x450] sm:$0x1] %v2058_v20  ;;  %1509 = vst [vmem:[#allocation2 + $0x1b0] sm:$0x1] %v1508_v8 }
 0x2e3   :  { %1851 = vst [vmem:[#allocation2 + $0x448] sm:$0x80] %v1850_v30  ;;  %2062 = vst [vmem:[#allocation2 + $0x498] sm:$0x1] %v2061_v14  ;;  %v1511_v19 = vsel %vm10932_vm7, 0, %v10948_v18  ;;  %v1853_v40 = vsel %vm10942_vm10, 0, %v10950_v0 }
 0x2e4   :  { %v2064_v49 = vsel %vm10932_vm7, 0, %v10952_v15  ;;  %v1514_v61 = vsel %vm10932_vm7, 0, %v10954_v57  ;;  %v11022_v3 = vld [vmem:[#allocation2 + $0x3a8] sm:$0x1]  ;;  %v11024_v32 = vld [vmem:[#allocation2 + $0x640] sm:$0x80] }
 0x2e5   :  { %v11026_v60 = vld [vmem:[#allocation2 + $0x690] sm:$0x1]  ;;  %1512 = vst [vmem:[#allocation2 + $0x1f8] sm:$0x1] %v1511_v19  ;;  %1854 = vst [vmem:[#allocation2 + $0x490] sm:$0x80] %v1853_v40 }
 0x2e6   :  { %2065 = vst [vmem:[#allocation2 + $0x4e0] sm:$0x1] %v2064_v49  ;;  %1515 = vst [vmem:[#allocation2 + $0x240] sm:$0x1] %v1514_v61  ;;  %v1856_v50 = vsel %vm10942_vm10, 0, %v1855_v53  ;;  %v2067_v44 = vsel %vm10932_vm7, 0, %v2066_v31 }
 0x2e7   :  { %v1517_v21 = vsel %vm10932_vm7, 0, %v1516_v4  ;;  %v1859_v26 = vsel %vm10942_vm10, 0, %v1858_v38  ;;  %v11036_v37 = vld [vmem:[#allocation2 + $0x3f0] sm:$0x1]  ;;  %v11038_v27 = vld [vmem:[#allocation2 + $0x688] sm:$0x80] }
 0x2e8   :  { %v11040_v11 = vld [vmem:[#allocation2 + $0x6d8] sm:$0x1]  ;;  %1857 = vst [vmem:[#allocation2 + $0x4d8] sm:$0x80] %v1856_v50  ;;  %2068 = vst [vmem:[#allocation2 + $0x528] sm:$0x1] %v2067_v44 }
 0x2e9   :  { %1518 = vst [vmem:[#allocation2 + $0x288] sm:$0x1] %v1517_v21  ;;  %1860 = vst [vmem:[#allocation2 + $0x520] sm:$0x80] %v1859_v26  ;;  %v2070_v22 = vsel %vm10932_vm7, 0, %v10972_v55  ;;  %v1520_v43 = vsel %vm10932_vm7, 0, %v10974_v48 }
 0x2ea   :  { %v1862_v56 = vsel %vm10942_vm10, 0, %v10976_v28  ;;  %v2073_v54 = vsel %vm10932_vm7, 0, %v10978_v34  ;;  %v11054_v35 = vld [vmem:[#allocation2 + $0x438] sm:$0x1]  ;;  %v11056_v10 = vld [vmem:[#allocation2 + $0x6d0] sm:$0x80] }
 0x2eb   :  { %v11058_v2 = vld [vmem:[#allocation2 + $0x720] sm:$0x1]  ;;  %v2840_v52 = vld [vmem:[#allocation2 + $0x2e8] sm:$0xff]  ;;  %2071 = vst [vmem:[#allocation2 + $0x570] sm:$0x1] %v2070_v22  ;;  %v1523_v16 = vsel %vm10932_vm7, 0, %v10988_v7 }
 0x2ec   :  { %v2747_v13 = vld [vmem:[#allocation2] sm:$0xff]  ;;  %1521 = vst [vmem:[#allocation2 + $0x2d0] sm:$0x1] %v1520_v43  ;;  %1863 = vst [vmem:[#allocation2 + $0x568] sm:$0x80] %v1862_v56  ;;  %v1865_v25 = vsel %vm10942_vm10, 0, %v10990_v23  ;;  %4012 = vmatprep.mubr.bf16.mxu1 %v2840_v52 }
 0x2ed   :  { %2074 = vst [vmem:[#allocation2 + $0x5b8] sm:$0x1] %v2073_v54  ;;  %v2076_v1 = vsel %vm10932_vm7, 0, %v10992_v51  ;;  %v11069_v18 = vld [vmem:[#allocation2 + $0x718] sm:$0x80]  ;;  %3644 = vmatmul.mubr.bf16.vlgmr.msra.gmra.mrb[64].mxu0 %v2747_v13  ;;  %v2839_v15 = vld [vmem:[#allocation2 + $0x2e0] sm:$0xff] }
 0x2ee   :  { %v11071_v0 = vld [vmem:[#allocation2 + $0x768] sm:$0x1]  ;;  %1524 = vst [vmem:[#allocation2 + $0x318] sm:$0x1] %v1523_v16  ;;  %1866 = vst [vmem:[#allocation2 + $0x5b0] sm:$0x80] %v1865_v25  ;;  %3651 = vmatprep.mubr.bf16.mxu0 %v2757_v9  ;;  %4013 = vmatmul.mubr.bf16.vlgmr.msra.gmra.mrb[0].mxu1 %v2839_v15 }
 0x2ef   :  { %2077 = vst [vmem:[#allocation2 + $0x600] sm:$0x1] %v2076_v1  ;;  %v1526_v57 = vsel %vm10932_vm7, 0, %v11002_v17  ;;  %v1868_v63 = vsel %vm10942_vm10, 0, %v11004_v33  ;;  %v2079_v29 = vsel %vm10932_vm7, 0, %v11006_v41  ;;  %v2849_v31 = vld [vmem:[#allocation2 + $0x330] sm:$0xff]  ;;  %4190 = vmatpush1.bf16.msra.mxu1 %v11008_v6 }
 0x2f0   :  { %v11082_v58 = vld [vmem:[#allocation2 + $0x4c8] sm:$0x1]  ;;  %v11084_v62 = vld [vmem:[#allocation2 + $0x760] sm:$0x80]  ;;  %v11086_v53 = vld [vmem:[#allocation2 + $0x7b0] sm:$0x1]  ;;  %4020 = vmatprep.mubr.bf16.mxu1 %v2849_v31 }
 0x2f1   :  { %1527 = vst [vmem:[#allocation2 + $0x360] sm:$0x1] %v1526_v57  ;;  %1869 = vst [vmem:[#allocation2 + $0x5f8] sm:$0x80] %v1868_v63  ;;  %v1529_v4 = vsel %vm10932_vm7, 0, %v11022_v3  ;;  %v1871_v38 = vsel %vm10942_vm10, 0, %v11024_v32 }
 0x2f2   :  { %2080 = vst [vmem:[#allocation2 + $0x648] sm:$0x1] %v2079_v29  ;;  %v2082_v36 = vsel %vm10932_vm7, 0, %v11026_v60  ;;  %v1537_v59 = vld [vmem:[#allocation2 + $0x480] sm:$0x1]  ;;  %v8197_v55 = vld [vmem:[#allocation8 + $0x108] sm:$0xff]  }
 0x2f3   :  { %v1543_v12 = vld [vmem:[#allocation2 + $0x510] sm:$0x1]  ;;  %v1885_v46 = vld [vmem:[#allocation2 + $0x7a8] sm:$0x80]  ;;  %1530 = vst [vmem:[#allocation2 + $0x3a8] sm:$0x1] %v1529_v4 }
 0x2f4   :  { %1872 = vst [vmem:[#allocation2 + $0x640] sm:$0x80] %v1871_v38  ;;  %2083 = vst [vmem:[#allocation2 + $0x690] sm:$0x1] %v2082_v36  ;;  %v1532_v48 = vsel %vm10932_vm7, 0, %v11036_v37  ;;  %v1874_v28 = vsel %vm10942_vm10, 0, %v11038_v27 }
 0x2f5   :  { %v2085_v34 = vsel %vm10932_vm7, 0, %v11040_v11  ;;  %v2096_v45 = vld [vmem:[#allocation2 + $0x7f8] sm:$0x1]  ;;  %v1888_v42 = vld [vmem:[#allocation2 + $0x7f0] sm:$0x80]  ;;  %v11107_v24 = vld [vmem:[#allocation2 + $0x480] sm:$0xff] }
 0x2f6   :  { %v1546_v47 = vld [vmem:[#allocation2 + $0x558] sm:$0x1]  ;;  %4191 = vmatprep.subr.bf16.mxu1 %v11107_v24  ;;  %1533 = vst [vmem:[#allocation2 + $0x3f0] sm:$0x1] %v1532_v48  ;;  %1875 = vst [vmem:[#allocation2 + $0x688] sm:$0x80] %v1874_v28 }
 0x2f7   :  { %2086 = vst [vmem:[#allocation2 + $0x6d8] sm:$0x1] %v2085_v34  ;;  %v1535_v7 = vsel %vm10932_vm7, 0, %v11054_v35  ;;  %v1877_v23 = vsel %vm10942_vm10, 0, %v11056_v10  ;;  %v2088_v51 = vsel %vm10932_vm7, 0, %v11058_v2  ;;  %v8252_v17 = vld [vmem:[#allocation8 + $0x80] sm:$0xff]   ;;  %4192 = vmatpush1.bf16.msra.mxu1 %v8197_v55 }
 0x2f8   :  { %v2099_v20 = vld [vmem:[#allocation2 + $0x840] sm:$0x1]  ;;  %v11121_v30 = vld [vmem:[#allocation2 + $0x838] sm:$0x80]  ;;  %v11123_v14 = vld [vmem:[#allocation2 + $0x888] sm:$0x1]  ;;  %3901 = vmatpush1.bf16.msra.mxu0 %v8252_v17  ;;  %4193 = vmatprep.subr.bf16.mxu1 %v11107_v24 }
 0x2f9   :  { %v11119_v8 = vld [vmem:[#allocation2 + $0x5a0] sm:$0x1]  ;;  %1536 = vst [vmem:[#allocation2 + $0x438] sm:$0x1] %v1535_v7  ;;  %1878 = vst [vmem:[#allocation2 + $0x6d0] sm:$0x80] %v1877_v23  ;;  %3902 = vmatprep.subr.bf16.mxu0 %v11107_v24 }
 0x2fa   :  { %2089 = vst [vmem:[#allocation2 + $0x720] sm:$0x1] %v2088_v51  ;;  %v1538_v33 = vsel %vm10932_vm7, 0, %v1537_v59  ;;  %v1880_v41 = vsel %vm10942_vm10, 0, %v11069_v18  ;;  %v2091_v9 = vsel %vm10932_vm7, 0, %v11071_v0  ;;  %v2756_v49 = vld [vmem:[#allocation2 + $0x48] sm:$0xff] }
 0x2fb   :  { %v11133_v6 = vld [vmem:[#allocation2 + $0x5e8] sm:$0x1]  ;;  %v11135_v19 = vld [vmem:[#allocation2 + $0x880] sm:$0x80]  ;;  %v11137_v40 = vld [vmem:[#allocation2 + $0x8d0] sm:$0x1]  ;;  %3652 = vmatmul.mubr.bf16.gmra.mrb[68].mxu0 %v2756_v49 }
 0x2fc   :  { %1539 = vst [vmem:[#allocation2 + $0x480] sm:$0x1] %v1538_v33  ;;  %1881 = vst [vmem:[#allocation2 + $0x718] sm:$0x80] %v1880_v41  ;;  %v1541_v61 = vsel %vm10932_vm7, 0, %v11082_v58  ;;  %v1883_v3 = vsel %vm10942_vm10, 0, %v11084_v62 }
 0x2fd   :  { %2092 = vst [vmem:[#allocation2 + $0x768] sm:$0x1] %v2091_v9  ;;  %v2094_v32 = vsel %vm10932_vm7, 0, %v11086_v53  ;;  %v11149_v60 = vld [vmem:[#allocation2 + $0x630] sm:$0x1]  ;;  %v1544_v26 = vsel %vm10932_vm7, 0, %v1543_v12 }
 0x2fe   :  { %v11151_v50 = vld [vmem:[#allocation2 + $0x8c8] sm:$0x80]  ;;  %v8198_v21 = vld [vmem:[#allocation8 + $0x110] sm:$0xff]   ;;  %1542 = vst [vmem:[#allocation2 + $0x4c8] sm:$0x1] %v1541_v61  ;;  %v1886_v37 = vsel %vm10942_vm10, 0, %v1885_v46 }
 0x2ff   :  { %v11153_v44 = vld [vmem:[#allocation2 + $0x28] sm:$0x80]  ;;  %1884 = vst [vmem:[#allocation2 + $0x760] sm:$0x80] %v1883_v3  ;;  %2095 = vst [vmem:[#allocation2 + $0x7b0] sm:$0x1] %v2094_v32  ;;  %4194 = vmatpush1.bf16.msra.mxu1 %v8198_v21 }
 0x300   :  { %v2097_v27 = vsel %vm10932_vm7, 0, %v2096_v45  ;;  %v11161_v11 = vld [vmem:[#allocation2 + $0x678] sm:$0x1]  ;;  %v11163_v22 = vld [vmem:[#allocation2 + $0x70] sm:$0x80]  ;;  %v1547_v54 = vsel %vm10932_vm7, 0, %v1546_v47  ;;  %4195 = vmatprep.subr.bf16.mxu1 %v11107_v24 }
 0x301   :  { %v11165_v43 = vld [vmem:[#allocation2 + $0x6c0] sm:$0x1]  ;;  %v2766_v56 = vld [vmem:[#allocation2 + $0x98] sm:$0xff]  ;;  %1545 = vst [vmem:[#allocation2 + $0x510] sm:$0x1] %v1544_v26  ;;  %v1889_v35 = vsel %vm10942_vm10, 0, %v1888_v42 }
 0x302   :  { %1887 = vst [vmem:[#allocation2 + $0x7a8] sm:$0x80] %v1886_v37  ;;  %2098 = vst [vmem:[#allocation2 + $0x7f8] sm:$0x1] %v2097_v27  ;;  %v2100_v10 = vsel %vm10932_vm7, 0, %v2099_v20  ;;  %v8253_v13 = vld [vmem:[#allocation8 + $0x88] sm:$0xff]   ;;  %3659 = vmatprep.mubr.bf16.mxu0 %v2766_v56 }
 0x303   :  { %v11174_v2 = vld [vmem:[#allocation2 + $0xb8] sm:$0x80]  ;;  %3903 = vmatpush1.bf16.msra.mxu0 %v8253_v13  ;;  %v1564_v52 = vld [vmem:[#allocation2 + $0x708] sm:$0x1]  ;;  %v2251_v16 = vld [vmem:[#allocation2 + $0x100] sm:$0x80] }
 0x304   :  { %v2848_v25 = vld [vmem:[#allocation2 + $0x328] sm:$0xff]  ;;  %1548 = vst [vmem:[#allocation2 + $0x558] sm:$0x1] %v1547_v54  ;;  %1890 = vst [vmem:[#allocation2 + $0x7f0] sm:$0x80] %v1889_v35  ;;  %v1550_v1 = vsel %vm10932_vm7, 0, %v11119_v8  ;;  %3904 = vmatprep.subr.bf16.mxu0 %v11107_v24 }
 0x305   :  { %2101 = vst [vmem:[#allocation2 + $0x840] sm:$0x1] %v2100_v10  ;;  %v1892_v18 = vsel %vm10942_vm10, 0, %v11121_v30  ;;  %v2103_v0 = vsel %vm10932_vm7, 0, %v11123_v14  ;;  %v1567_v15 = vld [vmem:[#allocation2 + $0x750] sm:$0x1]  ;;  %4021 = vmatmul.mubr.bf16.gmra.mrb[4].mxu1 %v2848_v25 }
 0x306   :  { %v2254_v57 = vld [vmem:[#allocation2 + $0x148] sm:$0x80]  ;;  %v1570_v63 = vld [vmem:[#allocation2 + $0x798] sm:$0x1]  ;;  %1551 = vst [vmem:[#allocation2 + $0x5a0] sm:$0x1] %v1550_v1 }
 0x307   :  { %v2858_v29 = vld [vmem:[#allocation2 + $0x378] sm:$0xff]  ;;  %1893 = vst [vmem:[#allocation2 + $0x838] sm:$0x80] %v1892_v18  ;;  %2104 = vst [vmem:[#allocation2 + $0x888] sm:$0x1] %v2103_v0  ;;  %v1553_v58 = vsel %vm10932_vm7, 0, %v11133_v6 }
 0x308   :  { %v1895_v62 = vsel %vm10942_vm10, 0, %v11135_v19  ;;  %v2106_v53 = vsel %vm10932_vm7, 0, %v11137_v40  ;;  %v2257_v31 = vld [vmem:[#allocation2 + $0x190] sm:$0x80]  ;;  %v1573_v4 = vld [vmem:[#allocation2 + $0x7e0] sm:$0x1]  ;;  %4028 = vmatprep.mubr.bf16.mxu1 %v2858_v29 }
 0x309   :  { %v2260_v38 = vld [vmem:[#allocation2 + $0x1d8] sm:$0x80]  ;;  %1554 = vst [vmem:[#allocation2 + $0x5e8] sm:$0x1] %v1553_v58  ;;  %1896 = vst [vmem:[#allocation2 + $0x880] sm:$0x80] %v1895_v62 }
 0x30a   :  { %v8199_v36 = vld [vmem:[#allocation8 + $0x118] sm:$0xff]   ;;  %2107 = vst [vmem:[#allocation2 + $0x8d0] sm:$0x1] %v2106_v53  ;;  %v1556_v59 = vsel %vm10932_vm7, 0, %v11149_v60  ;;  %v1898_v12 = vsel %vm10942_vm10, 0, %v11151_v50  ;;  %v2243_v46 = vsel %vm10942_vm10, 0, %v11153_v44 }
 0x30b   :  { %v1576_v55 = vld [vmem:[#allocation2 + $0x828] sm:$0x1]  ;;  %v2263_v48 = vld [vmem:[#allocation2 + $0x220] sm:$0x80]  ;;  %v1579_v28 = vld [vmem:[#allocation2 + $0x870] sm:$0x1]  ;;  %4196 = vmatpush1.bf16.msra.mxu1 %v8199_v36 }
 0x30c   :  { %1557 = vst [vmem:[#allocation2 + $0x630] sm:$0x1] %v1556_v59  ;;  %1899 = vst [vmem:[#allocation2 + $0x8c8] sm:$0x80] %v1898_v12  ;;  %v1559_v34 = vsel %vm10932_vm7, 0, %v11161_v11  ;;  %v2246_v45 = vsel %vm10942_vm10, 0, %v11163_v22  ;;  %4197 = vmatprep.subr.bf16.mxu1 %v11107_v24 }
 0x30d   :  { %2244 = vst [vmem:[#allocation2 + $0x28] sm:$0x80] %v2243_v46  ;;  %v1562_v47 = vsel %vm10932_vm7, 0, %v11165_v43  ;;  %v8254_v42 = vld [vmem:[#allocation8 + $0x90] sm:$0xff]   ;;  %v2266_v7 = vld [vmem:[#allocation2 + $0x268] sm:$0x80] }
 0x30e   :  { %3905 = vmatpush1.bf16.msra.mxu0 %v8254_v42  ;;  %v1582_v23 = vld [vmem:[#allocation2 + $0x8b8] sm:$0x1]  ;;  %1560 = vst [vmem:[#allocation2 + $0x678] sm:$0x1] %v1559_v34  ;;  %2247 = vst [vmem:[#allocation2 + $0x70] sm:$0x80] %v2246_v45 }
 0x30f   :  { %v2012_v51 = vld [vmem:[#allocation2 + $0x18] sm:$0x1]  ;;  %1563 = vst [vmem:[#allocation2 + $0x6c0] sm:$0x1] %v1562_v47  ;;  %v2249_v20 = vsel %vm10942_vm10, 0, %v11174_v2  ;;  %v1565_v8 = vsel %vm10932_vm7, 0, %v1564_v52  ;;  %3906 = vmatprep.subr.bf16.mxu0 %v11107_v24 }
 0x310   :  { %v2252_v30 = vsel %vm10942_vm10, 0, %v2251_v16  ;;  %v11222_v14 = vld [vmem:[#allocation2 + $0x2b0] sm:$0x80]  ;;  %v11224_v17 = vld [vmem:[#allocation2 + $0x60] sm:$0x1]  ;;  %v1568_v41 = vsel %vm10932_vm7, 0, %v1567_v15 }
 0x311   :  { %v11226_v33 = vld [vmem:[#allocation2 + $0x2f8] sm:$0x80]  ;;  %2250 = vst [vmem:[#allocation2 + $0xb8] sm:$0x80] %v2249_v20  ;;  %1566 = vst [vmem:[#allocation2 + $0x708] sm:$0x1] %v1565_v8 }
 0x312   :  { %2253 = vst [vmem:[#allocation2 + $0x100] sm:$0x80] %v2252_v30  ;;  %v2255_v9 = vsel %vm10942_vm10, 0, %v2254_v57  ;;  %v1571_v6 = vsel %vm10932_vm7, 0, %v1570_v63  ;;  %v11234_v19 = vld [vmem:[#allocation2 + $0x58] sm:$0x80] }
 0x313   :  { %v11236_v40 = vld [vmem:[#allocation2 + $0xa8] sm:$0x1]  ;;  %v11238_v49 = vld [vmem:[#allocation2 + $0x340] sm:$0x80]  ;;  %1569 = vst [vmem:[#allocation2 + $0x750] sm:$0x1] %v1568_v41 }
 0x314   :  { %v2775_v61 = vld [vmem:[#allocation2 + $0xe0] sm:$0xff]  ;;  %2256 = vst [vmem:[#allocation2 + $0x148] sm:$0x80] %v2255_v9  ;;  %1572 = vst [vmem:[#allocation2 + $0x798] sm:$0x1] %v1571_v6  ;;  %v2258_v32 = vsel %vm10942_vm10, 0, %v2257_v31 }
 0x315   :  { %v8200_v3 = vld [vmem:[#allocation8 + $0x120] sm:$0xff]   ;;  %v1574_v60 = vsel %vm10932_vm7, 0, %v1573_v4  ;;  %v2261_v50 = vsel %vm10942_vm10, 0, %v2260_v38  ;;  %v11248_v21 = vld [vmem:[#allocation2 + $0xf0] sm:$0x1]  ;;  %v8255_v27 = vld [vmem:[#allocation8 + $0x98] sm:$0xff]  }
 0x316   :  { %v11246_v44 = vld [vmem:[#allocation2 + $0xa0] sm:$0x80]  ;;  %v11250_v26 = vld [vmem:[#allocation2 + $0x388] sm:$0x80]  ;;  %v2765_v37 = vld [vmem:[#allocation2 + $0x90] sm:$0xff]  ;;  %3907 = vmatpush1.bf16.msra.mxu0 %v8255_v27  ;;  %v1577_v11 = vsel %vm10932_vm7, 0, %v1576_v55  ;;  %4198 = vmatpush1.bf16.msra.mxu1 %v8200_v3 }
 0x317   :  { %2259 = vst [vmem:[#allocation2 + $0x190] sm:$0x80] %v2258_v32  ;;  %1575 = vst [vmem:[#allocation2 + $0x7e0] sm:$0x1] %v1574_v60  ;;  %v2264_v22 = vsel %vm10942_vm10, 0, %v2263_v48  ;;  %v1580_v43 = vsel %vm10932_vm7, 0, %v1579_v28  ;;  %3660 = vmatmul.mubr.bf16.gmra.mrb[72].mxu0 %v2765_v37  ;;  %3908 = vmatprep.subr.bf16.mxu0 %v11107_v24 }
 0x318   :  { %2262 = vst [vmem:[#allocation2 + $0x1d8] sm:$0x80] %v2261_v50  ;;  %v1813_v56 = vld [vmem:[#allocation2 + $0xe8] sm:$0x80]  ;;  %v2024_v54 = vld [vmem:[#allocation2 + $0x138] sm:$0x1]  ;;  %3667 = vmatprep.mubr.bf16.mxu0 %v2775_v61  ;;  %4199 = vmatprep.subr.bf16.mxu1 %v11107_v24 }
 0x319   :  { %v2281_v35 = vld [vmem:[#allocation2 + $0x3d0] sm:$0x80]  ;;  %1578 = vst [vmem:[#allocation2 + $0x828] sm:$0x1] %v1577_v11  ;;  %2265 = vst [vmem:[#allocation2 + $0x220] sm:$0x80] %v2264_v22 }
 0x31a   :  { %v2857_v10 = vld [vmem:[#allocation2 + $0x370] sm:$0xff]  ;;  %1581 = vst [vmem:[#allocation2 + $0x870] sm:$0x1] %v1580_v43  ;;  %v2267_v2 = vsel %vm10942_vm10, 0, %v2266_v7  ;;  %v1583_v13 = vsel %vm10932_vm7, 0, %v1582_v23  ;;  %v2013_v52 = vsel %vm10932_vm7, 0, %v2012_v51 }
 0x31b   :  { %v1816_v16 = vld [vmem:[#allocation2 + $0x130] sm:$0x80]  ;;  %v2027_v25 = vld [vmem:[#allocation2 + $0x180] sm:$0x1]  ;;  %v2284_v1 = vld [vmem:[#allocation2 + $0x418] sm:$0x80]  ;;  %4029 = vmatmul.mubr.bf16.gmra.mrb[8].mxu1 %v2857_v10 }
 0x31c   :  { %v2867_v18 = vld [vmem:[#allocation2 + $0x3c0] sm:$0xff]  ;;  %2268 = vst [vmem:[#allocation2 + $0x268] sm:$0x80] %v2267_v2  ;;  %1584 = vst [vmem:[#allocation2 + $0x8b8] sm:$0x1] %v1583_v13  ;;  %v2270_v0 = vsel %vm10942_vm10, 0, %v11222_v14 }
 0x31d   :  { %2014 = vst [vmem:[#allocation2 + $0x18] sm:$0x1] %v2013_v52  ;;  %v2016_v15 = vsel %vm10932_vm7, 0, %v11224_v17  ;;  %v2273_v57 = vsel %vm10942_vm10, 0, %v11226_v33  ;;  %v1819_v63 = vld [vmem:[#allocation2 + $0x178] sm:$0x80]  ;;  %4036 = vmatprep.mubr.bf16.mxu1 %v2867_v18 }
 0x31e   :  { %v2030_v29 = vld [vmem:[#allocation2 + $0x1c8] sm:$0x1]  ;;  %v2287_v58 = vld [vmem:[#allocation2 + $0x460] sm:$0x80]  ;;  %2271 = vst [vmem:[#allocation2 + $0x2b0] sm:$0x80] %v2270_v0 }
 0x31f   :  { %v8201_v62 = vld [vmem:[#allocation8 + $0x128] sm:$0xff]   ;;  %2017 = vst [vmem:[#allocation2 + $0x60] sm:$0x1] %v2016_v15  ;;  %2274 = vst [vmem:[#allocation2 + $0x2f8] sm:$0x80] %v2273_v57  ;;  %v1808_v53 = vsel %vm10942_vm10, 0, %v11234_v19 }
 0x320   :  { %v2019_v31 = vsel %vm10932_vm7, 0, %v11236_v40  ;;  %v2276_v4 = vsel %vm10942_vm10, 0, %v11238_v49  ;;  %v1822_v38 = vld [vmem:[#allocation2 + $0x1c0] sm:$0x80]  ;;  %v2033_v36 = vld [vmem:[#allocation2 + $0x210] sm:$0x1]  ;;  %4200 = vmatpush1.bf16.msra.mxu1 %v8201_v62 }
 0x321   :  { %v2290_v59 = vld [vmem:[#allocation2 + $0x4a8] sm:$0x80]  ;;  %v8256_v12 = vld [vmem:[#allocation8 + $0xa0] sm:$0xff]   ;;  %1809 = vst [vmem:[#allocation2 + $0x58] sm:$0x80] %v1808_v53  ;;  %v1811_v46 = vsel %vm10942_vm10, 0, %v11246_v44  ;;  %4201 = vmatprep.subr.bf16.mxu1 %v11107_v24 }
 0x322   :  { %3909 = vmatpush1.bf16.msra.mxu0 %v8256_v12  ;;  %2020 = vst [vmem:[#allocation2 + $0xa8] sm:$0x1] %v2019_v31  ;;  %2277 = vst [vmem:[#allocation2 + $0x340] sm:$0x80] %v2276_v4  ;;  %v2022_v55 = vsel %vm10932_vm7, 0, %v11248_v21  ;;  %v2279_v48 = vsel %vm10942_vm10, 0, %v11250_v26 }
 0x323   :  { %v1825_v28 = vld [vmem:[#allocation2 + $0x208] sm:$0x80]  ;;  %v2036_v34 = vld [vmem:[#allocation2 + $0x258] sm:$0x1]  ;;  %v2293_v45 = vld [vmem:[#allocation2 + $0x4f0] sm:$0x80]  ;;  %3910 = vmatprep.subr.bf16.mxu0 %v11107_v24 }
 0x324   :  { %1812 = vst [vmem:[#allocation2 + $0xa0] sm:$0x80] %v1811_v46  ;;  %2023 = vst [vmem:[#allocation2 + $0xf0] sm:$0x1] %v2022_v55  ;;  %v1814_v47 = vsel %vm10942_vm10, 0, %v1813_v56  ;;  %v2025_v42 = vsel %vm10932_vm7, 0, %v2024_v54 }
 0x325   :  { %2280 = vst [vmem:[#allocation2 + $0x388] sm:$0x80] %v2279_v48  ;;  %v2282_v7 = vsel %vm10942_vm10, 0, %v2281_v35  ;;  %v1828_v23 = vld [vmem:[#allocation2 + $0x250] sm:$0x80]  ;;  %v1817_v8 = vsel %vm10942_vm10, 0, %v1816_v16 }
 0x326   :  { %v2039_v51 = vld [vmem:[#allocation2 + $0x2a0] sm:$0x1]  ;;  %v2296_v20 = vld [vmem:[#allocation2 + $0x538] sm:$0x80]  ;;  %1815 = vst [vmem:[#allocation2 + $0xe8] sm:$0x80] %v1814_v47 }
 0x327   :  { %2026 = vst [vmem:[#allocation2 + $0x138] sm:$0x1] %v2025_v42  ;;  %2283 = vst [vmem:[#allocation2 + $0x3d0] sm:$0x80] %v2282_v7  ;;  %v2028_v30 = vsel %vm10932_vm7, 0, %v2027_v25  ;;  %v2285_v14 = vsel %vm10942_vm10, 0, %v2284_v1 }
 0x328   :  { %v11307_v17 = vld [vmem:[#allocation2 + $0x298] sm:$0x80]  ;;  %v11309_v33 = vld [vmem:[#allocation2 + $0x40] sm:$0x80]  ;;  %v2784_v9 = vld [vmem:[#allocation2 + $0x128] sm:$0xff]  ;;  %v1820_v19 = vsel %vm10942_vm10, 0, %v1819_v63 }
 0x329   :  { %v11311_v41 = vld [vmem:[#allocation2 + $0x580] sm:$0x80]  ;;  %v8202_v6 = vld [vmem:[#allocation8 + $0x130] sm:$0xff]   ;;  %1818 = vst [vmem:[#allocation2 + $0x130] sm:$0x80] %v1817_v8  ;;  %v2031_v40 = vsel %vm10932_vm7, 0, %v2030_v29 }
 0x32a   :  { %2029 = vst [vmem:[#allocation2 + $0x180] sm:$0x1] %v2028_v30  ;;  %2286 = vst [vmem:[#allocation2 + $0x418] sm:$0x80] %v2285_v14  ;;  %v2288_v49 = vsel %vm10942_vm10, 0, %v2287_v58  ;;  %v2774_v60 = vld [vmem:[#allocation2 + $0xd8] sm:$0xff]  ;;  %4202 = vmatpush1.bf16.msra.mxu1 %v8202_v6 }
 0x32b   :  { %v11319_v61 = vld [vmem:[#allocation2 + $0x88] sm:$0x80]  ;;  %v11321_v3 = vld [vmem:[#allocation2 + $0xd0] sm:$0x80]  ;;  %1821 = vst [vmem:[#allocation2 + $0x178] sm:$0x80] %v1820_v19  ;;  %3668 = vmatmul.mubr.bf16.gmra.mrb[76].mxu0 %v2774_v60  ;;  %4203 = vmatprep.subr.bf16.mxu1 %v11107_v24 }
 0x32c   :  { %v11323_v32 = vld [vmem:[#allocation2 + $0x5c8] sm:$0x80]  ;;  %2032 = vst [vmem:[#allocation2 + $0x1c8] sm:$0x1] %v2031_v40  ;;  %2289 = vst [vmem:[#allocation2 + $0x460] sm:$0x80] %v2288_v49  ;;  %3675 = vmatprep.mubr.bf16.mxu0 %v2784_v9 }
 0x32d   :  { %v8257_v50 = vld [vmem:[#allocation8 + $0xa8] sm:$0xff]   ;;  %v1823_v44 = vsel %vm10942_vm10, 0, %v1822_v38  ;;  %v2034_v21 = vsel %vm10932_vm7, 0, %v2033_v36  ;;  %v2291_v26 = vsel %vm10942_vm10, 0, %v2290_v59  ;;  %v2660_v37 = vld [vmem:[#allocation2 + $0x118] sm:$0x80] }
 0x32e   :  { %3911 = vmatpush1.bf16.msra.mxu0 %v8257_v50  ;;  %v2305_v27 = vld [vmem:[#allocation2 + $0x610] sm:$0x80]  ;;  %v2866_v11 = vld [vmem:[#allocation2 + $0x3b8] sm:$0xff]  ;;  %1824 = vst [vmem:[#allocation2 + $0x1c0] sm:$0x80] %v1823_v44  ;;  %v1826_v22 = vsel %vm10942_vm10, 0, %v1825_v28 }
 0x32f   :  { %3912 = vmatprep.subr.bf16.mxu0 %v11107_v24  ;;  %2035 = vst [vmem:[#allocation2 + $0x210] sm:$0x1] %v2034_v21  ;;  %2292 = vst [vmem:[#allocation2 + $0x4a8] sm:$0x80] %v2291_v26  ;;  %v2037_v43 = vsel %vm10932_vm7, 0, %v2036_v34  ;;  %v2294_v56 = vsel %vm10942_vm10, 0, %v2293_v45  ;;  %4037 = vmatmul.mubr.bf16.gmra.mrb[12].mxu1 %v2866_v11 }
 0x330   :  { %v2663_v54 = vld [vmem:[#allocation2 + $0x160] sm:$0x80]  ;;  %v2308_v35 = vld [vmem:[#allocation2 + $0x658] sm:$0x80]  ;;  %v2876_v10 = vld [vmem:[#allocation2 + $0x408] sm:$0xff]  ;;  %v1829_v2 = vsel %vm10942_vm10, 0, %v1828_v23 }
 0x331   :  { %1827 = vst [vmem:[#allocation2 + $0x208] sm:$0x80] %v1826_v22  ;;  %2038 = vst [vmem:[#allocation2 + $0x258] sm:$0x1] %v2037_v43  ;;  %v2040_v13 = vsel %vm10932_vm7, 0, %v2039_v51  ;;  %v2297_v52 = vsel %vm10942_vm10, 0, %v2296_v20  ;;  %4044 = vmatprep.mubr.bf16.mxu1 %v2876_v10 }
 0x332   :  { %2295 = vst [vmem:[#allocation2 + $0x4f0] sm:$0x80] %v2294_v56  ;;  %v2666_v16 = vld [vmem:[#allocation2 + $0x1a8] sm:$0x80]  ;;  %v2311_v25 = vld [vmem:[#allocation2 + $0x6a0] sm:$0x80] }
 0x333   :  { %v2314_v1 = vld [vmem:[#allocation2 + $0x6e8] sm:$0x80]  ;;  %v8203_v18 = vld [vmem:[#allocation8 + $0x138] sm:$0xff]   ;;  %1830 = vst [vmem:[#allocation2 + $0x250] sm:$0x80] %v1829_v2  ;;  %v1832_v0 = vsel %vm10942_vm10, 0, %v11307_v17 }
 0x334   :  { %2041 = vst [vmem:[#allocation2 + $0x2a0] sm:$0x1] %v2040_v13  ;;  %2298 = vst [vmem:[#allocation2 + $0x538] sm:$0x80] %v2297_v52  ;;  %v2652_v15 = vsel %vm10942_vm10, 0, %v11309_v33  ;;  %v2300_v57 = vsel %vm10942_vm10, 0, %v11311_v41  ;;  %4204 = vmatpush1.bf16.msra.mxu1 %v8203_v18 }
 0x335   :  { %v2669_v63 = vld [vmem:[#allocation2 + $0x1f0] sm:$0x80]  ;;  %v2320_v58 = vld [vmem:[#allocation2 + $0x778] sm:$0x80]  ;;  %v2323_v62 = vld [vmem:[#allocation2 + $0x7c0] sm:$0x80]  ;;  %4205 = vmatprep.subr.bf16.mxu1 %v11107_v24 }
 0x336   :  { %v2317_v29 = vld [vmem:[#allocation2 + $0x730] sm:$0x80]  ;;  %1833 = vst [vmem:[#allocation2 + $0x298] sm:$0x80] %v1832_v0  ;;  %2653 = vst [vmem:[#allocation2 + $0x40] sm:$0x80] %v2652_v15 }
 0x337   :  { %v8258_v53 = vld [vmem:[#allocation8 + $0xb0] sm:$0xff]   ;;  %2301 = vst [vmem:[#allocation2 + $0x580] sm:$0x80] %v2300_v57  ;;  %v2655_v31 = vsel %vm10942_vm10, 0, %v11319_v61  ;;  %v2658_v4 = vsel %vm10942_vm10, 0, %v11321_v3  ;;  %v2303_v38 = vsel %vm10942_vm10, 0, %v11323_v32 }
 0x338   :  { %3913 = vmatpush1.bf16.msra.mxu0 %v8258_v53  ;;  %v2672_v36 = vld [vmem:[#allocation2 + $0x238] sm:$0x80]  ;;  %2656 = vst [vmem:[#allocation2 + $0x88] sm:$0x80] %v2655_v31  ;;  %2659 = vst [vmem:[#allocation2 + $0xd0] sm:$0x80] %v2658_v4 }
 0x339   :  { %v2332_v59 = vld [vmem:[#allocation2 + $0x898] sm:$0x80]  ;;  %3914 = vmatprep.subr.bf16.mxu0 %v11107_v24  ;;  %2304 = vst [vmem:[#allocation2 + $0x5c8] sm:$0x80] %v2303_v38  ;;  %v2661_v12 = vsel %vm10942_vm10, 0, %v2660_v37  ;;  %v2664_v46 = vsel %vm10942_vm10, 0, %v2663_v54 }
 0x33a   :  { %v2306_v55 = vsel %vm10942_vm10, 0, %v2305_v27  ;;  %v2326_v48 = vld [vmem:[#allocation2 + $0x808] sm:$0x80]  ;;  %v2518_v34 = vld [vmem:[#allocation2 + $0x858] sm:$0x1]  ;;  %v2667_v45 = vsel %vm10942_vm10, 0, %v2666_v16 }
 0x33b   :  { %v2738_v28 = vld [vmem:[#allocation2 + $0x868] sm:$0x80]  ;;  %2662 = vst [vmem:[#allocation2 + $0x118] sm:$0x80] %v2661_v12  ;;  %2665 = vst [vmem:[#allocation2 + $0x160] sm:$0x80] %v2664_v46 }
 0x33c   :  { %2307 = vst [vmem:[#allocation2 + $0x610] sm:$0x80] %v2306_v55  ;;  %v2670_v47 = vsel %vm10942_vm10, 0, %v2669_v63  ;;  %v2309_v42 = vsel %vm10942_vm10, 0, %v2308_v35  ;;  %v2329_v7 = vld [vmem:[#allocation2 + $0x850] sm:$0x80] }
 0x33d   :  { %v8204_v23 = vld [vmem:[#allocation8 + $0x140] sm:$0xff]   ;;  %2668 = vst [vmem:[#allocation2 + $0x1a8] sm:$0x80] %v2667_v45  ;;  %2671 = vst [vmem:[#allocation2 + $0x1f0] sm:$0x80] %v2670_v47  ;;  %v2673_v51 = vsel %vm10942_vm10, 0, %v2672_v36 }
 0x33e   :  { %2310 = vst [vmem:[#allocation2 + $0x658] sm:$0x80] %v2309_v42  ;;  %v2312_v20 = vsel %vm10942_vm10, 0, %v2311_v25  ;;  %v2315_v8 = vsel %vm10942_vm10, 0, %v2314_v1  ;;  %v2335_v30 = vld [vmem:[#allocation2 + $0x8e0] sm:$0x80]  ;;  %4206 = vmatpush1.bf16.msra.mxu1 %v8204_v23 }
 0x33f   :  { %v2783_v14 = vld [vmem:[#allocation2 + $0x120] sm:$0xff]  ;;  %v8259_v17 = vld [vmem:[#allocation8 + $0xb8] sm:$0xff]   ;;  %2674 = vst [vmem:[#allocation2 + $0x238] sm:$0x80] %v2673_v51  ;;  %2313 = vst [vmem:[#allocation2 + $0x6a0] sm:$0x80] %v2312_v20  ;;  %4207 = vmatprep.subr.bf16.mxu1 %v11107_v24 }
 0x340   :  { %3915 = vmatpush1.bf16.msra.mxu0 %v8259_v17  ;;  %2316 = vst [vmem:[#allocation2 + $0x6e8] sm:$0x80] %v2315_v8  ;;  %v2318_v33 = vsel %vm10942_vm10, 0, %v2317_v29  ;;  %v2321_v41 = vsel %vm10942_vm10, 0, %v2320_v58  ;;  %v2324_v9 = vsel %vm10942_vm10, 0, %v2323_v62  ;;  %v2793_v6 = vld [vmem:[#allocation2 + $0x170] sm:$0xff] }
 0x341   :  { %3676 = vmatmul.mubr.bf16.gmra.mrb[80].mxu0 %v2783_v14  ;;  %v2875_v19 = vld [vmem:[#allocation2 + $0x400] sm:$0xff]  ;;  %3916 = vmatprep.subr.bf16.mxu0 %v11107_v24  ;;  %2319 = vst [vmem:[#allocation2 + $0x730] sm:$0x80] %v2318_v33  ;;  %2322 = vst [vmem:[#allocation2 + $0x778] sm:$0x80] %v2321_v41  ;;  %v2327_v40 = vsel %vm10942_vm10, 0, %v2326_v48 }
 0x342   :  { %2325 = vst [vmem:[#allocation2 + $0x7c0] sm:$0x80] %v2324_v9  ;;  %v2330_v49 = vsel %vm10942_vm10, 0, %v2329_v7  ;;  %v2333_v61 = vsel %vm10942_vm10, 0, %v2332_v59  ;;  %3683 = vmatprep.mubr.bf16.mxu0 %v2793_v6  ;;  %4045 = vmatmul.mubr.bf16.gmra.mrb[16].mxu1 %v2875_v19  ;;  %v2885_v3 = vld [vmem:[#allocation2 + $0x450] sm:$0xff]  ;;  %v2336_v32 = vsel %vm10942_vm10, 0, %v2335_v30 }
 0x343   :  { %2328 = vst [vmem:[#allocation2 + $0x808] sm:$0x80] %v2327_v40  ;;  %2331 = vst [vmem:[#allocation2 + $0x850] sm:$0x80] %v2330_v49  ;;  %v2739_v60 = vsel %vm10942_vm10, 0, %v2738_v28  ;;  %v2519_v50 = vsel %vm10932_vm7, 0, %v2518_v34  ;;  %4052 = vmatprep.mubr.bf16.mxu1 %v2885_v3 }
 0x344   :  { %2334 = vst [vmem:[#allocation2 + $0x898] sm:$0x80] %v2333_v61  ;;  %v8205_v44 = vld [vmem:[#allocation8 + $0x148] sm:$0xff]   ;;  %2337 = vst [vmem:[#allocation2 + $0x8e0] sm:$0x80] %v2336_v32  ;;  %v8260_v21 = vld [vmem:[#allocation8 + $0xc0] sm:$0xff]  }
 0x345   :  { %2740 = vst [vmem:[#allocation2 + $0x868] sm:$0x80] %v2739_v60  ;;  %2520 = vst [vmem:[#allocation2 + $0x858] sm:$0x1] %v2519_v50  ;;  %3917 = vmatpush1.bf16.msra.mxu0 %v8260_v21  ;;  %4208 = vmatpush1.bf16.msra.mxu1 %v8205_v44  ;;  %v8206_v26 = vld [vmem:[#allocation8 + $0x150] sm:$0xff]   ;;  %v2792_v37 = vld [vmem:[#allocation2 + $0x168] sm:$0xff] }
 0x346   :  { %3918 = vmatprep.subr.bf16.mxu0 %v11107_v24  ;;  %4209 = vmatprep.subr.bf16.mxu1 %v11107_v24  ;;  %v8261_v27 = vld [vmem:[#allocation8 + $0xc8] sm:$0xff]   ;;  %v2802_v11 = vld [vmem:[#allocation2 + $0x1b8] sm:$0xff]  ;;  %v2675_v54 = vld [vmem:[#allocation2 + $0x280] sm:$0x80] }
 0x347   :  { %v2884_v22 = vld [vmem:[#allocation2 + $0x448] sm:$0xff]  ;;  %v2894_v43 = vld [vmem:[#allocation2 + $0x498] sm:$0xff]  ;;  %v8262_v35 = vld [vmem:[#allocation8 + $0xd0] sm:$0xff]   ;;  %v2676_v10 = vsel %vm10942_vm10, 0, %v2675_v54 }
 0x348   :  { %v8207_v56 = vld [vmem:[#allocation8 + $0x158] sm:$0xff]   ;;  %v2678_v2 = vld [vmem:[#allocation2 + $0x2c8] sm:$0x80]  ;;  %v2681_v13 = vld [vmem:[#allocation2 + $0x310] sm:$0x80] }
 0x349   :  { %3919 = vmatpush1.bf16.msra.mxu0 %v8261_v27  ;;  %4210 = vmatpush1.bf16.msra.mxu1 %v8206_v26  ;;  %v2893_v52 = vld [vmem:[#allocation2 + $0x490] sm:$0xff]  ;;  %2677 = vst [vmem:[#allocation2 + $0x280] sm:$0x80] %v2676_v10  ;;  %v2679_v16 = vsel %vm10942_vm10, 0, %v2678_v2  ;;  %v2682_v25 = vsel %vm10942_vm10, 0, %v2681_v13  ;;  %v8208_v18 = vld [vmem:[#allocation8 + $0x160] sm:$0xff]  }
 0x34a   :  { %3684 = vmatmul.mubr.bf16.gmra.mrb[84].mxu0 %v2792_v37  ;;  %3920 = vmatprep.subr.bf16.mxu0 %v11107_v24  ;;  %v2684_v1 = vld [vmem:[#allocation2 + $0x358] sm:$0x80]  ;;  %2680 = vst [vmem:[#allocation2 + $0x2c8] sm:$0x80] %v2679_v16  ;;  %2683 = vst [vmem:[#allocation2 + $0x310] sm:$0x80] %v2682_v25 }
 0x34b   :  { %3691 = vmatprep.mubr.bf16.mxu0 %v2802_v11  ;;  %4053 = vmatmul.mubr.bf16.gmra.mrb[20].mxu1 %v2884_v22  ;;  %v2685_v0 = vsel %vm10942_vm10, 0, %v2684_v1  ;;  %v2687_v15 = vld [vmem:[#allocation2 + $0x3a0] sm:$0x80]  ;;  %v2690_v57 = vld [vmem:[#allocation2 + $0x3e8] sm:$0x80]  ;;  %v2801_v53 = vld [vmem:[#allocation2 + $0x1b0] sm:$0xff] }
 0x34c   :  { %4060 = vmatprep.mubr.bf16.mxu1 %v2894_v43  ;;  %4211 = vmatprep.subr.bf16.mxu1 %v11107_v24  ;;  %2686 = vst [vmem:[#allocation2 + $0x358] sm:$0x80] %v2685_v0  ;;  %v2688_v63 = vsel %vm10942_vm10, 0, %v2687_v15  ;;  %v2691_v29 = vsel %vm10942_vm10, 0, %v2690_v57  ;;  %v2693_v58 = vld [vmem:[#allocation2 + $0x430] sm:$0x80] }
 0x34d   :  { %3921 = vmatpush1.bf16.msra.mxu0 %v8262_v35  ;;  %4212 = vmatpush1.bf16.msra.mxu1 %v8207_v56  ;;  %v2699_v62 = vld [vmem:[#allocation2 + $0x4c0] sm:$0x80]  ;;  %v8263_v4 = vld [vmem:[#allocation8 + $0xd8] sm:$0xff]   ;;  %2689 = vst [vmem:[#allocation2 + $0x3a0] sm:$0x80] %v2688_v63  ;;  %v2694_v38 = vsel %vm10942_vm10, 0, %v2693_v58 }
 0x34e   :  { %3922 = vmatprep.subr.bf16.mxu0 %v11107_v24  ;;  %v2811_v31 = vld [vmem:[#allocation2 + $0x200] sm:$0xff]  ;;  %4213 = vmatprep.subr.bf16.mxu1 %v11107_v24  ;;  %2692 = vst [vmem:[#allocation2 + $0x3e8] sm:$0x80] %v2691_v29  ;;  %v2700_v36 = vsel %vm10942_vm10, 0, %v2699_v62  ;;  %v2702_v59 = vld [vmem:[#allocation2 + $0x508] sm:$0x80] }
 0x34f   :  { %v2903_v12 = vld [vmem:[#allocation2 + $0x4e0] sm:$0xff]  ;;  %2695 = vst [vmem:[#allocation2 + $0x430] sm:$0x80] %v2694_v38  ;;  %2701 = vst [vmem:[#allocation2 + $0x4c0] sm:$0x80] %v2700_v36  ;;  %v2703_v46 = vsel %vm10942_vm10, 0, %v2702_v59 }
 0x350   :  { %v2705_v55 = vld [vmem:[#allocation2 + $0x550] sm:$0x80]  ;;  %v2708_v48 = vld [vmem:[#allocation2 + $0x598] sm:$0x80]  ;;  %2704 = vst [vmem:[#allocation2 + $0x508] sm:$0x80] %v2703_v46 }
 0x351   :  { %3923 = vmatpush1.bf16.msra.mxu0 %v8263_v4  ;;  %v2706_v28 = vsel %vm10942_vm10, 0, %v2705_v55  ;;  %v2709_v34 = vsel %vm10942_vm10, 0, %v2708_v48  ;;  %v2711_v45 = vld [vmem:[#allocation2 + $0x5e0] sm:$0x80]  ;;  %v2714_v47 = vld [vmem:[#allocation2 + $0x628] sm:$0x80]  ;;  %4214 = vmatpush1.bf16.msra.mxu1 %v8208_v18 }
 0x352   :  { %3692 = vmatmul.mubr.bf16.gmra.mrb[88].mxu0 %v2801_v53  ;;  %3924 = vmatprep.subr.bf16.mxu0 %v11107_v24  ;;  %v8209_v42 = vld [vmem:[#allocation8 + $0x168] sm:$0xff]   ;;  %2707 = vst [vmem:[#allocation2 + $0x550] sm:$0x80] %v2706_v28  ;;  %2710 = vst [vmem:[#allocation2 + $0x598] sm:$0x80] %v2709_v34  ;;  %v2712_v7 = vsel %vm10942_vm10, 0, %v2711_v45 }
 0x353   :  { %3699 = vmatprep.mubr.bf16.mxu0 %v2811_v31  ;;  %4061 = vmatmul.mubr.bf16.gmra.mrb[24].mxu1 %v2893_v52  ;;  %v2715_v23 = vsel %vm10942_vm10, 0, %v2714_v47  ;;  %v2717_v51 = vld [vmem:[#allocation2 + $0x670] sm:$0x80]  ;;  %v8264_v20 = vld [vmem:[#allocation8 + $0xe0] sm:$0xff]   ;;  %2713 = vst [vmem:[#allocation2 + $0x5e0] sm:$0x80] %v2712_v7 }
 0x354   :  { %4068 = vmatprep.mubr.bf16.mxu1 %v2903_v12  ;;  %4215 = vmatprep.subr.bf16.mxu1 %v11107_v24  ;;  %2716 = vst [vmem:[#allocation2 + $0x628] sm:$0x80] %v2715_v23  ;;  %v2718_v8 = vsel %vm10942_vm10, 0, %v2717_v51  ;;  %v2720_v30 = vld [vmem:[#allocation2 + $0x6b8] sm:$0x80]  ;;  %v8210_v40 = vld [vmem:[#allocation8 + $0x170] sm:$0xff]  }
 0x355   :  { %3925 = vmatpush1.bf16.msra.mxu0 %v8264_v20  ;;  %v2723_v14 = vld [vmem:[#allocation2 + $0x700] sm:$0x80]  ;;  %2719 = vst [vmem:[#allocation2 + $0x670] sm:$0x80] %v2718_v8  ;;  %v2721_v17 = vsel %vm10942_vm10, 0, %v2720_v30  ;;  %4216 = vmatpush1.bf16.msra.mxu1 %v8209_v42  ;;  %v2810_v32 = vld [vmem:[#allocation2 + $0x1f8] sm:$0xff] }
 0x356   :  { %3926 = vmatprep.subr.bf16.mxu0 %v11107_v24  ;;  %v2724_v33 = vsel %vm10942_vm10, 0, %v2723_v14  ;;  %v2726_v41 = vld [vmem:[#allocation2 + $0x748] sm:$0x80]  ;;  %2722 = vst [vmem:[#allocation2 + $0x6b8] sm:$0x80] %v2721_v17  ;;  %4217 = vmatprep.subr.bf16.mxu1 %v11107_v24  ;;  %v2902_v26 = vld [vmem:[#allocation2 + $0x4d8] sm:$0xff] }
 0x357   :  { %2725 = vst [vmem:[#allocation2 + $0x700] sm:$0x80] %v2724_v33  ;;  %v2727_v9 = vsel %vm10942_vm10, 0, %v2726_v41  ;;  %v2729_v6 = vld [vmem:[#allocation2 + $0x790] sm:$0x80]  ;;  %v8265_v60 = vld [vmem:[#allocation8 + $0xe8] sm:$0xff]  }
 0x358   :  { %v2732_v19 = vld [vmem:[#allocation2 + $0x7d8] sm:$0x80]  ;;  %2728 = vst [vmem:[#allocation2 + $0x748] sm:$0x80] %v2727_v9  ;;  %v2730_v49 = vsel %vm10942_vm10, 0, %v2729_v6  ;;  %v2820_v21 = vld [vmem:[#allocation2 + $0x248] sm:$0xff] }
 0x359   :  { %v2733_v61 = vsel %vm10942_vm10, 0, %v2732_v19  ;;  %v2431_v3 = vld [vmem:[#allocation2 + $0x30] sm:$0x1]  ;;  %3927 = vmatpush1.bf16.msra.mxu0 %v8265_v60  ;;  %2731 = vst [vmem:[#allocation2 + $0x790] sm:$0x80] %v2730_v49  ;;  %v2912_v11 = vld [vmem:[#allocation2 + $0x528] sm:$0xff]  ;;  %4218 = vmatpush1.bf16.msra.mxu1 %v8210_v40 }
 0x35a   :  { %2734 = vst [vmem:[#allocation2 + $0x7d8] sm:$0x80] %v2733_v61  ;;  %v2432_v50 = vsel %vm10932_vm7, 0, %v2431_v3  ;;  %v2735_v44 = vld [vmem:[#allocation2 + $0x820] sm:$0x80]  ;;  %3700 = vmatmul.mubr.bf16.gmra.mrb[92].mxu0 %v2810_v32  ;;  %3928 = vmatprep.subr.bf16.mxu0 %v11107_v24  ;;  %v8211_v43 = vld [vmem:[#allocation8 + $0x178] sm:$0xff]  }
 0x35b   :  { %2433 = vst [vmem:[#allocation2 + $0x30] sm:$0x1] %v2432_v50  ;;  %v2736_v37 = vsel %vm10942_vm10, 0, %v2735_v44  ;;  %v2434_v27 = vld [vmem:[#allocation2 + $0x78] sm:$0x1]  ;;  %3707 = vmatprep.mubr.bf16.mxu0 %v2820_v21  ;;  %4069 = vmatmul.mubr.bf16.gmra.mrb[28].mxu1 %v2902_v26  ;;  %v8266_v54 = vld [vmem:[#allocation8 + $0xf0] sm:$0xff]  }
 0x35c   :  { %2737 = vst [vmem:[#allocation2 + $0x820] sm:$0x80] %v2736_v37  ;;  %v2435_v22 = vsel %vm10932_vm7, 0, %v2434_v27  ;;  %4076 = vmatprep.mubr.bf16.mxu1 %v2912_v11  ;;  %v2741_v56 = vld [vmem:[#allocation2 + $0x8b0] sm:$0x80]  ;;  %4219 = vmatprep.subr.bf16.mxu1 %v11107_v24  ;;  %v2819_v63 = vld [vmem:[#allocation2 + $0x240] sm:$0xff] }
 0x35d   :  { %2436 = vst [vmem:[#allocation2 + $0x78] sm:$0x1] %v2435_v22  ;;  %3929 = vmatpush1.bf16.msra.mxu0 %v8266_v54  ;;  %v2742_v35 = vsel %vm10942_vm10, 0, %v2741_v56  ;;  %v2437_v10 = vld [vmem:[#allocation2 + $0xc0] sm:$0x1]  ;;  %4220 = vmatpush1.bf16.msra.mxu1 %v8211_v43  ;;  %v8267_v29 = vld [vmem:[#allocation8 + $0xf8] sm:$0xff]  }
 0x35e   :  { %v2440_v2 = vld [vmem:[#allocation2 + $0x108] sm:$0x1]  ;;  %3930 = vmatprep.subr.bf16.mxu0 %v11107_v24  ;;  %2743 = vst [vmem:[#allocation2 + $0x8b0] sm:$0x80] %v2742_v35  ;;  %v2438_v13 = vsel %vm10932_vm7, 0, %v2437_v10  ;;  %4478 = vmatprep.subr.bf16.mxu1 %v11107_v24  ;;  %v2829_v31 = vld [vmem:[#allocation2 + $0x290] sm:$0xff] }
 0x35f   :  { %v2441_v52 = vsel %vm10932_vm7, 0, %v2440_v2  ;;  %v2443_v16 = vld [vmem:[#allocation2 + $0x150] sm:$0x1]  ;;  %2439 = vst [vmem:[#allocation2 + $0xc0] sm:$0x1] %v2438_v13  ;;  %v2911_v4 = vld [vmem:[#allocation2 + $0x520] sm:$0xff] }
 0x360   :  { %2442 = vst [vmem:[#allocation2 + $0x108] sm:$0x1] %v2441_v52  ;;  %v2444_v25 = vsel %vm10932_vm7, 0, %v2443_v16  ;;  %v2446_v1 = vld [vmem:[#allocation2 + $0x198] sm:$0x1]  ;;  %v2921_v59 = vld [vmem:[#allocation2 + $0x570] sm:$0xff] }
 0x361   :  { %v2449_v18 = vld [vmem:[#allocation2 + $0x1e0] sm:$0x1]  ;;  %2445 = vst [vmem:[#allocation2 + $0x150] sm:$0x1] %v2444_v25  ;;  %v2447_v0 = vsel %vm10932_vm7, 0, %v2446_v1  ;;  %3931 = vmatpush1.bf16.msra.mxu0 %v8267_v29  ;;  %v2828_v41 = vld [vmem:[#allocation2 + $0x288] sm:$0xff] }
 0x362   :  { %v2450_v15 = vsel %vm10932_vm7, 0, %v2449_v18  ;;  %v2452_v57 = vld [vmem:[#allocation2 + $0x228] sm:$0x1]  ;;  %2448 = vst [vmem:[#allocation2 + $0x198] sm:$0x1] %v2447_v0  ;;  %3708 = vmatmul.mubr.bf16.gmra.mrb[96].mxu0 %v2819_v63  ;;  %v2838_v40 = vld [vmem:[#allocation2 + $0x2d8] sm:$0xff] }
 0x363   :  { %2451 = vst [vmem:[#allocation2 + $0x1e0] sm:$0x1] %v2450_v15  ;;  %v2453_v58 = vsel %vm10932_vm7, 0, %v2452_v57  ;;  %v2455_v62 = vld [vmem:[#allocation2 + $0x270] sm:$0x1]  ;;  %3715 = vmatprep.mubr.bf16.mxu0 %v2829_v31  ;;  %4077 = vmatmul.mubr.bf16.gmra.mrb[32].mxu1 %v2911_v4  ;;  %v2920_v49 = vld [vmem:[#allocation2 + $0x568] sm:$0xff] }
 0x364   :  { %v2458_v53 = vld [vmem:[#allocation2 + $0x2b8] sm:$0x1]  ;;  %2454 = vst [vmem:[#allocation2 + $0x228] sm:$0x1] %v2453_v58  ;;  %v2456_v38 = vsel %vm10932_vm7, 0, %v2455_v62  ;;  %4084 = vmatprep.mubr.bf16.mxu1 %v2921_v59  ;;  %v2837_v2 = vld [vmem:[#allocation2 + $0x2d0] sm:$0xff] }
 0x365   :  { %v2459_v36 = vsel %vm10932_vm7, 0, %v2458_v53  ;;  %v2461_v24 = vld [vmem:[#allocation2 + $0x300] sm:$0x1]  ;;  %2457 = vst [vmem:[#allocation2 + $0x270] sm:$0x1] %v2456_v38  ;;  %v2930_v60 = vld [vmem:[#allocation2 + $0x5b8] sm:$0xff] }
 0x366   :  { %2460 = vst [vmem:[#allocation2 + $0x2b8] sm:$0x1] %v2459_v36  ;;  %v2462_v12 = vsel %vm10932_vm7, 0, %v2461_v24  ;;  %v2464_v46 = vld [vmem:[#allocation2 + $0x348] sm:$0x1]  ;;  %v2847_v13 = vld [vmem:[#allocation2 + $0x320] sm:$0xff] }
 0x367   :  { %v2467_v55 = vld [vmem:[#allocation2 + $0x390] sm:$0x1]  ;;  %2463 = vst [vmem:[#allocation2 + $0x300] sm:$0x1] %v2462_v12  ;;  %v2465_v48 = vsel %vm10932_vm7, 0, %v2464_v46  ;;  %v2939_v16 = vld [vmem:[#allocation2 + $0x600] sm:$0xff] }
 0x368   :  { %v2468_v28 = vsel %vm10932_vm7, 0, %v2467_v55  ;;  %v2470_v34 = vld [vmem:[#allocation2 + $0x3d8] sm:$0x1]  ;;  %v2473_v45 = vld [vmem:[#allocation2 + $0x420] sm:$0x1]  ;;  %v2929_v52 = vld [vmem:[#allocation2 + $0x5b0] sm:$0xff] }
 0x369   :  { %2466 = vst [vmem:[#allocation2 + $0x348] sm:$0x1] %v2465_v48  ;;  %2469 = vst [vmem:[#allocation2 + $0x390] sm:$0x1] %v2468_v28  ;;  %v2471_v47 = vsel %vm10932_vm7, 0, %v2470_v34  ;;  %v2474_v42 = vsel %vm10932_vm7, 0, %v2473_v45 }
 0x36a   :  { %v2479_v7 = vld [vmem:[#allocation2 + $0x4b0] sm:$0x1]  ;;  %2472 = vst [vmem:[#allocation2 + $0x3d8] sm:$0x1] %v2471_v47  ;;  %2475 = vst [vmem:[#allocation2 + $0x420] sm:$0x1] %v2474_v42  ;;  %3716 = vmatmul.mubr.bf16.gmra.mrb[100].mxu0 %v2828_v41 }
 0x36b   :  { %v2480_v23 = vsel %vm10932_vm7, 0, %v2479_v7  ;;  %v2482_v51 = vld [vmem:[#allocation2 + $0x4f8] sm:$0x1]  ;;  %v2485_v8 = vld [vmem:[#allocation2 + $0x540] sm:$0x1]  ;;  %3723 = vmatprep.mubr.bf16.mxu0 %v2838_v40  ;;  %4085 = vmatmul.mubr.bf16.gmra.mrb[36].mxu1 %v2920_v49  ;;  %v2856_v1 = vld [vmem:[#allocation2 + $0x368] sm:$0xff] }
 0x36c   :  { %2481 = vst [vmem:[#allocation2 + $0x4b0] sm:$0x1] %v2480_v23  ;;  %v2483_v20 = vsel %vm10932_vm7, 0, %v2482_v51  ;;  %v2488_v30 = vld [vmem:[#allocation2 + $0x588] sm:$0x1]  ;;  %v2486_v14 = vsel %vm10932_vm7, 0, %v2485_v8  ;;  %4092 = vmatprep.mubr.bf16.mxu1 %v2930_v60 }
 0x36d   :  { %2484 = vst [vmem:[#allocation2 + $0x4f8] sm:$0x1] %v2483_v20  ;;  %v2489_v17 = vsel %vm10932_vm7, 0, %v2488_v30  ;;  %v2491_v33 = vld [vmem:[#allocation2 + $0x5d0] sm:$0x1]  ;;  %v2846_v25 = vld [vmem:[#allocation2 + $0x318] sm:$0xff] }
 0x36e   :  { %2487 = vst [vmem:[#allocation2 + $0x540] sm:$0x1] %v2486_v14  ;;  %2490 = vst [vmem:[#allocation2 + $0x588] sm:$0x1] %v2489_v17  ;;  %v2492_v9 = vsel %vm10932_vm7, 0, %v2491_v33  ;;  %v2938_v18 = vld [vmem:[#allocation2 + $0x5f8] sm:$0xff] }
 0x36f   :  { %v2494_v6 = vld [vmem:[#allocation2 + $0x618] sm:$0x1]  ;;  %v2497_v19 = vld [vmem:[#allocation2 + $0x660] sm:$0x1]  ;;  %2493 = vst [vmem:[#allocation2 + $0x5d0] sm:$0x1] %v2492_v9 }
 0x370   :  { %v2495_v61 = vsel %vm10932_vm7, 0, %v2494_v6  ;;  %v2498_v3 = vsel %vm10932_vm7, 0, %v2497_v19  ;;  %v2500_v32 = vld [vmem:[#allocation2 + $0x6a8] sm:$0x1]  ;;  %v2503_v44 = vld [vmem:[#allocation2 + $0x6f0] sm:$0x1] }
 0x371   :  { %2496 = vst [vmem:[#allocation2 + $0x618] sm:$0x1] %v2495_v61  ;;  %2499 = vst [vmem:[#allocation2 + $0x660] sm:$0x1] %v2498_v3  ;;  %v2501_v50 = vsel %vm10932_vm7, 0, %v2500_v32  ;;  %v2504_v21 = vsel %vm10932_vm7, 0, %v2503_v44 }
 0x372   :  { %2502 = vst [vmem:[#allocation2 + $0x6a8] sm:$0x1] %v2501_v50  ;;  %v2506_v26 = vld [vmem:[#allocation2 + $0x738] sm:$0x1]  ;;  %2505 = vst [vmem:[#allocation2 + $0x6f0] sm:$0x1] %v2504_v21  ;;  %3724 = vmatmul.mubr.bf16.gmra.mrb[104].mxu0 %v2837_v2 }
 0x373   :  { %v2507_v37 = vsel %vm10932_vm7, 0, %v2506_v26  ;;  %v2509_v27 = vld [vmem:[#allocation2 + $0x780] sm:$0x1]  ;;  %v2512_v22 = vld [vmem:[#allocation2 + $0x7c8] sm:$0x1]  ;;  %3731 = vmatprep.mubr.bf16.mxu0 %v2847_v13  ;;  %4093 = vmatmul.mubr.bf16.gmra.mrb[40].mxu1 %v2929_v52  ;;  %v2865_v57 = vld [vmem:[#allocation2 + $0x3b0] sm:$0xff] }
 0x374   :  { %2508 = vst [vmem:[#allocation2 + $0x738] sm:$0x1] %v2507_v37  ;;  %v2510_v11 = vsel %vm10932_vm7, 0, %v2509_v27  ;;  %v2515_v43 = vld [vmem:[#allocation2 + $0x810] sm:$0x1]  ;;  %v2513_v56 = vsel %vm10932_vm7, 0, %v2512_v22  ;;  %4100 = vmatprep.mubr.bf16.mxu1 %v2939_v16 }
 0x375   :  { %2511 = vst [vmem:[#allocation2 + $0x780] sm:$0x1] %v2510_v11  ;;  %v2516_v54 = vsel %vm10932_vm7, 0, %v2515_v43  ;;  %v2521_v35 = vld [vmem:[#allocation2 + $0x8a0] sm:$0x1]  ;;  %v2948_v0 = vld [vmem:[#allocation2 + $0x648] sm:$0xff] }
 0x376   :  { %2514 = vst [vmem:[#allocation2 + $0x7c8] sm:$0x1] %v2513_v56  ;;  %2517 = vst [vmem:[#allocation2 + $0x810] sm:$0x1] %v2516_v54  ;;  %v2522_v10 = vsel %vm10932_vm7, 0, %v2521_v35  ;;  %v2855_v15 = vld [vmem:[#allocation2 + $0x360] sm:$0xff] }
 0x377   :  { %2523 = vst [vmem:[#allocation2 + $0x8a0] sm:$0x1] %v2522_v10  ;;  %v2947_v63 = vld [vmem:[#allocation2 + $0x640] sm:$0xff]  ;;  %v2957_v29 = vld [vmem:[#allocation2 + $0x690] sm:$0xff]  ;;  %v2864_v58 = vld [vmem:[#allocation2 + $0x3a8] sm:$0xff] }
 0x378   :  { %v2874_v62 = vld [vmem:[#allocation2 + $0x3f8] sm:$0xff]  ;;  %v2956_v53 = vld [vmem:[#allocation2 + $0x688] sm:$0xff]  ;;  %v2873_v4 = vld [vmem:[#allocation2 + $0x3f0] sm:$0xff] }
 0x379   :  { %v2966_v31 = vld [vmem:[#allocation2 + $0x6d8] sm:$0xff]  ;;  %v2883_v38 = vld [vmem:[#allocation2 + $0x440] sm:$0xff]  ;;  %v2965_v36 = vld [vmem:[#allocation2 + $0x6d0] sm:$0xff] }
 0x37a   :  { %3732 = vmatmul.mubr.bf16.gmra.mrb[108].mxu0 %v2846_v25  ;;  %v2975_v24 = vld [vmem:[#allocation2 + $0x720] sm:$0xff]  ;;  %v2882_v59 = vld [vmem:[#allocation2 + $0x438] sm:$0xff]  ;;  %v11518_v46 = vld [vmem:[#allocation2 + $0x8] sm:$0xff] }
 0x37b   :  { %3739 = vmatprep.mubr.bf16.mxu0 %v2856_v1  ;;  %4101 = vmatmul.mubr.bf16.gmra.mrb[44].mxu1 %v2938_v18  ;;  %v2974_v12 = vld [vmem:[#allocation2 + $0x718] sm:$0xff]  ;;  %v2984_v55 = vld [vmem:[#allocation2 + $0x768] sm:$0xff]  ;;  %v1804_v48 = vld [vmem:[#allocation2 + $0x10] sm:$0x80] }
 0x37c   :  { %4108 = vmatprep.mubr.bf16.mxu1 %v2948_v0  ;;  %v1805_v28 = vsel %vm10942_vm10, 0, %v1804_v48  ;;  %v2891_v34 = vld [vmem:[#allocation2 + $0x480] sm:$0xff]  ;;  %v2901_v45 = vld [vmem:[#allocation2 + $0x4d0] sm:$0xff]  ;;  %v2900_v7 = vld [vmem:[#allocation2 + $0x4c8] sm:$0xff] }
 0x37d   :  { %1806 = vst [vmem:[#allocation2 + $0x10] sm:$0x80] %v1805_v28  ;;  %v2983_v47 = vld [vmem:[#allocation2 + $0x760] sm:$0xff]  ;;  %v2993_v42 = vld [vmem:[#allocation2 + $0x7b0] sm:$0xff]  ;;  %v2910_v23 = vld [vmem:[#allocation2 + $0x518] sm:$0xff] }
 0x37e   :  { %v2992_v51 = vld [vmem:[#allocation2 + $0x7a8] sm:$0xff]  ;;  %v3002_v20 = vld [vmem:[#allocation2 + $0x7f8] sm:$0xff]  ;;  %v2909_v8 = vld [vmem:[#allocation2 + $0x510] sm:$0xff] }
 0x37f   :  { %v2919_v30 = vld [vmem:[#allocation2 + $0x560] sm:$0xff]  ;;  %v3001_v14 = vld [vmem:[#allocation2 + $0x7f0] sm:$0xff]  ;;  %v2918_v33 = vld [vmem:[#allocation2 + $0x558] sm:$0xff] }
 0x380   :  { %v3011_v17 = vld [vmem:[#allocation2 + $0x840] sm:$0xff]  ;;  %v2928_v41 = vld [vmem:[#allocation2 + $0x5a8] sm:$0xff]  ;;  %v3010_v9 = vld [vmem:[#allocation2 + $0x838] sm:$0xff] }
 0x381   :  { %v3020_v6 = vld [vmem:[#allocation2 + $0x888] sm:$0xff]  ;;  %v2927_v19 = vld [vmem:[#allocation2 + $0x5a0] sm:$0xff]  ;;  %v2937_v40 = vld [vmem:[#allocation2 + $0x5f0] sm:$0xff] }
 0x382   :  { %3740 = vmatmul.mubr.bf16.gmra.mrb[112].mxu0 %v2855_v15  ;;  %v3019_v49 = vld [vmem:[#allocation2 + $0x880] sm:$0xff]  ;;  %v3029_v61 = vld [vmem:[#allocation2 + $0x8d0] sm:$0xff]  ;;  %v2936_v3 = vld [vmem:[#allocation2 + $0x5e8] sm:$0xff] }
 0x383   :  { %3747 = vmatprep.mubr.bf16.mxu0 %v2865_v57  ;;  %4109 = vmatmul.mubr.bf16.gmra.mrb[48].mxu1 %v2947_v63  ;;  %v2946_v32 = vld [vmem:[#allocation2 + $0x638] sm:$0xff]  ;;  %v3028_v60 = vld [vmem:[#allocation2 + $0x8c8] sm:$0xff]  ;;  %v8212_v44 = vld [vmem:[#allocation8 + $0x180] sm:$0xff]  }
 0x384   :  { %4116 = vmatprep.mubr.bf16.mxu1 %v2957_v29  ;;  %v2752_v50 = vld [vmem:[#allocation2 + $0x28] sm:$0xff]  ;;  %v2945_v21 = vld [vmem:[#allocation2 + $0x630] sm:$0xff]  ;;  %v2955_v26 = vld [vmem:[#allocation2 + $0x680] sm:$0xff] }
 0x385   :  { %v2751_v37 = vld [vmem:[#allocation2 + $0x20] sm:$0xff]  ;;  %v2761_v11 = vld [vmem:[#allocation2 + $0x70] sm:$0xff]  ;;  %v8213_v22 = vld [vmem:[#allocation8 + $0x188] sm:$0xff]  }
 0x386   :  { %v11523_v27 = vld [vmem:[#allocation8 + $0x200] sm:$0xff]   ;;  %v8214_v43 = vld [vmem:[#allocation8 + $0x190] sm:$0xff]   ;;  %v2954_v56 = vld [vmem:[#allocation2 + $0x678] sm:$0xff] }
 0x387   :  { %7604 = vmatprep.subr.bf16.mxu0 %v11523_v27  ;;  %v2964_v54 = vld [vmem:[#allocation2 + $0x6c8] sm:$0xff]  ;;  %v2770_v10 = vld [vmem:[#allocation2 + $0xb8] sm:$0xff]  ;;  %v8216_v13 = vld [vmem:[#allocation8 + $0x1a0] sm:$0xff]  }
 0x388   :  { %v2760_v35 = vld [vmem:[#allocation2 + $0x68] sm:$0xff]  ;;  %v8215_v2 = vld [vmem:[#allocation8 + $0x198] sm:$0xff]   ;;  %v2963_v52 = vld [vmem:[#allocation2 + $0x6c0] sm:$0xff] }
 0x389   :  { %v2973_v16 = vld [vmem:[#allocation2 + $0x710] sm:$0xff]  ;;  %v2779_v1 = vld [vmem:[#allocation2 + $0x100] sm:$0xff]  ;;  %v8217_v18 = vld [vmem:[#allocation8 + $0x1a8] sm:$0xff]  }
 0x38a   :  { %3748 = vmatmul.mubr.bf16.gmra.mrb[116].mxu0 %v2864_v58  ;;  %v2769_v25 = vld [vmem:[#allocation2 + $0xb0] sm:$0xff]  ;;  %v2972_v15 = vld [vmem:[#allocation2 + $0x708] sm:$0xff]  ;;  %v2982_v57 = vld [vmem:[#allocation2 + $0x758] sm:$0xff] }
 0x38b   :  { %3755 = vmatprep.mubr.bf16.mxu0 %v2874_v62  ;;  %4117 = vmatmul.mubr.bf16.gmra.mrb[52].mxu1 %v2956_v53  ;;  %v8218_v0 = vld [vmem:[#allocation8 + $0x1b0] sm:$0xff]   ;;  %v2778_v63 = vld [vmem:[#allocation2 + $0xf8] sm:$0xff]  ;;  %v2788_v29 = vld [vmem:[#allocation2 + $0x148] sm:$0xff] }
 0x38c   :  { %4124 = vmatprep.mubr.bf16.mxu1 %v2966_v31  ;;  %v8219_v58 = vld [vmem:[#allocation8 + $0x1b8] sm:$0xff]   ;;  %v8223_v62 = vld [vmem:[#allocation8 + $0x1c0] sm:$0xff]   ;;  %v2981_v53 = vld [vmem:[#allocation2 + $0x750] sm:$0xff] }
 0x38d   :  { %v2991_v31 = vld [vmem:[#allocation2 + $0x7a0] sm:$0xff]  ;;  %v2806_v48 = vld [vmem:[#allocation2 + $0x1d8] sm:$0xff]  ;;  %v2897_v39 = vld [vmem:[#allocation2 + $0x4b0] sm:$0xff] }
 0x38e   :  { %v2999_v28 = vld [vmem:[#allocation2 + $0x7e0] sm:$0xff] }
 0x392   :  { %3756 = vmatmul.mubr.bf16.gmra.mrb[120].mxu0 %v2873_v4  ;;  %v2787_v4 = vld [vmem:[#allocation2 + $0x140] sm:$0xff] }
 0x393   :  { %3763 = vmatprep.mubr.bf16.mxu0 %v2883_v38  ;;  %4125 = vmatmul.mubr.bf16.gmra.mrb[56].mxu1 %v2965_v36  ;;  %v2797_v38 = vld [vmem:[#allocation2 + $0x190] sm:$0xff]  ;;  %v8228_v36 = vld [vmem:[#allocation8 + $0x1c8] sm:$0xff]  }
 0x394   :  { %4132 = vmatprep.mubr.bf16.mxu1 %v2975_v24  ;;  %v2990_v24 = vld [vmem:[#allocation2 + $0x798] sm:$0xff] }
 0x39a   :  { %3764 = vmatmul.mubr.bf16.gmra.mrb[124].mxu0 %v2882_v59  ;;  %v3000_v59 = vld [vmem:[#allocation2 + $0x7e8] sm:$0xff] }
 0x39b   :  { %3771 = vmatprep.mubr.bf16.mxu0 %v11518_v46  ;;  %4133 = vmatmul.mubr.bf16.gmra.mrb[60].mxu1 %v2974_v12  ;;  %v2796_v12 = vld [vmem:[#allocation2 + $0x188] sm:$0xff] }
 0x39c   :  { %4140 = vmatprep.mubr.bf16.mxu1 %v2984_v55  ;;  %v8230_v55 = vld [vmem:[#allocation8 + $0x1d0] sm:$0xff]  }
 0x3a2   :  { %3772 = vmatmul.mubr.bf16.gmra.mrb[128].mxu0 %v2891_v34  ;;  %v3009_v34 = vld [vmem:[#allocation2 + $0x830] sm:$0xff] }
 0x3a3   :  { %3779 = vmatprep.mubr.bf16.mxu0 %v2901_v45  ;;  %4141 = vmatmul.mubr.bf16.gmra.mrb[64].mxu1 %v2983_v47  ;;  %v2805_v45 = vld [vmem:[#allocation2 + $0x1d0] sm:$0xff]  ;;  %v2815_v47 = vld [vmem:[#allocation2 + $0x220] sm:$0xff] }
 0x3a4   :  { %4148 = vmatprep.mubr.bf16.mxu1 %v2993_v42  ;;  %v3008_v42 = vld [vmem:[#allocation2 + $0x828] sm:$0xff] }
 0x3aa   :  { %3780 = vmatmul.mubr.bf16.gmra.mrb[132].mxu0 %v2900_v7  ;;  %v3018_v7 = vld [vmem:[#allocation2 + $0x878] sm:$0xff] }
 0x3ab   :  { %3787 = vmatprep.mubr.bf16.mxu0 %v2910_v23  ;;  %4149 = vmatmul.mubr.bf16.gmra.mrb[68].mxu1 %v2992_v51  ;;  %v2814_v23 = vld [vmem:[#allocation2 + $0x218] sm:$0xff] }
 0x3ac   :  { %4156 = vmatprep.mubr.bf16.mxu1 %v3002_v20  ;;  %v8231_v51 = vld [vmem:[#allocation8 + $0x1d8] sm:$0xff]   ;;  %v2824_v20 = vld [vmem:[#allocation2 + $0x268] sm:$0xff] }
 0x3b2   :  { %3788 = vmatmul.mubr.bf16.gmra.mrb[136].mxu0 %v2909_v8  ;;  %v3017_v8 = vld [vmem:[#allocation2 + $0x870] sm:$0xff] }
 0x3b3   :  { %3795 = vmatprep.mubr.bf16.mxu0 %v2919_v30  ;;  %4157 = vmatmul.mubr.bf16.gmra.mrb[72].mxu1 %v3001_v14  ;;  %v3027_v30 = vld [vmem:[#allocation2 + $0x8c0] sm:$0xff] }
 0x3b4   :  { %4164 = vmatprep.mubr.bf16.mxu1 %v3011_v17  ;;  %v2823_v14 = vld [vmem:[#allocation2 + $0x260] sm:$0xff]  ;;  %v2833_v17 = vld [vmem:[#allocation2 + $0x2b0] sm:$0xff] }
 0x3ba   :  { %3796 = vmatmul.mubr.bf16.gmra.mrb[140].mxu0 %v2918_v33  ;;  %v3026_v33 = vld [vmem:[#allocation2 + $0x8b8] sm:$0xff] }
 0x3bb   :  { %3803 = vmatprep.mubr.bf16.mxu0 %v2928_v41  ;;  %4165 = vmatmul.mubr.bf16.gmra.mrb[76].mxu1 %v3010_v9  ;;  %v2750_v41 = vld [vmem:[#allocation2 + $0x18] sm:$0xff]  ;;  %v2832_v9 = vld [vmem:[#allocation2 + $0x2a8] sm:$0xff] }
 0x3bc   :  { %4172 = vmatprep.mubr.bf16.mxu1 %v3020_v6  ;;  %v8232_v6 = vld [vmem:[#allocation8 + $0x1e0] sm:$0xff]  }
 0x3c2   :  { %3804 = vmatmul.mubr.bf16.gmra.mrb[144].mxu0 %v2927_v19  ;;  %v2842_v19 = vld [vmem:[#allocation2 + $0x2f8] sm:$0xff] }
 0x3c3   :  { %3811 = vmatprep.mubr.bf16.mxu0 %v2937_v40  ;;  %4173 = vmatmul.mubr.bf16.gmra.mrb[80].mxu1 %v3019_v49  ;;  %v2749_v40 = vld [vmem:[#allocation2 + $0x10] sm:$0xff]  ;;  %v8221_v49 = vld [vmem:[#allocation8 + $0x208] sm:$0xff]  }
 0x3c4   :  { %4180 = vmatprep.mubr.bf16.mxu1 %v3029_v61  ;;  %v2759_v61 = vld [vmem:[#allocation2 + $0x60] sm:$0xff] }
 0x3ca   :  { %3812 = vmatmul.mubr.bf16.gmra.mrb[148].mxu0 %v2936_v3  ;;  %v2841_v3 = vld [vmem:[#allocation2 + $0x2f0] sm:$0xff] }
 0x3cb   :  { %3819 = vmatprep.mubr.bf16.mxu0 %v2946_v32  ;;  %4181 = vmatmul.mubr.bf16.gmra.mrb[84].mxu1 %v3028_v60  ;;  %v2851_v32 = vld [vmem:[#allocation2 + $0x340] sm:$0xff]  ;;  %v8222_v60 = vld [vmem:[#allocation8 + $0x210] sm:$0xff]  }
 0x3cc   :  { %4221 = vmatprep.mubr.bf16.mxu1 %v2752_v50  ;;  %v2696_v50 = vld [vmem:[#allocation2 + $0x478] sm:$0x80] }
 0x3d2   :  { %3820 = vmatmul.mubr.bf16.gmra.mrb[152].mxu0 %v2945_v21  ;;  %v8224_v21 = vld [vmem:[#allocation8 + $0x218] sm:$0xff]  }
 0x3d3   :  { %3827 = vmatprep.mubr.bf16.mxu0 %v2955_v26  ;;  %4222 = vmatmul.mubr.bf16.vlgmr.msra.gmra.mrb[88].mxu1 %v2751_v37  ;;  %v2697_v26 = vsel %vm10942_vm10, 0, %v2696_v50  ;;  %v2768_v37 = vld [vmem:[#allocation2 + $0xa8] sm:$0xff]  ;;  %v2830_v50 = vld [vmem:[#allocation2 + $0x298] sm:$0xff] }
 0x3d4   :  { %4479 = vmatpush1.bf16.msra.mxu1 %v8212_v44  ;;  %4229 = vmatprep.mubr.bf16.mxu1 %v2761_v11  ;;  %v2758_v44 = vld [vmem:[#allocation2 + $0x58] sm:$0xff]  ;;  %2698 = vst [vmem:[#allocation2 + $0x478] sm:$0x80] %v2697_v26  ;;  %v2932_v26 = vld [vmem:[#allocation2 + $0x5c8] sm:$0xff] }
 0x3d5   :  { %4480 = vmatprep.subr.bf16.mxu1 %v11518_v46  ;;  %v2850_v11 = vld [vmem:[#allocation2 + $0x338] sm:$0xff] }
 0x3d8   :  { %4481 = vmatpush1.bf16.msra.mxu1 %v8213_v22  ;;  %v8233_v22 = vld [vmem:[#allocation8 + $0x1e8] sm:$0xff]  }
 0x3d9   :  { %4482 = vmatprep.subr.bf16.mxu1 %v11518_v46 }
 0x3da   :  { %3828 = vmatmul.mubr.bf16.gmra.mrb[156].mxu0 %v2954_v56  ;;  %v2767_v56 = vld [vmem:[#allocation2 + $0xa0] sm:$0xff] }
 0x3db   :  { %3835 = vmatprep.mubr.bf16.mxu0 %v2964_v54  ;;  %4230 = vmatmul.mubr.bf16.gmra.mrb[92].mxu1 %v2760_v35  ;;  %v8226_v54 = vld [vmem:[#allocation8 + $0x228] sm:$0xff]   ;;  %v2777_v35 = vld [vmem:[#allocation2 + $0xf0] sm:$0xff] }
 0x3dc   :  { %4237 = vmatprep.mubr.bf16.mxu1 %v2770_v10  ;;  %4483 = vmatpush1.bf16.msra.mxu1 %v8214_v43  ;;  %v2860_v43 = vld [vmem:[#allocation2 + $0x388] sm:$0xff]  ;;  %v2859_v10 = vld [vmem:[#allocation2 + $0x380] sm:$0xff] }
 0x3dd   :  { %4484 = vmatprep.subr.bf16.mxu1 %v11518_v46 }
 0x3e0   :  { %4485 = vmatpush1.bf16.msra.mxu1 %v8215_v2  ;;  %v2869_v2 = vld [vmem:[#allocation2 + $0x3d0] sm:$0xff] }
 0x3e1   :  { %4486 = vmatprep.subr.bf16.mxu1 %v11518_v46 }
 0x3e2   :  { %3836 = vmatmul.mubr.bf16.gmra.mrb[160].mxu0 %v2963_v52  ;;  %v2776_v52 = vld [vmem:[#allocation2 + $0xe8] sm:$0xff] }
 0x3e3   :  { %3843 = vmatprep.mubr.bf16.mxu0 %v2973_v16  ;;  %4238 = vmatmul.mubr.bf16.gmra.mrb[96].mxu1 %v2769_v25  ;;  %v8229_v16 = vld [vmem:[#allocation8 + $0x238] sm:$0xff]  }
 0x3e4   :  { %4245 = vmatprep.mubr.bf16.mxu1 %v2779_v1  ;;  %4487 = vmatpush1.bf16.msra.mxu1 %v8216_v13  ;;  %v8227_v13 = vld [vmem:[#allocation8 + $0x230] sm:$0xff]   ;;  %v2786_v25 = vld [vmem:[#allocation2 + $0x138] sm:$0xff]  ;;  %v2868_v1 = vld [vmem:[#allocation2 + $0x3c8] sm:$0xff] }
 0x3e5   :  { %4488 = vmatprep.subr.bf16.mxu1 %v11518_v46 }
 0x3e8   :  { %4489 = vmatpush1.bf16.msra.mxu1 %v8217_v18  ;;  %v8234_v18 = vld [vmem:[#allocation8 + $0x1f0] sm:$0xff]  }
 0x3e9   :  { %4490 = vmatprep.subr.bf16.mxu1 %v11518_v46 }
 0x3ea   :  { %3844 = vmatmul.mubr.bf16.gmra.mrb[164].mxu0 %v2972_v15  ;;  %v2785_v15 = vld [vmem:[#allocation2 + $0x130] sm:$0xff] }
 0x3eb   :  { %3851 = vmatprep.mubr.bf16.mxu0 %v2982_v57  ;;  %4246 = vmatmul.mubr.bf16.gmra.mrb[100].mxu1 %v2778_v63  ;;  %v2795_v57 = vld [vmem:[#allocation2 + $0x180] sm:$0xff]  ;;  %v2877_v63 = vld [vmem:[#allocation2 + $0x410] sm:$0xff] }
 0x3ec   :  { %4253 = vmatprep.mubr.bf16.mxu1 %v2788_v29  ;;  %4491 = vmatpush1.bf16.msra.mxu1 %v8218_v0  ;;  %v2878_v0 = vld [vmem:[#allocation2 + $0x418] sm:$0xff]  ;;  %v2887_v29 = vld [vmem:[#allocation2 + $0x460] sm:$0xff] }
 0x3ed   :  { %4492 = vmatprep.subr.bf16.mxu1 %v11518_v46 }
 0x3f0   :  { %4493 = vmatpush1.bf16.msra.mxu1 %v8219_v58 }
 0x3f1   :  { %4494 = vmatprep.subr.bf16.mxu1 %v11518_v46 }
 0x3f2   :  { %3852 = vmatmul.mubr.bf16.gmra.mrb[168].mxu0 %v2981_v53 }
 0x3f3   :  { %3859 = vmatprep.mubr.bf16.mxu0 %v2991_v31  ;;  %4254 = vmatmul.mubr.bf16.gmra.mrb[104].mxu1 %v2787_v4  ;;  %v2794_v4 = vld [vmem:[#allocation2 + $0x178] sm:$0xff] }
 0x3f4   :  { %4261 = vmatprep.mubr.bf16.mxu1 %v2797_v38  ;;  %4495 = vmatpush1.bf16.msra.mxu1 %v8223_v62  ;;  %v2804_v38 = vld [vmem:[#allocation2 + $0x1c8] sm:$0xff] }
 0x3f5   :  { %4496 = vmatprep.subr.bf16.mxu1 %v11518_v46 }
 0x3f8   :  { %4497 = vmatpush1.bf16.msra.mxu1 %v8228_v36  ;;  %v2886_v36 = vld [vmem:[#allocation2 + $0x458] sm:$0xff] }
 0x3f9   :  { %4498 = vmatprep.subr.bf16.mxu1 %v11518_v46 }
 0x3fa   :  { %3860 = vmatmul.mubr.bf16.gmra.mrb[172].mxu0 %v2990_v24  ;;  %v2896_v24 = vld [vmem:[#allocation2 + $0x4a8] sm:$0xff] }
 0x3fb   :  { %3867 = vmatprep.mubr.bf16.mxu0 %v3000_v59  ;;  %4262 = vmatmul.mubr.bf16.gmra.mrb[108].mxu1 %v2796_v12 }
 0x3fc   :  { %4269 = vmatprep.mubr.bf16.mxu1 %v2806_v48  ;;  %4499 = vmatpush1.bf16.msra.mxu1 %v8230_v55 }
 0x3fd   :  { %4500 = vmatprep.subr.bf16.mxu1 %v11518_v46 }
 0x400   :  { %4501 = vmatpush1.bf16.msra.mxu1 %v8231_v51 }
 0x401   :  { %4502 = vmatprep.subr.bf16.mxu1 %v11518_v46 }
 0x402   :  { %3868 = vmatmul.mubr.bf16.gmra.mrb[176].mxu0 %v2999_v28  ;;  %v2803_v28 = vld [vmem:[#allocation2 + $0x1c0] sm:$0xff] }
 0x403   :  { %3875 = vmatprep.mubr.bf16.mxu0 %v3009_v34  ;;  %4270 = vmatmul.mubr.bf16.gmra.mrb[112].mxu1 %v2805_v45  ;;  %v2813_v34 = vld [vmem:[#allocation2 + $0x210] sm:$0xff]  ;;  %v2895_v45 = vld [vmem:[#allocation2 + $0x4a0] sm:$0xff] }
 0x404   :  { %4277 = vmatprep.mubr.bf16.mxu1 %v2815_v47  ;;  %4503 = vmatpush1.bf16.msra.mxu1 %v8232_v6  ;;  %v2905_v47 = vld [vmem:[#allocation2 + $0x4f0] sm:$0xff] }
 0x405   :  { %4504 = vmatprep.subr.bf16.mxu1 %v11518_v46  ;;  %v2821_v6 = vld [vmem:[#allocation2 + $0x250] sm:$0xff] }
 0x408   :  { %4505 = vmatpush1.bf16.msra.mxu1 %v8233_v22 }
 0x409   :  { %4506 = vmatprep.subr.bf16.mxu1 %v11518_v46 }
 0x40a   :  { %3876 = vmatmul.mubr.bf16.gmra.mrb[180].mxu0 %v3008_v42 }
 0x40b   :  { %3883 = vmatprep.mubr.bf16.mxu0 %v3018_v7  ;;  %4278 = vmatmul.mubr.bf16.gmra.mrb[116].mxu1 %v2814_v23 }
 0x40c   :  { %4285 = vmatprep.mubr.bf16.mxu1 %v2824_v20  ;;  %4507 = vmatpush1.bf16.msra.mxu1 %v8234_v18  ;;  %v2812_v20 = vld [vmem:[#allocation2 + $0x208] sm:$0xff]  ;;  %v2950_v18 = vld [vmem:[#allocation2 + $0x658] sm:$0xff] }
 0x40d   :  { %4508 = vmatprep.subr.bf16.mxu1 %v11518_v46  ;;  %v8235_v46 = vld [vmem:[#allocation8 + $0x1f8] sm:$0xff]  }
 0x410   :  { %4509 = vmatpush1.bf16.msra.mxu1 %v8235_v46 }
 0x412   :  { %3884 = vmatmul.mubr.bf16.gmra.mrb[184].mxu0 %v3017_v8  ;;  %v2822_v8 = vld [vmem:[#allocation2 + $0x258] sm:$0xff] }
 0x413   :  { %3891 = vmatprep.mubr.bf16.mxu0 %v3027_v30  ;;  %4286 = vmatmul.mubr.bf16.gmra.mrb[120].mxu1 %v2823_v14  ;;  %v2904_v30 = vld [vmem:[#allocation2 + $0x4e8] sm:$0xff]  ;;  %v2914_v14 = vld [vmem:[#allocation2 + $0x538] sm:$0xff] }
 0x414   :  { %4293 = vmatprep.mubr.bf16.mxu1 %v2833_v17 }
 0x41a   :  { %3892 = vmatmul.mubr.bf16.gmra.mrb[188].mxu0 %v3026_v33 }
 0x41b   :  { %3932 = vmatprep.mubr.bf16.mxu0 %v2750_v41  ;;  %4294 = vmatmul.mubr.bf16.gmra.mrb[124].mxu1 %v2832_v9 }
 0x41c   :  { %4301 = vmatprep.mubr.bf16.mxu1 %v2842_v19  ;;  %v2831_v19 = vld [vmem:[#allocation2 + $0x2a0] sm:$0xff] }
 0x422   :  { %3933 = vmatmul.mubr.bf16.vlgmr.msra.gmra.mrb[64].mxu0 %v2749_v40  ;;  %v2913_v40 = vld [vmem:[#allocation2 + $0x530] sm:$0xff] }
 0x423   :  { %3940 = vmatprep.mubr.bf16.mxu0 %v2759_v61  ;;  %4302 = vmatmul.mubr.bf16.gmra.mrb[0].mxu1 %v2841_v3 }
 0x424   :  { %4309 = vmatprep.mubr.bf16.mxu1 %v2851_v32  ;;  %7605 = vmatpush3.bf16.msra.mxu0 %v11523_v27  ;;  %v8225_v27 = vld [vmem:[#allocation8 + $0x220] sm:$0xff]  }
 0x425   :  { %7606 = vmatprep.subr.bf16.mxu0 %v8221_v49 }
 0x428   :  { %7607 = vmatpush3.bf16.msra.mxu0 %v8221_v49  ;;  %v2923_v49 = vld [vmem:[#allocation2 + $0x580] sm:$0xff] }
 0x429   :  { %7608 = vmatprep.subr.bf16.mxu0 %v8222_v60 }
 0x42a   :  { %3941 = vmatmul.mubr.bf16.gmra.mrb[68].mxu0 %v2758_v44  ;;  %v2755_v44 = vld [vmem:[#allocation2 + $0x40] sm:$0xff] }
 0x42b   :  { %3948 = vmatprep.mubr.bf16.mxu0 %v2768_v37  ;;  %4310 = vmatmul.mubr.bf16.gmra.mrb[4].mxu1 %v2850_v11 }
 0x42c   :  { %4317 = vmatprep.mubr.bf16.mxu1 %v2860_v43  ;;  %7609 = vmatpush3.bf16.msra.mxu0 %v8222_v60 }
 0x42d   :  { %7610 = vmatprep.subr.bf16.mxu0 %v8224_v21 }
 0x430   :  { %7611 = vmatpush3.bf16.msra.mxu0 %v8224_v21  ;;  %v2922_v21 = vld [vmem:[#allocation2 + $0x578] sm:$0xff] }
 0x431   :  { %7612 = vmatprep.subr.bf16.mxu0 %v8225_v27 }
 0x432   :  { %3949 = vmatmul.mubr.bf16.gmra.mrb[72].mxu0 %v2767_v56  ;;  %v2773_v56 = vld [vmem:[#allocation2 + $0xd0] sm:$0xff] }
 0x433   :  { %3956 = vmatprep.mubr.bf16.mxu0 %v2777_v35  ;;  %4318 = vmatmul.mubr.bf16.gmra.mrb[8].mxu1 %v2859_v10  ;;  %v2941_v35 = vld [vmem:[#allocation2 + $0x610] sm:$0xff] }
 0x434   :  { %4325 = vmatprep.mubr.bf16.mxu1 %v2869_v2  ;;  %7613 = vmatpush3.bf16.msra.mxu0 %v8225_v27  ;;  %v2764_v27 = vld [vmem:[#allocation2 + $0x88] sm:$0xff] }
 0x435   :  { %7614 = vmatprep.subr.bf16.mxu0 %v8226_v54 }
 0x438   :  { %7615 = vmatpush3.bf16.msra.mxu0 %v8226_v54  ;;  %v2931_v54 = vld [vmem:[#allocation2 + $0x5c0] sm:$0xff] }
 0x439   :  { %7616 = vmatprep.subr.bf16.mxu0 %v8227_v13 }
 0x43a   :  { %3957 = vmatmul.mubr.bf16.gmra.mrb[76].mxu0 %v2776_v52 }
 0x43b   :  { %3964 = vmatprep.mubr.bf16.mxu0 %v2786_v25  ;;  %4326 = vmatmul.mubr.bf16.gmra.mrb[12].mxu1 %v2868_v1  ;;  %v2791_v25 = vld [vmem:[#allocation2 + $0x160] sm:$0xff]  ;;  %v2940_v1 = vld [vmem:[#allocation2 + $0x608] sm:$0xff] }
 0x43c   :  { %4333 = vmatprep.mubr.bf16.mxu1 %v2878_v0  ;;  %7617 = vmatpush3.bf16.msra.mxu0 %v8227_v13 }
 0x43d   :  { %7618 = vmatprep.subr.bf16.mxu0 %v8229_v16 }
 0x440   :  { %7619 = vmatpush3.bf16.msra.mxu0 %v8229_v16  ;;  %v2782_v16 = vld [vmem:[#allocation2 + $0x118] sm:$0xff] }
 0x442   :  { %3965 = vmatmul.mubr.bf16.gmra.mrb[80].mxu0 %v2785_v15 }
 0x443   :  { %3972 = vmatprep.mubr.bf16.mxu0 %v2795_v57  ;;  %4334 = vmatmul.mubr.bf16.gmra.mrb[16].mxu1 %v2877_v63 }
 0x444   :  { %4341 = vmatprep.mubr.bf16.mxu1 %v2887_v29  ;;  %v2800_v29 = vld [vmem:[#allocation2 + $0x1a8] sm:$0xff] }
 0x445   :  { %v11544_v58 = vpop.f32.mrb[104].mxu0 }
 0x446   :  { %v3727_v62 = vpop.f32.mrb[105].mxu0 }
 0x447   :  { %v11546_v53 = vpop.f32.mrb[106].mxu0  ;;  %v2809_v62 = vld [vmem:[#allocation2 + $0x1f0] sm:$0xff] }
 0x448   :  { %v3730_v31 = vpop.f32.mrb[107].mxu0 }
 0x449   :  { %v2949_v31 = vld [vmem:[#allocation2 + $0x650] sm:$0xff] }
 0x44a   :  { %3973 = vmatmul.mubr.bf16.gmra.mrb[84].mxu0 %v2794_v4  ;;  %v2959_v4 = vld [vmem:[#allocation2 + $0x6a0] sm:$0xff] }
 0x44b   :  { %3980 = vmatprep.mubr.bf16.mxu0 %v2804_v38  ;;  %4342 = vmatmul.mubr.bf16.gmra.mrb[20].mxu1 %v2886_v36 }
 0x44c   :  { %4349 = vmatprep.mubr.bf16.mxu1 %v2896_v24 }
 0x44d   :  { %v11548_v59 = vpop.f32.mrb[108].mxu0 }
 0x44e   :  { %v3735_v12 = vpop.f32.mrb[109].mxu0 }
 0x44f   :  { %v11550_v55 = vpop.f32.mrb[110].mxu0  ;;  %v2818_v12 = vld [vmem:[#allocation2 + $0x238] sm:$0xff] }
 0x450   :  { %v3738_v48 = vpop.f32.mrb[111].mxu0 }
 0x451   :  { %v2827_v48 = vld [vmem:[#allocation2 + $0x280] sm:$0xff] }
 0x452   :  { %3981 = vmatmul.mubr.bf16.gmra.mrb[88].mxu0 %v2803_v28  ;;  %v2958_v28 = vld [vmem:[#allocation2 + $0x698] sm:$0xff] }
 0x453   :  { %3988 = vmatprep.mubr.bf16.mxu0 %v2813_v34  ;;  %4350 = vmatmul.mubr.bf16.gmra.mrb[24].mxu1 %v2895_v45  ;;  %v2968_v34 = vld [vmem:[#allocation2 + $0x6e8] sm:$0xff] }
 0x454   :  { %4357 = vmatprep.mubr.bf16.mxu1 %v2905_v47 }
 0x455   :  { %v11552_v42 = vpop.f32.mrb[112].mxu0 }
 0x456   :  { %v3743_v7 = vpop.f32.mrb[113].mxu0 }
 0x457   :  { %v11554_v23 = vpop.f32.mrb[114].mxu0 }
 0x458   :  { %v3746_v51 = vpop.f32.mrb[115].mxu0 }
 0x45a   :  { %3989 = vmatmul.mubr.bf16.gmra.mrb[92].mxu0 %v2812_v20  ;;  %v2836_v20 = vld [vmem:[#allocation2 + $0x2c8] sm:$0xff] }
 0x45b   :  { %3996 = vmatprep.mubr.bf16.mxu0 %v2822_v8  ;;  %4358 = vmatmul.mubr.bf16.gmra.mrb[28].mxu1 %v2904_v30  ;;  %v2845_v8 = vld [vmem:[#allocation2 + $0x310] sm:$0xff]  ;;  %v2967_v30 = vld [vmem:[#allocation2 + $0x6e0] sm:$0xff] }
 0x45c   :  { %4365 = vmatprep.mubr.bf16.mxu1 %v2914_v14  ;;  %v2977_v14 = vld [vmem:[#allocation2 + $0x730] sm:$0xff] }
 0x45d   :  { %v11556_v17 = vpop.f32.mrb[116].mxu0 }
 0x45e   :  { %14387 = vst [vmem:[#allocation30_spill] sm:$0xff] %v11556_v17  ;;  %v3751_v33 = vpop.f32.mrb[117].mxu0 }
 0x45f   :  { %v11558_v41 = vpop.f32.mrb[118].mxu0 }
 0x460   :  { %14388 = vst [vmem:[#allocation32_spill] sm:$0xff] %v11558_v41  ;;  %v3754_v9 = vpop.f32.mrb[119].mxu0  ;;  %v2961_v41 = vld [vmem:[#allocation2 + $0x6b0] sm:$0xff] }
 0x462   :  { %3997 = vmatmul.mubr.bf16.gmra.mrb[96].mxu0 %v2821_v6 }
 0x463   :  { %4004 = vmatprep.mubr.bf16.mxu0 %v2831_v19  ;;  %4366 = vmatmul.mubr.bf16.gmra.mrb[32].mxu1 %v2913_v40  ;;  %v2854_v40 = vld [vmem:[#allocation2 + $0x358] sm:$0xff] }
 0x464   :  { %4373 = vmatprep.mubr.bf16.mxu1 %v2923_v49  ;;  %v2863_v49 = vld [vmem:[#allocation2 + $0x3a0] sm:$0xff] }
 0x465   :  { %v11560_v61 = vpop.f32.mrb[120].mxu0 }
 0x466   :  { %14389 = vst [vmem:[#allocation34_spill] sm:$0xff] %v11560_v61  ;;  %v3759_v3 = vpop.f32.mrb[121].mxu0 }
 0x467   :  { %v11562_v32 = vpop.f32.mrb[122].mxu0  ;;  %v2976_v3 = vld [vmem:[#allocation2 + $0x728] sm:$0xff] }
 0x468   :  { %14390 = vst [vmem:[#allocation38_spill] sm:$0xff] %v11562_v32  ;;  %v3762_v60 = vpop.f32.mrb[123].mxu0 }
 0x469   :  { %v2986_v60 = vld [vmem:[#allocation2 + $0x778] sm:$0xff] }
 0x46a   :  { %4005 = vmatmul.mubr.bf16.gmra.mrb[100].mxu0 %v2830_v50 }
 0x46b   :  { %7620 = vmatprep.mubr.bf16.mxu0 %v2755_v44  ;;  %4374 = vmatmul.mubr.bf16.gmra.mrb[36].mxu1 %v2922_v21 }
 0x46c   :  { %4381 = vmatprep.mubr.bf16.mxu1 %v2932_v26 }
 0x46d   :  { %v11564_v37 = vpop.f32.mrb[124].mxu0 }
 0x46e   :  { %14391 = vst [vmem:[#allocation39_spill] sm:$0xff] %v11564_v37  ;;  %v3767_v11 = vpop.f32.mrb[125].mxu0 }
 0x46f   :  { %v11566_v22 = vpop.f32.mrb[126].mxu0  ;;  %v2872_v11 = vld [vmem:[#allocation2 + $0x3e8] sm:$0xff] }
 0x470   :  { %14392 = vst [vmem:[#allocation40_spill] sm:$0xff] %v11566_v22  ;;  %v3770_v43 = vpop.f32.mrb[127].mxu0  ;;  %v2952_v22 = vld [vmem:[#allocation2 + $0x668] sm:$0xff] }
 0x471   :  { %v2881_v43 = vld [vmem:[#allocation2 + $0x430] sm:$0xff] }
 0x472   :  { %7621 = vmatmul.mubr.bf16.vlgmr.msra.gmra.mrb[192].mxu0 %v2764_v27  ;;  %v2985_v27 = vld [vmem:[#allocation2 + $0x770] sm:$0xff] }
 0x473   :  { %7624 = vmatprep.mubr.bf16.mxu0 %v2773_v56  ;;  %4382 = vmatmul.mubr.bf16.gmra.mrb[40].mxu1 %v2931_v54  ;;  %v2995_v56 = vld [vmem:[#allocation2 + $0x7c0] sm:$0xff] }
 0x474   :  { %4389 = vmatprep.mubr.bf16.mxu1 %v2941_v35 }
 0x475   :  { %v11568_v10 = vpop.f32.mrb[128].mxu0 }
 0x476   :  { %14393 = vst [vmem:[#allocation18_spill] sm:$0xff] %v11568_v10  ;;  %v3775_v2 = vpop.f32.mrb[129].mxu0 }
 0x477   :  { %v11570_v13 = vpop.f32.mrb[130].mxu0 }
 0x478   :  { %14394 = vst [vmem:[#allocation20_spill] sm:$0xff] %v11570_v13  ;;  %v3778_v52 = vpop.f32.mrb[131].mxu0 }
 0x479   :  { %v2890_v52 = vld [vmem:[#allocation2 + $0x478] sm:$0xff] }
 0x47a   :  { %7625 = vmatmul.mubr.bf16.gmra.mrb[196].mxu0 %v2782_v16 }
 0x47b   :  { %7628 = vmatprep.mubr.bf16.mxu0 %v2791_v25  ;;  %4390 = vmatmul.mubr.bf16.gmra.mrb[44].mxu1 %v2940_v1  ;;  %v2899_v25 = vld [vmem:[#allocation2 + $0x4c0] sm:$0xff]  ;;  %v2994_v1 = vld [vmem:[#allocation2 + $0x7b8] sm:$0xff] }
 0x47c   :  { %4397 = vmatprep.mubr.bf16.mxu1 %v2950_v18  ;;  %v3004_v18 = vld [vmem:[#allocation2 + $0x808] sm:$0xff] }
 0x47d   :  { %v11572_v0 = vpop.f32.mrb[132].mxu0 }
 0x47e   :  { %14395 = vst [vmem:[#allocation23_spill] sm:$0xff] %v11572_v0  ;;  %v3783_v15 = vpop.f32.mrb[133].mxu0 }
 0x47f   :  { %v11574_v57 = vpop.f32.mrb[134].mxu0 }
 0x480   :  { %14396 = vst [vmem:[#allocation25_spill] sm:$0xff] %v11574_v57  ;;  %v3786_v63 = vpop.f32.mrb[135].mxu0  ;;  %v2943_v57 = vld [vmem:[#allocation2 + $0x620] sm:$0xff] }
 0x482   :  { %7629 = vmatmul.mubr.bf16.gmra.mrb[200].mxu0 %v2800_v29 }
 0x483   :  { %7632 = vmatprep.mubr.bf16.mxu0 %v2809_v62  ;;  %4398 = vmatmul.mubr.bf16.gmra.mrb[48].mxu1 %v2949_v31  ;;  %v2908_v31 = vld [vmem:[#allocation2 + $0x508] sm:$0xff] }
 0x484   :  { %4405 = vmatprep.mubr.bf16.mxu1 %v2959_v4  ;;  %v2917_v4 = vld [vmem:[#allocation2 + $0x550] sm:$0xff] }
 0x485   :  { %v11576_v38 = vpop.f32.mrb[136].mxu0 }
 0x486   :  { %14397 = vst [vmem:[#allocation27_spill] sm:$0xff] %v11576_v38  ;;  %v3791_v36 = vpop.f32.mrb[137].mxu0 }
 0x487   :  { %v11578_v46 = vpop.f32.mrb[138].mxu0  ;;  %v3003_v36 = vld [vmem:[#allocation2 + $0x800] sm:$0xff] }
 0x488   :  { %14398 = vst [vmem:[#allocation37_spill] sm:$0xff] %v11578_v46  ;;  %v3794_v24 = vpop.f32.mrb[139].mxu0 }
 0x489   :  { %v3013_v24 = vld [vmem:[#allocation2 + $0x850] sm:$0xff] }
 0x48a   :  { %7633 = vmatmul.mubr.bf16.gmra.mrb[204].mxu0 %v2818_v12 }
 0x48b   :  { %7636 = vmatprep.mubr.bf16.mxu0 %v2827_v48  ;;  %4406 = vmatmul.mubr.bf16.gmra.mrb[52].mxu1 %v2958_v28 }
 0x48c   :  { %4413 = vmatprep.mubr.bf16.mxu1 %v2968_v34 }
 0x48d   :  { %v11580_v45 = vpop.f32.mrb[140].mxu0 }
 0x48e   :  { %14399 = vst [vmem:[#allocation29_spill] sm:$0xff] %v11580_v45  ;;  %v3799_v47 = vpop.f32.mrb[141].mxu0 }
 0x48f   :  { %v11582_v7 = vpop.f32.mrb[142].mxu0  ;;  %v2926_v47 = vld [vmem:[#allocation2 + $0x598] sm:$0xff] }
 0x490   :  { %14400 = vst [vmem:[#allocation26_spill] sm:$0xff] %v11582_v7  ;;  %v3802_v51 = vpop.f32.mrb[143].mxu0  ;;  %v2934_v7 = vld [vmem:[#allocation2 + $0x5d8] sm:$0xff] }
 0x491   :  { %v2935_v51 = vld [vmem:[#allocation2 + $0x5e0] sm:$0xff] }
 0x492   :  { %7637 = vmatmul.mubr.bf16.gmra.mrb[208].mxu0 %v2836_v20  ;;  %v3012_v20 = vld [vmem:[#allocation2 + $0x848] sm:$0xff] }
 0x493   :  { %7640 = vmatprep.mubr.bf16.mxu0 %v2845_v8  ;;  %4414 = vmatmul.mubr.bf16.gmra.mrb[56].mxu1 %v2967_v30  ;;  %v3022_v8 = vld [vmem:[#allocation2 + $0x898] sm:$0xff] }
 0x494   :  { %4421 = vmatprep.mubr.bf16.mxu1 %v2977_v14 }
 0x495   :  { %v11584_v33 = vpop.f32.mrb[144].mxu0 }
 0x496   :  { %14401 = vst [vmem:[#allocation28_spill] sm:$0xff] %v11584_v33  ;;  %v3807_v9 = vpop.f32.mrb[145].mxu0 }
 0x497   :  { %v11586_v6 = vpop.f32.mrb[146].mxu0 }
 0x498   :  { %14402 = vst [vmem:[#allocation55_spill] sm:$0xff] %v11586_v6  ;;  %v3810_v19 = vpop.f32.mrb[147].mxu0 }
 0x49a   :  { %7641 = vmatmul.mubr.bf16.gmra.mrb[212].mxu0 %v2854_v40  ;;  %v2944_v40 = vld [vmem:[#allocation2 + $0x628] sm:$0xff] }
 0x49b   :  { %7644 = vmatprep.mubr.bf16.mxu0 %v2863_v49  ;;  %4422 = vmatmul.mubr.bf16.gmra.mrb[60].mxu1 %v2976_v3  ;;  %v2953_v49 = vld [vmem:[#allocation2 + $0x670] sm:$0xff] }
 0x49c   :  { %4429 = vmatprep.mubr.bf16.mxu1 %v2986_v60  ;;  %v3021_v3 = vld [vmem:[#allocation2 + $0x890] sm:$0xff]  ;;  %v3031_v60 = vld [vmem:[#allocation2 + $0x8e0] sm:$0xff] }
 0x49d   :  { %v11588_v50 = vpop.f32.mrb[148].mxu0 }
 0x49e   :  { %14403 = vst [vmem:[#allocation62_spill] sm:$0xff] %v11588_v50  ;;  %v3815_v44 = vpop.f32.mrb[149].mxu0 }
 0x49f   :  { %v11590_v21 = vpop.f32.mrb[150].mxu0 }
 0x4a0   :  { %14404 = vst [vmem:[#allocation64_spill] sm:$0xff] %v11590_v21  ;;  %v3818_v26 = vpop.f32.mrb[151].mxu0  ;;  %v2916_v21 = vld [vmem:[#allocation2 + $0x548] sm:$0xff] }
 0x4a2   :  { %7645 = vmatmul.mubr.bf16.gmra.mrb[216].mxu0 %v2872_v11 }
 0x4a3   :  { %7648 = vmatprep.mubr.bf16.mxu0 %v2881_v43  ;;  %4430 = vmatmul.mubr.bf16.gmra.mrb[64].mxu1 %v2985_v27  ;;  %v2962_v27 = vld [vmem:[#allocation2 + $0x6b8] sm:$0xff] }
 0x4a4   :  { %4437 = vmatprep.mubr.bf16.mxu1 %v2995_v56  ;;  %v2971_v56 = vld [vmem:[#allocation2 + $0x700] sm:$0xff] }
 0x4a5   :  { %v11592_v54 = vpop.f32.mrb[152].mxu0 }
 0x4a6   :  { %14405 = vst [vmem:[#allocation68_spill] sm:$0xff] %v11592_v54  ;;  %v3823_v35 = vpop.f32.mrb[153].mxu0  ;;  %v2906_v54 = vld [vmem:[#allocation2 + $0x4f8] sm:$0xff] }
 0x4a7   :  { %v11594_v2 = vpop.f32.mrb[154].mxu0  ;;  %v3030_v35 = vld [vmem:[#allocation2 + $0x8d8] sm:$0xff] }
 0x4a8   :  { %14406 = vst [vmem:[#allocation41_spill] sm:$0xff] %v11594_v2  ;;  %v3826_v16 = vpop.f32.mrb[155].mxu0 }
 0x4aa   :  { %7649 = vmatmul.mubr.bf16.gmra.mrb[220].mxu0 %v2890_v52  ;;  %v2754_v52 = vld [vmem:[#allocation2 + $0x38] sm:$0xff] }
 0x4ab   :  { %7652 = vmatprep.mubr.bf16.mxu0 %v2899_v25  ;;  %4438 = vmatmul.mubr.bf16.gmra.mrb[68].mxu1 %v2994_v1 }
 0x4ac   :  { %4445 = vmatprep.mubr.bf16.mxu1 %v3004_v18 }
 0x4ad   :  { %v11596_v15 = vpop.f32.mrb[156].mxu0 }
 0x4ae   :  { %14407 = vst [vmem:[#allocation69_spill] sm:$0xff] %v11596_v15  ;;  %v3831_v63 = vpop.f32.mrb[157].mxu0 }
 0x4af   :  { %v11598_v29 = vpop.f32.mrb[158].mxu0  ;;  %v2476_v63 = vld [vmem:[#allocation2 + $0x468] sm:$0x1] }
 0x4b0   :  { %14408 = vst [vmem:[#allocation31_spill] sm:$0xff] %v11598_v29  ;;  %v3834_v62 = vpop.f32.mrb[159].mxu0 }
 0x4b1   :  { %v2980_v62 = vld [vmem:[#allocation2 + $0x748] sm:$0xff] }
 0x4b2   :  { %7653 = vmatmul.mubr.bf16.gmra.mrb[224].mxu0 %v2908_v31  ;;  %v2477_v31 = vsel %vm10932_vm7, 0, %v2476_v63  ;;  %v2780_v63 = vld [vmem:[#allocation2 + $0x108] sm:$0xff] }
 0x4b3   :  { %7656 = vmatprep.mubr.bf16.mxu0 %v2917_v4  ;;  %4446 = vmatmul.mubr.bf16.gmra.mrb[72].mxu1 %v3003_v36  ;;  %v2989_v4 = vld [vmem:[#allocation2 + $0x790] sm:$0xff]  ;;  %2478 = vst [vmem:[#allocation2 + $0x468] sm:$0x1] %v2477_v31 }
 0x4b4   :  { %4453 = vmatprep.mubr.bf16.mxu1 %v3013_v24  ;;  %v2753_v36 = vld [vmem:[#allocation2 + $0x30] sm:$0xff]  ;;  %v2763_v24 = vld [vmem:[#allocation2 + $0x80] sm:$0xff] }
 0x4b5   :  { %v11600_v12 = vpop.f32.mrb[160].mxu0 }
 0x4b6   :  { %14409 = vst [vmem:[#allocation33_spill] sm:$0xff] %v11600_v12  ;;  %v3839_v48 = vpop.f32.mrb[161].mxu0 }
 0x4b7   :  { %v11602_v28 = vpop.f32.mrb[162].mxu0 }
 0x4b8   :  { %14410 = vst [vmem:[#allocation43_spill] sm:$0xff] %v11602_v28  ;;  %v3842_v34 = vpop.f32.mrb[163].mxu0  ;;  %v2524_v28 = vld [vmem:[#allocation2 + $0x8e8] sm:$0x1] }
 0x4b9   :  { %v2525_v15 = vsel %vm10932_vm7, 0, %v2524_v28 }
 0x4ba   :  { %7657 = vmatmul.mubr.bf16.gmra.mrb[228].mxu0 %v2926_v47  ;;  %2526 = vst [vmem:[#allocation2 + $0x8e8] sm:$0x1] %v2525_v15 }
 0x4bb   :  { %7660 = vmatprep.mubr.bf16.mxu0 %v2935_v51  ;;  %4454 = vmatmul.mubr.bf16.gmra.mrb[76].mxu1 %v3012_v20  ;;  %v2998_v20 = vld [vmem:[#allocation2 + $0x7d8] sm:$0xff] }
 0x4bc   :  { %4461 = vmatprep.mubr.bf16.mxu1 %v3022_v8  ;;  %v3007_v8 = vld [vmem:[#allocation2 + $0x820] sm:$0xff] }
 0x4bd   :  { %v11604_v30 = vpop.f32.mrb[164].mxu0 }
 0x4be   :  { %14411 = vst [vmem:[#allocation44_spill] sm:$0xff] %v11604_v30  ;;  %v3847_v14 = vpop.f32.mrb[165].mxu0 }
 0x4bf   :  { %v11606_v9 = vpop.f32.mrb[166].mxu0  ;;  %v2762_v14 = vld [vmem:[#allocation2 + $0x78] sm:$0xff] }
 0x4c0   :  { %14412 = vst [vmem:[#allocation45_spill] sm:$0xff] %v11606_v9  ;;  %v3850_v19 = vpop.f32.mrb[167].mxu0 }
 0x4c1   :  { %v2772_v19 = vld [vmem:[#allocation2 + $0xc8] sm:$0xff] }
 0x4c2   :  { %7661 = vmatmul.mubr.bf16.gmra.mrb[232].mxu0 %v2944_v40 }
 0x4c3   :  { %7664 = vmatprep.mubr.bf16.mxu0 %v2953_v49  ;;  %4462 = vmatmul.mubr.bf16.gmra.mrb[80].mxu1 %v3021_v3 }
 0x4c4   :  { %4469 = vmatprep.mubr.bf16.mxu1 %v3031_v60 }
 0x4c5   :  { %v11608_v44 = vpop.f32.mrb[168].mxu0 }
 0x4c6   :  { %14413 = vst [vmem:[#allocation46_spill] sm:$0xff] %v11608_v44  ;;  %v3855_v26 = vpop.f32.mrb[169].mxu0  ;;  %v2888_v44 = vld [vmem:[#allocation2 + $0x468] sm:$0xff] }
 0x4c7   :  { %v11610_v11 = vpop.f32.mrb[170].mxu0  ;;  %v3016_v26 = vld [vmem:[#allocation2 + $0x868] sm:$0xff] }
 0x4c8   :  { %14414 = vst [vmem:[#allocation47_spill] sm:$0xff] %v11610_v11  ;;  %v3858_v43 = vpop.f32.mrb[171].mxu0  ;;  %v2879_v11 = vld [vmem:[#allocation2 + $0x420] sm:$0xff] }
 0x4c9   :  { %v3025_v43 = vld [vmem:[#allocation2 + $0x8b0] sm:$0xff] }
 0x4ca   :  { %7665 = vmatmul.mubr.bf16.gmra.mrb[236].mxu0 %v2962_v27  ;;  %v2771_v27 = vld [vmem:[#allocation2 + $0xc0] sm:$0xff] }
 0x4cb   :  { %7668 = vmatprep.mubr.bf16.mxu0 %v2971_v56  ;;  %4470 = vmatmul.mubr.bf16.gmra.mrb[84].mxu1 %v3030_v35  ;;  %v2781_v56 = vld [vmem:[#allocation2 + $0x110] sm:$0xff] }
 0x4cc   :  { %4510 = vmatprep.mubr.bf16.mxu1 %v2754_v52 }
 0x4cd   :  { %v11612_v16 = vpop.f32.mrb[172].mxu0 }
 0x4ce   :  { %14415 = vst [vmem:[#allocation48_spill] sm:$0xff] %v11612_v16  ;;  %v3863_v25 = vpop.f32.mrb[173].mxu0 }
 0x4cf   :  { %v11614_v1 = vpop.f32.mrb[174].mxu0 }
 0x4d0   :  { %14416 = vst [vmem:[#allocation49_spill] sm:$0xff] %v11614_v1  ;;  %v3866_v18 = vpop.f32.mrb[175].mxu0  ;;  %v2870_v1 = vld [vmem:[#allocation2 + $0x3d8] sm:$0xff] }
 0x4d2   :  { %7669 = vmatmul.mubr.bf16.gmra.mrb[240].mxu0 %v2980_v62  ;;  %v2790_v62 = vld [vmem:[#allocation2 + $0x158] sm:$0xff] }
 0x4d3   :  { %7672 = vmatprep.mubr.bf16.mxu0 %v2989_v4  ;;  %4511 = vmatmul.mubr.bf16.vlgmr.msra.gmra.mrb[88].mxu1 %v2753_v36 }
 0x4d4   :  { %4518 = vmatprep.mubr.bf16.mxu1 %v2763_v24 }
 0x4d5   :  { %v11618_v48 = vpop.f32.mrb[176].mxu0 }
 0x4d6   :  { %14417 = vst [vmem:[#allocation50_spill] sm:$0xff] %v11618_v48  ;;  %v3871_v34 = vpop.f32.mrb[177].mxu0 }
 0x4d7   :  { %v11620_v47 = vpop.f32.mrb[178].mxu0  ;;  %v2789_v34 = vld [vmem:[#allocation2 + $0x150] sm:$0xff] }
 0x4d8   :  { %14418 = vst [vmem:[#allocation51_spill] sm:$0xff] %v11620_v47  ;;  %v3874_v51 = vpop.f32.mrb[179].mxu0  ;;  %v2861_v47 = vld [vmem:[#allocation2 + $0x390] sm:$0xff] }
 0x4d9   :  { %v2799_v51 = vld [vmem:[#allocation2 + $0x1a0] sm:$0xff] }
 0x4da   :  { %7673 = vmatmul.mubr.bf16.gmra.mrb[244].mxu0 %v2998_v20 }
 0x4db   :  { %7676 = vmatprep.mubr.bf16.mxu0 %v3007_v8  ;;  %4519 = vmatmul.mubr.bf16.gmra.mrb[92].mxu1 %v2762_v14 }
 0x4dc   :  { %4526 = vmatprep.mubr.bf16.mxu1 %v2772_v19 }
 0x4dd   :  { %v11622_v40 = vpop.f32.mrb[180].mxu0 }
 0x4de   :  { %14419 = vst [vmem:[#allocation52_spill] sm:$0xff] %v11622_v40  ;;  %v3879_v49 = vpop.f32.mrb[181].mxu0 }
 0x4df   :  { %v11624_v3 = vpop.f32.mrb[182].mxu0  ;;  %v2798_v49 = vld [vmem:[#allocation2 + $0x198] sm:$0xff] }
 0x4e0   :  { %14420 = vst [vmem:[#allocation53_spill] sm:$0xff] %v11624_v3  ;;  %v3882_v60 = vpop.f32.mrb[183].mxu0  ;;  %v2852_v3 = vld [vmem:[#allocation2 + $0x348] sm:$0xff] }
 0x4e1   :  { %v2808_v60 = vld [vmem:[#allocation2 + $0x1e8] sm:$0xff] }
 0x4e2   :  { %7677 = vmatmul.mubr.bf16.gmra.mrb[248].mxu0 %v3016_v26 }
 0x4e3   :  { %7680 = vmatprep.mubr.bf16.mxu0 %v3025_v43  ;;  %4527 = vmatmul.mubr.bf16.gmra.mrb[96].mxu1 %v2771_v27 }
 0x4e4   :  { %4534 = vmatprep.mubr.bf16.mxu1 %v2781_v56 }
 0x4e5   :  { %v11626_v35 = vpop.f32.mrb[184].mxu0 }
 0x4e6   :  { %14421 = vst [vmem:[#allocation54_spill] sm:$0xff] %v11626_v35  ;;  %v3887_v52 = vpop.f32.mrb[185].mxu0 }
 0x4e7   :  { %v11628_v25 = vpop.f32.mrb[186].mxu0  ;;  %v2807_v52 = vld [vmem:[#allocation2 + $0x1e0] sm:$0xff] }
 0x4e8   :  { %14422 = vst [vmem:[#allocation22_spill] sm:$0xff] %v11628_v25  ;;  %v3890_v18 = vpop.f32.mrb[187].mxu0  ;;  %v2843_v25 = vld [vmem:[#allocation2 + $0x300] sm:$0xff] }
 0x4e9   :  { %v2817_v18 = vld [vmem:[#allocation2 + $0x230] sm:$0xff] }
 0x4eb   :  { %4535 = vmatmul.mubr.bf16.gmra.mrb[100].mxu1 %v2780_v63 }
 0x4ec   :  { %4542 = vmatprep.mubr.bf16.mxu1 %v2790_v62 }
 0x4ed   :  { %v11630_v31 = vpop.f32.mrb[188].mxu0 }
 0x4ee   :  { %14423 = vst [vmem:[#allocation56_spill] sm:$0xff] %v11630_v31  ;;  %v3895_v4 = vpop.f32.mrb[189].mxu0 }
 0x4ef   :  { %v11632_v36 = vpop.f32.mrb[190].mxu0 }
 0x4f0   :  { %14424 = vst [vmem:[#allocation57_spill] sm:$0xff] %v11632_v36  ;;  %v3898_v24 = vpop.f32.mrb[191].mxu0  ;;  %v2834_v36 = vld [vmem:[#allocation2 + $0x2b8] sm:$0xff] }
 0x4f3   :  { %4543 = vmatmul.mubr.bf16.gmra.mrb[104].mxu1 %v2789_v34  ;;  %v2816_v34 = vld [vmem:[#allocation2 + $0x228] sm:$0xff] }
 0x4f4   :  { %4550 = vmatprep.mubr.bf16.mxu1 %v2799_v51  ;;  %v2826_v51 = vld [vmem:[#allocation2 + $0x278] sm:$0xff] }
 0x4f5   :  { %v11634_v20 = vpop.f32.mrb[64].mxu0 }
 0x4f6   :  { %v3936_v8 = vpop.f32.mrb[65].mxu0 }
 0x4f7   :  { %v11636_v14 = vpop.f32.mrb[66].mxu0 }
 0x4f8   :  { %v3939_v19 = vpop.f32.mrb[67].mxu0 }
 0x4fb   :  { %4551 = vmatmul.mubr.bf16.gmra.mrb[108].mxu1 %v2798_v49 }
 0x4fc   :  { %4558 = vmatprep.mubr.bf16.mxu1 %v2808_v60 }
 0x4fd   :  { %v11638_v26 = vpop.f32.mrb[68].mxu0 }
 0x4fe   :  { %v3944_v43 = vpop.f32.mrb[69].mxu0 }
 0x4ff   :  { %v11640_v27 = vpop.f32.mrb[70].mxu0  ;;  %v2825_v43 = vld [vmem:[#allocation2 + $0x270] sm:$0xff] }
 0x500   :  { %v3947_v56 = vpop.f32.mrb[71].mxu0 }
 0x501   :  { %v2835_v56 = vld [vmem:[#allocation2 + $0x2c0] sm:$0xff] }
 0x503   :  { %4559 = vmatmul.mubr.bf16.gmra.mrb[112].mxu1 %v2807_v52 }
 0x504   :  { %4566 = vmatprep.mubr.bf16.mxu1 %v2817_v18 }
 0x505   :  { %v11642_v63 = vpop.f32.mrb[72].mxu0 }
 0x506   :  { %v3952_v62 = vpop.f32.mrb[73].mxu0 }
 0x507   :  { %v11644_v4 = vpop.f32.mrb[74].mxu0 }
 0x508   :  { %v3955_v24 = vpop.f32.mrb[75].mxu0 }
 0x50b   :  { %4567 = vmatmul.mubr.bf16.gmra.mrb[116].mxu1 %v2816_v34  ;;  %v2844_v34 = vld [vmem:[#allocation2 + $0x308] sm:$0xff] }
 0x50c   :  { %4574 = vmatprep.mubr.bf16.mxu1 %v2826_v51 }
 0x50d   :  { %v11646_v8 = vpop.f32.mrb[76].mxu0 }
 0x50e   :  { %v3960_v19 = vpop.f32.mrb[77].mxu0 }
 0x50f   :  { %v11648_v49 = vpop.f32.mrb[78].mxu0 }
 0x510   :  { %v3963_v60 = vpop.f32.mrb[79].mxu0 }
 0x513   :  { %4575 = vmatmul.mubr.bf16.gmra.mrb[120].mxu1 %v2825_v43  ;;  %v2853_v43 = vld [vmem:[#allocation2 + $0x350] sm:$0xff] }
 0x514   :  { %4582 = vmatprep.mubr.bf16.mxu1 %v2835_v56 }
 0x515   :  { %v11650_v52 = vpop.f32.mrb[80].mxu0 }
 0x516   :  { %v3968_v18 = vpop.f32.mrb[81].mxu0 }
 0x517   :  { %v11652_v62 = vpop.f32.mrb[82].mxu0 }
 0x518   :  { %v3971_v24 = vpop.f32.mrb[83].mxu0 }
 0x51b   :  { %4583 = vmatmul.mubr.bf16.gmra.mrb[124].mxu1 %v2834_v36  ;;  %v2862_v36 = vld [vmem:[#allocation2 + $0x398] sm:$0xff] }
 0x51c   :  { %4590 = vmatprep.mubr.bf16.mxu1 %v2844_v34 }
 0x51d   :  { %v11654_v51 = vpop.f32.mrb[84].mxu0 }
 0x51e   :  { %v3976_v19 = vpop.f32.mrb[85].mxu0 }
 0x51f   :  { %v11656_v31 = vpop.f32.mrb[86].mxu0 }
 0x520   :  { %v3979_v60 = vpop.f32.mrb[87].mxu0 }
 0x523   :  { %4591 = vmatmul.mubr.bf16.gmra.mrb[0].mxu1 %v2843_v25  ;;  %v2871_v25 = vld [vmem:[#allocation2 + $0x3e0] sm:$0xff] }
 0x524   :  { %4598 = vmatprep.mubr.bf16.mxu1 %v2853_v43 }
 0x525   :  { %v11658_v56 = vpop.f32.mrb[88].mxu0 }
 0x526   :  { %v3984_v18 = vpop.f32.mrb[89].mxu0 }
 0x527   :  { %v11660_v35 = vpop.f32.mrb[90].mxu0 }
 0x528   :  { %v3987_v24 = vpop.f32.mrb[91].mxu0 }
 0x52b   :  { %4599 = vmatmul.mubr.bf16.gmra.mrb[4].mxu1 %v2852_v3  ;;  %v2880_v3 = vld [vmem:[#allocation2 + $0x428] sm:$0xff] }
 0x52c   :  { %4606 = vmatprep.mubr.bf16.mxu1 %v2862_v36 }
 0x52d   :  { %v11662_v34 = vpop.f32.mrb[92].mxu0 }
 0x52e   :  { %v3992_v19 = vpop.f32.mrb[93].mxu0 }
 0x52f   :  { %v11664_v40 = vpop.f32.mrb[94].mxu0 }
 0x530   :  { %v3995_v60 = vpop.f32.mrb[95].mxu0 }
 0x533   :  { %4607 = vmatmul.mubr.bf16.gmra.mrb[8].mxu1 %v2861_v47  ;;  %v11674_v47 = vld [vmem:[#allocation2 + $0x8] sm:$0xff] }
 0x534   :  { %4614 = vmatprep.mubr.bf16.mxu1 %v2871_v25 }
 0x535   :  { %v11666_v43 = vpop.f32.mrb[96].mxu0 }
 0x536   :  { %v4000_v18 = vpop.f32.mrb[97].mxu0 }
 0x537   :  { %v11668_v48 = vpop.f32.mrb[98].mxu0 }
 0x538   :  { %v4003_v24 = vpop.f32.mrb[99].mxu0 }
 0x53b   :  { %4615 = vmatmul.mubr.bf16.gmra.mrb[12].mxu1 %v2870_v1  ;;  %v2744_v1 = vld [vmem:[#allocation2 + $0x8f8] sm:$0x80] }
 0x53c   :  { %4622 = vmatprep.mubr.bf16.mxu1 %v2880_v3 }
 0x53d   :  { %v11670_v36 = vpop.f32.mrb[100].mxu0 }
 0x53e   :  { %v4008_v19 = vpop.f32.mrb[101].mxu0 }
 0x53f   :  { %v11672_v16 = vpop.f32.mrb[102].mxu0  ;;  %v2745_v19 = vsel %vm10942_vm10, 0, %v2744_v1 }
 0x540   :  { %v4011_v60 = vpop.f32.mrb[103].mxu0  ;;  %2746 = vst [vmem:[#allocation2 + $0x8f8] sm:$0x80] %v2745_v19 }
 0x543   :  { %4623 = vmatmul.mubr.bf16.gmra.mrb[16].mxu1 %v2879_v11  ;;  %v2898_v11 = vld [vmem:[#allocation2 + $0x4b8] sm:$0xff] }
 0x544   :  { %4630 = vmatprep.mubr.bf16.mxu1 %v11674_v47 }
 0x545   :  { %v11677_v25 = vpop.f32.mrb[192].mxu0 }
 0x546   :  { %v11679_v18 = vpop.f32.mrb[193].mxu0 }
 0x547   :  { %v11681_v24 = vpop.f32.mrb[194].mxu0  ;;  %v3034_v29 = vld [vmem:[#allocation2 + $0x8f8] sm:$0xff] }
 0x548   :  { %v11683_v3 = vpop.f32.mrb[195].mxu0  ;;  %7681 = vmatmul.mubr.bf16.gmra.mrb[252].mxu0 %v3034_v29 }
 0x54b   :  { %4631 = vmatmul.mubr.bf16.gmra.mrb[20].mxu1 %v2888_v44  ;;  %v2907_v44 = vld [vmem:[#allocation2 + $0x500] sm:$0xff] }
 0x54c   :  { %4638 = vmatprep.mubr.bf16.mxu1 %v2898_v11 }
 0x54d   :  { %v11687_v60 = vpop.f32.mrb[196].mxu0 }
 0x54e   :  { %v11689_v9 = vpop.f32.mrb[197].mxu0 }
 0x54f   :  { %v11691_v30 = vpop.f32.mrb[198].mxu0 }
 0x550   :  { %v11693_v12 = vpop.f32.mrb[199].mxu0 }
 0x553   :  { %4639 = vmatmul.mubr.bf16.gmra.mrb[24].mxu1 %v2897_v39  ;;  %v2915_v39 = vld [vmem:[#allocation2 + $0x540] sm:$0xff] }
 0x554   :  { %4646 = vmatprep.mubr.bf16.mxu1 %v2907_v44  ;;  %v2925_v44 = vld [vmem:[#allocation2 + $0x590] sm:$0xff] }
 0x555   :  { %v11697_v1 = vpop.f32.mrb[200].mxu0 }
 0x556   :  { %v11699_v19 = vpop.f32.mrb[201].mxu0 }
 0x557   :  { %v11701_v11 = vpop.f32.mrb[202].mxu0 }
 0x558   :  { %v11703_v2 = vpop.f32.mrb[203].mxu0 }
 0x55b   :  { %4647 = vmatmul.mubr.bf16.gmra.mrb[28].mxu1 %v2906_v54 }
 0x55c   :  { %4654 = vmatprep.mubr.bf16.mxu1 %v2916_v21  ;;  %v2924_v21 = vld [vmem:[#allocation2 + $0x588] sm:$0xff] }
 0x55d   :  { %v11705_v5 = vpop.f32.mrb[204].mxu0 }
 0x55e   :  { %v11707_v29 = vpop.f32.mrb[205].mxu0 }
 0x55f   :  { %v11709_v15 = vpop.f32.mrb[206].mxu0 }
 0x560   :  { %v11711_v28 = vpop.f32.mrb[207].mxu0 }
 0x563   :  { %4655 = vmatmul.mubr.bf16.gmra.mrb[32].mxu1 %v2915_v39 }
 0x564   :  { %4662 = vmatprep.mubr.bf16.mxu1 %v2925_v44  ;;  %v2933_v44 = vld [vmem:[#allocation2 + $0x5d0] sm:$0xff] }
 0x565   :  { %v11713_v50 = vpop.f32.mrb[208].mxu0 }
 0x566   :  { %v11715_v6 = vpop.f32.mrb[209].mxu0 }
 0x567   :  { %v11717_v33 = vpop.f32.mrb[210].mxu0 }
 0x568   :  { %v11719_v54 = vpop.f32.mrb[211].mxu0 }
 0x56b   :  { %4663 = vmatmul.mubr.bf16.gmra.mrb[36].mxu1 %v2924_v21 }
 0x56c   :  { %4670 = vmatprep.mubr.bf16.mxu1 %v2934_v7  ;;  %v2942_v7 = vld [vmem:[#allocation2 + $0x618] sm:$0xff] }
 0x56d   :  { %v11721_v45 = vpop.f32.mrb[212].mxu0 }
 0x56e   :  { %v11723_v46 = vpop.f32.mrb[213].mxu0 }
 0x56f   :  { %v11725_v38 = vpop.f32.mrb[214].mxu0 }
 0x570   :  { %v11727_v39 = vpop.f32.mrb[215].mxu0 }
 0x573   :  { %4671 = vmatmul.mubr.bf16.gmra.mrb[40].mxu1 %v2933_v44 }
 0x574   :  { %4678 = vmatprep.mubr.bf16.mxu1 %v2943_v57  ;;  %v2951_v57 = vld [vmem:[#allocation2 + $0x660] sm:$0xff] }
 0x575   :  { %v11729_v0 = vpop.f32.mrb[216].mxu0 }
 0x576   :  { %14425 = vst [vmem:[#allocation58_spill] sm:$0xff] %v11729_v0  ;;  %v11731_v13 = vpop.f32.mrb[217].mxu0 }
 0x577   :  { %v11733_v10 = vpop.f32.mrb[218].mxu0 }
 0x578   :  { %14426 = vst [vmem:[#allocation59_spill] sm:$0xff] %v11733_v10  ;;  %v11735_v21 = vpop.f32.mrb[219].mxu0 }
 0x579   :  { %14427 = vst [vmem:[#allocation60_spill] sm:$0xff] %v11735_v21 }
 0x57b   :  { %4679 = vmatmul.mubr.bf16.gmra.mrb[44].mxu1 %v2942_v7 }
 0x57c   :  { %4686 = vmatprep.mubr.bf16.mxu1 %v2952_v22  ;;  %v2960_v22 = vld [vmem:[#allocation2 + $0x6a8] sm:$0xff] }
 0x57d   :  { %v11737_v37 = vpop.f32.mrb[220].mxu0 }
 0x57e   :  { %14428 = vst [vmem:[#allocation61_spill] sm:$0xff] %v11737_v37  ;;  %v11739_v32 = vpop.f32.mrb[221].mxu0  ;;  %v2970_v37 = vld [vmem:[#allocation2 + $0x6f8] sm:$0xff] }
 0x57f   :  { %14429 = vst [vmem:[#allocation63_spill] sm:$0xff] %v11739_v32  ;;  %v11741_v61 = vpop.f32.mrb[222].mxu0 }
 0x580   :  { %14430 = vst [vmem:[#allocation65_spill] sm:$0xff] %v11741_v61  ;;  %v11743_v44 = vpop.f32.mrb[223].mxu0 }
 0x581   :  { %14431 = vst [vmem:[#allocation36_spill] sm:$0xff] %v11743_v44 }
 0x583   :  { %4687 = vmatmul.mubr.bf16.gmra.mrb[48].mxu1 %v2951_v57 }
 0x584   :  { %4694 = vmatprep.mubr.bf16.mxu1 %v2961_v41  ;;  %v2969_v41 = vld [vmem:[#allocation2 + $0x6f0] sm:$0xff] }
 0x585   :  { %v11745_v0 = vpop.f32.mrb[224].mxu0 }
 0x586   :  { %14432 = vst [vmem:[#allocation66_spill] sm:$0xff] %v11745_v0  ;;  %v11747_v10 = vpop.f32.mrb[225].mxu0  ;;  %v2979_v0 = vld [vmem:[#allocation2 + $0x740] sm:$0xff] }
 0x587   :  { %14433 = vst [vmem:[#allocation67_spill] sm:$0xff] %v11747_v10  ;;  %v11749_v17 = vpop.f32.mrb[226].mxu0 }
 0x588   :  { %14434 = vst [vmem:[#allocation42_spill] sm:$0xff] %v11749_v17  ;;  %v11751_v7 = vpop.f32.mrb[227].mxu0 }
 0x589   :  { %14435 = vst [vmem:[#allocation16_spill] sm:$0xff] %v11751_v7 }
 0x58b   :  { %4695 = vmatmul.mubr.bf16.gmra.mrb[52].mxu1 %v2960_v22 }
 0x58c   :  { %4702 = vmatprep.mubr.bf16.mxu1 %v2970_v37  ;;  %v2978_v37 = vld [vmem:[#allocation2 + $0x738] sm:$0xff] }
 0x58d   :  { %v11753_v32 = vpop.f32.mrb[228].mxu0 }
 0x58e   :  { %14436 = vst [vmem:[#allocation17_spill] sm:$0xff] %v11753_v32  ;;  %v11755_v61 = vpop.f32.mrb[229].mxu0  ;;  %v2988_v32 = vld [vmem:[#allocation2 + $0x788] sm:$0xff] }
 0x58f   :  { %14437 = vst [vmem:[#allocation19_spill] sm:$0xff] %v11755_v61  ;;  %v11757_v44 = vpop.f32.mrb[230].mxu0 }
 0x590   :  { %14438 = vst [vmem:[#allocation21_spill] sm:$0xff] %v11757_v44  ;;  %v11759_v57 = vpop.f32.mrb[231].mxu0 }
 0x591   :  { %14439 = vst [vmem:[#allocation24_spill] sm:$0xff] %v11759_v57 }
 0x593   :  { %4703 = vmatmul.mubr.bf16.gmra.mrb[56].mxu1 %v2969_v41 }
 0x594   :  { %4710 = vmatprep.mubr.bf16.mxu1 %v2979_v0  ;;  %v2987_v0 = vld [vmem:[#allocation2 + $0x780] sm:$0xff] }
 0x595   :  { %v11761_v10 = vpop.f32.mrb[232].mxu0 }
 0x596   :  { %14440 = vst [vmem:[#allocation70_spill] sm:$0xff] %v11761_v10  ;;  %v11763_v17 = vpop.f32.mrb[233].mxu0  ;;  %v2997_v10 = vld [vmem:[#allocation2 + $0x7d0] sm:$0xff] }
 0x597   :  { %14441 = vst [vmem:[#allocation71_spill] sm:$0xff] %v11763_v17  ;;  %v11765_v7 = vpop.f32.mrb[234].mxu0 }
 0x598   :  { %14442 = vst [vmem:[#allocation72_spill] sm:$0xff] %v11765_v7  ;;  %v11767_v22 = vpop.f32.mrb[235].mxu0 }
 0x599   :  { %14443 = vst [vmem:[#allocation73_spill] sm:$0xff] %v11767_v22 }
 0x59b   :  { %4711 = vmatmul.mubr.bf16.gmra.mrb[60].mxu1 %v2978_v37 }
 0x59c   :  { %4718 = vmatprep.mubr.bf16.mxu1 %v2988_v32 }
 0x59d   :  { %v11769_v61 = vpop.f32.mrb[236].mxu0 }
 0x59e   :  { %14444 = vst [vmem:[#allocation74_spill] sm:$0xff] %v11769_v61  ;;  %v11771_v44 = vpop.f32.mrb[237].mxu0 }
 0x59f   :  { %14445 = vst [vmem:[#allocation75_spill] sm:$0xff] %v11771_v44  ;;  %v11773_v57 = vpop.f32.mrb[238].mxu0 }
 0x5a0   :  { %14446 = vst [vmem:[#allocation76_spill] sm:$0xff] %v11773_v57  ;;  %v11775_v41 = vpop.f32.mrb[239].mxu0 }
 0x5a1   :  { %14447 = vst [vmem:[#allocation77_spill] sm:$0xff] %v11775_v41 }
 0x5a3   :  { %4719 = vmatmul.mubr.bf16.gmra.mrb[64].mxu1 %v2987_v0 }
 0x5a4   :  { %4726 = vmatprep.mubr.bf16.mxu1 %v2997_v10  ;;  %v2996_v10 = vld [vmem:[#allocation2 + $0x7c8] sm:$0xff] }
 0x5a5   :  { %v11777_v17 = vpop.f32.mrb[240].mxu0 }
 0x5a6   :  { %14448 = vst [vmem:[#allocation78_spill] sm:$0xff] %v11777_v17  ;;  %v11779_v7 = vpop.f32.mrb[241].mxu0  ;;  %v4512_v22 = vpop.f32.mrb[88].mxu1 }
 0x5a7   :  { %14449 = vst [vmem:[#allocation79_spill] sm:$0xff] %v11779_v7  ;;  %v11781_v37 = vpop.f32.mrb[242].mxu0  ;;  %v7796_v32 = vadd.f32 %v4512_v22, %v11634_v20  ;;  %v4514_v61 = vpop.f32.mrb[89].mxu1  ;;  %v3006_v7 = vld [vmem:[#allocation2 + $0x818] sm:$0xff] }
 0x5a8   :  { %14450 = vst [vmem:[#allocation80_spill] sm:$0xff] %v11781_v37  ;;  %v11784_v21 = vpop.f32.mrb[243].mxu0  ;;  %v4515_v44 = vpop.f32.mrb[90].mxu1 }
 0x5a9   :  { %14451 = vst [vmem:[#allocation81_spill] sm:$0xff] %v11784_v21  ;;  %v11787_v57 = vadd.f32 %v7796_v32, %v11679_v18  ;;  %v7797_v0 = vadd.f32 %v4515_v44, %v11636_v14  ;;  %v4517_v41 = vpop.f32.mrb[91].mxu1 }
 0x5ab   :  { %v11791_v17 = vadd.f32 %v7797_v0, %v11683_v3  ;;  %4727 = vmatmul.mubr.bf16.gmra.mrb[68].mxu1 %v2996_v10  ;;  %v3015_v10 = vld [vmem:[#allocation2 + $0x860] sm:$0xff] }
 0x5ac   :  { %4734 = vmatprep.mubr.bf16.mxu1 %v3006_v7  ;;  %v3005_v7 = vld [vmem:[#allocation2 + $0x810] sm:$0xff] }
 0x5ad   :  { %v11793_v37 = vpop.f32.mrb[244].mxu0 }
 0x5ae   :  { %14452 = vst [vmem:[#allocation82_spill] sm:$0xff] %v11793_v37  ;;  %v11795_v20 = vpop.f32.mrb[245].mxu0  ;;  %v4520_v61 = vpop.f32.mrb[92].mxu1 }
 0x5af   :  { %v11797_v22 = vpop.f32.mrb[246].mxu0  ;;  %v7798_v18 = vadd.f32 %v4520_v61, %v11638_v26  ;;  %v4522_v32 = vpop.f32.mrb[93].mxu1 }
 0x5b0   :  { %14453 = vst [vmem:[#allocation83_spill] sm:$0xff] %v11797_v22  ;;  %v11800_v21 = vpop.f32.mrb[247].mxu0  ;;  %v4523_v14 = vpop.f32.mrb[94].mxu1 }
 0x5b1   :  { %v11803_v44 = vadd.f32 %v7798_v18, %v11677_v25  ;;  %v7799_v3 = vadd.f32 %v4523_v14, %v11640_v27  ;;  %v4525_v41 = vpop.f32.mrb[95].mxu1 }
 0x5b2   :  { %v3014_v41 = vld [vmem:[#allocation2 + $0x858] sm:$0xff] }
 0x5b3   :  { %v11807_v0 = vadd.f32 %v7799_v3, %v11681_v24  ;;  %4735 = vmatmul.mubr.bf16.gmra.mrb[72].mxu1 %v3005_v7 }
 0x5b4   :  { %4742 = vmatprep.mubr.bf16.mxu1 %v3015_v10  ;;  %v3024_v10 = vld [vmem:[#allocation2 + $0x8a8] sm:$0xff] }
 0x5b5   :  { %v11809_v22 = vpop.f32.mrb[248].mxu0 }
 0x5b6   :  { %14454 = vst [vmem:[#allocation84_spill] sm:$0xff] %v11809_v22  ;;  %v11811_v26 = vpop.f32.mrb[249].mxu0  ;;  %v4528_v61 = vpop.f32.mrb[96].mxu1 }
 0x5b7   :  { %v11813_v32 = vpop.f32.mrb[250].mxu0  ;;  %v7800_v25 = vadd.f32 %v4528_v61, %v11642_v63  ;;  %v4530_v18 = vpop.f32.mrb[97].mxu1 }
 0x5b8   :  { %14455 = vst [vmem:[#allocation85_spill] sm:$0xff] %v11813_v32  ;;  %v11816_v37 = vpop.f32.mrb[251].mxu0  ;;  %v4531_v27 = vpop.f32.mrb[98].mxu1 }
 0x5b9   :  { %v11819_v14 = vadd.f32 %v7800_v25, %v11689_v9  ;;  %v7801_v24 = vadd.f32 %v4531_v27, %v11644_v4  ;;  %v4533_v3 = vpop.f32.mrb[99].mxu1  ;;  %v3023_v4 = vld [vmem:[#allocation2 + $0x8a0] sm:$0xff] }
 0x5bb   :  { %v11823_v7 = vadd.f32 %v7801_v24, %v11693_v12  ;;  %4743 = vmatmul.mubr.bf16.gmra.mrb[76].mxu1 %v3014_v41 }
 0x5bc   :  { %4750 = vmatprep.mubr.bf16.mxu1 %v3024_v10 }
 0x5be   :  { %v4536_v32 = vpop.f32.mrb[100].mxu1 }
 0x5bf   :  { %v7802_v63 = vadd.f32 %v4536_v32, %v11646_v8  ;;  %v4538_v61 = vpop.f32.mrb[101].mxu1  ;;  %v3032_v32 = vld [vmem:[#allocation2 + $0x8e8] sm:$0xff] }
 0x5c0   :  { %v4539_v18 = vpop.f32.mrb[102].mxu1 }
 0x5c1   :  { %v11827_v22 = vadd.f32 %v7802_v63, %v11687_v60  ;;  %v7803_v9 = vadd.f32 %v4539_v18, %v11648_v49  ;;  %v4541_v25 = vpop.f32.mrb[103].mxu1 }
 0x5c3   :  { %v11831_v27 = vadd.f32 %v7803_v9, %v11691_v30  ;;  %4751 = vmatmul.mubr.bf16.gmra.mrb[80].mxu1 %v3023_v4  ;;  %v8236_v4 = vld [vmem:[#allocation9] sm:$0xff]  }
 0x5c4   :  { %4758 = vmatprep.mubr.bf16.mxu1 %v11674_v47  ;;  %7684 = vmatprep.subr.bf16.mxu0 %v8236_v4 }
 0x5c5   :  { %7685 = vmatpush3.bf16.msra.mxu0 %v8236_v4 }
 0x5c6   :  { %v4544_v12 = vpop.f32.mrb[104].mxu1 }
 0x5c7   :  { %v7804_v24 = vadd.f32 %v4544_v12, %v11650_v52  ;;  %v4546_v3 = vpop.f32.mrb[105].mxu1 }
 0x5c8   :  { %v4547_v8 = vpop.f32.mrb[106].mxu1 }
 0x5c9   :  { %v11836_v41 = vadd.f32 %v7804_v24, %v11699_v19  ;;  %v7805_v60 = vadd.f32 %v4547_v8, %v11652_v62  ;;  %v4549_v49 = vpop.f32.mrb[107].mxu1 }
 0x5cb   :  { %v11840_v10 = vadd.f32 %v7805_v60, %v11703_v2  ;;  %4759 = vmatmul.mubr.bf16.gmra.mrb[84].mxu1 %v3032_v32 }
 0x5ce   :  { %v4552_v30 = vpop.f32.mrb[108].mxu1 }
 0x5cf   :  { %v7806_v63 = vadd.f32 %v4552_v30, %v11654_v51  ;;  %v4554_v47 = vpop.f32.mrb[109].mxu1 }
 0x5d0   :  { %v4555_v61 = vpop.f32.mrb[110].mxu1 }
 0x5d1   :  { %v11844_v52 = vadd.f32 %v7806_v63, %v11697_v1  ;;  %v7807_v18 = vadd.f32 %v4555_v61, %v11656_v31  ;;  %v4557_v9 = vpop.f32.mrb[111].mxu1 }
 0x5d3   :  { %v11848_v19 = vadd.f32 %v7807_v18, %v11701_v11 }
 0x5d6   :  { %v4560_v62 = vpop.f32.mrb[112].mxu1 }
 0x5d7   :  { %v7808_v25 = vadd.f32 %v4560_v62, %v11658_v56  ;;  %v4562_v2 = vpop.f32.mrb[113].mxu1 }
 0x5d8   :  { %v4563_v12 = vpop.f32.mrb[114].mxu1  ;;  %v5129_v2 = vmul.f32 %v11807_v0, %v11807_v0 }
 0x5d9   :  { %v11852_v24 = vadd.f32 %v7808_v25, %v11707_v29  ;;  %v7809_v51 = vadd.f32 %v4563_v12, %v11660_v35  ;;  %v4565_v3 = vpop.f32.mrb[115].mxu1 }
 0x5db   :  { %v11856_v31 = vadd.f32 %v7809_v51, %v11711_v28  ;;  %v8237_v28 = vld [vmem:[#allocation9 + $0x8] sm:$0xff]  }
 0x5dc   :  { %7686 = vmatprep.subr.bf16.mxu0 %v8237_v28 }
 0x5dd   :  { %7687 = vmatpush3.bf16.msra.mxu0 %v8237_v28 }
 0x5de   :  { %v4568_v1 = vpop.f32.mrb[116].mxu1 }
 0x5df   :  { %v7810_v11 = vadd.f32 %v4568_v1, %v11662_v34  ;;  %v4570_v8 = vpop.f32.mrb[117].mxu1  ;;  %v5127_v34 = vmul.f32 %v11791_v17, %v11791_v17  ;;  %v5130_v1 = vmul.f32 %v11819_v14, %v11819_v14 }
 0x5e0   :  { %v4571_v32 = vpop.f32.mrb[118].mxu1 }
 0x5e1   :  { %v11860_v56 = vadd.f32 %v7810_v11, %v11705_v5  ;;  %v7811_v60 = vadd.f32 %v4571_v32, %v11664_v40  ;;  %v4573_v29 = vpop.f32.mrb[119].mxu1  ;;  %v5126_v40 = vmul.f32 %v11787_v57, %v11787_v57 }
 0x5e3   :  { %v11864_v49 = vadd.f32 %v7811_v60, %v11709_v15  ;;  %v5128_v15 = vmul.f32 %v11803_v44, %v11803_v44  ;;  %v5190_v62 = vadd.f32 %v5127_v34, %v5126_v40 }
 0x5e6   :  { %v4576_v35 = vpop.f32.mrb[120].mxu1 }
 0x5e7   :  { %v7812_v30 = vadd.f32 %v4576_v35, %v11666_v43  ;;  %v4578_v63 = vpop.f32.mrb[121].mxu1  ;;  %v5056_v43 = vadd.f32 %v11791_v17, %v11787_v57  ;;  %v5131_v35 = vmul.f32 %v11823_v7, %v11823_v7 }
 0x5e8   :  { %v4579_v47 = vpop.f32.mrb[122].mxu1 }
 0x5e9   :  { %v11870_v61 = vadd.f32 %v7812_v30, %v11715_v6  ;;  %v7813_v5 = vadd.f32 %v4579_v47, %v11668_v48  ;;  %v4581_v18 = vpop.f32.mrb[123].mxu1  ;;  %v5057_v6 = vadd.f32 %v5056_v43, %v11803_v44  ;;  %v5191_v48 = vadd.f32 %v5190_v62, %v5128_v15  ;;  %v8238_v47 = vld [vmem:[#allocation9 + $0x10] sm:$0xff]  }
 0x5ea   :  { %7688 = vmatprep.subr.bf16.mxu0 %v8238_v47  ;;  %v5133_v62 = vmul.f32 %v11831_v27, %v11831_v27 }
 0x5eb   :  { %v11880_v9 = vadd.f32 %v7813_v5, %v11719_v54  ;;  %v5058_v3 = vadd.f32 %v5057_v6, %v11807_v0  ;;  %v5192_v32 = vadd.f32 %v5191_v48, %v5129_v2  ;;  %7689 = vmatpush3.bf16.msra.mxu0 %v8238_v47  ;;  %v5138_v47 = vmul.f32 %v11852_v24, %v11852_v24 }
 0x5ed   :  { %v5059_v60 = vadd.f32 %v5058_v3, %v11819_v14  ;;  %v5135_v3 = vmul.f32 %v11840_v10, %v11840_v10 }
 0x5ee   :  { %v4584_v25 = vpop.f32.mrb[124].mxu1 }
 0x5ef   :  { %v7814_v4 = vadd.f32 %v4584_v25, %v11670_v36  ;;  %v4586_v12 = vpop.f32.mrb[125].mxu1  ;;  %v5193_v36 = vadd.f32 %v5192_v32, %v5130_v1  ;;  %v5060_v63 = vadd.f32 %v5059_v60, %v11823_v7  ;;  %v5134_v25 = vmul.f32 %v11836_v41, %v11836_v41 }
 0x5f0   :  { %v4587_v51 = vpop.f32.mrb[126].mxu1  ;;  %v5136_v32 = vmul.f32 %v11844_v52, %v11844_v52 }
 0x5f1   :  { %v11890_v54 = vadd.f32 %v7814_v4, %v11713_v50  ;;  %v7815_v11 = vadd.f32 %v4587_v51, %v11672_v16  ;;  %v4589_v8 = vpop.f32.mrb[127].mxu1  ;;  %v5132_v50 = vmul.f32 %v11827_v22, %v11827_v22  ;;  %v5194_v5 = vadd.f32 %v5193_v36, %v5131_v35 }
 0x5f2   :  { %v5061_v18 = vadd.f32 %v5060_v63, %v11827_v22 }
 0x5f3   :  { %v11895_v29 = vadd.f32 %v7815_v11, %v11717_v33  ;;  %v5195_v15 = vadd.f32 %v5194_v5, %v5132_v50  ;;  %v8239_v50 = vld [vmem:[#allocation9 + $0x18] sm:$0xff]  }
 0x5f4   :  { %v5062_v6 = vadd.f32 %v5061_v18, %v11831_v27  ;;  %7690 = vmatprep.subr.bf16.mxu0 %v8239_v50 }
 0x5f5   :  { %7691 = vmatpush3.bf16.msra.mxu0 %v8239_v50 }
 0x5f6   :  { %v4592_v30 = vpop.f32.mrb[0].mxu1  ;;  %v5063_v2 = vadd.f32 %v5062_v6, %v11836_v41 }
 0x5f7   :  { %v7816_v28 = vadd.f32 %v4592_v30, %v11544_v58  ;;  %v4594_v16 = vpop.f32.mrb[1].mxu1 }
 0x5f8   :  { %v4595_v34 = vpop.f32.mrb[2].mxu1  ;;  %v5064_v8 = vadd.f32 %v5063_v2, %v11840_v10 }
 0x5f9   :  { %v11905_v33 = vadd.f32 %v7816_v28, %v11723_v46  ;;  %v7817_v40 = vadd.f32 %v4595_v34, %v11546_v53  ;;  %v4597_v43 = vpop.f32.mrb[3].mxu1  ;;  %v5196_v46 = vadd.f32 %v5195_v15, %v5133_v62  ;;  %v5139_v62 = vmul.f32 %v11856_v31, %v11856_v31 }
 0x5fa   :  { %v5065_v36 = vadd.f32 %v5064_v8, %v11844_v52 }
 0x5fb   :  { %v11911_v58 = vadd.f32 %v7817_v40, %v11727_v39  ;;  %v5197_v51 = vadd.f32 %v5196_v46, %v5134_v25 }
 0x5fc   :  { %v5066_v16 = vadd.f32 %v5065_v36, %v11848_v19 }
 0x5fe   :  { %v4600_v48 = vpop.f32.mrb[4].mxu1  ;;  %v5067_v40 = vadd.f32 %v5066_v16, %v11852_v24 }
 0x5ff   :  { %v7818_v53 = vadd.f32 %v4600_v48, %v11548_v59  ;;  %v4602_v4 = vpop.f32.mrb[5].mxu1  ;;  %v5198_v59 = vadd.f32 %v5197_v51, %v5135_v3  ;;  %v14459_v3 = vld [vmem:[#allocation32_spill] sm:$0xff] }
 0x600   :  { %v4603_v12 = vpop.f32.mrb[6].mxu1  ;;  %v5068_v25 = vadd.f32 %v5067_v40, %v11856_v31  ;;  %v14462_v40 = vld [vmem:[#allocation63_spill] sm:$0xff] }
 0x601   :  { %v11921_v39 = vadd.f32 %v7818_v53, %v11721_v45  ;;  %v7819_v1 = vadd.f32 %v4603_v12, %v11550_v55  ;;  %v4605_v11 = vpop.f32.mrb[7].mxu1  ;;  %v5199_v30 = vadd.f32 %v5198_v59, %v5136_v32  ;;  %v5137_v45 = vmul.f32 %v11848_v19, %v11848_v19  ;;  %v14458_v12 = vld [vmem:[#allocation58_spill] sm:$0xff]  ;;  %v14460_v59 = vld [vmem:[#allocation59_spill] sm:$0xff] }
 0x602   :  { %v5069_v4 = vadd.f32 %v5068_v25, %v11860_v56  ;;  %v5141_v32 = vmul.f32 %v11864_v49, %v11864_v49 }
 0x603   :  { %v11928_v60 = vadd.f32 %v7819_v1, %v11725_v38  ;;  %v5200_v18 = vadd.f32 %v5199_v30, %v5137_v45  ;;  %v5142_v30 = vmul.f32 %v11870_v61, %v11870_v61  ;;  %v8240_v45 = vld [vmem:[#allocation9 + $0x20] sm:$0xff]  }
 0x604   :  { %7692 = vmatprep.subr.bf16.mxu0 %v8240_v45 }
 0x605   :  { %v5201_v15 = vadd.f32 %v5200_v18, %v5138_v47  ;;  %7693 = vmatpush3.bf16.msra.mxu0 %v8240_v45  ;;  %v5143_v18 = vmul.f32 %v11880_v9, %v11880_v9  ;;  %v14469_v45 = vld [vmem:[#allocation40_spill] sm:$0xff] }
 0x606   :  { %v4608_v35 = vpop.f32.mrb[8].mxu1 }
 0x607   :  { %v7820_v63 = vadd.f32 %v4608_v35, %v11552_v42  ;;  %v4610_v55 = vpop.f32.mrb[9].mxu1  ;;  %v14456_v42 = vld [vmem:[#allocation60_spill] sm:$0xff]  ;;  %v5202_v53 = vadd.f32 %v5201_v15, %v5139_v62  ;;  %v5070_v35 = vadd.f32 %v5069_v4, %v11864_v49  ;;  %v14464_v15 = vld [vmem:[#allocation38_spill] sm:$0xff] }
 0x608   :  { %v4611_v28 = vpop.f32.mrb[10].mxu1 }
 0x609   :  { %v11938_v38 = vadd.f32 %v7820_v63, %v11731_v13  ;;  %v7821_v34 = vadd.f32 %v4611_v28, %v11554_v23  ;;  %v4613_v5 = vpop.f32.mrb[11].mxu1  ;;  %v5140_v13 = vmul.f32 %v11860_v56, %v11860_v56  ;;  %v14457_v23 = vld [vmem:[#allocation30_spill] sm:$0xff]  ;;  %v5071_v50 = vadd.f32 %v5070_v35, %v11870_v61  ;;  %v14468_v35 = vld [vmem:[#allocation61_spill] sm:$0xff] }
 0x60a   :  { %v14461_v28 = vld [vmem:[#allocation34_spill] sm:$0xff] }
 0x60b   :  { %v11943_v43 = vadd.f32 %v7821_v34, %v14456_v42  ;;  %v5203_v8 = vadd.f32 %v5202_v53, %v5140_v13  ;;  %v5072_v25 = vadd.f32 %v5071_v50, %v11880_v9  ;;  %v5144_v13 = vmul.f32 %v11890_v54, %v11890_v54 }
 0x60d   :  { %v5204_v55 = vadd.f32 %v5203_v8, %v5141_v32 }
 0x60e   :  { %v4616_v6 = vpop.f32.mrb[12].mxu1 }
 0x60f   :  { %v7822_v48 = vadd.f32 %v4616_v6, %v14457_v23  ;;  %v4618_v46 = vpop.f32.mrb[13].mxu1  ;;  %v5205_v5 = vadd.f32 %v5204_v55, %v5142_v30  ;;  %v14465_v23 = vld [vmem:[#allocation36_spill] sm:$0xff] }
 0x610   :  { %v4619_v2 = vpop.f32.mrb[14].mxu1 }
 0x611   :  { %v11953_v51 = vadd.f32 %v7822_v48, %v14458_v12  ;;  %v7823_v1 = vadd.f32 %v4619_v2, %v14459_v3  ;;  %v4621_v11 = vpop.f32.mrb[15].mxu1  ;;  %v5206_v46 = vadd.f32 %v5205_v5, %v5143_v18  ;;  %v5073_v2 = vadd.f32 %v5072_v25, %v11890_v54  ;;  %v14467_v3 = vld [vmem:[#allocation39_spill] sm:$0xff] }
 0x612   :  { %v5145_v12 = vmul.f32 %v11895_v29, %v11895_v29  ;;  %v5147_v18 = vmul.f32 %v11911_v58, %v11911_v58  ;;  %v5148_v25 = vmul.f32 %v11921_v39, %v11921_v39 }
 0x613   :  { %v11959_v36 = vadd.f32 %v7823_v1, %v14460_v59  ;;  %v5207_v4 = vadd.f32 %v5206_v46, %v5144_v13  ;;  %v5074_v32 = vadd.f32 %v5073_v2, %v11895_v29  ;;  %v5146_v59 = vmul.f32 %v11905_v33, %v11905_v33  ;;  %v14472_v13 = vld [vmem:[#allocation18_spill] sm:$0xff] }
 0x615   :  { %v5208_v50 = vadd.f32 %v5207_v4, %v5145_v12 }
 0x616   :  { %v4624_v63 = vpop.f32.mrb[16].mxu1 }
 0x617   :  { %v7824_v16 = vadd.f32 %v4624_v63, %v14461_v28  ;;  %v4626_v47 = vpop.f32.mrb[17].mxu1  ;;  %v5075_v28 = vadd.f32 %v5074_v32, %v11905_v33  ;;  %v5209_v5 = vadd.f32 %v5208_v50, %v5146_v59  ;;  %v5150_v50 = vmul.f32 %v11938_v38, %v11938_v38 }
 0x618   :  { %v4627_v34 = vpop.f32.mrb[18].mxu1 }
 0x619   :  { %v11969_v42 = vadd.f32 %v7824_v16, %v14462_v40  ;;  %v7825_v62 = vadd.f32 %v4627_v34, %v14464_v15  ;;  %v4629_v6 = vpop.f32.mrb[19].mxu1  ;;  %v14470_v16 = vld [vmem:[#allocation65_spill] sm:$0xff]  ;;  %v5210_v4 = vadd.f32 %v5209_v5, %v5147_v18  ;;  %v14477_v18 = vld [vmem:[#allocation23_spill] sm:$0xff] }
 0x61a   :  { %v5076_v6 = vadd.f32 %v5075_v28, %v11911_v58 }
 0x61b   :  { %14463 = vst [vmem:[#allocation60_spill] sm:$0xff] %v11969_v42  ;;  %v11976_v48 = vadd.f32 %v7825_v62, %v14465_v23  ;;  %v11993_v34 = vpop.f32.mrb[252].mxu0  ;;  %v5211_v59 = vadd.f32 %v5210_v4, %v5148_v25  ;;  %v14480_v4 = vld [vmem:[#allocation25_spill] sm:$0xff] }
 0x61c   :  { %v11997_v40 = vpop.f32.mrb[253].mxu0  ;;  %v5077_v12 = vadd.f32 %v5076_v6, %v11921_v39 }
 0x61d   :  { %14466 = vst [vmem:[#allocation30_spill] sm:$0xff] %v11976_v48  ;;  %v11999_v62 = vpop.f32.mrb[254].mxu0 }
 0x61e   :  { %v4632_v53 = vpop.f32.mrb[20].mxu1  ;;  %v12005_v2 = vpop.f32.mrb[255].mxu0 }
 0x61f   :  { %v7826_v1 = vadd.f32 %v4632_v53, %v14467_v3  ;;  %v4634_v11 = vpop.f32.mrb[21].mxu1  ;;  %v14473_v3 = vld [vmem:[#allocation67_spill] sm:$0xff] }
 0x620   :  { %v4635_v8 = vpop.f32.mrb[22].mxu1  ;;  %v14474_v11 = vld [vmem:[#allocation20_spill] sm:$0xff] }
 0x621   :  { %v11986_v30 = vadd.f32 %v7826_v1, %v14468_v35  ;;  %v7827_v63 = vadd.f32 %v4635_v8, %v14469_v45  ;;  %v4637_v55 = vpop.f32.mrb[23].mxu1  ;;  %v5149_v35 = vmul.f32 %v11928_v60, %v11928_v60  ;;  %v14475_v45 = vld [vmem:[#allocation16_spill] sm:$0xff] }
 0x622   :  { %v5078_v55 = vadd.f32 %v5077_v12, %v11928_v60 }
 0x623   :  { %v11991_v47 = vadd.f32 %v7827_v63, %v14470_v16  ;;  %v5212_v16 = vadd.f32 %v5211_v59, %v5149_v35 }
 0x624   :  { %v5079_v5 = vadd.f32 %v5078_v55, %v11938_v38 }
 0x625   :  { %14471 = vst [vmem:[#allocation58_spill] sm:$0xff] %v11991_v47  ;;  %v5213_v25 = vadd.f32 %v5212_v16, %v5150_v50  ;;  %v14483_v16 = vld [vmem:[#allocation27_spill] sm:$0xff] }
 0x626   :  { %v4640_v15 = vpop.f32.mrb[24].mxu1 }
 0x627   :  { %v7828_v23 = vadd.f32 %v4640_v15, %v14472_v13  ;;  %v4642_v46 = vpop.f32.mrb[25].mxu1 }
 0x628   :  { %v4643_v53 = vpop.f32.mrb[26].mxu1  ;;  %v14478_v46 = vld [vmem:[#allocation66_spill] sm:$0xff] }
 0x629   :  { %v12009_v1 = vadd.f32 %v7828_v23, %v14473_v3  ;;  %v7829_v8 = vadd.f32 %v4643_v53, %v14474_v11  ;;  %v4645_v32 = vpop.f32.mrb[27].mxu1  ;;  %v5151_v23 = vmul.f32 %v11943_v43, %v11943_v43  ;;  %v5080_v11 = vadd.f32 %v5079_v5, %v11943_v43 }
 0x62a   :  { %v14481_v32 = vld [vmem:[#allocation42_spill] sm:$0xff] }
 0x62b   :  { %v12015_v63 = vadd.f32 %v7829_v8, %v14475_v45  ;;  %v5152_v8 = vmul.f32 %v11953_v51, %v11953_v51  ;;  %v5214_v35 = vadd.f32 %v5213_v25, %v5151_v23  ;;  %v5081_v45 = vadd.f32 %v5080_v11, %v11953_v51  ;;  %v14486_v25 = vld [vmem:[#allocation37_spill] sm:$0xff] }
 0x62d   :  { %14476 = vst [vmem:[#allocation32_spill] sm:$0xff] %v12015_v63  ;;  %v5215_v50 = vadd.f32 %v5214_v35, %v5152_v8  ;;  %v5082_v5 = vadd.f32 %v5081_v45, %v11959_v36  ;;  %v14487_v8 = vld [vmem:[#allocation24_spill] sm:$0xff] }
 0x62e   :  { %v4648_v28 = vpop.f32.mrb[28].mxu1 }
 0x62f   :  { %v7830_v15 = vadd.f32 %v4648_v28, %v14477_v18  ;;  %v4650_v6 = vpop.f32.mrb[29].mxu1  ;;  %v5153_v28 = vmul.f32 %v11959_v36, %v11959_v36  ;;  %v5083_v11 = vadd.f32 %v5082_v5, %v11969_v42  ;;  %v14490_v5 = vld [vmem:[#allocation17_spill] sm:$0xff] }
 0x630   :  { %v4651_v13 = vpop.f32.mrb[30].mxu1 }
 0x631   :  { %v12025_v53 = vadd.f32 %v7830_v15, %v14478_v46  ;;  %v7831_v12 = vadd.f32 %v4651_v13, %v14480_v4  ;;  %v4653_v3 = vpop.f32.mrb[31].mxu1  ;;  %v5154_v13 = vmul.f32 %v11969_v42, %v11969_v42  ;;  %v14484_v46 = vld [vmem:[#allocation19_spill] sm:$0xff] }
 0x632   :  { %v5216_v3 = vadd.f32 %v5215_v50, %v5153_v28 }
 0x633   :  { %14479 = vst [vmem:[#allocation59_spill] sm:$0xff] %v12025_v53  ;;  %v12032_v59 = vadd.f32 %v7831_v12, %v14481_v32 }
 0x634   :  { %v5217_v35 = vadd.f32 %v5216_v3, %v5154_v13  ;;  %v14491_v13 = vld [vmem:[#allocation26_spill] sm:$0xff] }
 0x635   :  { %14482 = vst [vmem:[#allocation34_spill] sm:$0xff] %v12032_v59 }
 0x636   :  { %v4656_v55 = vpop.f32.mrb[32].mxu1 }
 0x637   :  { %v7832_v18 = vadd.f32 %v4656_v55, %v14483_v16  ;;  %v4658_v15 = vpop.f32.mrb[33].mxu1  ;;  %v5155_v55 = vmul.f32 %v11976_v48, %v11976_v48  ;;  %v5084_v16 = vadd.f32 %v5083_v11, %v11976_v48  ;;  %v5157_v11 = vmul.f32 %v11991_v47, %v11991_v47  ;;  %v14492_v48 = vld [vmem:[#allocation21_spill] sm:$0xff] }
 0x638   :  { %v4659_v6 = vpop.f32.mrb[34].mxu1  ;;  %v14489_v15 = vld [vmem:[#allocation29_spill] sm:$0xff] }
 0x639   :  { %v12042_v4 = vadd.f32 %v7832_v18, %v14484_v46  ;;  %v7833_v23 = vadd.f32 %v4659_v6, %v14486_v25  ;;  %v4661_v12 = vpop.f32.mrb[35].mxu1  ;;  %v5156_v18 = vmul.f32 %v11986_v30, %v11986_v30  ;;  %v5218_v50 = vadd.f32 %v5217_v35, %v5155_v55 }
 0x63a   :  { %v5085_v28 = vadd.f32 %v5084_v16, %v11986_v30  ;;  %v5158_v35 = vmul.f32 %v12009_v1, %v12009_v1 }
 0x63b   :  { %14485 = vst [vmem:[#allocation63_spill] sm:$0xff] %v12042_v4  ;;  %v12047_v32 = vadd.f32 %v7833_v23, %v14487_v8  ;;  %v5219_v8 = vadd.f32 %v5218_v50, %v5156_v18  ;;  %v5159_v50 = vmul.f32 %v12015_v63, %v12015_v63 }
 0x63d   :  { %14488 = vst [vmem:[#allocation38_spill] sm:$0xff] %v12047_v32  ;;  %v5220_v16 = vadd.f32 %v5219_v8, %v5157_v11  ;;  %v5160_v8 = vmul.f32 %v12025_v53, %v12025_v53  ;;  %v14498_v11 = vld [vmem:[#allocation73_spill] sm:$0xff] }
 0x63e   :  { %v4664_v45 = vpop.f32.mrb[36].mxu1 }
 0x63f   :  { %v7834_v46 = vadd.f32 %v4664_v45, %v14489_v15  ;;  %v4666_v6 = vpop.f32.mrb[37].mxu1  ;;  %v5086_v45 = vadd.f32 %v5085_v28, %v11991_v47  ;;  %v5221_v18 = vadd.f32 %v5220_v16, %v5158_v35 }
 0x640   :  { %v4667_v25 = vpop.f32.mrb[38].mxu1 }
 0x641   :  { %v12057_v23 = vadd.f32 %v7834_v46, %v14490_v5  ;;  %v7835_v12 = vadd.f32 %v4667_v25, %v14491_v13  ;;  %v4669_v3 = vpop.f32.mrb[39].mxu1  ;;  %v5087_v15 = vadd.f32 %v5086_v45, %v12009_v1  ;;  %v14494_v46 = vld [vmem:[#allocation28_spill] sm:$0xff]  ;;  %v14495_v13 = vld [vmem:[#allocation71_spill] sm:$0xff] }
 0x643   :  { %v12063_v42 = vadd.f32 %v7835_v12, %v14492_v48  ;;  %v14497_v12 = vld [vmem:[#allocation55_spill] sm:$0xff]  ;;  %v5088_v47 = vadd.f32 %v5087_v15, %v12015_v63  ;;  %v14501_v63 = vld [vmem:[#allocation70_spill] sm:$0xff] }
 0x645   :  { %14493 = vst [vmem:[#allocation36_spill] sm:$0xff] %v12063_v42  ;;  %v5089_v35 = vadd.f32 %v5088_v47, %v12025_v53 }
 0x646   :  { %v4672_v55 = vpop.f32.mrb[40].mxu1 }
 0x647   :  { %v7836_v6 = vadd.f32 %v4672_v55, %v14494_v46  ;;  %v4674_v25 = vpop.f32.mrb[41].mxu1  ;;  %v5222_v55 = vadd.f32 %v5221_v18, %v5159_v50  ;;  %v5090_v15 = vadd.f32 %v5089_v35, %v12032_v59  ;;  %v14503_v18 = vld [vmem:[#allocation64_spill] sm:$0xff] }
 0x648   :  { %v4675_v5 = vpop.f32.mrb[42].mxu1  ;;  %v14500_v25 = vld [vmem:[#allocation62_spill] sm:$0xff] }
 0x649   :  { %v12073_v48 = vadd.f32 %v7836_v6, %v14495_v13  ;;  %v7837_v28 = vadd.f32 %v4675_v5, %v14497_v12  ;;  %v4677_v3 = vpop.f32.mrb[43].mxu1  ;;  %v5223_v46 = vadd.f32 %v5222_v55, %v5160_v8  ;;  %v5161_v6 = vmul.f32 %v12032_v59, %v12032_v59  ;;  %v14504_v55 = vld [vmem:[#allocation72_spill] sm:$0xff] }
 0x64a   :  { %v5162_v3 = vmul.f32 %v12042_v4, %v12042_v4  ;;  %v5091_v8 = vadd.f32 %v5090_v15, %v12042_v4  ;;  %v14507_v15 = vld [vmem:[#allocation75_spill] sm:$0xff] }
 0x64b   :  { %14496 = vst [vmem:[#allocation39_spill] sm:$0xff] %v12073_v48  ;;  %v12080_v45 = vadd.f32 %v7837_v28, %v14498_v11  ;;  %v5224_v11 = vadd.f32 %v5223_v46, %v5161_v6 }
 0x64d   :  { %14499 = vst [vmem:[#allocation61_spill] sm:$0xff] %v12080_v45 }
 0x64e   :  { %v4680_v16 = vpop.f32.mrb[44].mxu1 }
 0x64f   :  { %v7838_v13 = vadd.f32 %v4680_v16, %v14500_v25  ;;  %v4682_v5 = vpop.f32.mrb[45].mxu1  ;;  %v5225_v16 = vadd.f32 %v5224_v11, %v5162_v3  ;;  %v5163_v25 = vmul.f32 %v12047_v32, %v12047_v32  ;;  %v14509_v3 = vld [vmem:[#allocation41_spill] sm:$0xff] }
 0x650   :  { %v4683_v12 = vpop.f32.mrb[46].mxu1  ;;  %v5092_v5 = vadd.f32 %v5091_v8, %v12047_v32  ;;  %v5165_v8 = vmul.f32 %v12063_v42, %v12063_v42  ;;  %v14510_v32 = vld [vmem:[#allocation77_spill] sm:$0xff] }
 0x651   :  { %v12090_v28 = vadd.f32 %v7838_v13, %v14501_v63  ;;  %v7839_v50 = vadd.f32 %v4683_v12, %v14503_v18  ;;  %v4685_v47 = vpop.f32.mrb[47].mxu1  ;;  %v5164_v63 = vmul.f32 %v12057_v23, %v12057_v23  ;;  %v14506_v13 = vld [vmem:[#allocation68_spill] sm:$0xff]  ;;  %v5226_v46 = vadd.f32 %v5225_v16, %v5163_v25 }
 0x652   :  { %v5093_v6 = vadd.f32 %v5092_v5, %v12057_v23  ;;  %v5166_v16 = vmul.f32 %v12073_v48, %v12073_v48 }
 0x653   :  { %14502 = vst [vmem:[#allocation40_spill] sm:$0xff] %v12090_v28  ;;  %v12095_v53 = vadd.f32 %v7839_v50, %v14504_v55  ;;  %v5227_v55 = vadd.f32 %v5226_v46, %v5164_v63  ;;  %v5167_v46 = vmul.f32 %v12080_v45, %v12080_v45 }
 0x655   :  { %14505 = vst [vmem:[#allocation65_spill] sm:$0xff] %v12095_v53  ;;  %v5228_v5 = vadd.f32 %v5227_v55, %v5165_v8  ;;  %v5168_v55 = vmul.f32 %v12090_v28, %v12090_v28  ;;  %v14515_v8 = vld [vmem:[#allocation76_spill] sm:$0xff] }
 0x656   :  { %v4688_v35 = vpop.f32.mrb[48].mxu1 }
 0x657   :  { %v7840_v59 = vadd.f32 %v4688_v35, %v14506_v13  ;;  %v4690_v12 = vpop.f32.mrb[49].mxu1  ;;  %v5094_v35 = vadd.f32 %v5093_v6, %v12063_v42  ;;  %v14512_v13 = vld [vmem:[#allocation69_spill] sm:$0xff]  ;;  %v5229_v63 = vadd.f32 %v5228_v5, %v5166_v16 }
 0x658   :  { %v4691_v18 = vpop.f32.mrb[50].mxu1 }
 0x659   :  { %v12105_v50 = vadd.f32 %v7840_v59, %v14507_v15  ;;  %v7841_v47 = vadd.f32 %v4691_v18, %v14509_v3  ;;  %v4693_v11 = vpop.f32.mrb[51].mxu1  ;;  %v5095_v59 = vadd.f32 %v5094_v35, %v12073_v48  ;;  %v14513_v3 = vld [vmem:[#allocation74_spill] sm:$0xff] }
 0x65b   :  { %14508 = vst [vmem:[#allocation18_spill] sm:$0xff] %v12105_v50  ;;  %v12111_v4 = vadd.f32 %v7841_v47, %v14510_v32  ;;  %v14514_v47 = vld [vmem:[#allocation31_spill] sm:$0xff]  ;;  %v5096_v42 = vadd.f32 %v5095_v59, %v12080_v45 }
 0x65c   :  { %v14517_v45 = vld [vmem:[#allocation79_spill] sm:$0xff] }
 0x65d   :  { %14511 = vst [vmem:[#allocation67_spill] sm:$0xff] %v12111_v4  ;;  %v5097_v16 = vadd.f32 %v5096_v42, %v12090_v28 }
 0x65e   :  { %v4696_v25 = vpop.f32.mrb[52].mxu1 }
 0x65f   :  { %v7842_v12 = vadd.f32 %v4696_v25, %v14512_v13  ;;  %v4698_v18 = vpop.f32.mrb[53].mxu1  ;;  %v5230_v25 = vadd.f32 %v5229_v63, %v5167_v46  ;;  %v5098_v59 = vadd.f32 %v5097_v16, %v12095_v53  ;;  %v14518_v63 = vld [vmem:[#allocation43_spill] sm:$0xff] }
 0x660   :  { %v4699_v15 = vpop.f32.mrb[54].mxu1  ;;  %v14516_v18 = vld [vmem:[#allocation33_spill] sm:$0xff] }
 0x661   :  { %v12121_v32 = vadd.f32 %v7842_v12, %v14513_v3  ;;  %v7843_v6 = vadd.f32 %v4699_v15, %v14514_v47  ;;  %v4701_v11 = vpop.f32.mrb[55].mxu1  ;;  %v5231_v13 = vadd.f32 %v5230_v25, %v5168_v55  ;;  %v5169_v12 = vmul.f32 %v12095_v53, %v12095_v53  ;;  %v14519_v25 = vld [vmem:[#allocation81_spill] sm:$0xff]  ;;  %v8242_v53 = vld [vmem:[#allocation9 + $0x30] sm:$0xff]  }
 0x662   :  { %v5170_v11 = vmul.f32 %v12105_v50, %v12105_v50  ;;  %v5099_v55 = vadd.f32 %v5098_v59, %v12105_v50 }
 0x663   :  { %v12128_v35 = vadd.f32 %v7843_v6, %v14515_v8  ;;  %v5232_v8 = vadd.f32 %v5231_v13, %v5169_v12 }
 0x664   :  { %v5100_v48 = vadd.f32 %v5099_v55, %v12111_v4  ;;  %v8243_v55 = vld [vmem:[#allocation9 + $0x38] sm:$0xff]  }
 0x665   :  { %v5173_v50 = vmul.f32 %v12128_v35, %v12128_v35 }
 0x666   :  { %v4704_v5 = vpop.f32.mrb[56].mxu1 }
 0x667   :  { %v7844_v3 = vadd.f32 %v4704_v5, %v14516_v18  ;;  %v4706_v15 = vpop.f32.mrb[57].mxu1  ;;  %v5233_v5 = vadd.f32 %v5232_v8, %v5170_v11  ;;  %v5171_v18 = vmul.f32 %v12111_v4, %v12111_v4  ;;  %v14521_v11 = vld [vmem:[#allocation78_spill] sm:$0xff] }
 0x668   :  { %v4707_v47 = vpop.f32.mrb[58].mxu1  ;;  %v8241_v15 = vld [vmem:[#allocation9 + $0x28] sm:$0xff]  }
 0x669   :  { %v12138_v6 = vadd.f32 %v7844_v3, %v14517_v45  ;;  %v7845_v46 = vadd.f32 %v4707_v47, %v14518_v63  ;;  %v4709_v42 = vpop.f32.mrb[59].mxu1  ;;  %v5172_v45 = vmul.f32 %v12121_v32, %v12121_v32  ;;  %v14520_v3 = vld [vmem:[#allocation44_spill] sm:$0xff]  ;;  %7694 = vmatprep.subr.bf16.mxu0 %v8241_v15  ;;  %v5234_v59 = vadd.f32 %v5233_v5, %v5171_v18 }
 0x66a   :  { %v5101_v63 = vadd.f32 %v5100_v48, %v12121_v32  ;;  %v14522_v42 = vld [vmem:[#allocation45_spill] sm:$0xff]  ;;  %7695 = vmatpush3.bf16.msra.mxu0 %v8241_v15 }
 0x66b   :  { %v12143_v28 = vadd.f32 %v7845_v46, %v14519_v25  ;;  %7696 = vmatprep.subr.bf16.mxu0 %v8242_v53  ;;  %v5235_v4 = vadd.f32 %v5234_v59, %v5172_v45  ;;  %v5174_v48 = vmul.f32 %v12138_v6, %v12138_v6 }
 0x66c   :  { %v5102_v5 = vadd.f32 %v5101_v63, %v12128_v35  ;;  %v14526_v63 = vld [vmem:[#allocation47_spill] sm:$0xff] }
 0x66e   :  { %v4712_v16 = vpop.f32.mrb[60].mxu1  ;;  %7697 = vmatpush3.bf16.msra.mxu0 %v8242_v53  ;;  %v5103_v15 = vadd.f32 %v5102_v5, %v12138_v6 }
 0x66f   :  { %v7846_v47 = vadd.f32 %v4712_v16, %v14520_v3  ;;  %v4714_v13 = vpop.f32.mrb[61].mxu1  ;;  %v14523_v16 = vld [vmem:[#allocation80_spill] sm:$0xff]  ;;  %7698 = vmatprep.subr.bf16.mxu0 %v8243_v55 }
 0x670   :  { %v4715_v12 = vpop.f32.mrb[62].mxu1  ;;  %v14525_v13 = vld [vmem:[#allocation46_spill] sm:$0xff]  ;;  %v5104_v53 = vadd.f32 %v5103_v15, %v12143_v28 }
 0x671   :  { %v12153_v46 = vadd.f32 %v7846_v47, %v14521_v11  ;;  %v7847_v8 = vadd.f32 %v4715_v12, %v14522_v42  ;;  %v4717_v25 = vpop.f32.mrb[63].mxu1  ;;  %v5236_v47 = vadd.f32 %v5235_v4, %v5173_v50  ;;  %v5175_v42 = vmul.f32 %v12143_v28, %v12143_v28 }
 0x672   :  { %7699 = vmatpush3.bf16.msra.mxu0 %v8243_v55 }
 0x673   :  { %v12159_v3 = vadd.f32 %v7847_v8, %v14523_v16  ;;  %v5237_v11 = vadd.f32 %v5236_v47, %v5174_v48  ;;  %v5176_v4 = vmul.f32 %v12153_v46, %v12153_v46  ;;  %v5105_v48 = vadd.f32 %v5104_v53, %v12153_v46 }
 0x675   :  { %14524 = vst [vmem:[#allocation20_spill] sm:$0xff] %v12159_v3  ;;  %v5238_v5 = vadd.f32 %v5237_v11, %v5175_v42  ;;  %v5106_v15 = vadd.f32 %v5105_v48, %v12159_v3  ;;  %v14530_v11 = vld [vmem:[#allocation49_spill] sm:$0xff] }
 0x676   :  { %v4720_v18 = vpop.f32.mrb[64].mxu1 }
 0x677   :  { %v7848_v12 = vadd.f32 %v4720_v18, %v14525_v13  ;;  %v4722_v45 = vpop.f32.mrb[65].mxu1  ;;  %v5239_v47 = vadd.f32 %v5238_v5, %v5176_v4  ;;  %v14527_v13 = vld [vmem:[#allocation48_spill] sm:$0xff]  ;;  %v14531_v4 = vld [vmem:[#allocation83_spill] sm:$0xff] }
 0x678   :  { %v4723_v59 = vpop.f32.mrb[66].mxu1 }
 0x679   :  { %v12169_v8 = vadd.f32 %v7848_v12, %v11795_v20  ;;  %v7849_v25 = vadd.f32 %v4723_v59, %v14526_v63  ;;  %v4725_v16 = vpop.f32.mrb[67].mxu1  ;;  %v5177_v20 = vmul.f32 %v12159_v3, %v12159_v3  ;;  %v14528_v63 = vld [vmem:[#allocation82_spill] sm:$0xff] }
 0x67b   :  { %v12176_v50 = vadd.f32 %v7849_v25, %v11800_v21  ;;  %v5178_v59 = vmul.f32 %v12169_v8, %v12169_v8  ;;  %v5240_v16 = vadd.f32 %v5239_v47, %v5177_v20  ;;  %v5107_v53 = vadd.f32 %v5106_v15, %v12169_v8 }
 0x67e   :  { %v4728_v18 = vpop.f32.mrb[68].mxu1 }
 0x67f   :  { %v7850_v12 = vadd.f32 %v4728_v18, %v14527_v13  ;;  %v4730_v45 = vpop.f32.mrb[69].mxu1  ;;  %v5241_v18 = vadd.f32 %v5240_v16, %v5178_v59  ;;  %v5179_v13 = vmul.f32 %v12176_v50, %v12176_v50  ;;  %v14535_v59 = vld [vmem:[#allocation51_spill] sm:$0xff] }
 0x680   :  { %v4731_v55 = vpop.f32.mrb[70].mxu1  ;;  %v5108_v45 = vadd.f32 %v5107_v53, %v12176_v50 }
 0x681   :  { %v12186_v21 = vadd.f32 %v7850_v12, %v14528_v63  ;;  %v7851_v42 = vadd.f32 %v4731_v55, %v14530_v11  ;;  %v4733_v25 = vpop.f32.mrb[71].mxu1  ;;  %v14533_v63 = vld [vmem:[#allocation50_spill] sm:$0xff]  ;;  %v5242_v47 = vadd.f32 %v5241_v18, %v5179_v13 }
 0x683   :  { %14529 = vst [vmem:[#allocation16_spill] sm:$0xff] %v12186_v21  ;;  %v12191_v5 = vadd.f32 %v7851_v42, %v14531_v4  ;;  %v5180_v12 = vmul.f32 %v12186_v21, %v12186_v21  ;;  %v5109_v20 = vadd.f32 %v5108_v45, %v12186_v21 }
 0x685   :  { %14532 = vst [vmem:[#allocation23_spill] sm:$0xff] %v12191_v5  ;;  %v5243_v16 = vadd.f32 %v5242_v47, %v5180_v12  ;;  %v5181_v53 = vmul.f32 %v12191_v5, %v12191_v5 }
 0x686   :  { %v4736_v48 = vpop.f32.mrb[72].mxu1 }
 0x687   :  { %v7852_v3 = vadd.f32 %v4736_v48, %v14533_v63  ;;  %v4738_v55 = vpop.f32.mrb[73].mxu1  ;;  %v5110_v48 = vadd.f32 %v5109_v20, %v12191_v5  ;;  %v5244_v45 = vadd.f32 %v5243_v16, %v5181_v53  ;;  %v14541_v53 = vld [vmem:[#allocation85_spill] sm:$0xff] }
 0x688   :  { %v4739_v11 = vpop.f32.mrb[74].mxu1 }
 0x689   :  { %v12201_v15 = vadd.f32 %v7852_v3, %v11811_v26  ;;  %v7853_v42 = vadd.f32 %v4739_v11, %v14535_v59  ;;  %v4741_v25 = vpop.f32.mrb[75].mxu1  ;;  %v14537_v3 = vld [vmem:[#allocation52_spill] sm:$0xff] }
 0x68a   :  { %v14538_v59 = vld [vmem:[#allocation84_spill] sm:$0xff] }
 0x68b   :  { %14534 = vst [vmem:[#allocation66_spill] sm:$0xff] %v12201_v15  ;;  %v12207_v4 = vadd.f32 %v7853_v42, %v11816_v37  ;;  %v5182_v18 = vmul.f32 %v12201_v15, %v12201_v15  ;;  %v5111_v26 = vadd.f32 %v5110_v48, %v12201_v15  ;;  %v14540_v42 = vld [vmem:[#allocation53_spill] sm:$0xff] }
 0x68d   :  { %14536 = vst [vmem:[#allocation25_spill] sm:$0xff] %v12207_v4  ;;  %v5245_v12 = vadd.f32 %v5244_v45, %v5182_v18  ;;  %v5183_v47 = vmul.f32 %v12207_v4, %v12207_v4  ;;  %v5112_v5 = vadd.f32 %v5111_v26, %v12207_v4 }
 0x68e   :  { %v4744_v13 = vpop.f32.mrb[76].mxu1 }
 0x68f   :  { %v7854_v63 = vadd.f32 %v4744_v13, %v14537_v3  ;;  %v4746_v55 = vpop.f32.mrb[77].mxu1  ;;  %v5246_v13 = vadd.f32 %v5245_v12, %v5183_v47 }
 0x690   :  { %v4747_v11 = vpop.f32.mrb[78].mxu1  ;;  %v14543_v55 = vld [vmem:[#allocation54_spill] sm:$0xff] }
 0x691   :  { %v12217_v37 = vadd.f32 %v7854_v63, %v14538_v59  ;;  %v7855_v20 = vadd.f32 %v4747_v11, %v14540_v42  ;;  %v4749_v25 = vpop.f32.mrb[79].mxu1 }
 0x692   :  { %v14544_v25 = vld [vmem:[#allocation22_spill] sm:$0xff] }
 0x693   :  { %14539 = vst [vmem:[#allocation42_spill] sm:$0xff] %v12217_v37  ;;  %v5184_v16 = vmul.f32 %v12217_v37, %v12217_v37  ;;  %v12224_v48 = vadd.f32 %v7855_v20, %v14541_v53  ;;  %v5113_v18 = vadd.f32 %v5112_v5, %v12217_v37 }
 0x695   :  { %14542 = vst [vmem:[#allocation27_spill] sm:$0xff] %v12224_v48  ;;  %v5247_v3 = vadd.f32 %v5246_v13, %v5184_v16  ;;  %v5185_v63 = vmul.f32 %v12224_v48, %v12224_v48  ;;  %v5114_v20 = vadd.f32 %v5113_v18, %v12224_v48 }
 0x696   :  { %v4752_v45 = vpop.f32.mrb[80].mxu1 }
 0x697   :  { %v7856_v59 = vadd.f32 %v4752_v45, %v14543_v55  ;;  %v4754_v11 = vpop.f32.mrb[81].mxu1  ;;  %v5248_v47 = vadd.f32 %v5247_v3, %v5185_v63 }
 0x698   :  { %v4755_v42 = vpop.f32.mrb[82].mxu1  ;;  %v14547_v11 = vld [vmem:[#allocation56_spill] sm:$0xff] }
 0x699   :  { %v7857_v26 = vadd.f32 %v4755_v42, %v14544_v25  ;;  %v12232_v4 = vadd.f32 %v7856_v59, %v11997_v40  ;;  %v4757_v53 = vpop.f32.mrb[83].mxu1 }
 0x69a   :  { %v14548_v53 = vld [vmem:[#allocation57_spill] sm:$0xff] }
 0x69b   :  { %14545 = vst [vmem:[#allocation19_spill] sm:$0xff] %v12232_v4  ;;  %v5115_v12 = vadd.f32 %v5114_v20, %v12232_v4  ;;  %v5186_v5 = vmul.f32 %v12232_v4, %v12232_v4  ;;  %v12239_v16 = vadd.f32 %v7857_v26, %v12005_v2 }
 0x69d   :  { %14546 = vst [vmem:[#allocation37_spill] sm:$0xff] %v12239_v16  ;;  %v5249_v13 = vadd.f32 %v5248_v47, %v5186_v5  ;;  %v5116_v45 = vadd.f32 %v5115_v12, %v12239_v16  ;;  %v5187_v55 = vmul.f32 %v12239_v16, %v12239_v16 }
 0x69e   :  { %v4760_v40 = vpop.f32.mrb[84].mxu1 }
 0x69f   :  { %v5250_v59 = vadd.f32 %v5249_v13, %v5187_v55  ;;  %v7858_v18 = vadd.f32 %v4760_v40, %v14547_v11  ;;  %v4762_v42 = vpop.f32.mrb[85].mxu1 }
 0x6a0   :  { %v4763_v25 = vpop.f32.mrb[86].mxu1 }
 0x6a1   :  { %v5050_v20 = vadd.f32 %v7858_v18, %v11993_v34  ;;  %v7859_v4 = vadd.f32 %v4763_v25, %v14548_v53  ;;  %v4765_v3 = vpop.f32.mrb[87].mxu1 }
 0x6a3   :  { %v5117_v63 = vadd.f32 %v5116_v45, %v5050_v20  ;;  %v5188_v2 = vmul.f32 %v5050_v20, %v5050_v20  ;;  %v5053_v26 = vadd.f32 %v7859_v4, %v11999_v62 }
 0x6a5   :  { %v5251_v5 = vadd.f32 %v5250_v59, %v5188_v2  ;;  %v5118_v12 = vadd.f32 %v5117_v63, %v5053_v26  ;;  %v5189_v47 = vmul.f32 %v5053_v26, %v5053_v26 }
 0x6a7   :  { %v5119_v48 = vrot.slane %v5118_v12, 4  ;;  %v5252_v16 = vadd.f32 %v5251_v5, %v5189_v47 }
 0x6a9   :  { %v5120_v37 = vadd.f32 %v5119_v48, %v5118_v12  ;;  %v5253_v13 = vrot.slane %v5252_v16, 4  ;;  %v5262_v48 = vld [vmem:[%s13697_s5] sm:$0x1] }
 0x6ab   :  { %v5121_v55 = vrot.slane %v5120_v37, 2  ;;  %v5254_v40 = vadd.f32 %v5253_v13, %v5252_v16 }
 0x6ad   :  { %v5122_v11 = vadd.f32 %v5121_v55, %v5120_v37  ;;  %v5255_v42 = vrot.slane %v5254_v40, 2  ;;  %v5266_v37 = vld [vmem:[%s13698_s6] sm:$0x1] }
 0x6af   :  { %v5123_v15 = vrot.slane %v5122_v11, 1  ;;  %v5256_v34 = vadd.f32 %v5255_v42, %v5254_v40 }
 0x6b1   :  { %v5124_v18 = vadd.f32 %v5123_v15, %v5122_v11  ;;  %v5257_v25 = vrot.slane %v5256_v34, 1  ;;  %v14549_v15 = vld [vmem:[#allocation35_spill] sm:$0xff] }
 0x6b3   :  { %v5125_v53 = vmul.f32 0.001953125, %v5124_v18  ;;  %v5258_v45 = vadd.f32 %v5257_v25, %v5256_v34 }
 0x6b5   :  { %v5259_v3 = vmul.f32 0.001953125, %v5258_v45  ;;  %v5260_v21 = vmul.f32 %v5125_v53, %v5125_v53 }
 0x6b7   :  { %v5261_v62 = vsub.f32 %v5259_v3, %v5260_v21 }
 0x6b9   :  { %v5263_v4 = vadd.f32 1e-05, %v5261_v62  ;;  %v14556_v62 = vld [vmem:[#allocation58_spill] sm:$0xff] }
 0x6bb   :  { %8246 = vrsqrt.f32 %v5263_v4  ;;  %v14558_v4 = vld [vmem:[#allocation32_spill] sm:$0xff] }
 0x6c5   :  { %v8247_v59 = vpop.eup %8246 }
 0x6c6   :  { %v5265_v63 = vmul.f32 %v8247_v59, %v5262_v48  ;;  %v14560_v48 = vld [vmem:[#allocation59_spill] sm:$0xff] }
 0x6c8   :  { %v5267_v16 = vmul.f32 %v5265_v63, %v5125_v53  ;;  %v12255_v2 = vrot.slane %v5265_v63, %v14549_v15  ;;  %v14561_v63 = vld [vmem:[#allocation34_spill] sm:$0xff] }
 0x6ca   :  { %v5268_v5 = vsub.f32 %v5266_v37, %v5267_v16  ;;  %v5337_v12 = vmul.f32 %v12255_v2, %v5050_v20  ;;  %v5338_v21 = vmul.f32 %v12255_v2, %v5053_v26  ;;  %v12261_v47 = vmul.f32 %v12255_v2, %v11787_v57  ;;  %v14562_v16 = vld [vmem:[#allocation63_spill] sm:$0xff] }
 0x6cb   :  { %v12265_v13 = vmul.f32 %v12255_v2, %v11791_v17  ;;  %v12269_v55 = vmul.f32 %v12255_v2, %v11803_v44  ;;  %v12273_v40 = vmul.f32 %v12255_v2, %v11807_v0  ;;  %v12277_v20 = vmul.f32 %v12255_v2, %v11819_v14 }
 0x6cc   :  { %v12280_v26 = vrot.slane %v5268_v5, %v14549_v15  ;;  %v12284_v57 = vmul.f32 %v12255_v2, %v11823_v7  ;;  %v12288_v17 = vmul.f32 %v12255_v2, %v11827_v22  ;;  %v12292_v44 = vmul.f32 %v12255_v2, %v11831_v27  ;;  %v14564_v5 = vld [vmem:[#allocation38_spill] sm:$0xff] }
 0x6cd   :  { %v12296_v0 = vmul.f32 %v12255_v2, %v11836_v41  ;;  %v12300_v14 = vmul.f32 %v12255_v2, %v11840_v10  ;;  %v5285_v7 = vmul.f32 %v12255_v2, %v11844_v52  ;;  %v5286_v11 = vmul.f32 %v12255_v2, %v11848_v19 }
 0x6ce   :  { %v5407_v22 = vadd.f32 %v12280_v26, %v5337_v12  ;;  %v5408_v42 = vadd.f32 %v12280_v26, %v5338_v21  ;;  %v12310_v27 = vmul.f32 %v12255_v2, %v11852_v24  ;;  %v12314_v41 = vmul.f32 %v12255_v2, %v11856_v31  ;;  %v14566_v21 = vld [vmem:[#allocation36_spill] sm:$0xff] }
 0x6cf   :  { %v5289_v10 = vmul.f32 %v12255_v2, %v11860_v56  ;;  %v5290_v52 = vmul.f32 %v12255_v2, %v11864_v49  ;;  %v12322_v19 = vmul.f32 %v12255_v2, %v11870_v61  ;;  %v12326_v34 = vmul.f32 %v12255_v2, %v11880_v9 }
 0x6d0   :  { %v5471_v24 = vmax.f32 %v5407_v22, 0.0  ;;  %v5472_v18 = vmax.f32 %v5408_v42, 0.0  ;;  %v5293_v31 = vmul.f32 %v12255_v2, %v11890_v54  ;;  %v5294_v25 = vmul.f32 %v12255_v2, %v11895_v29  ;;  %v14567_v42 = vld [vmem:[#allocation39_spill] sm:$0xff] }
 0x6d1   :  { %v12334_v56 = vmul.f32 %v12255_v2, %v11905_v33  ;;  %v12338_v49 = vmul.f32 %v12255_v2, %v11911_v58  ;;  %v5297_v61 = vmul.f32 %v12255_v2, %v11921_v39  ;;  %v5298_v9 = vmul.f32 %v12255_v2, %v11928_v60  ;;  %v14552_v39 = vld [vmem:[#allocation60_spill] sm:$0xff]  ;;  %v14554_v60 = vld [vmem:[#allocation30_spill] sm:$0xff] }
 0x6d2   :  { %v12344_v53 = vpack.c.bf16 %v5472_v18, %v5471_v24  ;;  %v12348_v54 = vmul.f32 %v12255_v2, %v11938_v38  ;;  %v12352_v29 = vmul.f32 %v12255_v2, %v11943_v43  ;;  %v5301_v33 = vmul.f32 %v12255_v2, %v11953_v51  ;;  %v14569_v18 = vld [vmem:[#allocation61_spill] sm:$0xff] }
 0x6d3   :  { %v5302_v58 = vmul.f32 %v12255_v2, %v11959_v36  ;;  %v12360_v45 = vmul.f32 %v12255_v2, %v14552_v39  ;;  %v12364_v3 = vmul.f32 %v12255_v2, %v14554_v60  ;;  %v5305_v38 = vmul.f32 %v12255_v2, %v11986_v30  ;;  %v14571_v60 = vld [vmem:[#allocation40_spill] sm:$0xff] }
 0x6d4   :  { %14550 = vst [vmem:[#allocation24_spill] sm:$0xff] %v12344_v53  ;;  %14551 = vst [vmem:[#allocation29_spill] sm:$0xff] %v12352_v29  ;;  %v5306_v43 = vmul.f32 %v12255_v2, %v14556_v62  ;;  %v12372_v51 = vmul.f32 %v12255_v2, %v12009_v1  ;;  %v12376_v36 = vmul.f32 %v12255_v2, %v14558_v4  ;;  %v14572_v4 = vld [vmem:[#allocation65_spill] sm:$0xff]  ;;  %v14583_v53 = vld [vmem:[#allocation23_spill] sm:$0xff] }
 0x6d5   :  { %14553 = vst [vmem:[#allocation17_spill] sm:$0xff] %v12360_v45  ;;  %14555 = vst [vmem:[#allocation26_spill] sm:$0xff] %v12364_v3  ;;  %v5309_v59 = vmul.f32 %v12255_v2, %v14560_v48  ;;  %v5310_v37 = vmul.f32 %v12255_v2, %v14561_v63  ;;  %v12384_v30 = vmul.f32 %v12255_v2, %v14562_v16  ;;  %v14573_v63 = vld [vmem:[#allocation18_spill] sm:$0xff]  ;;  %v14575_v16 = vld [vmem:[#allocation67_spill] sm:$0xff] }
 0x6d6   :  { %14557 = vst [vmem:[#allocation21_spill] sm:$0xff] %v12372_v51  ;;  %14559 = vst [vmem:[#allocation28_spill] sm:$0xff] %v12376_v36  ;;  %v12388_v12 = vmul.f32 %v12255_v2, %v14564_v5  ;;  %v5313_v1 = vmul.f32 %v12255_v2, %v12057_v23  ;;  %v5314_v22 = vmul.f32 %v12255_v2, %v14566_v21 }
 0x6d7   :  { %14563 = vst [vmem:[#allocation71_spill] sm:$0xff] %v12384_v30  ;;  %v12396_v24 = vmul.f32 %v12255_v2, %v14567_v42  ;;  %v12400_v39 = vmul.f32 %v12255_v2, %v14569_v18  ;;  %v5317_v62 = vmul.f32 %v12255_v2, %v14571_v60  ;;  %v5318_v48 = vmul.f32 %v12255_v2, %v14572_v4 }
 0x6d8   :  { %14565 = vst [vmem:[#allocation55_spill] sm:$0xff] %v12388_v12  ;;  %v12408_v23 = vmul.f32 %v12255_v2, %v14573_v63  ;;  %v12412_v5 = vmul.f32 %v12255_v2, %v14575_v16  ;;  %v5321_v21 = vmul.f32 %v12255_v2, %v12121_v32  ;;  %v5322_v42 = vmul.f32 %v12255_v2, %v12128_v35  ;;  %v14579_v63 = vld [vmem:[#allocation20_spill] sm:$0xff] }
 0x6d9   :  { %14568 = vst [vmem:[#allocation73_spill] sm:$0xff] %v12396_v24  ;;  %14570 = vst [vmem:[#allocation62_spill] sm:$0xff] %v12400_v39  ;;  %v12420_v18 = vmul.f32 %v12255_v2, %v12138_v6  ;;  %v12424_v60 = vmul.f32 %v12255_v2, %v12143_v28  ;;  %v5325_v4 = vmul.f32 %v12255_v2, %v12153_v46  ;;  %v14582_v6 = vld [vmem:[#allocation16_spill] sm:$0xff] }
 0x6da   :  { %14574 = vst [vmem:[#allocation70_spill] sm:$0xff] %v12408_v23  ;;  %14576 = vst [vmem:[#allocation64_spill] sm:$0xff] %v12412_v5  ;;  %v5326_v16 = vmul.f32 %v12255_v2, %v14579_v63  ;;  %v12432_v32 = vmul.f32 %v12255_v2, %v12169_v8  ;;  %v12436_v35 = vmul.f32 %v12255_v2, %v12176_v50  ;;  %v14588_v8 = vld [vmem:[#allocation42_spill] sm:$0xff]  ;;  %v14589_v5 = vld [vmem:[#allocation27_spill] sm:$0xff] }
 0x6db   :  { %14577 = vst [vmem:[#allocation72_spill] sm:$0xff] %v12420_v18  ;;  %14578 = vst [vmem:[#allocation68_spill] sm:$0xff] %v12424_v60  ;;  %v5329_v15 = vmul.f32 %v12255_v2, %v14582_v6  ;;  %v5330_v28 = vmul.f32 %v12255_v2, %v14583_v53  ;;  %v14584_v60 = vld [vmem:[#allocation66_spill] sm:$0xff]  ;;  %v14586_v18 = vld [vmem:[#allocation25_spill] sm:$0xff]  ;;  %v5334_v50 = vmul.f32 %v12255_v2, %v14589_v5 }
 0x6dc   :  { %14580 = vst [vmem:[#allocation75_spill] sm:$0xff] %v12432_v32  ;;  %14581 = vst [vmem:[#allocation41_spill] sm:$0xff] %v12436_v35  ;;  %v12444_v46 = vmul.f32 %v12255_v2, %v14584_v60  ;;  %v12448_v63 = vmul.f32 %v12255_v2, %v14586_v18  ;;  %v5333_v32 = vmul.f32 %v12255_v2, %v14588_v8  ;;  %v14590_v35 = vld [vmem:[#allocation19_spill] sm:$0xff]  ;;  %v14592_v23 = vld [vmem:[#allocation37_spill] sm:$0xff] }
 0x6dd   :  { %v12456_v6 = vmul.f32 %v12255_v2, %v14590_v35  ;;  %v12460_v53 = vmul.f32 %v12255_v2, %v14592_v23  ;;  %v5347_v60 = vadd.f32 %v12280_v26, %v12269_v55  ;;  %v5348_v18 = vadd.f32 %v12280_v26, %v12273_v40 }
 0x6de   :  { %14585 = vst [vmem:[#allocation77_spill] sm:$0xff] %v12444_v46  ;;  %14587 = vst [vmem:[#allocation69_spill] sm:$0xff] %v12448_v63  ;;  %v5351_v8 = vadd.f32 %v12280_v26, %v12288_v17  ;;  %v5352_v5 = vadd.f32 %v12280_v26, %v12292_v44  ;;  %v5355_v63 = vadd.f32 %v12280_v26, %v5285_v7 }
 0x6df   :  { %14591 = vst [vmem:[#allocation74_spill] sm:$0xff] %v12456_v6  ;;  %14593 = vst [vmem:[#allocation31_spill] sm:$0xff] %v12460_v53  ;;  %v5356_v35 = vadd.f32 %v12280_v26, %v5286_v11  ;;  %v5359_v6 = vadd.f32 %v12280_v26, %v5289_v10  ;;  %v5360_v2 = vadd.f32 %v12280_v26, %v5290_v52  ;;  %v5411_v46 = vmax.f32 %v5347_v60, 0.0 }
 0x6e0   :  { %v5363_v23 = vadd.f32 %v12280_v26, %v5293_v31  ;;  %v5364_v55 = vadd.f32 %v12280_v26, %v5294_v25  ;;  %v5367_v40 = vadd.f32 %v12280_v26, %v5297_v61  ;;  %v5368_v53 = vadd.f32 %v12280_v26, %v5298_v9 }
 0x6e1   :  { %v5371_v17 = vadd.f32 %v12280_v26, %v5301_v33  ;;  %v5372_v44 = vadd.f32 %v12280_v26, %v5302_v58  ;;  %v5375_v7 = vadd.f32 %v12280_v26, %v5305_v38  ;;  %v5376_v11 = vadd.f32 %v12280_v26, %v5306_v43 }
 0x6e2   :  { %v5379_v10 = vadd.f32 %v12280_v26, %v5309_v59  ;;  %v5380_v52 = vadd.f32 %v12280_v26, %v5310_v37  ;;  %v5383_v31 = vadd.f32 %v12280_v26, %v5313_v1  ;;  %v5384_v25 = vadd.f32 %v12280_v26, %v5314_v22 }
 0x6e3   :  { %v5387_v61 = vadd.f32 %v12280_v26, %v5317_v62  ;;  %v5388_v9 = vadd.f32 %v12280_v26, %v5318_v48  ;;  %v5391_v33 = vadd.f32 %v12280_v26, %v5321_v21  ;;  %v5392_v58 = vadd.f32 %v12280_v26, %v5322_v42 }
 0x6e4   :  { %v5395_v38 = vadd.f32 %v12280_v26, %v5325_v4  ;;  %v5396_v43 = vadd.f32 %v12280_v26, %v5326_v16  ;;  %v5399_v59 = vadd.f32 %v12280_v26, %v5329_v15  ;;  %v5400_v37 = vadd.f32 %v12280_v26, %v5330_v28 }
 0x6e5   :  { %v5403_v1 = vadd.f32 %v12280_v26, %v5333_v32  ;;  %v5404_v22 = vadd.f32 %v12280_v26, %v5334_v50  ;;  %v5412_v62 = vmax.f32 %v5348_v18, 0.0  ;;  %v5415_v39 = vmax.f32 %v5351_v8, 0.0 }
 0x6e6   :  { %v5416_v48 = vmax.f32 %v5352_v5, 0.0  ;;  %v5419_v24 = vmax.f32 %v5355_v63, 0.0  ;;  %v5420_v21 = vmax.f32 %v5356_v35, 0.0  ;;  %v5423_v12 = vmax.f32 %v5359_v6, 0.0 }
 0x6e7   :  { %v5424_v42 = vmax.f32 %v5360_v2, 0.0  ;;  %v5427_v30 = vmax.f32 %v5363_v23, 0.0  ;;  %v5428_v4 = vmax.f32 %v5364_v55, 0.0  ;;  %v5431_v36 = vmax.f32 %v5367_v40, 0.0 }
 0x6e8   :  { %v5432_v16 = vmax.f32 %v5368_v53, 0.0  ;;  %v5435_v51 = vmax.f32 %v5371_v17, 0.0  ;;  %v5436_v15 = vmax.f32 %v5372_v44, 0.0  ;;  %v5439_v3 = vmax.f32 %v5375_v7, 0.0 }
 0x6e9   :  { %v5440_v28 = vmax.f32 %v5376_v11, 0.0  ;;  %v5443_v45 = vmax.f32 %v5379_v10, 0.0  ;;  %v5444_v32 = vmax.f32 %v5380_v52, 0.0  ;;  %v5447_v29 = vmax.f32 %v5383_v31, 0.0 }
 0x6ea   :  { %v5448_v50 = vmax.f32 %v5384_v25, 0.0  ;;  %v5451_v60 = vmax.f32 %v5387_v61, 0.0  ;;  %v5452_v18 = vmax.f32 %v5388_v9, 0.0  ;;  %v5455_v8 = vmax.f32 %v5391_v33, 0.0 }
 0x6eb   :  { %v5456_v5 = vmax.f32 %v5392_v58, 0.0  ;;  %v5459_v63 = vmax.f32 %v5395_v38, 0.0  ;;  %v5460_v35 = vmax.f32 %v5396_v43, 0.0  ;;  %v5463_v6 = vmax.f32 %v5399_v59, 0.0 }
 0x6ec   :  { %v5464_v2 = vmax.f32 %v5400_v37, 0.0  ;;  %v5467_v23 = vmax.f32 %v5403_v1, 0.0  ;;  %v5468_v55 = vmax.f32 %v5404_v22, 0.0  ;;  %v5474_v40 = vpack.c.bf16 %v5412_v62, %v5411_v46 }
 0x6ed   :  { %v12496_v53 = vpack.c.bf16 %v5416_v48, %v5415_v39  ;;  %v12498_v17 = vpack.c.bf16 %v5420_v21, %v5419_v24  ;;  %v12500_v44 = vpack.c.bf16 %v5424_v42, %v5423_v12  ;;  %v12502_v7 = vpack.c.bf16 %v5428_v4, %v5427_v30  ;;  %v14594_v4 = vld [vmem:[#allocation29_spill] sm:$0xff] }
 0x6ee   :  { %v12504_v11 = vpack.c.bf16 %v5432_v16, %v5431_v36  ;;  %v12506_v10 = vpack.c.bf16 %v5436_v15, %v5435_v51  ;;  %v12508_v52 = vpack.c.bf16 %v5440_v28, %v5439_v3  ;;  %v12510_v31 = vpack.c.bf16 %v5444_v32, %v5443_v45  ;;  %v14595_v15 = vld [vmem:[#allocation17_spill] sm:$0xff]  ;;  %v14596_v32 = vld [vmem:[#allocation26_spill] sm:$0xff] }
 0x6ef   :  { %v12512_v25 = vpack.c.bf16 %v5448_v50, %v5447_v29  ;;  %v12514_v61 = vpack.c.bf16 %v5452_v18, %v5451_v60  ;;  %v12516_v39 = vpack.c.bf16 %v5456_v5, %v5455_v8  ;;  %v12518_v24 = vpack.c.bf16 %v5460_v35, %v5459_v63  ;;  %v14597_v60 = vld [vmem:[#allocation21_spill] sm:$0xff]  ;;  %v14598_v5 = vld [vmem:[#allocation28_spill] sm:$0xff] }
 0x6f0   :  { %v12520_v12 = vpack.c.bf16 %v5464_v2, %v5463_v6  ;;  %v12522_v30 = vpack.c.bf16 %v5468_v55, %v5467_v23  ;;  %v5345_v51 = vadd.f32 %v12280_v26, %v12261_v47  ;;  %v5346_v3 = vadd.f32 %v12280_v26, %v12265_v13  ;;  %v14599_v23 = vld [vmem:[#allocation71_spill] sm:$0xff] }
 0x6f1   :  { %v5349_v29 = vadd.f32 %v12280_v26, %v12277_v20  ;;  %v5350_v45 = vadd.f32 %v12280_v26, %v12284_v57  ;;  %v5353_v36 = vadd.f32 %v12280_v26, %v12296_v0  ;;  %v5354_v46 = vadd.f32 %v12280_v26, %v12300_v14 }
 0x6f2   :  { %v5409_v9 = vmax.f32 %v5345_v51, 0.0  ;;  %v5410_v33 = vmax.f32 %v5346_v3, 0.0  ;;  %v5357_v47 = vadd.f32 %v12280_v26, %v12310_v27  ;;  %v5358_v13 = vadd.f32 %v12280_v26, %v12314_v41  ;;  %v14600_v3 = vld [vmem:[#allocation55_spill] sm:$0xff] }
 0x6f3   :  { %v5413_v58 = vmax.f32 %v5349_v29, 0.0  ;;  %v5414_v38 = vmax.f32 %v5350_v45, 0.0  ;;  %v5417_v20 = vmax.f32 %v5353_v36, 0.0  ;;  %v5418_v43 = vmax.f32 %v5354_v46, 0.0  ;;  %v14601_v45 = vld [vmem:[#allocation73_spill] sm:$0xff] }
 0x6f4   :  { %v5473_v59 = vpack.c.bf16 %v5410_v33, %v5409_v9  ;;  %v5421_v57 = vmax.f32 %v5357_v47, 0.0  ;;  %v5422_v37 = vmax.f32 %v5358_v13, 0.0  ;;  %v5361_v0 = vadd.f32 %v12280_v26, %v12322_v19  ;;  %v14602_v33 = vld [vmem:[#allocation62_spill] sm:$0xff] }
 0x6f5   :  { %v5475_v1 = vpack.c.bf16 %v5414_v38, %v5413_v58  ;;  %v5477_v14 = vpack.c.bf16 %v5418_v43, %v5417_v20  ;;  %v5362_v22 = vadd.f32 %v12280_v26, %v12326_v34  ;;  %v5365_v27 = vadd.f32 %v12280_v26, %v12334_v56  ;;  %v14603_v13 = vld [vmem:[#allocation70_spill] sm:$0xff] }
 0x6f6   :  { %7700 = vmatprep.mubr.bf16.mxu0 %v5473_v59  ;;  %v5479_v41 = vpack.c.bf16 %v5422_v37, %v5421_v57  ;;  %v5425_v62 = vmax.f32 %v5361_v0, 0.0  ;;  %v5366_v48 = vadd.f32 %v12280_v26, %v12338_v49  ;;  %v5369_v21 = vadd.f32 %v12280_v26, %v12348_v54  ;;  %v14604_v59 = vld [vmem:[#allocation64_spill] sm:$0xff] }
 0x6f7   :  { %7701 = vmatmul.mubr.bf16.vlgmr.msra.gmra.mrb[0].mxu0 %v5474_v40  ;;  %v5426_v42 = vmax.f32 %v5362_v22, 0.0  ;;  %v5429_v19 = vmax.f32 %v5365_v27, 0.0  ;;  %v5370_v16 = vadd.f32 %v12280_v26, %v14594_v4  ;;  %v5373_v34 = vadd.f32 %v12280_v26, %v14595_v15  ;;  %v14606_v27 = vld [vmem:[#allocation68_spill] sm:$0xff]  ;;  %v14608_v4 = vld [vmem:[#allocation41_spill] sm:$0xff] }
 0x6f8   :  { %7704 = vmatprep.mubr.bf16.mxu0 %v5475_v1  ;;  %v5430_v56 = vmax.f32 %v5366_v48, 0.0  ;;  %v5433_v28 = vmax.f32 %v5369_v21, 0.0  ;;  %v5374_v50 = vadd.f32 %v12280_v26, %v14596_v32  ;;  %v5377_v49 = vadd.f32 %v12280_v26, %v14597_v60  ;;  %v14605_v1 = vld [vmem:[#allocation72_spill] sm:$0xff] }
 0x6f9   :  { %v5481_v18 = vpack.c.bf16 %v5426_v42, %v5425_v62  ;;  %v5434_v54 = vmax.f32 %v5370_v16, 0.0  ;;  %v5437_v8 = vmax.f32 %v5373_v34, 0.0  ;;  %v5378_v63 = vadd.f32 %v12280_v26, %v14598_v5  ;;  %v14607_v42 = vld [vmem:[#allocation75_spill] sm:$0xff] }
 0x6fa   :  { %v5483_v35 = vpack.c.bf16 %v5430_v56, %v5429_v19  ;;  %v5438_v6 = vmax.f32 %v5374_v50, 0.0  ;;  %v5441_v2 = vmax.f32 %v5377_v49, 0.0  ;;  %v5381_v55 = vadd.f32 %v12280_v26, %v14599_v23 }
 0x6fb   :  { %v5485_v40 = vpack.c.bf16 %v5434_v54, %v5433_v28  ;;  %v5442_v51 = vmax.f32 %v5378_v63, 0.0  ;;  %v5382_v29 = vadd.f32 %v12280_v26, %v14600_v3  ;;  %v5385_v36 = vadd.f32 %v12280_v26, %v14601_v45  ;;  %v14609_v28 = vld [vmem:[#allocation77_spill] sm:$0xff]  ;;  %v14611_v63 = vld [vmem:[#allocation74_spill] sm:$0xff] }
 0x6fc   :  { %v5487_v46 = vpack.c.bf16 %v5438_v6, %v5437_v8  ;;  %v5445_v9 = vmax.f32 %v5381_v55, 0.0  ;;  %v5386_v47 = vadd.f32 %v12280_v26, %v14602_v33  ;;  %v5389_v58 = vadd.f32 %v12280_v26, %v14603_v13  ;;  %v14610_v54 = vld [vmem:[#allocation69_spill] sm:$0xff] }
 0x6fd   :  { %v5489_v38 = vpack.c.bf16 %v5442_v51, %v5441_v2  ;;  %v5446_v20 = vmax.f32 %v5382_v29, 0.0  ;;  %v5449_v43 = vmax.f32 %v5385_v36, 0.0  ;;  %v5390_v57 = vadd.f32 %v12280_v26, %v14604_v59  ;;  %v14612_v2 = vld [vmem:[#allocation31_spill] sm:$0xff] }
 0x6fe   :  { %v5450_v37 = vmax.f32 %v5386_v47, 0.0  ;;  %v5453_v0 = vmax.f32 %v5389_v58, 0.0  ;;  %v5393_v22 = vadd.f32 %v12280_v26, %v14605_v1  ;;  %v5394_v62 = vadd.f32 %v12280_v26, %v14606_v27 }
 0x6ff   :  { %7705 = vmatmul.mubr.bf16.gmra.mrb[4].mxu0 %v12496_v53  ;;  %v5491_v48 = vpack.c.bf16 %v5446_v20, %v5445_v9  ;;  %v5454_v21 = vmax.f32 %v5390_v57, 0.0  ;;  %v5397_v19 = vadd.f32 %v12280_v26, %v14607_v42  ;;  %v5398_v16 = vadd.f32 %v12280_v26, %v14608_v4 }
 0x700   :  { %7708 = vmatprep.mubr.bf16.mxu0 %v5477_v14  ;;  %v5493_v15 = vpack.c.bf16 %v5450_v37, %v5449_v43  ;;  %v5457_v34 = vmax.f32 %v5393_v22, 0.0  ;;  %v5458_v56 = vmax.f32 %v5394_v62, 0.0  ;;  %v5401_v32 = vadd.f32 %v12280_v26, %v14609_v28 }
 0x701   :  { %v5495_v50 = vpack.c.bf16 %v5454_v21, %v5453_v0  ;;  %v5461_v60 = vmax.f32 %v5397_v19, 0.0  ;;  %v5462_v49 = vmax.f32 %v5398_v16, 0.0  ;;  %v5402_v53 = vadd.f32 %v12280_v26, %v14610_v54 }
 0x702   :  { %v5497_v8 = vpack.c.bf16 %v5458_v56, %v5457_v34  ;;  %v5465_v5 = vmax.f32 %v5401_v32, 0.0  ;;  %v5405_v6 = vadd.f32 %v12280_v26, %v14611_v63  ;;  %v5406_v14 = vadd.f32 %v12280_v26, %v14612_v2  ;;  %v14613_v26 = vld [vmem:[#allocation24_spill] sm:$0xff] }
 0x703   :  { %v5499_v23 = vpack.c.bf16 %v5462_v49, %v5461_v60  ;;  %v5466_v55 = vmax.f32 %v5402_v53, 0.0 }
 0x704   :  { %v5469_v51 = vmax.f32 %v5405_v6, 0.0  ;;  %v5470_v3 = vmax.f32 %v5406_v14, 0.0 }
 0x705   :  { %v5501_v29 = vpack.c.bf16 %v5466_v55, %v5465_v5 }
 0x706   :  { %v5503_v45 = vpack.c.bf16 %v5470_v3, %v5469_v51 }
 0x707   :  { %7709 = vmatmul.mubr.bf16.gmra.mrb[8].mxu0 %v12498_v17 }
 0x708   :  { %7712 = vmatprep.mubr.bf16.mxu0 %v5479_v41 }
 0x70f   :  { %7713 = vmatmul.mubr.bf16.gmra.mrb[12].mxu0 %v12500_v44 }
 0x710   :  { %7716 = vmatprep.mubr.bf16.mxu0 %v5481_v18 }
 0x717   :  { %7717 = vmatmul.mubr.bf16.gmra.mrb[16].mxu0 %v12502_v7 }
 0x718   :  { %7720 = vmatprep.mubr.bf16.mxu0 %v5483_v35 }
 0x71f   :  { %7721 = vmatmul.mubr.bf16.gmra.mrb[20].mxu0 %v12504_v11 }
 0x720   :  { %7724 = vmatprep.mubr.bf16.mxu0 %v5485_v40 }
 0x727   :  { %7725 = vmatmul.mubr.bf16.gmra.mrb[24].mxu0 %v12506_v10 }
 0x728   :  { %7728 = vmatprep.mubr.bf16.mxu0 %v5487_v46 }
 0x72f   :  { %7729 = vmatmul.mubr.bf16.gmra.mrb[28].mxu0 %v12508_v52 }
 0x730   :  { %7732 = vmatprep.mubr.bf16.mxu0 %v5489_v38 }
 0x737   :  { %7733 = vmatmul.mubr.bf16.gmra.mrb[32].mxu0 %v12510_v31 }
 0x738   :  { %7736 = vmatprep.mubr.bf16.mxu0 %v5491_v48 }
 0x73f   :  { %7737 = vmatmul.mubr.bf16.gmra.mrb[36].mxu0 %v12512_v25 }
 0x740   :  { %7740 = vmatprep.mubr.bf16.mxu0 %v5493_v15 }
 0x747   :  { %7741 = vmatmul.mubr.bf16.gmra.mrb[40].mxu0 %v12514_v61 }
 0x748   :  { %7744 = vmatprep.mubr.bf16.mxu0 %v5495_v50 }
 0x74f   :  { %7745 = vmatmul.mubr.bf16.gmra.mrb[44].mxu0 %v12516_v39 }
 0x750   :  { %7748 = vmatprep.mubr.bf16.mxu0 %v5497_v8 }
 0x757   :  { %7749 = vmatmul.mubr.bf16.gmra.mrb[48].mxu0 %v12518_v24 }
 0x758   :  { %7752 = vmatprep.mubr.bf16.mxu0 %v5499_v23 }
 0x75f   :  { %7753 = vmatmul.mubr.bf16.gmra.mrb[52].mxu0 %v12520_v12 }
 0x760   :  { %7756 = vmatprep.mubr.bf16.mxu0 %v5501_v29 }
 0x767   :  { %7757 = vmatmul.mubr.bf16.gmra.mrb[56].mxu0 %v12522_v30 }
 0x768   :  { %7760 = vmatprep.mubr.bf16.mxu0 %v5503_v45 }
 0x76f   :  { %7761 = vmatmul.mubr.bf16.gmra.mrb[60].mxu0 %v14613_v26 }
 0x7ca   :  { %v12603_v17 = vpop.f32.mrb[0].mxu0 }
 0x7cb   :  { %v12605_v44 = vpop.f32.mrb[1].mxu0  ;;  %v5930_v25 = vmul.f32 %v12603_v17, %v12603_v17 }
 0x7cc   :  { %v12607_v7 = vpop.f32.mrb[2].mxu0  ;;  %v5928_v10 = vmul.f32 %v12605_v44, %v12605_v44 }
 0x7cd   :  { %v12609_v11 = vpop.f32.mrb[3].mxu0  ;;  %v5931_v24 = vmul.f32 %v12607_v7, %v12607_v7 }
 0x7ce   :  { %v5858_v52 = vadd.f32 %v12609_v11, %v12605_v44  ;;  %v5929_v31 = vmul.f32 %v12609_v11, %v12609_v11 }
 0x7d0   :  { %v5859_v61 = vadd.f32 %v12603_v17, %v5858_v52  ;;  %v5992_v39 = vadd.f32 %v5929_v31, %v5928_v10 }
 0x7d2   :  { %v5993_v12 = vadd.f32 %v5992_v39, %v5930_v25  ;;  %v12622_v30 = vpop.f32.mrb[4].mxu0  ;;  %v5860_v41 = vadd.f32 %v12607_v7, %v5859_v61 }
 0x7d3   :  { %v12625_v18 = vpop.f32.mrb[5].mxu0  ;;  %v5934_v58 = vmul.f32 %v12622_v30, %v12622_v30 }
 0x7d4   :  { %v5861_v35 = vadd.f32 %v5860_v41, %v12625_v18  ;;  %v5932_v40 = vmul.f32 %v12625_v18, %v12625_v18  ;;  %v5994_v36 = vadd.f32 %v5993_v12, %v5931_v24  ;;  %v12630_v46 = vpop.f32.mrb[6].mxu0 }
 0x7d5   :  { %v12632_v9 = vpop.f32.mrb[7].mxu0  ;;  %v5935_v43 = vmul.f32 %v12630_v46, %v12630_v46 }
 0x7d6   :  { %v5995_v33 = vadd.f32 %v5994_v36, %v5932_v40  ;;  %v5862_v47 = vadd.f32 %v5861_v35, %v12632_v9  ;;  %v5933_v13 = vmul.f32 %v12632_v9, %v12632_v9 }
 0x7d8   :  { %v5863_v38 = vadd.f32 %v12622_v30, %v5862_v47  ;;  %v5996_v20 = vadd.f32 %v5995_v33, %v5933_v13 }
 0x7da   :  { %v5997_v59 = vadd.f32 %v5996_v20, %v5934_v58  ;;  %v12642_v57 = vpop.f32.mrb[8].mxu0  ;;  %v5864_v37 = vadd.f32 %v12630_v46, %v5863_v38 }
 0x7db   :  { %v12645_v0 = vpop.f32.mrb[9].mxu0  ;;  %v5938_v4 = vmul.f32 %v12642_v57, %v12642_v57 }
 0x7dc   :  { %v5865_v1 = vadd.f32 %v5864_v37, %v12645_v0  ;;  %v5936_v22 = vmul.f32 %v12645_v0, %v12645_v0  ;;  %v5998_v27 = vadd.f32 %v5997_v59, %v5935_v43  ;;  %v12650_v62 = vpop.f32.mrb[10].mxu0 }
 0x7dd   :  { %v12652_v48 = vpop.f32.mrb[11].mxu0  ;;  %v5939_v34 = vmul.f32 %v12650_v62, %v12650_v62 }
 0x7de   :  { %v5999_v21 = vadd.f32 %v5998_v27, %v5936_v22  ;;  %v5866_v42 = vadd.f32 %v5865_v1, %v12652_v48  ;;  %v5937_v19 = vmul.f32 %v12652_v48, %v12652_v48 }
 0x7e0   :  { %v5867_v16 = vadd.f32 %v12642_v57, %v5866_v42  ;;  %v6000_v15 = vadd.f32 %v5999_v21, %v5937_v19 }
 0x7e2   :  { %v6001_v56 = vadd.f32 %v6000_v15, %v5938_v4  ;;  %v12662_v28 = vpop.f32.mrb[12].mxu0  ;;  %v5868_v32 = vadd.f32 %v12650_v62, %v5867_v16 }
 0x7e3   :  { %v12665_v50 = vpop.f32.mrb[13].mxu0  ;;  %v5942_v2 = vmul.f32 %v12662_v28, %v12662_v28 }
 0x7e4   :  { %v5869_v60 = vadd.f32 %v5868_v32, %v12665_v50  ;;  %v5940_v49 = vmul.f32 %v12665_v50, %v12665_v50  ;;  %v6002_v54 = vadd.f32 %v6001_v56, %v5939_v34  ;;  %v12670_v53 = vpop.f32.mrb[14].mxu0 }
 0x7e5   :  { %v12672_v8 = vpop.f32.mrb[15].mxu0  ;;  %v5943_v55 = vmul.f32 %v12670_v53, %v12670_v53 }
 0x7e6   :  { %v6003_v5 = vadd.f32 %v6002_v54, %v5940_v49  ;;  %v5870_v63 = vadd.f32 %v5869_v60, %v12672_v8  ;;  %v5941_v6 = vmul.f32 %v12672_v8, %v12672_v8 }
 0x7e8   :  { %v5871_v14 = vadd.f32 %v12662_v28, %v5870_v63  ;;  %v6004_v23 = vadd.f32 %v6003_v5, %v5941_v6 }
 0x7ea   :  { %v6005_v51 = vadd.f32 %v6004_v23, %v5942_v2  ;;  %v12682_v3 = vpop.f32.mrb[16].mxu0  ;;  %v5872_v29 = vadd.f32 %v12670_v53, %v5871_v14 }
 0x7eb   :  { %v12685_v45 = vpop.f32.mrb[17].mxu0  ;;  %v5946_v12 = vmul.f32 %v12682_v3, %v12682_v3 }
 0x7ec   :  { %v5873_v26 = vadd.f32 %v5872_v29, %v12685_v45  ;;  %v5944_v10 = vmul.f32 %v12685_v45, %v12685_v45  ;;  %v6006_v52 = vadd.f32 %v6005_v51, %v5943_v55  ;;  %v12690_v31 = vpop.f32.mrb[18].mxu0 }
 0x7ed   :  { %v12692_v25 = vpop.f32.mrb[19].mxu0  ;;  %v5947_v40 = vmul.f32 %v12690_v31, %v12690_v31 }
 0x7ee   :  { %v6007_v61 = vadd.f32 %v6006_v52, %v5944_v10  ;;  %v5874_v39 = vadd.f32 %v5873_v26, %v12692_v25  ;;  %v5945_v24 = vmul.f32 %v12692_v25, %v12692_v25 }
 0x7f0   :  { %v5875_v41 = vadd.f32 %v12682_v3, %v5874_v39  ;;  %v6008_v35 = vadd.f32 %v6007_v61, %v5945_v24 }
 0x7f2   :  { %v6009_v36 = vadd.f32 %v6008_v35, %v5946_v12  ;;  %v12702_v33 = vpop.f32.mrb[20].mxu0  ;;  %v5876_v47 = vadd.f32 %v12690_v31, %v5875_v41 }
 0x7f3   :  { %v12705_v13 = vpop.f32.mrb[21].mxu0  ;;  %v5950_v27 = vmul.f32 %v12702_v33, %v12702_v33 }
 0x7f4   :  { %v5877_v58 = vadd.f32 %v5876_v47, %v12705_v13  ;;  %v5948_v38 = vmul.f32 %v12705_v13, %v12705_v13  ;;  %v6010_v20 = vadd.f32 %v6009_v36, %v5947_v40  ;;  %v12710_v43 = vpop.f32.mrb[22].mxu0 }
 0x7f5   :  { %v12712_v59 = vpop.f32.mrb[23].mxu0  ;;  %v5951_v19 = vmul.f32 %v12710_v43, %v12710_v43 }
 0x7f6   :  { %v6011_v37 = vadd.f32 %v6010_v20, %v5948_v38  ;;  %v5878_v1 = vadd.f32 %v5877_v58, %v12712_v59  ;;  %v5949_v22 = vmul.f32 %v12712_v59, %v12712_v59 }
 0x7f8   :  { %v5879_v21 = vadd.f32 %v12702_v33, %v5878_v1  ;;  %v6012_v42 = vadd.f32 %v6011_v37, %v5949_v22 }
 0x7fa   :  { %v6013_v4 = vadd.f32 %v6012_v42, %v5950_v27  ;;  %v12722_v16 = vpop.f32.mrb[24].mxu0  ;;  %v5880_v15 = vadd.f32 %v12710_v43, %v5879_v21 }
 0x7fb   :  { %v12725_v34 = vpop.f32.mrb[25].mxu0  ;;  %v5954_v2 = vmul.f32 %v12722_v16, %v12722_v16 }
 0x7fc   :  { %v5881_v56 = vadd.f32 %v5880_v15, %v12725_v34  ;;  %v5952_v32 = vmul.f32 %v12725_v34, %v12725_v34  ;;  %v6014_v60 = vadd.f32 %v6013_v4, %v5951_v19  ;;  %v12730_v49 = vpop.f32.mrb[26].mxu0 }
 0x7fd   :  { %v12732_v54 = vpop.f32.mrb[27].mxu0  ;;  %v5955_v55 = vmul.f32 %v12730_v49, %v12730_v49 }
 0x7fe   :  { %v6015_v5 = vadd.f32 %v6014_v60, %v5952_v32  ;;  %v5882_v63 = vadd.f32 %v5881_v56, %v12732_v54  ;;  %v5953_v6 = vmul.f32 %v12732_v54, %v12732_v54 }
 0x800   :  { %v5883_v14 = vadd.f32 %v12722_v16, %v5882_v63  ;;  %v6016_v23 = vadd.f32 %v6015_v5, %v5953_v6 }
 0x802   :  { %v6017_v51 = vadd.f32 %v6016_v23, %v5954_v2  ;;  %v12742_v29 = vpop.f32.mrb[28].mxu0  ;;  %v5884_v26 = vadd.f32 %v12730_v49, %v5883_v14 }
 0x803   :  { %v12745_v10 = vpop.f32.mrb[29].mxu0  ;;  %v5958_v36 = vmul.f32 %v12742_v29, %v12742_v29 }
 0x804   :  { %v5885_v52 = vadd.f32 %v5884_v26, %v12745_v10  ;;  %v5956_v61 = vmul.f32 %v12745_v10, %v12745_v10  ;;  %v6018_v39 = vadd.f32 %v6017_v51, %v5955_v55  ;;  %v12750_v24 = vpop.f32.mrb[30].mxu0 }
 0x805   :  { %v12752_v12 = vpop.f32.mrb[31].mxu0  ;;  %v5959_v38 = vmul.f32 %v12750_v24, %v12750_v24 }
 0x806   :  { %v6019_v41 = vadd.f32 %v6018_v39, %v5956_v61  ;;  %v5886_v35 = vadd.f32 %v5885_v52, %v12752_v12  ;;  %v5957_v40 = vmul.f32 %v12752_v12, %v12752_v12 }
 0x808   :  { %v5887_v47 = vadd.f32 %v12742_v29, %v5886_v35  ;;  %v6020_v58 = vadd.f32 %v6019_v41, %v5957_v40 }
 0x80a   :  { %v6021_v20 = vadd.f32 %v6020_v58, %v5958_v36  ;;  %v12762_v37 = vpop.f32.mrb[32].mxu0  ;;  %v5888_v1 = vadd.f32 %v12750_v24, %v5887_v47 }
 0x80b   :  { %v12765_v22 = vpop.f32.mrb[33].mxu0  ;;  %v5962_v60 = vmul.f32 %v12762_v37, %v12762_v37 }
 0x80c   :  { %v5889_v27 = vadd.f32 %v5888_v1, %v12765_v22  ;;  %v5960_v21 = vmul.f32 %v12765_v22, %v12765_v22  ;;  %v6022_v42 = vadd.f32 %v6021_v20, %v5959_v38  ;;  %v12770_v19 = vpop.f32.mrb[34].mxu0 }
 0x80d   :  { %v12772_v4 = vpop.f32.mrb[35].mxu0  ;;  %v5963_v6 = vmul.f32 %v12770_v19, %v12770_v19 }
 0x80e   :  { %v6023_v15 = vadd.f32 %v6022_v42, %v5960_v21  ;;  %v5890_v56 = vadd.f32 %v5889_v27, %v12772_v4  ;;  %v5961_v32 = vmul.f32 %v12772_v4, %v12772_v4 }
 0x810   :  { %v5891_v5 = vadd.f32 %v12762_v37, %v5890_v56  ;;  %v6024_v63 = vadd.f32 %v6023_v15, %v5961_v32 }
 0x812   :  { %v6025_v2 = vadd.f32 %v6024_v63, %v5962_v60  ;;  %v12782_v14 = vpop.f32.mrb[36].mxu0  ;;  %v5892_v23 = vadd.f32 %v12770_v19, %v5891_v5 }
 0x813   :  { %v12785_v55 = vpop.f32.mrb[37].mxu0  ;;  %v5966_v36 = vmul.f32 %v12782_v14, %v12782_v14 }
 0x814   :  { %v5893_v51 = vadd.f32 %v5892_v23, %v12785_v55  ;;  %v5964_v26 = vmul.f32 %v12785_v55, %v12785_v55  ;;  %v6026_v52 = vadd.f32 %v6025_v2, %v5963_v6  ;;  %v12790_v61 = vpop.f32.mrb[38].mxu0 }
 0x815   :  { %14614 = vst [vmem:[#allocation76_spill] sm:$0xff] %v12790_v61  ;;  %v12792_v39 = vpop.f32.mrb[39].mxu0  ;;  %v5967_v38 = vmul.f32 %v12790_v61, %v12790_v61 }
 0x816   :  { %v6027_v41 = vadd.f32 %v6026_v52, %v5964_v26  ;;  %v5894_v35 = vadd.f32 %v5893_v51, %v12792_v39  ;;  %v5965_v40 = vmul.f32 %v12792_v39, %v12792_v39 }
 0x818   :  { %v5895_v47 = vadd.f32 %v12782_v14, %v5894_v35  ;;  %v6028_v58 = vadd.f32 %v6027_v41, %v5965_v40 }
 0x81a   :  { %v6029_v20 = vadd.f32 %v6028_v58, %v5966_v36  ;;  %v12802_v1 = vpop.f32.mrb[40].mxu0  ;;  %v5896_v27 = vadd.f32 %v12790_v61, %v5895_v47 }
 0x81b   :  { %14615 = vst [vmem:[#allocation33_spill] sm:$0xff] %v12802_v1  ;;  %v12805_v21 = vpop.f32.mrb[41].mxu0  ;;  %v5970_v2 = vmul.f32 %v12802_v1, %v12802_v1 }
 0x81c   :  { %14616 = vst [vmem:[#allocation79_spill] sm:$0xff] %v12805_v21  ;;  %v5897_v42 = vadd.f32 %v5896_v27, %v12805_v21  ;;  %v5968_v15 = vmul.f32 %v12805_v21, %v12805_v21  ;;  %v6030_v56 = vadd.f32 %v6029_v20, %v5967_v38  ;;  %v12810_v32 = vpop.f32.mrb[42].mxu0 }
 0x81d   :  { %14617 = vst [vmem:[#allocation43_spill] sm:$0xff] %v12810_v32  ;;  %v12812_v60 = vpop.f32.mrb[43].mxu0  ;;  %v5971_v26 = vmul.f32 %v12810_v32, %v12810_v32 }
 0x81e   :  { %14618 = vst [vmem:[#allocation81_spill] sm:$0xff] %v12812_v60  ;;  %v6031_v5 = vadd.f32 %v6030_v56, %v5968_v15  ;;  %v5898_v63 = vadd.f32 %v5897_v42, %v12812_v60  ;;  %v5969_v6 = vmul.f32 %v12812_v60, %v12812_v60 }
 0x820   :  { %v5899_v23 = vadd.f32 %v12802_v1, %v5898_v63  ;;  %v6032_v51 = vadd.f32 %v6031_v5, %v5969_v6 }
 0x822   :  { %v6033_v52 = vadd.f32 %v6032_v51, %v5970_v2  ;;  %v12822_v41 = vpop.f32.mrb[44].mxu0  ;;  %v5900_v35 = vadd.f32 %v12810_v32, %v5899_v23 }
 0x823   :  { %14619 = vst [vmem:[#allocation44_spill] sm:$0xff] %v12822_v41  ;;  %v12825_v40 = vpop.f32.mrb[45].mxu0  ;;  %v5974_v56 = vmul.f32 %v12822_v41, %v12822_v41 }
 0x824   :  { %14620 = vst [vmem:[#allocation78_spill] sm:$0xff] %v12825_v40  ;;  %v5901_v36 = vadd.f32 %v5900_v35, %v12825_v40  ;;  %v5972_v47 = vmul.f32 %v12825_v40, %v12825_v40  ;;  %v6034_v58 = vadd.f32 %v6033_v52, %v5971_v26  ;;  %v12830_v38 = vpop.f32.mrb[46].mxu0 }
 0x825   :  { %14621 = vst [vmem:[#allocation45_spill] sm:$0xff] %v12830_v38  ;;  %v12832_v20 = vpop.f32.mrb[47].mxu0  ;;  %v5975_v6 = vmul.f32 %v12830_v38, %v12830_v38 }
 0x826   :  { %14622 = vst [vmem:[#allocation80_spill] sm:$0xff] %v12832_v20  ;;  %v6035_v27 = vadd.f32 %v6034_v58, %v5972_v47  ;;  %v5902_v42 = vadd.f32 %v5901_v36, %v12832_v20  ;;  %v5973_v15 = vmul.f32 %v12832_v20, %v12832_v20 }
 0x828   :  { %v5903_v5 = vadd.f32 %v12822_v41, %v5902_v42  ;;  %v6036_v63 = vadd.f32 %v6035_v27, %v5973_v15 }
 0x82a   :  { %v6037_v2 = vadd.f32 %v6036_v63, %v5974_v56  ;;  %v12842_v23 = vpop.f32.mrb[48].mxu0  ;;  %v5904_v51 = vadd.f32 %v12830_v38, %v5903_v5 }
 0x82b   :  { %14623 = vst [vmem:[#allocation46_spill] sm:$0xff] %v12842_v23  ;;  %v12845_v26 = vpop.f32.mrb[49].mxu0  ;;  %v5978_v56 = vmul.f32 %v12842_v23, %v12842_v23 }
 0x82c   :  { %14624 = vst [vmem:[#allocation47_spill] sm:$0xff] %v12845_v26  ;;  %v5905_v52 = vadd.f32 %v5904_v51, %v12845_v26  ;;  %v5976_v35 = vmul.f32 %v12845_v26, %v12845_v26  ;;  %v6038_v36 = vadd.f32 %v6037_v2, %v5975_v6  ;;  %v12850_v47 = vpop.f32.mrb[50].mxu0 }
 0x82d   :  { %14625 = vst [vmem:[#allocation48_spill] sm:$0xff] %v12850_v47  ;;  %v12852_v58 = vpop.f32.mrb[51].mxu0  ;;  %v5979_v51 = vmul.f32 %v12850_v47, %v12850_v47 }
 0x82e   :  { %14626 = vst [vmem:[#allocation82_spill] sm:$0xff] %v12852_v58  ;;  %v6039_v27 = vadd.f32 %v6038_v36, %v5976_v35  ;;  %v5906_v42 = vadd.f32 %v5905_v52, %v12852_v58  ;;  %v5977_v15 = vmul.f32 %v12852_v58, %v12852_v58 }
 0x830   :  { %v5907_v5 = vadd.f32 %v12842_v23, %v5906_v42  ;;  %v6040_v63 = vadd.f32 %v6039_v27, %v5977_v15 }
 0x832   :  { %v6041_v6 = vadd.f32 %v6040_v63, %v5978_v56  ;;  %v12862_v2 = vpop.f32.mrb[52].mxu0  ;;  %v5908_v26 = vadd.f32 %v12850_v47, %v5907_v5 }
 0x833   :  { %14627 = vst [vmem:[#allocation49_spill] sm:$0xff] %v12862_v2  ;;  %v12865_v35 = vpop.f32.mrb[53].mxu0  ;;  %v5982_v5 = vmul.f32 %v12862_v2, %v12862_v2 }
 0x834   :  { %14628 = vst [vmem:[#allocation83_spill] sm:$0xff] %v12865_v35  ;;  %v5909_v52 = vadd.f32 %v5908_v26, %v12865_v35  ;;  %v5980_v36 = vmul.f32 %v12865_v35, %v12865_v35  ;;  %v6042_v58 = vadd.f32 %v6041_v6, %v5979_v51  ;;  %v12870_v38 = vpop.f32.mrb[54].mxu0 }
 0x835   :  { %14629 = vst [vmem:[#allocation50_spill] sm:$0xff] %v12870_v38  ;;  %v12872_v42 = vpop.f32.mrb[55].mxu0  ;;  %v5983_v35 = vmul.f32 %v12870_v38, %v12870_v38 }
 0x836   :  { %14630 = vst [vmem:[#allocation51_spill] sm:$0xff] %v12872_v42  ;;  %v6043_v27 = vadd.f32 %v6042_v58, %v5980_v36  ;;  %v5910_v15 = vadd.f32 %v5909_v52, %v12872_v42  ;;  %v5981_v56 = vmul.f32 %v12872_v42, %v12872_v42 }
 0x838   :  { %v5911_v63 = vadd.f32 %v12862_v2, %v5910_v15  ;;  %v6044_v26 = vadd.f32 %v6043_v27, %v5981_v56 }
 0x83a   :  { %v6045_v51 = vadd.f32 %v6044_v26, %v5982_v5  ;;  %v12882_v6 = vpop.f32.mrb[56].mxu0  ;;  %v5912_v47 = vadd.f32 %v12870_v38, %v5911_v63 }
 0x83b   :  { %14631 = vst [vmem:[#allocation52_spill] sm:$0xff] %v12882_v6  ;;  %v12885_v58 = vpop.f32.mrb[57].mxu0  ;;  %v5986_v63 = vmul.f32 %v12882_v6, %v12882_v6 }
 0x83c   :  { %14632 = vst [vmem:[#allocation84_spill] sm:$0xff] %v12885_v58  ;;  %v5913_v52 = vadd.f32 %v5912_v47, %v12885_v58  ;;  %v5984_v36 = vmul.f32 %v12885_v58, %v12885_v58  ;;  %v6046_v42 = vadd.f32 %v6045_v51, %v5983_v35  ;;  %v12890_v23 = vpop.f32.mrb[58].mxu0 }
 0x83d   :  { %14633 = vst [vmem:[#allocation53_spill] sm:$0xff] %v12890_v23  ;;  %v12892_v15 = vpop.f32.mrb[59].mxu0  ;;  %v5987_v58 = vmul.f32 %v12890_v23, %v12890_v23 }
 0x83e   :  { %14634 = vst [vmem:[#allocation85_spill] sm:$0xff] %v12892_v15  ;;  %v6047_v27 = vadd.f32 %v6046_v42, %v5984_v36  ;;  %v5914_v56 = vadd.f32 %v5913_v52, %v12892_v15  ;;  %v5985_v5 = vmul.f32 %v12892_v15, %v12892_v15 }
 0x840   :  { %v5915_v26 = vadd.f32 %v12882_v6, %v5914_v56  ;;  %v6048_v47 = vadd.f32 %v6047_v27, %v5985_v5 }
 0x842   :  { %v6049_v35 = vadd.f32 %v6048_v47, %v5986_v63  ;;  %v12902_v51 = vpop.f32.mrb[60].mxu0  ;;  %v5916_v38 = vadd.f32 %v12890_v23, %v5915_v26 }
 0x843   :  { %14635 = vst [vmem:[#allocation54_spill] sm:$0xff] %v12902_v51  ;;  %v12905_v42 = vpop.f32.mrb[61].mxu0  ;;  %v5990_v26 = vmul.f32 %v12902_v51, %v12902_v51 }
 0x844   :  { %v5917_v52 = vadd.f32 %v5916_v38, %v12905_v42  ;;  %v5988_v36 = vmul.f32 %v12905_v42, %v12905_v42  ;;  %v6050_v15 = vadd.f32 %v6049_v35, %v5987_v58  ;;  %v12910_v2 = vpop.f32.mrb[62].mxu0 }
 0x845   :  { %v12912_v56 = vpop.f32.mrb[63].mxu0  ;;  %v5991_v23 = vmul.f32 %v12910_v2, %v12910_v2 }
 0x846   :  { %v6051_v27 = vadd.f32 %v6050_v15, %v5988_v36  ;;  %v5918_v5 = vadd.f32 %v5917_v52, %v12912_v56  ;;  %v5989_v63 = vmul.f32 %v12912_v56, %v12912_v56 }
 0x848   :  { %v5919_v47 = vadd.f32 %v12902_v51, %v5918_v5  ;;  %v6052_v38 = vadd.f32 %v6051_v27, %v5989_v63  ;;  %v12925_v63 = vld [vmem:[#allocation3 + $0x8] sm:$0xff]  }
 0x849   :  { %14636 = vst [vmem:[#allocation22_spill] sm:$0xff] %v12925_v63  ;;  %v14688_v63 = vld [vmem:[#allocation83_spill] sm:$0xff] }
 0x84a   :  { %v5920_v58 = vadd.f32 %v12910_v2, %v5919_v47  ;;  %v6053_v35 = vadd.f32 %v6052_v38, %v5990_v26  ;;  %v12945_v38 = vld [vmem:[#allocation3 + $0x30] sm:$0xff]  }
 0x84b   :  { %14643 = vst [vmem:[#allocation59_spill] sm:$0xff] %v12945_v38  ;;  %v12990_v38 = vld [vmem:[#allocation3 + $0x98] sm:$0xff]  }
 0x84c   :  { %v5921_v6 = vrot.slane %v5920_v58, 4  ;;  %v6054_v41 = vadd.f32 %v6053_v35, %v5991_v23  ;;  %v12929_v23 = vld [vmem:[#allocation3] sm:$0xff]   ;;  %v12976_v35 = vld [vmem:[#allocation3 + $0x70] sm:$0xff]   ;;  %14654 = vst [vmem:[#allocation20_spill] sm:$0xff] %v12990_v38 }
 0x84d   :  { %14637 = vst [vmem:[#allocation56_spill] sm:$0xff] %v12929_v23  ;;  %14651 = vst [vmem:[#allocation65_spill] sm:$0xff] %v12976_v35  ;;  %v13022_v35 = vld [vmem:[#allocation3 + $0xd8] sm:$0xff]   ;;  %v13031_v38 = vld [vmem:[#allocation3 + $0xd0] sm:$0xff]  }
 0x84e   :  { %v5922_v15 = vadd.f32 %v5921_v6, %v5920_v58  ;;  %v6055_v36 = vrot.slane %v6054_v41, 4  ;;  %v12931_v6 = vld [vmem:[#allocation3 + $0x18] sm:$0xff]   ;;  %14662 = vst [vmem:[#allocation37_spill] sm:$0xff] %v13022_v35  ;;  %14663 = vst [vmem:[#allocation29_spill] sm:$0xff] %v13031_v38  ;;  %v14685_v38 = vld [vmem:[#allocation82_spill] sm:$0xff] }
 0x84f   :  { %14638 = vst [vmem:[#allocation57_spill] sm:$0xff] %v12931_v6  ;;  %v12974_v6 = vld [vmem:[#allocation3 + $0x78] sm:$0xff]  }
 0x850   :  { %v5923_v52 = vrot.slane %v5922_v15, 2  ;;  %v6056_v20 = vadd.f32 %v6055_v36, %v6054_v41  ;;  %v12933_v41 = vld [vmem:[#allocation3 + $0x10] sm:$0xff]   ;;  %14650 = vst [vmem:[#allocation40_spill] sm:$0xff] %v12974_v6  ;;  %v13039_v6 = vld [vmem:[#allocation3 + $0xe0] sm:$0xff]   ;;  %v14689_v23 = vld [vmem:[#allocation51_spill] sm:$0xff] }
 0x851   :  { %14639 = vst [vmem:[#allocation60_spill] sm:$0xff] %v12933_v41  ;;  %14665 = vst [vmem:[#allocation26_spill] sm:$0xff] %v13039_v6  ;;  %v6068_v36 = vld [vmem:[%s13701_s9] sm:$0x1]  ;;  %v14684_v6 = vld [vmem:[#allocation47_spill] sm:$0xff]  ;;  %s8395_s9 = smov [#allocation11]  }
 0x852   :  { %v5924_v40 = vadd.f32 %v5923_v52, %v5922_v15  ;;  %v6057_v32 = vrot.slane %v6056_v20, 2  ;;  %v12951_v52 = vld [vmem:[#allocation3 + $0x48] sm:$0xff]   ;;  %v12992_v15 = vld [vmem:[#allocation3 + $0x90] sm:$0xff]   ;;  %s6792_s30 = sshll.u32 %s8395_s9, 4  ;;  %s6793_s30 = int_to_ptr.vmem [resolvable:$true] %s6792_s30 }
 0x853   :  { %14644 = vst [vmem:[#allocation34_spill] sm:$0xff] %v12951_v52  ;;  %14655 = vst [vmem:[#allocation16_spill] sm:$0xff] %v12992_v15  ;;  %v14681_v15 = vld [vmem:[#allocation80_spill] sm:$0xff]  ;;  %s8358_s11 = scalar_lea.vmem %s6793_s30, 4096  ;;  %p8363_p5 = scmp.lt.s32.totalorder %s6793_s30, %s6793_s30 }
 0x854   :  { %v5925_v1 = vrot.slane %v5924_v40, 1  ;;  %v6058_v60 = vadd.f32 %v6057_v32, %v6056_v20  ;;  %v12943_v20 = vld [vmem:[#allocation3 + $0x38] sm:$0xff]   ;;  %v13000_v32 = vld [vmem:[#allocation3 + $0xa0] sm:$0xff]   ;;  %p8359_p4 = scmp.ne.s32.totalorder %s6793_s30, %s8358_s11  ;;  %p8364_p6 = scmp.lt.s32.totalorder %s8358_s11, %s8358_s11 }
 0x855   :  { %14642 = vst [vmem:[#allocation32_spill] sm:$0xff] %v12943_v20  ;;  %14657 = vst [vmem:[#allocation66_spill] sm:$0xff] %v13000_v32  ;;  %v7371_v32 = vld [vmem:[#allocation3 + $0xf0] sm:$0xff]  }
 0x856   :  { %v5926_v21 = vadd.f32 %v5925_v1, %v5924_v40  ;;  %v6059_v61 = vrot.slane %v6058_v60, 1  ;;  %v12936_v1 = vld [vmem:[#allocation3 + $0x28] sm:$0xff]   ;;  %v12958_v40 = vld [vmem:[#allocation3 + $0x58] sm:$0xff]   ;;  %p8365_p7 = por %p8364_p6, %p8363_p5 }
 0x857   :  { %14640 = vst [vmem:[#allocation30_spill] sm:$0xff] %v12936_v1  ;;  %14646 = vst [vmem:[#allocation38_spill] sm:$0xff] %v12958_v40  ;;  %v6064_v40 = vld [vmem:[%s13700_s8] sm:$0x1] }
 0x858   :  { %v12923_v5 = vmul.f32 0.001953125, %v5926_v21  ;;  %v6060_v27 = vadd.f32 %v6059_v61, %v6058_v60  ;;  %v12938_v21 = vld [vmem:[#allocation3 + $0x20] sm:$0xff]   ;;  %v12966_v61 = vld [vmem:[#allocation3 + $0x68] sm:$0xff]   ;;  %p8366_p8 = pnand %p8365_p7, %p8359_p4 }
 0x859   :  { %14641 = vst [vmem:[#allocation58_spill] sm:$0xff] %v12938_v21  ;;  %14648 = vst [vmem:[#allocation39_spill] sm:$0xff] %v12966_v61  ;;  %v12982_v21 = vld [vmem:[#allocation3 + $0x88] sm:$0xff]   ;;  %v12984_v60 = vld [vmem:[#allocation3 + $0x80] sm:$0xff]  }
 0x85a   :  { %v6061_v51 = vmul.f32 0.001953125, %v6060_v27  ;;  %v6062_v26 = vmul.f32 %v12923_v5, %v12923_v5  ;;  %v12953_v27 = vld [vmem:[#allocation3 + $0x40] sm:$0xff]   ;;  %14652 = vst [vmem:[#allocation18_spill] sm:$0xff] %v12982_v21  ;;  %14653 = vst [vmem:[#allocation67_spill] sm:$0xff] %v12984_v60  ;;  %v13033_v61 = vld [vmem:[#allocation3 + $0xe8] sm:$0xff]   ;;  %v7177_v21 = vunpack.c.h.bf16 %v7371_v32 }
 0x85b   :  { %14645 = vst [vmem:[#allocation63_spill] sm:$0xff] %v12953_v27  ;;  %v12998_v27 = vld [vmem:[#allocation3 + $0xa8] sm:$0xff]   ;;  %14664 = vst [vmem:[#allocation17_spill] sm:$0xff] %v13033_v61 }
 0x85c   :  { %v6063_v47 = vsub.f32 %v6061_v51, %v6062_v26  ;;  %v12968_v26 = vld [vmem:[#allocation3 + $0x60] sm:$0xff]   ;;  %14656 = vst [vmem:[#allocation23_spill] sm:$0xff] %v12998_v27  ;;  %v13008_v51 = vld [vmem:[#allocation3 + $0xb0] sm:$0xff]   ;;  %v7176_v27 = vunpack.c.l.bf16 %v7371_v32 }
 0x85d   :  { %14649 = vst [vmem:[#allocation61_spill] sm:$0xff] %v12968_v26  ;;  %14659 = vst [vmem:[#allocation42_spill] sm:$0xff] %v13008_v51  ;;  %v13014_v26 = vld [vmem:[#allocation3 + $0xc8] sm:$0xff]  }
 0x85e   :  { %v6065_v58 = vadd.f32 1e-05, %v6063_v47  ;;  %v12960_v47 = vld [vmem:[#allocation3 + $0x50] sm:$0xff]   ;;  %14660 = vst [vmem:[#allocation27_spill] sm:$0xff] %v13014_v26  ;;  %v14667_v26 = vld [vmem:[#allocation35_spill] sm:$0xff] }
 0x85f   :  { %14647 = vst [vmem:[#allocation36_spill] sm:$0xff] %v12960_v47  ;;  %v13006_v47 = vld [vmem:[#allocation3 + $0xb8] sm:$0xff]  }
 0x860   :  { %8248 = vrsqrt.f32 %v6065_v58  ;;  %14658 = vst [vmem:[#allocation25_spill] sm:$0xff] %v13006_v47  ;;  %v13016_v58 = vld [vmem:[#allocation3 + $0xc0] sm:$0xff]   ;;  %v13044_v47 = vld [vmem:[#allocation3 + $0xf8] sm:$0xff]  }
 0x861   :  { %14661 = vst [vmem:[#allocation19_spill] sm:$0xff] %v13016_v58  ;;  %14666 = vst [vmem:[#allocation21_spill] sm:$0xff] %v13044_v47 }
 0x86a   :  { %v8249_v1 = vpop.eup %8248 }
 0x86b   :  { %v6067_v41 = vmul.f32 %v8249_v1, %v6064_v40 }
 0x86d   :  { %v6069_v35 = vmul.f32 %v6067_v41, %v12923_v5  ;;  %v13057_v1 = vrot.slane %v6067_v41, %v14667_v26 }
 0x86f   :  { %v6070_v60 = vsub.f32 %v6068_v36, %v6069_v35  ;;  %v6265_v61 = vmul.f32 %v13057_v1, %v12905_v42  ;;  %v6266_v20 = vmul.f32 %v13057_v1, %v12912_v56  ;;  %v13067_v52 = vmul.f32 %v13057_v1, %v12605_v44 }
 0x870   :  { %v13071_v5 = vmul.f32 %v13057_v1, %v12609_v11  ;;  %v13075_v41 = vmul.f32 %v12603_v17, %v13057_v1  ;;  %v13079_v32 = vmul.f32 %v12607_v7, %v13057_v1  ;;  %v13083_v42 = vmul.f32 %v13057_v1, %v12625_v18 }
 0x871   :  { %v13086_v56 = vrot.slane %v6070_v60, %v14667_v26  ;;  %v13090_v44 = vmul.f32 %v13057_v1, %v12632_v9  ;;  %v13094_v11 = vmul.f32 %v12622_v30, %v13057_v1  ;;  %v13098_v17 = vmul.f32 %v12630_v46, %v13057_v1  ;;  %v14675_v26 = vld [vmem:[#allocation76_spill] sm:$0xff] }
 0x872   :  { %v13102_v7 = vmul.f32 %v13057_v1, %v12645_v0  ;;  %v13106_v18 = vmul.f32 %v13057_v1, %v12652_v48  ;;  %v13110_v9 = vmul.f32 %v12642_v57, %v13057_v1  ;;  %v13114_v30 = vmul.f32 %v12650_v62, %v13057_v1 }
 0x873   :  { %v6335_v60 = vadd.f32 %v13086_v56, %v6265_v61  ;;  %v6336_v46 = vadd.f32 %v13086_v56, %v6266_v20  ;;  %v13120_v0 = vmul.f32 %v13057_v1, %v12665_v50  ;;  %v13124_v48 = vmul.f32 %v13057_v1, %v12672_v8 }
 0x874   :  { %v13128_v57 = vmul.f32 %v12662_v28, %v13057_v1  ;;  %v13132_v62 = vmul.f32 %v12670_v53, %v13057_v1  ;;  %v13136_v61 = vmul.f32 %v13057_v1, %v12685_v45  ;;  %v13140_v50 = vmul.f32 %v13057_v1, %v12692_v25 }
 0x875   :  { %v6399_v20 = vadd.f32 %v7176_v27, %v6335_v60  ;;  %v6400_v35 = vadd.f32 %v7177_v21, %v6336_v46  ;;  %v13144_v8 = vmul.f32 %v12682_v3, %v13057_v1  ;;  %v13148_v28 = vmul.f32 %v12690_v31, %v13057_v1 }
 0x876   :  { %v13152_v53 = vmul.f32 %v13057_v1, %v12705_v13  ;;  %v13156_v45 = vmul.f32 %v13057_v1, %v12712_v59  ;;  %v13160_v25 = vmul.f32 %v12702_v33, %v13057_v1  ;;  %v13164_v3 = vmul.f32 %v12710_v43, %v13057_v1 }
 0x877   :  { %v6463_v21 = vmax.f32 %v6399_v20, 0.0  ;;  %v6464_v36 = vmax.f32 %v6400_v35, 0.0  ;;  %v13168_v31 = vmul.f32 %v13057_v1, %v12725_v34  ;;  %v13172_v13 = vmul.f32 %v13057_v1, %v12732_v54  ;;  %v14677_v20 = vld [vmem:[#allocation81_spill] sm:$0xff] }
 0x878   :  { %v13176_v59 = vmul.f32 %v12722_v16, %v13057_v1  ;;  %v13180_v33 = vmul.f32 %v12730_v49, %v13057_v1  ;;  %v13184_v43 = vmul.f32 %v13057_v1, %v12745_v10  ;;  %v13188_v34 = vmul.f32 %v13057_v1, %v12752_v12  ;;  %v14678_v35 = vld [vmem:[#allocation33_spill] sm:$0xff] }
 0x879   :  { %v7335_v27 = vpack.c.bf16 %v6464_v36, %v6463_v21  ;;  %v13192_v54 = vmul.f32 %v12742_v29, %v13057_v1  ;;  %v13196_v16 = vmul.f32 %v12750_v24, %v13057_v1  ;;  %v13200_v49 = vmul.f32 %v13057_v1, %v12765_v22  ;;  %v14679_v21 = vld [vmem:[#allocation43_spill] sm:$0xff] }
 0x87a   :  { %v13204_v10 = vmul.f32 %v13057_v1, %v12772_v4  ;;  %v13208_v12 = vmul.f32 %v12762_v37, %v13057_v1  ;;  %v13212_v29 = vmul.f32 %v12770_v19, %v13057_v1  ;;  %v13216_v24 = vmul.f32 %v13057_v1, %v12785_v55  ;;  %v14676_v37 = vld [vmem:[#allocation79_spill] sm:$0xff] }
 0x87b   :  { %14668 = vst [vmem:[#allocation28_spill] sm:$0xff] %v13192_v54  ;;  %14669 = vst [vmem:[#allocation71_spill] sm:$0xff] %v13196_v16  ;;  %v6242_v22 = vmul.f32 %v13057_v1, %v12792_v39  ;;  %v6243_v4 = vmul.f32 %v12782_v14, %v13057_v1  ;;  %v6244_v60 = vmul.f32 %v14675_v26, %v13057_v1  ;;  %v14682_v26 = vld [vmem:[#allocation44_spill] sm:$0xff] }
 0x87c   :  { %14670 = vst [vmem:[#allocation55_spill] sm:$0xff] %v13200_v49  ;;  %14671 = vst [vmem:[#allocation73_spill] sm:$0xff] %v13204_v10  ;;  %v6245_v46 = vmul.f32 %v13057_v1, %v14676_v37  ;;  %v6246_v19 = vmul.f32 %v13057_v1, %v14677_v20  ;;  %v6247_v55 = vmul.f32 %v14678_v35, %v13057_v1  ;;  %v14683_v37 = vld [vmem:[#allocation45_spill] sm:$0xff] }
 0x87d   :  { %14672 = vst [vmem:[#allocation62_spill] sm:$0xff] %v13208_v12  ;;  %14673 = vst [vmem:[#allocation70_spill] sm:$0xff] %v13212_v29  ;;  %v6248_v36 = vmul.f32 %v14679_v21, %v13057_v1  ;;  %v6250_v14 = vmul.f32 %v13057_v1, %v14681_v15  ;;  %v6251_v40 = vmul.f32 %v14682_v26, %v13057_v1  ;;  %v14686_v21 = vld [vmem:[#allocation46_spill] sm:$0xff]  ;;  %v14692_v12 = vld [vmem:[#allocation84_spill] sm:$0xff] }
 0x87e   :  { %14674 = vst [vmem:[#allocation64_spill] sm:$0xff] %v13216_v24  ;;  %7402 = vst [vmem:[#allocation11 + $0xf0] sm:$0xff] %v7335_v27   ;;  %v14680_v27 = vld [vmem:[#allocation78_spill] sm:$0xff]  ;;  %v6252_v47 = vmul.f32 %v14683_v37, %v13057_v1  ;;  %v6253_v20 = vmul.f32 %v13057_v1, %v14684_v6  ;;  %v6254_v35 = vmul.f32 %v13057_v1, %v14685_v38  ;;  %v14690_v37 = vld [vmem:[#allocation49_spill] sm:$0xff] }
 0x87f   :  { %v6249_v39 = vmul.f32 %v13057_v1, %v14680_v27  ;;  %v6255_v58 = vmul.f32 %v14686_v21, %v13057_v1  ;;  %v14687_v27 = vld [vmem:[#allocation48_spill] sm:$0xff]  ;;  %v6257_v15 = vmul.f32 %v13057_v1, %v14688_v63  ;;  %v6258_v26 = vmul.f32 %v13057_v1, %v14689_v23  ;;  %v14691_v6 = vld [vmem:[#allocation50_spill] sm:$0xff]  ;;  %v14693_v10 = vld [vmem:[#allocation85_spill] sm:$0xff] }
 0x880   :  { %v6256_v51 = vmul.f32 %v14687_v27, %v13057_v1  ;;  %v6259_v24 = vmul.f32 %v14690_v37, %v13057_v1  ;;  %v6260_v29 = vmul.f32 %v14691_v6, %v13057_v1  ;;  %v6261_v38 = vmul.f32 %v13057_v1, %v14692_v12  ;;  %v14694_v27 = vld [vmem:[#allocation52_spill] sm:$0xff]  ;;  %v14695_v63 = vld [vmem:[#allocation53_spill] sm:$0xff]  ;;  %v14696_v23 = vld [vmem:[#allocation54_spill] sm:$0xff] }
 0x881   :  { %v6262_v21 = vmul.f32 %v13057_v1, %v14693_v10  ;;  %v6263_v49 = vmul.f32 %v14694_v27, %v13057_v1  ;;  %v6264_v16 = vmul.f32 %v14695_v63, %v13057_v1  ;;  %v6267_v54 = vmul.f32 %v14696_v23, %v13057_v1 }
 0x882   :  { %v6268_v37 = vmul.f32 %v12910_v2, %v13057_v1  ;;  %v6275_v6 = vadd.f32 %v13086_v56, %v13067_v52  ;;  %v6276_v12 = vadd.f32 %v13086_v56, %v13071_v5  ;;  %v6277_v10 = vadd.f32 %v13086_v56, %v13075_v41 }
 0x883   :  { %v6278_v27 = vadd.f32 %v13086_v56, %v13079_v32  ;;  %v6279_v63 = vadd.f32 %v13086_v56, %v13083_v42  ;;  %v6280_v23 = vadd.f32 %v13086_v56, %v13090_v44  ;;  %v6281_v2 = vadd.f32 %v13086_v56, %v13094_v11 }
 0x884   :  { %v6282_v52 = vadd.f32 %v13086_v56, %v13098_v17  ;;  %v6283_v1 = vadd.f32 %v13086_v56, %v13102_v7  ;;  %v6284_v5 = vadd.f32 %v13086_v56, %v13106_v18  ;;  %v6285_v41 = vadd.f32 %v13086_v56, %v13110_v9 }
 0x885   :  { %v6286_v32 = vadd.f32 %v13086_v56, %v13114_v30  ;;  %v6287_v42 = vadd.f32 %v13086_v56, %v13120_v0  ;;  %v6288_v44 = vadd.f32 %v13086_v56, %v13124_v48  ;;  %v6289_v11 = vadd.f32 %v13086_v56, %v13128_v57 }
 0x886   :  { %v6290_v17 = vadd.f32 %v13086_v56, %v13132_v62  ;;  %v6291_v7 = vadd.f32 %v13086_v56, %v13136_v61  ;;  %v6292_v18 = vadd.f32 %v13086_v56, %v13140_v50  ;;  %v6293_v9 = vadd.f32 %v13086_v56, %v13144_v8 }
 0x887   :  { %v6294_v30 = vadd.f32 %v13086_v56, %v13148_v28  ;;  %v6295_v0 = vadd.f32 %v13086_v56, %v13152_v53  ;;  %v6296_v48 = vadd.f32 %v13086_v56, %v13156_v45  ;;  %v6297_v57 = vadd.f32 %v13086_v56, %v13160_v25  ;;  %v14697_v25 = vld [vmem:[#allocation28_spill] sm:$0xff] }
 0x888   :  { %v6298_v62 = vadd.f32 %v13086_v56, %v13164_v3  ;;  %v6299_v61 = vadd.f32 %v13086_v56, %v13168_v31  ;;  %v6300_v50 = vadd.f32 %v13086_v56, %v13172_v13  ;;  %v6301_v8 = vadd.f32 %v13086_v56, %v13176_v59  ;;  %v14698_v31 = vld [vmem:[#allocation71_spill] sm:$0xff] }
 0x889   :  { %v6302_v28 = vadd.f32 %v13086_v56, %v13180_v33  ;;  %v6303_v53 = vadd.f32 %v13086_v56, %v13184_v43  ;;  %v6304_v45 = vadd.f32 %v13086_v56, %v13188_v34  ;;  %v6305_v3 = vadd.f32 %v13086_v56, %v14697_v25  ;;  %v14699_v59 = vld [vmem:[#allocation55_spill] sm:$0xff]  ;;  %v14700_v43 = vld [vmem:[#allocation73_spill] sm:$0xff]  ;;  %v14701_v25 = vld [vmem:[#allocation62_spill] sm:$0xff] }
 0x88a   :  { %v6306_v13 = vadd.f32 %v13086_v56, %v14698_v31  ;;  %v6307_v33 = vadd.f32 %v13086_v56, %v14699_v59  ;;  %v6308_v34 = vadd.f32 %v13086_v56, %v14700_v43  ;;  %v6309_v31 = vadd.f32 %v13086_v56, %v14701_v25  ;;  %v14702_v59 = vld [vmem:[#allocation70_spill] sm:$0xff]  ;;  %v14703_v25 = vld [vmem:[#allocation64_spill] sm:$0xff] }
 0x88b   :  { %v6310_v43 = vadd.f32 %v13086_v56, %v14702_v59  ;;  %v6311_v59 = vadd.f32 %v13086_v56, %v14703_v25  ;;  %v6312_v25 = vadd.f32 %v13086_v56, %v6242_v22  ;;  %v6313_v22 = vadd.f32 %v13086_v56, %v6243_v4 }
 0x88c   :  { %v6314_v4 = vadd.f32 %v13086_v56, %v6244_v60  ;;  %v6315_v60 = vadd.f32 %v13086_v56, %v6245_v46  ;;  %v6316_v46 = vadd.f32 %v13086_v56, %v6246_v19  ;;  %v6317_v19 = vadd.f32 %v13086_v56, %v6247_v55 }
 0x88d   :  { %v6318_v55 = vadd.f32 %v13086_v56, %v6248_v36  ;;  %v6319_v36 = vadd.f32 %v13086_v56, %v6249_v39  ;;  %v6320_v39 = vadd.f32 %v13086_v56, %v6250_v14  ;;  %v6321_v14 = vadd.f32 %v13086_v56, %v6251_v40 }
 0x88e   :  { %v6322_v40 = vadd.f32 %v13086_v56, %v6252_v47  ;;  %v6323_v47 = vadd.f32 %v13086_v56, %v6253_v20  ;;  %v6324_v20 = vadd.f32 %v13086_v56, %v6254_v35  ;;  %v6325_v35 = vadd.f32 %v13086_v56, %v6255_v58 }
 0x88f   :  { %v6326_v58 = vadd.f32 %v13086_v56, %v6256_v51  ;;  %v6327_v51 = vadd.f32 %v13086_v56, %v6257_v15  ;;  %v6328_v15 = vadd.f32 %v13086_v56, %v6258_v26  ;;  %v6329_v26 = vadd.f32 %v13086_v56, %v6259_v24 }
 0x890   :  { %v6330_v24 = vadd.f32 %v13086_v56, %v6260_v29  ;;  %v6331_v29 = vadd.f32 %v13086_v56, %v6261_v38  ;;  %v6332_v38 = vadd.f32 %v13086_v56, %v6262_v21  ;;  %v6333_v21 = vadd.f32 %v13086_v56, %v6263_v49 }
 0x891   :  { %v6334_v49 = vadd.f32 %v13086_v56, %v6264_v16  ;;  %v6337_v16 = vadd.f32 %v13086_v56, %v6267_v54  ;;  %v6338_v54 = vadd.f32 %v13086_v56, %v6268_v37  ;;  %v14704_v37 = vld [vmem:[#allocation56_spill] sm:$0xff] }
 0x892   :  { %v14705_v56 = vunpack.c.l.bf16 %v14704_v37 }
 0x894   :  { %v13369_v37 = vadd.f32 %v14705_v56, %v6275_v6  ;;  %v14707_v6 = vld [vmem:[#allocation56_spill] sm:$0xff] }
 0x895   :  { %v14708_v56 = vunpack.c.h.bf16 %v14707_v6  ;;  %v14710_v6 = vld [vmem:[#allocation22_spill] sm:$0xff] }
 0x896   :  { %14706 = vst [vmem:[#allocation72_spill] sm:$0xff] %v13369_v37 }
 0x897   :  { %v13373_v37 = vadd.f32 %v14708_v56, %v6276_v12  ;;  %v14711_v12 = vunpack.c.l.bf16 %v14710_v6 }
 0x899   :  { %14709 = vst [vmem:[#allocation68_spill] sm:$0xff] %v13373_v37  ;;  %v13377_v56 = vadd.f32 %v14711_v12, %v6277_v10  ;;  %v14713_v37 = vunpack.c.h.bf16 %v14710_v6  ;;  %v14715_v12 = vld [vmem:[#allocation60_spill] sm:$0xff] }
 0x89b   :  { %14712 = vst [vmem:[#allocation75_spill] sm:$0xff] %v13377_v56  ;;  %v13381_v10 = vadd.f32 %v14713_v37, %v6278_v27  ;;  %v14716_v56 = vunpack.c.l.bf16 %v14715_v12  ;;  %v14718_v27 = vunpack.c.h.bf16 %v14715_v12 }
 0x89d   :  { %14714 = vst [vmem:[#allocation41_spill] sm:$0xff] %v13381_v10  ;;  %v13385_v6 = vadd.f32 %v14716_v56, %v6279_v63  ;;  %v13389_v37 = vadd.f32 %v14718_v27, %v6280_v23  ;;  %v14720_v10 = vld [vmem:[#allocation57_spill] sm:$0xff]  ;;  %v14725_v23 = vld [vmem:[#allocation58_spill] sm:$0xff] }
 0x89e   :  { %v14721_v56 = vunpack.c.l.bf16 %v14720_v10  ;;  %v14726_v27 = vunpack.c.l.bf16 %v14725_v23 }
 0x89f   :  { %14717 = vst [vmem:[#allocation77_spill] sm:$0xff] %v13385_v6  ;;  %14719 = vst [vmem:[#allocation69_spill] sm:$0xff] %v13389_v37  ;;  %v14723_v6 = vunpack.c.h.bf16 %v14720_v10 }
 0x8a0   :  { %v13393_v63 = vadd.f32 %v14721_v56, %v6281_v2  ;;  %v13401_v37 = vadd.f32 %v14726_v27, %v6283_v1  ;;  %v14728_v2 = vunpack.c.h.bf16 %v14725_v23  ;;  %v14735_v1 = vld [vmem:[#allocation59_spill] sm:$0xff] }
 0x8a1   :  { %v13397_v12 = vadd.f32 %v14723_v6, %v6282_v52  ;;  %v14736_v27 = vunpack.c.l.bf16 %v14735_v1  ;;  %v14737_v23 = vunpack.c.h.bf16 %v14735_v1 }
 0x8a2   :  { %14722 = vst [vmem:[#allocation74_spill] sm:$0xff] %v13393_v63  ;;  %14727 = vst [vmem:[#allocation24_spill] sm:$0xff] %v13401_v37  ;;  %v13405_v56 = vadd.f32 %v14728_v2, %v6284_v5  ;;  %v14730_v63 = vld [vmem:[#allocation30_spill] sm:$0xff]  ;;  %v14738_v5 = vld [vmem:[#allocation32_spill] sm:$0xff] }
 0x8a3   :  { %14724 = vst [vmem:[#allocation31_spill] sm:$0xff] %v13397_v12  ;;  %v14731_v10 = vunpack.c.l.bf16 %v14730_v63  ;;  %v14733_v52 = vunpack.c.h.bf16 %v14730_v63  ;;  %v13417_v37 = vadd.f32 %v14736_v27, %v6287_v42  ;;  %v13421_v2 = vadd.f32 %v14737_v23, %v6288_v44  ;;  %v14741_v63 = vld [vmem:[#allocation63_spill] sm:$0xff]  ;;  %v14744_v27 = vld [vmem:[#allocation34_spill] sm:$0xff] }
 0x8a4   :  { %14729 = vst [vmem:[#allocation35_spill] sm:$0xff] %v13405_v56  ;;  %v14739_v56 = vunpack.c.l.bf16 %v14738_v5  ;;  %v14745_v1 = vunpack.c.l.bf16 %v14744_v27  ;;  %v14746_v23 = vunpack.c.h.bf16 %v14744_v27 }
 0x8a5   :  { %v13409_v6 = vadd.f32 %v14731_v10, %v6285_v41  ;;  %v13413_v12 = vadd.f32 %v14733_v52, %v6286_v32  ;;  %v14740_v41 = vunpack.c.h.bf16 %v14738_v5  ;;  %v14742_v32 = vunpack.c.l.bf16 %v14741_v63 }
 0x8a6   :  { %v13425_v10 = vadd.f32 %v14739_v56, %v6289_v11  ;;  %v13441_v44 = vadd.f32 %v14745_v1, %v6293_v9  ;;  %v13445_v11 = vadd.f32 %v14746_v23, %v6294_v30  ;;  %v14747_v56 = vld [vmem:[#allocation36_spill] sm:$0xff]  ;;  %v14753_v1 = vld [vmem:[#allocation61_spill] sm:$0xff] }
 0x8a7   :  { %14732 = vst [vmem:[#allocation76_spill] sm:$0xff] %v13409_v6  ;;  %14734 = vst [vmem:[#allocation79_spill] sm:$0xff] %v13413_v12  ;;  %v13429_v6 = vadd.f32 %v14740_v41, %v6290_v17  ;;  %v13433_v52 = vadd.f32 %v14742_v32, %v6291_v7  ;;  %v14743_v12 = vunpack.c.h.bf16 %v14741_v63  ;;  %v14748_v5 = vunpack.c.l.bf16 %v14747_v56  ;;  %v14750_v32 = vld [vmem:[#allocation38_spill] sm:$0xff] }
 0x8a8   :  { %v14749_v41 = vunpack.c.h.bf16 %v14747_v56  ;;  %v14751_v63 = vunpack.c.l.bf16 %v14750_v32  ;;  %v14754_v27 = vunpack.c.l.bf16 %v14753_v1  ;;  %v14755_v23 = vunpack.c.h.bf16 %v14753_v1 }
 0x8a9   :  { %v13437_v42 = vadd.f32 %v14743_v12, %v6292_v18  ;;  %v13449_v17 = vadd.f32 %v14748_v5, %v6295_v0  ;;  %v14752_v12 = vunpack.c.h.bf16 %v14750_v32  ;;  %v14756_v5 = vld [vmem:[#allocation39_spill] sm:$0xff] }
 0x8aa   :  { %v13453_v7 = vadd.f32 %v14749_v41, %v6296_v48  ;;  %v13457_v18 = vadd.f32 %v14751_v63, %v6297_v57  ;;  %v13465_v30 = vadd.f32 %v14754_v27, %v6299_v61  ;;  %v13469_v0 = vadd.f32 %v14755_v23, %v6300_v50  ;;  %v14759_v63 = vld [vmem:[#allocation65_spill] sm:$0xff]  ;;  %v14762_v27 = vld [vmem:[#allocation40_spill] sm:$0xff] }
 0x8ab   :  { %v13461_v9 = vadd.f32 %v14752_v12, %v6298_v62  ;;  %v14757_v56 = vunpack.c.l.bf16 %v14756_v5  ;;  %v14758_v41 = vunpack.c.h.bf16 %v14756_v5  ;;  %v14760_v32 = vunpack.c.l.bf16 %v14759_v63 }
 0x8ac   :  { %v14761_v12 = vunpack.c.h.bf16 %v14759_v63  ;;  %v14763_v1 = vunpack.c.l.bf16 %v14762_v27  ;;  %v14764_v23 = vunpack.c.h.bf16 %v14762_v27 }
 0x8ad   :  { %v13473_v48 = vadd.f32 %v14757_v56, %v6301_v8  ;;  %v13477_v57 = vadd.f32 %v14758_v41, %v6302_v28  ;;  %v13481_v62 = vadd.f32 %v14760_v32, %v6303_v53  ;;  %v14765_v56 = vld [vmem:[#allocation67_spill] sm:$0xff]  ;;  %v14768_v32 = vld [vmem:[#allocation18_spill] sm:$0xff] }
 0x8ae   :  { %v13485_v61 = vadd.f32 %v14761_v12, %v6304_v45  ;;  %v13489_v50 = vadd.f32 %v14763_v1, %v6305_v3  ;;  %v13493_v8 = vadd.f32 %v14764_v23, %v6306_v13  ;;  %v14766_v5 = vunpack.c.l.bf16 %v14765_v56  ;;  %v14771_v1 = vld [vmem:[#allocation16_spill] sm:$0xff] }
 0x8af   :  { %v14767_v41 = vunpack.c.h.bf16 %v14765_v56  ;;  %v14769_v63 = vunpack.c.l.bf16 %v14768_v32  ;;  %v14770_v12 = vunpack.c.h.bf16 %v14768_v32  ;;  %v14772_v27 = vunpack.c.l.bf16 %v14771_v1 }
 0x8b0   :  { %v13497_v28 = vadd.f32 %v14766_v5, %v6307_v33  ;;  %v14773_v23 = vunpack.c.h.bf16 %v14771_v1  ;;  %v14774_v5 = vld [vmem:[#allocation20_spill] sm:$0xff] }
 0x8b1   :  { %v13501_v53 = vadd.f32 %v14767_v41, %v6308_v34  ;;  %v13505_v45 = vadd.f32 %v14769_v63, %v6309_v31  ;;  %v13509_v3 = vadd.f32 %v14770_v12, %v6310_v43  ;;  %v13513_v13 = vadd.f32 %v14772_v27, %v6311_v59  ;;  %v14777_v63 = vld [vmem:[#allocation66_spill] sm:$0xff]  ;;  %v14780_v27 = vld [vmem:[#allocation23_spill] sm:$0xff] }
 0x8b2   :  { %v13517_v33 = vadd.f32 %v14773_v23, %v6312_v25  ;;  %v14775_v56 = vunpack.c.l.bf16 %v14774_v5  ;;  %v14776_v41 = vunpack.c.h.bf16 %v14774_v5  ;;  %v14778_v32 = vunpack.c.l.bf16 %v14777_v63 }
 0x8b3   :  { %v14779_v12 = vunpack.c.h.bf16 %v14777_v63  ;;  %v14781_v1 = vunpack.c.l.bf16 %v14780_v27  ;;  %v14782_v23 = vunpack.c.h.bf16 %v14780_v27 }
 0x8b4   :  { %v13521_v34 = vadd.f32 %v14775_v56, %v6313_v22  ;;  %v13525_v31 = vadd.f32 %v14776_v41, %v6314_v4  ;;  %v13529_v43 = vadd.f32 %v14778_v32, %v6315_v60  ;;  %v14783_v56 = vld [vmem:[#allocation42_spill] sm:$0xff]  ;;  %v14786_v32 = vld [vmem:[#allocation25_spill] sm:$0xff] }
 0x8b5   :  { %v13533_v59 = vadd.f32 %v14779_v12, %v6316_v46  ;;  %v13537_v25 = vadd.f32 %v14781_v1, %v6317_v19  ;;  %v13541_v22 = vadd.f32 %v14782_v23, %v6318_v55  ;;  %v14784_v5 = vunpack.c.l.bf16 %v14783_v56  ;;  %v14789_v1 = vld [vmem:[#allocation19_spill] sm:$0xff] }
 0x8b6   :  { %v14785_v41 = vunpack.c.h.bf16 %v14783_v56  ;;  %v14787_v63 = vunpack.c.l.bf16 %v14786_v32  ;;  %v14788_v12 = vunpack.c.h.bf16 %v14786_v32  ;;  %v14790_v27 = vunpack.c.l.bf16 %v14789_v1 }
 0x8b7   :  { %v13545_v4 = vadd.f32 %v14784_v5, %v6319_v36  ;;  %v14791_v23 = vunpack.c.h.bf16 %v14789_v1  ;;  %v14792_v5 = vld [vmem:[#allocation27_spill] sm:$0xff] }
 0x8b8   :  { %v13549_v60 = vadd.f32 %v14785_v41, %v6320_v39  ;;  %v13553_v46 = vadd.f32 %v14787_v63, %v6321_v14  ;;  %v13557_v19 = vadd.f32 %v14788_v12, %v6322_v40  ;;  %v13561_v55 = vadd.f32 %v14790_v27, %v6323_v47  ;;  %v14795_v63 = vld [vmem:[#allocation29_spill] sm:$0xff] }
 0x8b9   :  { %v13565_v36 = vadd.f32 %v14791_v23, %v6324_v20  ;;  %v14793_v56 = vunpack.c.l.bf16 %v14792_v5  ;;  %v14794_v41 = vunpack.c.h.bf16 %v14792_v5  ;;  %v14796_v32 = vunpack.c.l.bf16 %v14795_v63  ;;  %v14798_v27 = vld [vmem:[#allocation37_spill] sm:$0xff] }
 0x8ba   :  { %v14797_v12 = vunpack.c.h.bf16 %v14795_v63  ;;  %v14799_v1 = vunpack.c.l.bf16 %v14798_v27  ;;  %v14801_v23 = vunpack.c.h.bf16 %v14798_v27 }
 0x8bb   :  { %v13569_v39 = vadd.f32 %v14793_v56, %v6325_v35  ;;  %v13573_v14 = vadd.f32 %v14794_v41, %v6326_v58  ;;  %v13577_v40 = vadd.f32 %v14796_v32, %v6327_v51  ;;  %v14803_v56 = vld [vmem:[#allocation26_spill] sm:$0xff]  ;;  %v14808_v32 = vld [vmem:[#allocation17_spill] sm:$0xff] }
 0x8bc   :  { %v13581_v47 = vadd.f32 %v14797_v12, %v6328_v15  ;;  %v13585_v20 = vadd.f32 %v14799_v1, %v6329_v26  ;;  %v13589_v35 = vadd.f32 %v14801_v23, %v6330_v24  ;;  %v14804_v5 = vunpack.c.l.bf16 %v14803_v56  ;;  %v14813_v1 = vld [vmem:[#allocation21_spill] sm:$0xff] }
 0x8bd   :  { %v14806_v41 = vunpack.c.h.bf16 %v14803_v56  ;;  %v14809_v63 = vunpack.c.l.bf16 %v14808_v32  ;;  %v14811_v12 = vunpack.c.h.bf16 %v14808_v32  ;;  %v14814_v27 = vunpack.c.l.bf16 %v14813_v1 }
 0x8be   :  { %14800 = vst [vmem:[#allocation81_spill] sm:$0xff] %v13585_v20  ;;  %14802 = vst [vmem:[#allocation33_spill] sm:$0xff] %v13589_v35  ;;  %v13593_v58 = vadd.f32 %v14804_v5, %v6331_v29  ;;  %v14816_v23 = vunpack.c.h.bf16 %v14813_v1  ;;  %v14818_v5 = vld [vmem:[#allocation72_spill] sm:$0xff]  ;;  %v14829_v20 = vld [vmem:[#allocation79_spill] sm:$0xff] }
 0x8bf   :  { %v13597_v51 = vadd.f32 %v14806_v41, %v6332_v38  ;;  %v13601_v15 = vadd.f32 %v14809_v63, %v6333_v21  ;;  %v13605_v26 = vadd.f32 %v14811_v12, %v6334_v49  ;;  %v13609_v24 = vadd.f32 %v14814_v27, %v6337_v16  ;;  %v14819_v38 = vld [vmem:[#allocation68_spill] sm:$0xff]  ;;  %v14821_v21 = vld [vmem:[#allocation41_spill] sm:$0xff]  ;;  %v14825_v16 = vld [vmem:[#allocation31_spill] sm:$0xff] }
 0x8c0   :  { %14805 = vst [vmem:[#allocation43_spill] sm:$0xff] %v13593_v58  ;;  %v13613_v29 = vadd.f32 %v14816_v23, %v6338_v54  ;;  %v6403_v56 = vmax.f32 %v14818_v5, 0.0  ;;  %v6404_v41 = vmax.f32 %v14819_v38, 0.0  ;;  %v6406_v63 = vmax.f32 %v14821_v21, 0.0  ;;  %v14823_v49 = vld [vmem:[#allocation69_spill] sm:$0xff]  ;;  %v14827_v54 = vld [vmem:[#allocation35_spill] sm:$0xff] }
 0x8c1   :  { %14807 = vst [vmem:[#allocation78_spill] sm:$0xff] %v13597_v51  ;;  %14810 = vst [vmem:[#allocation80_spill] sm:$0xff] %v13601_v15  ;;  %v14820_v51 = vld [vmem:[#allocation75_spill] sm:$0xff]  ;;  %v14822_v15 = vld [vmem:[#allocation77_spill] sm:$0xff]  ;;  %v6408_v12 = vmax.f32 %v14823_v49, 0.0  ;;  %v6410_v27 = vmax.f32 %v14825_v16, 0.0 }
 0x8c2   :  { %14812 = vst [vmem:[#allocation44_spill] sm:$0xff] %v13605_v26  ;;  %14815 = vst [vmem:[#allocation45_spill] sm:$0xff] %v13609_v24  ;;  %v6405_v58 = vmax.f32 %v14820_v51, 0.0  ;;  %v6407_v32 = vmax.f32 %v14822_v15, 0.0  ;;  %v14824_v26 = vld [vmem:[#allocation74_spill] sm:$0xff]  ;;  %v14826_v24 = vld [vmem:[#allocation24_spill] sm:$0xff] }
 0x8c3   :  { %14817 = vst [vmem:[#allocation47_spill] sm:$0xff] %v13613_v29  ;;  %v6409_v35 = vmax.f32 %v14824_v26, 0.0  ;;  %v6411_v1 = vmax.f32 %v14826_v24, 0.0  ;;  %v6412_v23 = vmax.f32 %v14827_v54, 0.0  ;;  %v14828_v29 = vld [vmem:[#allocation76_spill] sm:$0xff]  ;;  %v6414_v38 = vmax.f32 %v14829_v20, 0.0 }
 0x8c4   :  { %v6413_v5 = vmax.f32 %v14828_v29, 0.0  ;;  %v6415_v51 = vmax.f32 %v13417_v37, 0.0  ;;  %v6416_v21 = vmax.f32 %v13421_v2, 0.0  ;;  %v6417_v15 = vmax.f32 %v13425_v10, 0.0 }
 0x8c5   :  { %v6418_v49 = vmax.f32 %v13429_v6, 0.0  ;;  %v6419_v26 = vmax.f32 %v13433_v52, 0.0  ;;  %v6420_v16 = vmax.f32 %v13437_v42, 0.0  ;;  %v6421_v24 = vmax.f32 %v13441_v44, 0.0 }
 0x8c6   :  { %v6422_v54 = vmax.f32 %v13445_v11, 0.0  ;;  %v6423_v29 = vmax.f32 %v13449_v17, 0.0  ;;  %v6424_v20 = vmax.f32 %v13453_v7, 0.0  ;;  %v6425_v37 = vmax.f32 %v13457_v18, 0.0 }
 0x8c7   :  { %v6426_v2 = vmax.f32 %v13461_v9, 0.0  ;;  %v6427_v10 = vmax.f32 %v13465_v30, 0.0  ;;  %v6428_v6 = vmax.f32 %v13469_v0, 0.0  ;;  %v6429_v52 = vmax.f32 %v13473_v48, 0.0 }
 0x8c8   :  { %v6430_v42 = vmax.f32 %v13477_v57, 0.0  ;;  %v6431_v44 = vmax.f32 %v13481_v62, 0.0  ;;  %v6432_v11 = vmax.f32 %v13485_v61, 0.0  ;;  %v6433_v17 = vmax.f32 %v13489_v50, 0.0 }
 0x8c9   :  { %v6434_v7 = vmax.f32 %v13493_v8, 0.0  ;;  %v6435_v18 = vmax.f32 %v13497_v28, 0.0  ;;  %v6436_v9 = vmax.f32 %v13501_v53, 0.0  ;;  %v6437_v30 = vmax.f32 %v13505_v45, 0.0 }
 0x8ca   :  { %v6438_v0 = vmax.f32 %v13509_v3, 0.0  ;;  %v6439_v48 = vmax.f32 %v13513_v13, 0.0  ;;  %v6440_v57 = vmax.f32 %v13517_v33, 0.0  ;;  %v6441_v62 = vmax.f32 %v13521_v34, 0.0 }
 0x8cb   :  { %v6442_v61 = vmax.f32 %v13525_v31, 0.0  ;;  %v6443_v50 = vmax.f32 %v13529_v43, 0.0  ;;  %v6444_v8 = vmax.f32 %v13533_v59, 0.0  ;;  %v6445_v28 = vmax.f32 %v13537_v25, 0.0 }
 0x8cc   :  { %v6446_v53 = vmax.f32 %v13541_v22, 0.0  ;;  %v6447_v45 = vmax.f32 %v13545_v4, 0.0  ;;  %v6448_v3 = vmax.f32 %v13549_v60, 0.0  ;;  %v6449_v13 = vmax.f32 %v13553_v46, 0.0  ;;  %v14830_v4 = vld [vmem:[#allocation81_spill] sm:$0xff] }
 0x8cd   :  { %v6450_v33 = vmax.f32 %v13557_v19, 0.0  ;;  %v6451_v34 = vmax.f32 %v13561_v55, 0.0  ;;  %v6452_v31 = vmax.f32 %v13565_v36, 0.0  ;;  %v6453_v43 = vmax.f32 %v13569_v39, 0.0  ;;  %v14831_v46 = vld [vmem:[#allocation33_spill] sm:$0xff]  ;;  %v14832_v55 = vld [vmem:[#allocation43_spill] sm:$0xff] }
 0x8ce   :  { %v6454_v59 = vmax.f32 %v13573_v14, 0.0  ;;  %v6455_v25 = vmax.f32 %v13577_v40, 0.0  ;;  %v6456_v22 = vmax.f32 %v13581_v47, 0.0  ;;  %v6457_v60 = vmax.f32 %v14830_v4, 0.0  ;;  %v14833_v39 = vld [vmem:[#allocation78_spill] sm:$0xff]  ;;  %v14834_v40 = vld [vmem:[#allocation80_spill] sm:$0xff] }
 0x8cf   :  { %v6458_v19 = vmax.f32 %v14831_v46, 0.0  ;;  %v6459_v36 = vmax.f32 %v14832_v55, 0.0  ;;  %v6460_v14 = vmax.f32 %v14833_v39, 0.0  ;;  %v6461_v47 = vmax.f32 %v14834_v40, 0.0  ;;  %v14835_v4 = vld [vmem:[#allocation44_spill] sm:$0xff]  ;;  %v14836_v55 = vld [vmem:[#allocation45_spill] sm:$0xff] }
 0x8d0   :  { %v6462_v46 = vmax.f32 %v14835_v4, 0.0  ;;  %v6465_v39 = vmax.f32 %v14836_v55, 0.0  ;;  %v14837_v40 = vld [vmem:[#allocation47_spill] sm:$0xff]  ;;  %v7185_v55 = vpack.c.bf16 %v6404_v41, %v6403_v56  ;;  %v7195_v41 = vpack.c.bf16 %v6408_v12, %v6407_v32 }
 0x8d1   :  { %v6466_v4 = vmax.f32 %v14837_v40, 0.0  ;;  %v7190_v40 = vpack.c.bf16 %v6406_v63, %v6405_v58  ;;  %v7200_v56 = vpack.c.bf16 %v6410_v27, %v6409_v35  ;;  %v7205_v58 = vpack.c.bf16 %v6412_v23, %v6411_v1 }
 0x8d2   :  { %7186 = vst [vmem:[#allocation11] sm:$0xff] %v7185_v55   ;;  %v7210_v63 = vpack.c.bf16 %v6414_v38, %v6413_v5  ;;  %v7215_v12 = vpack.c.bf16 %v6416_v21, %v6415_v51  ;;  %v7220_v32 = vpack.c.bf16 %v6418_v49, %v6417_v15  ;;  %v7225_v27 = vpack.c.bf16 %v6420_v16, %v6419_v26 }
 0x8d3   :  { %7373 = vst [vmem:[#allocation11 + $0x8] sm:$0xff] %v7190_v40   ;;  %7374 = vst [vmem:[#allocation11 + $0x10] sm:$0xff] %v7195_v41   ;;  %v7230_v35 = vpack.c.bf16 %v6422_v54, %v6421_v24  ;;  %v7235_v1 = vpack.c.bf16 %v6424_v20, %v6423_v29  ;;  %v7240_v23 = vpack.c.bf16 %v6426_v2, %v6425_v37 }
 0x8d4   :  { %7375 = vst [vmem:[#allocation11 + $0x18] sm:$0xff] %v7200_v56   ;;  %7376 = vst [vmem:[#allocation11 + $0x20] sm:$0xff] %v7205_v58   ;;  %v7245_v55 = vpack.c.bf16 %v6428_v6, %v6427_v10  ;;  %v7250_v5 = vpack.c.bf16 %v6430_v42, %v6429_v52  ;;  %v7255_v38 = vpack.c.bf16 %v6432_v11, %v6431_v44 }
 0x8d5   :  { %7377 = vst [vmem:[#allocation11 + $0x28] sm:$0xff] %v7210_v63   ;;  %7378 = vst [vmem:[#allocation11 + $0x30] sm:$0xff] %v7215_v12   ;;  %v7260_v21 = vpack.c.bf16 %v6434_v7, %v6433_v17  ;;  %v7265_v51 = vpack.c.bf16 %v6436_v9, %v6435_v18  ;;  %v7270_v15 = vpack.c.bf16 %v6438_v0, %v6437_v30 }
 0x8d6   :  { %7379 = vst [vmem:[#allocation11 + $0x38] sm:$0xff] %v7220_v32   ;;  %7380 = vst [vmem:[#allocation11 + $0x40] sm:$0xff] %v7225_v27   ;;  %v7275_v49 = vpack.c.bf16 %v6440_v57, %v6439_v48  ;;  %v7280_v26 = vpack.c.bf16 %v6442_v61, %v6441_v62  ;;  %v7285_v16 = vpack.c.bf16 %v6444_v8, %v6443_v50 }
 0x8d7   :  { %7381 = vst [vmem:[#allocation11 + $0x48] sm:$0xff] %v7230_v35   ;;  %7382 = vst [vmem:[#allocation11 + $0x50] sm:$0xff] %v7235_v1   ;;  %v7290_v24 = vpack.c.bf16 %v6446_v53, %v6445_v28  ;;  %v7295_v54 = vpack.c.bf16 %v6448_v3, %v6447_v45  ;;  %v7300_v29 = vpack.c.bf16 %v6450_v33, %v6449_v13 }
 0x8d8   :  { %7383 = vst [vmem:[#allocation11 + $0x58] sm:$0xff] %v7240_v23   ;;  %7384 = vst [vmem:[#allocation11 + $0x60] sm:$0xff] %v7245_v55   ;;  %v7305_v20 = vpack.c.bf16 %v6452_v31, %v6451_v34  ;;  %v7310_v37 = vpack.c.bf16 %v6454_v59, %v6453_v43  ;;  %v7315_v2 = vpack.c.bf16 %v6456_v22, %v6455_v25 }
 0x8d9   :  { %7385 = vst [vmem:[#allocation11 + $0x68] sm:$0xff] %v7250_v5   ;;  %7386 = vst [vmem:[#allocation11 + $0x70] sm:$0xff] %v7255_v38   ;;  %v7320_v10 = vpack.c.bf16 %v6458_v19, %v6457_v60  ;;  %v7325_v6 = vpack.c.bf16 %v6460_v14, %v6459_v36  ;;  %v7330_v52 = vpack.c.bf16 %v6462_v46, %v6461_v47 }
 0x8da   :  { %7387 = vst [vmem:[#allocation11 + $0x78] sm:$0xff] %v7260_v21   ;;  %7388 = vst [vmem:[#allocation11 + $0x80] sm:$0xff] %v7265_v51   ;;  %v7340_v42 = vpack.c.bf16 %v6466_v4, %v6465_v39 }
 0x8db   :  { %7389 = vst [vmem:[#allocation11 + $0x88] sm:$0xff] %v7270_v15   ;;  %7390 = vst [vmem:[#allocation11 + $0x90] sm:$0xff] %v7275_v49  }
 0x8dc   :  { %7391 = vst [vmem:[#allocation11 + $0x98] sm:$0xff] %v7280_v26   ;;  %7392 = vst [vmem:[#allocation11 + $0xa0] sm:$0xff] %v7285_v16  }
 0x8dd   :  { %7393 = vst [vmem:[#allocation11 + $0xa8] sm:$0xff] %v7290_v24   ;;  %7394 = vst [vmem:[#allocation11 + $0xb0] sm:$0xff] %v7295_v54  }
 0x8de   :  { %7395 = vst [vmem:[#allocation11 + $0xb8] sm:$0xff] %v7300_v29   ;;  %7396 = vst [vmem:[#allocation11 + $0xc0] sm:$0xff] %v7305_v20  }
 0x8df   :  { %7397 = vst [vmem:[#allocation11 + $0xc8] sm:$0xff] %v7310_v37   ;;  %7398 = vst [vmem:[#allocation11 + $0xd0] sm:$0xff] %v7315_v2  }
 0x8e0   :  { %7399 = vst [vmem:[#allocation11 + $0xd8] sm:$0xff] %v7320_v10   ;;  %7400 = vst [vmem:[#allocation11 + $0xe0] sm:$0xff] %v7325_v6  }
 0x8e1   :  { %7401 = vst [vmem:[#allocation11 + $0xe8] sm:$0xff] %v7330_v52   ;;  %7403 = vst [vmem:[#allocation11 + $0xf8] sm:$0xff] %v7340_v42  }
 0x8e2   :  { %8369 = shalt.err (!%p8366_p8)
}
 0x8e3   :  { %s8370_s12 = scalar_lea.hbm %s13702_s10, 4096 }
 0x8e4   :  { %p8371_p9 = scmp.ne.s32.totalorder %s13702_s10, %s8370_s12  ;;  %p8374_p10 = scmp.lt.u32.totalorder %s8370_s12, %s13702_s10 }
 0x8e6   :  { %p8376_p11 = pnand %p8374_p10, %p8371_p9 }
 0x8e8   :  { %8379 = shalt.err (!%p8376_p11)
}
 0x8e9   :  { %6798 = dma.vmem_to_hbm [thread:$0]  %s6793_s30, 4096, %s13702_s10, [#allocation5], %s8390_s25, %s8390_s25, %s8391_s26  }
 0x8ea   :  { %8386 = dma.done.wait [#allocation5], 4096  }
 0x8eb   :  { %8387 = vsyncadd [#allocation5], 4294963200 }
 0x8ec   :  { %6802 = vsyncpa [#allocation4], 1 }
 0x8ed   :  { %6803 = vsyncpa [#allocation7], 1 }
 0x8ee   :  { %6804 = vsyncpa [#allocation10], 1 }
 0x8ef   :  { %6805 = vsyncpa [#allocation5], 1 }

</bundles_post_ra>
